<compile_context>
chip_gen: v5e
topology: v5e:2x2
jax: 0.10.0
libtpu: 0.0.40
codegen_flags: <defaults>
</compile_context>

<pallas_src>
import jax
import jax.numpy as jnp
from jax.experimental import pallas as pl
from jax.experimental.pallas import tpu as pltpu


# ---------------------------------------------------------------------------
# Kernel: one tile of graphs_per_tile molecules, three fused ChebConv+ReLU.
# ---------------------------------------------------------------------------
def fused_encoder_kernel(lhat_ref, x_ref, w1_ref, b1_ref, w2_ref, b2_ref,
                         w3_ref, b3_ref, o_ref):
    """PyG ChebConv(K=3,'sym',lambda_max=2) x3, ReLU after each layer.

    Per layer:
        T0 = x, T1 = L_hat @ x, T2 = 2 * L_hat @ T1 - T0
        out = relu(T0 @ W0 + T1 @ W1 + T2 @ W2 + b)
    L_hat is the per-tile block-diagonal scaled Laplacian (bf16); weights are
    bf16; all accumulation and the recurrence arithmetic are f32.
    """
    lhat = lhat_ref[...]                                    # (M, M) bf16

    def cheb_layer(x, w_ref, b_ref):
        # x: (M, F_in) f32
        t0 = x
        t1 = jnp.dot(lhat, t0.astype(jnp.bfloat16),
                     preferred_element_type=jnp.float32)
        t2 = 2.0 * jnp.dot(lhat, t1.astype(jnp.bfloat16),
                           preferred_element_type=jnp.float32) - t0
        # Three accumulated MXU passes; no (M, 3*F) concat buffer.
        acc = jnp.dot(t0.astype(w_ref.dtype), w_ref[0],
                      preferred_element_type=jnp.float32)
        acc += jnp.dot(t1.astype(w_ref.dtype), w_ref[1],
                       preferred_element_type=jnp.float32)
        acc += jnp.dot(t2.astype(w_ref.dtype), w_ref[2],
                       preferred_element_type=jnp.float32)
        return jnp.maximum(acc + b_ref[...], 0.0)            # bias+ReLU in f32

    h1 = cheb_layer(x_ref[...], w1_ref, b1_ref)              # (M, 128)
    h2 = cheb_layer(h1, w2_ref, b2_ref)                      # (M, 256)
    o_ref[...] = cheb_layer(h2, w3_ref, b3_ref).astype(o_ref.dtype)  # (M, 512)


# ---------------------------------------------------------------------------
# Wrapper
# ---------------------------------------------------------------------------
def spectral_molecule_encoder(lhat_bd, v, params):
    """Batched fused forward pass.

    lhat_bd: (num_tiles, M_tile, M_tile) bf16 block-diagonal scaled Laplacians
             (static topology: build once with build_block_diag_lhat).
    v:       (B, N, F_in) node features; graphs are packed row-wise into tiles
             in the same order used to build lhat_bd.
    params:  [(w, b)] * 3 from init_params; w is (3, F_in, F_out) bf16.
    Returns  (B, N, 512) f32.
    """
    (w1, b1), (w2, b2), (w3, b3) = params
    b, n, f_in = v.shape
    num_tiles, m_tile, _ = lhat_bd.shape
    rows = num_tiles * m_tile
    f_out = w3.shape[-1]

    # Pack node rows; pad only the trailing tile if B*N < rows (padded rows
    # hit zero Laplacian blocks, so real outputs are unaffected).
    x = v.reshape(b * n, f_in).astype(jnp.float32)
    if b * n < rows:
        x = jnp.pad(x, ((0, rows - b * n), (0, 0)))

    const3 = lambda i: (0, 0, 0)   # weights/biases resident across the grid
    const2 = lambda i: (0, 0)

    out = pl.pallas_call(
        fused_encoder_kernel,
        out_shape=jax.ShapeDtypeStruct((rows, f_out), jnp.float32),
        grid_spec=pltpu.PrefetchScalarGridSpec(
            num_scalar_prefetch=0,
            grid=(num_tiles,),
            in_specs=[
                pl.BlockSpec((None, m_tile, m_tile), lambda i: (i, 0, 0)),
                pl.BlockSpec((m_tile, f_in), lambda i: (i, 0)),
                pl.BlockSpec(w1.shape, const3), pl.BlockSpec(b1.shape, const2),
                pl.BlockSpec(w2.shape, const3), pl.BlockSpec(b2.shape, const2),
                pl.BlockSpec(w3.shape, const3), pl.BlockSpec(b3.shape, const2),
            ],
            out_specs=pl.BlockSpec((m_tile, f_out), lambda i: (i, 0)),
        ),
        compiler_params=pltpu.CompilerParams(
            dimension_semantics=("parallel",),       # megacore sharding on v7x
            vmem_limit_bytes=32 * 1024 * 1024,       # working set ~5 MiB/tile
        ),
    )(lhat_bd, x, w1, b1, w2, b2, w3, b3)

    return out[: b * n].reshape(b, n, f_out)


# ---------------------------------------------------------------------------
# Static-topology preprocessing (plain JAX, done once outside the jitted
# forward): per-molecule scaled Laplacian + per-tile block-diagonal assembly.
# ---------------------------------------------------------------------------
def scaled_laplacian(src, dst, num_nodes):
    """Dense scaled Laplacian exactly as PyG ChebConv.__norm__:
        L = I - D^{-1/2} A D^{-1/2};  L_hat = (2/lambda_max) * L - I
    with lambda_max = 2.0 (PyG default when not supplied).

    INVARIANT: (src, dst) must contain BOTH directions of every undirected
    molecular bond — degree is taken from src like PyG's get_laplacian, which
    only matches 'sym' normalization for undirected input."""
    ew = jnp.ones(src.shape[0], dtype=jnp.float32)
    adj = jnp.zeros((num_nodes, num_nodes), jnp.float32).at[src, dst].add(ew)
    deg = jnp.zeros((num_nodes,), jnp.float32).at[src].add(ew)
    dinv = jnp.where(deg > 0, jax.lax.rsqrt(jnp.maximum(deg, 1e-30)), 0.0)
    eye = jnp.eye(num_nodes, dtype=jnp.float32)
    lap = eye - dinv[:, None] * adj * dinv[None, :]
    lambda_max = 2.0
    return (2.0 / lambda_max) * lap - eye


def build_block_diag_lhat(lhat_per_graph, graphs_per_tile, dtype=jnp.bfloat16):
    """(B, N, N) per-molecule L_hat -> (num_tiles, G*N, G*N) block-diagonal
    bf16 tiles (pads the last tile with zero blocks). G*N should be 256 on
    v6e/v7x (16 molecules of 16 nodes) or 128 on v5e."""
    b, n, _ = lhat_per_graph.shape
    num_tiles = -(-b // graphs_per_tile)
    pad = num_tiles * graphs_per_tile - b
    lp = jnp.pad(lhat_per_graph, ((0, pad), (0, 0), (0, 0)))
    lp = lp.reshape(num_tiles, graphs_per_tile, n, n)
    eye_g = jnp.eye(graphs_per_tile, dtype=lp.dtype)
    bd = jnp.einsum('gh,tgij->tgihj', eye_g, lp)
    m = graphs_per_tile * n
    return bd.reshape(num_tiles, m, m).astype(dtype)


# ---------------------------------------------------------------------------
# Parameters (PyG ChebConv: per-order glorot weights, zero bias)
# ---------------------------------------------------------------------------
def glorot(key, shape):
    fan_in, fan_out = shape[-2], shape[-1]
    limit = jnp.sqrt(6.0 / (fan_in + fan_out))
    return jax.random.uniform(key, shape, jnp.float32, -limit, limit)


def init_params(key, in_features, weight_dtype=jnp.bfloat16):
    """ChebConv(in, out, K=3) params for the 3 layers: per layer a (3, F_in,
    F_out) weight stack (bf16, un-padded) and a (1, F_out) f32 zero bias."""
    dims = [(in_features, 128), (128, 256), (256, 512)]
    params = []
    for i, (fi, fo) in enumerate(dims):
        k = jax.random.fold_in(key, i)
        w = glorot(k, (3, fi, fo)).astype(weight_dtype)
        b = jnp.zeros((1, fo), jnp.float32)
        params.append((w, b))
    return params


# ---------------------------------------------------------------------------
# Pure-JAX f32 reference (PyG semantics) for validation
# ---------------------------------------------------------------------------
def reference_encoder(lhat, v, params):
    def layer(x, w, bias):
        w = w.astype(jnp.float32)
        t0 = x
        t1 = jnp.einsum('bij,bjf->bif', lhat, t0)
        t2 = 2.0 * jnp.einsum('bij,bjf->bif', lhat, t1) - t0
        h = (jnp.einsum('bnf,fo->bno', t0, w[0]) +
             jnp.einsum('bnf,fo->bno', t1, w[1]) +
             jnp.einsum('bnf,fo->bno', t2, w[2]) + bias)
        return jnp.maximum(h, 0.0)
    (w1, b1), (w2, b2), (w3, b3) = params
    h = layer(v.astype(jnp.float32), w1, b1)
    h = layer(h, w2, b2)
    return layer(h, w3, b3)


if __name__ == "__main__":
    key = jax.random.PRNGKey(0)
    n_nodes, in_features, n_edges = 16, 32, 24
    n_graphs = 32                 # small demo batch: 2 tiles of 16 graphs
    graphs_per_tile = 16          # 16 graphs * 16 nodes = 256-row MXU tiles

    k_feat, k_src, k_dst, k_par = jax.random.split(key, 4)
    v = jax.random.normal(k_feat, (n_graphs, n_nodes, in_features), jnp.float32)
    src = jax.random.randint(k_src, (n_graphs, n_edges), 0, n_nodes)
    dst = jax.random.randint(k_dst, (n_graphs, n_edges), 0, n_nodes)
    # Undirected molecular bonds: include both directions (required for 'sym'
    # normalization to match PyG -- see scaled_laplacian docstring).
    src_u = jnp.concatenate([src, dst], axis=1).astype(jnp.int32)
    dst_u = jnp.concatenate([dst, src], axis=1).astype(jnp.int32)

    params = init_params(k_par, in_features)

    # Static topology: per-molecule L_hat and the per-tile block-diagonal
    # operand are built once, outside the jitted forward.
    lhat = jax.vmap(lambda s, d: scaled_laplacian(s, d, n_nodes))(src_u, dst_u)
    lhat_bd = jax.block_until_ready(build_block_diag_lhat(lhat, graphs_per_tile))

    encoder = jax.jit(spectral_molecule_encoder)
    out = jax.block_until_ready(encoder(lhat_bd, v, params))
    assert out.shape == (n_graphs, n_nodes, 512) and out.dtype == jnp.float32
    assert bool(jnp.all(jnp.isfinite(out)))

    # Validate against the pure-f32 PyG-semantics reference (kernel uses bf16
    # MXU operands with f32 accumulation -> ~1% worst-case deviation).
    ref = reference_encoder(lhat, v, params)
    rel_err = float(jnp.max(jnp.abs(out - ref)) / (jnp.max(jnp.abs(ref)) + 1e-6))
    assert rel_err < 5e-2, f"mismatch vs f32 reference: rel_err={rel_err}"
    print("KERNEL_OK")
</pallas_src>

<mosaic_0001>
module attributes {stable_mosaic.version = 11 : i64} {
  func.func @fused_encoder_kernel(%arg0: i32, %arg1: memref<1x256x256xbf16, #tpu.memory_space<vmem>>, %arg2: memref<256x32xf32, #tpu.memory_space<vmem>>, %arg3: memref<3x32x128xbf16, #tpu.memory_space<vmem>>, %arg4: memref<1x128xf32, #tpu.memory_space<vmem>>, %arg5: memref<3x128x256xbf16, #tpu.memory_space<vmem>>, %arg6: memref<1x256xf32, #tpu.memory_space<vmem>>, %arg7: memref<3x256x512xbf16, #tpu.memory_space<vmem>>, %arg8: memref<1x512xf32, #tpu.memory_space<vmem>>, %arg9: memref<256x512xf32, #tpu.memory_space<vmem>>) attributes {dimension_semantics = [#tpu.dimension_semantics<parallel>], iteration_bounds = array<i64: 2>, scalar_prefetch = 0 : i64, scratch_operands = 0 : i64, tpu.core_type = #tpu.core_type<tc>, window_params = [{transform_indices = @transform_0, window_bounds = array<i64: 1, 256, 256>}, {transform_indices = @transform_1, window_bounds = array<i64: 256, 32>}, {pipeline_mode = #tpu.pipeline_mode<synchronous>, transform_indices = @transform_2, window_bounds = array<i64: 3, 32, 128>}, {pipeline_mode = #tpu.pipeline_mode<synchronous>, transform_indices = @transform_3, window_bounds = array<i64: 1, 128>}, {pipeline_mode = #tpu.pipeline_mode<synchronous>, transform_indices = @transform_4, window_bounds = array<i64: 3, 128, 256>}, {pipeline_mode = #tpu.pipeline_mode<synchronous>, transform_indices = @transform_5, window_bounds = array<i64: 1, 256>}, {pipeline_mode = #tpu.pipeline_mode<synchronous>, transform_indices = @transform_6, window_bounds = array<i64: 3, 256, 512>}, {pipeline_mode = #tpu.pipeline_mode<synchronous>, transform_indices = @transform_7, window_bounds = array<i64: 1, 512>}, {transform_indices = @transform_8, window_bounds = array<i64: 256, 512>}]} {
    %c0 = arith.constant 0 : index
    %c0_0 = arith.constant 0 : index
    %c0_1 = arith.constant 0 : index
    %0 = vector.load %arg1[%c0, %c0_0, %c0_1] : memref<1x256x256xbf16, #tpu.memory_space<vmem>>, vector<1x256x256xbf16>
    %1 = vector.shape_cast %0 : vector<1x256x256xbf16> to vector<256x256xbf16>
    %c0_2 = arith.constant 0 : index
    %c0_3 = arith.constant 0 : index
    %2 = vector.load %arg2[%c0_2, %c0_3] : memref<256x32xf32, #tpu.memory_space<vmem>>, vector<256x32xf32>
    %3 = arith.truncf %2 : vector<256x32xf32> to vector<256x32xbf16>
    %cst = arith.constant dense<0.000000e+00> : vector<256x32xf32>
    %4 = tpu.matmul %1, %3, %cst {dimension_numbers = #tpu.dot_dimension_numbers<[1], [0], [0], [1], [0, 0, 1, 1], [], []>} : vector<256x256xbf16>, vector<256x32xbf16>, vector<256x32xf32> -> vector<256x32xf32>
    %5 = arith.truncf %4 : vector<256x32xf32> to vector<256x32xbf16>
    %cst_4 = arith.constant dense<0.000000e+00> : vector<256x32xf32>
    %6 = tpu.matmul %1, %5, %cst_4 {dimension_numbers = #tpu.dot_dimension_numbers<[1], [0], [0], [1], [0, 0, 1, 1], [], []>} : vector<256x256xbf16>, vector<256x32xbf16>, vector<256x32xf32> -> vector<256x32xf32>
    %cst_5 = arith.constant 2.000000e+00 : f32
    %7 = vector.broadcast %cst_5 : f32 to vector<256x32xf32>
    %8 = arith.mulf %7, %6 : vector<256x32xf32>
    %9 = arith.subf %8, %2 : vector<256x32xf32>
    %10 = arith.truncf %2 : vector<256x32xf32> to vector<256x32xbf16>
    %c0_6 = arith.constant 0 : index
    %c0_7 = arith.constant 0 : index
    %c0_8 = arith.constant 0 : index
    %11 = vector.load %arg3[%c0_6, %c0_7, %c0_8] : memref<3x32x128xbf16, #tpu.memory_space<vmem>>, vector<1x32x128xbf16>
    %12 = vector.shape_cast %11 : vector<1x32x128xbf16> to vector<32x128xbf16>
    %cst_9 = arith.constant dense<0.000000e+00> : vector<256x128xf32>
    %13 = tpu.matmul %10, %12, %cst_9 {dimension_numbers = #tpu.dot_dimension_numbers<[1], [0], [0], [1], [0, 0, 1, 1], [], []>} : vector<256x32xbf16>, vector<32x128xbf16>, vector<256x128xf32> -> vector<256x128xf32>
    %14 = arith.truncf %4 : vector<256x32xf32> to vector<256x32xbf16>
    %c1 = arith.constant 1 : index
    %c0_10 = arith.constant 0 : index
    %c0_11 = arith.constant 0 : index
    %15 = vector.load %arg3[%c1, %c0_10, %c0_11] : memref<3x32x128xbf16, #tpu.memory_space<vmem>>, vector<1x32x128xbf16>
    %16 = vector.shape_cast %15 : vector<1x32x128xbf16> to vector<32x128xbf16>
    %cst_12 = arith.constant dense<0.000000e+00> : vector<256x128xf32>
    %17 = tpu.matmul %14, %16, %cst_12 {dimension_numbers = #tpu.dot_dimension_numbers<[1], [0], [0], [1], [0, 0, 1, 1], [], []>} : vector<256x32xbf16>, vector<32x128xbf16>, vector<256x128xf32> -> vector<256x128xf32>
    %18 = arith.addf %13, %17 : vector<256x128xf32>
    %19 = arith.truncf %9 : vector<256x32xf32> to vector<256x32xbf16>
    %c2 = arith.constant 2 : index
    %c0_13 = arith.constant 0 : index
    %c0_14 = arith.constant 0 : index
    %20 = vector.load %arg3[%c2, %c0_13, %c0_14] : memref<3x32x128xbf16, #tpu.memory_space<vmem>>, vector<1x32x128xbf16>
    %21 = vector.shape_cast %20 : vector<1x32x128xbf16> to vector<32x128xbf16>
    %cst_15 = arith.constant dense<0.000000e+00> : vector<256x128xf32>
    %22 = tpu.matmul %19, %21, %cst_15 {dimension_numbers = #tpu.dot_dimension_numbers<[1], [0], [0], [1], [0, 0, 1, 1], [], []>} : vector<256x32xbf16>, vector<32x128xbf16>, vector<256x128xf32> -> vector<256x128xf32>
    %23 = arith.addf %18, %22 : vector<256x128xf32>
    %c0_16 = arith.constant 0 : index
    %c0_17 = arith.constant 0 : index
    %24 = vector.load %arg4[%c0_16, %c0_17] : memref<1x128xf32, #tpu.memory_space<vmem>>, vector<1x128xf32>
    %25 = vector.broadcast %24 : vector<1x128xf32> to vector<256x128xf32>
    %26 = arith.addf %23, %25 : vector<256x128xf32>
    %cst_18 = arith.constant 0.000000e+00 : f32
    %27 = vector.broadcast %cst_18 : f32 to vector<256x128xf32>
    %28 = arith.maximumf %26, %27 : vector<256x128xf32>
    %29 = arith.truncf %28 : vector<256x128xf32> to vector<256x128xbf16>
    %cst_19 = arith.constant dense<0.000000e+00> : vector<256x128xf32>
    %30 = tpu.matmul %1, %29, %cst_19 {dimension_numbers = #tpu.dot_dimension_numbers<[1], [0], [0], [1], [0, 0, 1, 1], [], []>} : vector<256x256xbf16>, vector<256x128xbf16>, vector<256x128xf32> -> vector<256x128xf32>
    %31 = arith.truncf %30 : vector<256x128xf32> to vector<256x128xbf16>
    %cst_20 = arith.constant dense<0.000000e+00> : vector<256x128xf32>
    %32 = tpu.matmul %1, %31, %cst_20 {dimension_numbers = #tpu.dot_dimension_numbers<[1], [0], [0], [1], [0, 0, 1, 1], [], []>} : vector<256x256xbf16>, vector<256x128xbf16>, vector<256x128xf32> -> vector<256x128xf32>
    %cst_21 = arith.constant 2.000000e+00 : f32
    %33 = vector.broadcast %cst_21 : f32 to vector<256x128xf32>
    %34 = arith.mulf %33, %32 : vector<256x128xf32>
    %35 = arith.subf %34, %28 : vector<256x128xf32>
    %36 = arith.truncf %28 : vector<256x128xf32> to vector<256x128xbf16>
    %c0_22 = arith.constant 0 : index
    %c0_23 = arith.constant 0 : index
    %c0_24 = arith.constant 0 : index
    %37 = vector.load %arg5[%c0_22, %c0_23, %c0_24] : memref<3x128x256xbf16, #tpu.memory_space<vmem>>, vector<1x128x256xbf16>
    %38 = vector.shape_cast %37 : vector<1x128x256xbf16> to vector<128x256xbf16>
    %cst_25 = arith.constant dense<0.000000e+00> : vector<256x256xf32>
    %39 = tpu.matmul %36, %38, %cst_25 {dimension_numbers = #tpu.dot_dimension_numbers<[1], [0], [0], [1], [0, 0, 1, 1], [], []>} : vector<256x128xbf16>, vector<128x256xbf16>, vector<256x256xf32> -> vector<256x256xf32>
    %40 = arith.truncf %30 : vector<256x128xf32> to vector<256x128xbf16>
    %c1_26 = arith.constant 1 : index
    %c0_27 = arith.constant 0 : index
    %c0_28 = arith.constant 0 : index
    %41 = vector.load %arg5[%c1_26, %c0_27, %c0_28] : memref<3x128x256xbf16, #tpu.memory_space<vmem>>, vector<1x128x256xbf16>
    %42 = vector.shape_cast %41 : vector<1x128x256xbf16> to vector<128x256xbf16>
    %cst_29 = arith.constant dense<0.000000e+00> : vector<256x256xf32>
    %43 = tpu.matmul %40, %42, %cst_29 {dimension_numbers = #tpu.dot_dimension_numbers<[1], [0], [0], [1], [0, 0, 1, 1], [], []>} : vector<256x128xbf16>, vector<128x256xbf16>, vector<256x256xf32> -> vector<256x256xf32>
    %44 = arith.addf %39, %43 : vector<256x256xf32>
    %45 = arith.truncf %35 : vector<256x128xf32> to vector<256x128xbf16>
    %c2_30 = arith.constant 2 : index
    %c0_31 = arith.constant 0 : index
    %c0_32 = arith.constant 0 : index
    %46 = vector.load %arg5[%c2_30, %c0_31, %c0_32] : memref<3x128x256xbf16, #tpu.memory_space<vmem>>, vector<1x128x256xbf16>
    %47 = vector.shape_cast %46 : vector<1x128x256xbf16> to vector<128x256xbf16>
    %cst_33 = arith.constant dense<0.000000e+00> : vector<256x256xf32>
    %48 = tpu.matmul %45, %47, %cst_33 {dimension_numbers = #tpu.dot_dimension_numbers<[1], [0], [0], [1], [0, 0, 1, 1], [], []>} : vector<256x128xbf16>, vector<128x256xbf16>, vector<256x256xf32> -> vector<256x256xf32>
    %49 = arith.addf %44, %48 : vector<256x256xf32>
    %c0_34 = arith.constant 0 : index
    %c0_35 = arith.constant 0 : index
    %50 = vector.load %arg6[%c0_34, %c0_35] : memref<1x256xf32, #tpu.memory_space<vmem>>, vector<1x256xf32>
    %51 = vector.broadcast %50 : vector<1x256xf32> to vector<256x256xf32>
    %52 = arith.addf %49, %51 : vector<256x256xf32>
    %cst_36 = arith.constant 0.000000e+00 : f32
    %53 = vector.broadcast %cst_36 : f32 to vector<256x256xf32>
    %54 = arith.maximumf %52, %53 : vector<256x256xf32>
    %55 = arith.truncf %54 : vector<256x256xf32> to vector<256x256xbf16>
    %cst_37 = arith.constant dense<0.000000e+00> : vector<256x256xf32>
    %56 = tpu.matmul %1, %55, %cst_37 {dimension_numbers = #tpu.dot_dimension_numbers<[1], [0], [0], [1], [0, 0, 1, 1], [], []>} : vector<256x256xbf16>, vector<256x256xbf16>, vector<256x256xf32> -> vector<256x256xf32>
    %57 = arith.truncf %56 : vector<256x256xf32> to vector<256x256xbf16>
    %cst_38 = arith.constant dense<0.000000e+00> : vector<256x256xf32>
    %58 = tpu.matmul %1, %57, %cst_38 {dimension_numbers = #tpu.dot_dimension_numbers<[1], [0], [0], [1], [0, 0, 1, 1], [], []>} : vector<256x256xbf16>, vector<256x256xbf16>, vector<256x256xf32> -> vector<256x256xf32>
    %cst_39 = arith.constant 2.000000e+00 : f32
    %59 = vector.broadcast %cst_39 : f32 to vector<256x256xf32>
    %60 = arith.mulf %59, %58 : vector<256x256xf32>
    %61 = arith.subf %60, %54 : vector<256x256xf32>
    %62 = arith.truncf %54 : vector<256x256xf32> to vector<256x256xbf16>
    %c0_40 = arith.constant 0 : index
    %c0_41 = arith.constant 0 : index
    %c0_42 = arith.constant 0 : index
    %63 = vector.load %arg7[%c0_40, %c0_41, %c0_42] : memref<3x256x512xbf16, #tpu.memory_space<vmem>>, vector<1x256x512xbf16>
    %64 = vector.shape_cast %63 : vector<1x256x512xbf16> to vector<256x512xbf16>
    %cst_43 = arith.constant dense<0.000000e+00> : vector<256x512xf32>
    %65 = tpu.matmul %62, %64, %cst_43 {dimension_numbers = #tpu.dot_dimension_numbers<[1], [0], [0], [1], [0, 0, 1, 1], [], []>} : vector<256x256xbf16>, vector<256x512xbf16>, vector<256x512xf32> -> vector<256x512xf32>
    %66 = arith.truncf %56 : vector<256x256xf32> to vector<256x256xbf16>
    %c1_44 = arith.constant 1 : index
    %c0_45 = arith.constant 0 : index
    %c0_46 = arith.constant 0 : index
    %67 = vector.load %arg7[%c1_44, %c0_45, %c0_46] : memref<3x256x512xbf16, #tpu.memory_space<vmem>>, vector<1x256x512xbf16>
    %68 = vector.shape_cast %67 : vector<1x256x512xbf16> to vector<256x512xbf16>
    %cst_47 = arith.constant dense<0.000000e+00> : vector<256x512xf32>
    %69 = tpu.matmul %66, %68, %cst_47 {dimension_numbers = #tpu.dot_dimension_numbers<[1], [0], [0], [1], [0, 0, 1, 1], [], []>} : vector<256x256xbf16>, vector<256x512xbf16>, vector<256x512xf32> -> vector<256x512xf32>
    %70 = arith.addf %65, %69 : vector<256x512xf32>
    %71 = arith.truncf %61 : vector<256x256xf32> to vector<256x256xbf16>
    %c2_48 = arith.constant 2 : index
    %c0_49 = arith.constant 0 : index
    %c0_50 = arith.constant 0 : index
    %72 = vector.load %arg7[%c2_48, %c0_49, %c0_50] : memref<3x256x512xbf16, #tpu.memory_space<vmem>>, vector<1x256x512xbf16>
    %73 = vector.shape_cast %72 : vector<1x256x512xbf16> to vector<256x512xbf16>
    %cst_51 = arith.constant dense<0.000000e+00> : vector<256x512xf32>
    %74 = tpu.matmul %71, %73, %cst_51 {dimension_numbers = #tpu.dot_dimension_numbers<[1], [0], [0], [1], [0, 0, 1, 1], [], []>} : vector<256x256xbf16>, vector<256x512xbf16>, vector<256x512xf32> -> vector<256x512xf32>
    %75 = arith.addf %70, %74 : vector<256x512xf32>
    %c0_52 = arith.constant 0 : index
    %c0_53 = arith.constant 0 : index
    %76 = vector.load %arg8[%c0_52, %c0_53] : memref<1x512xf32, #tpu.memory_space<vmem>>, vector<1x512xf32>
    %77 = vector.broadcast %76 : vector<1x512xf32> to vector<256x512xf32>
    %78 = arith.addf %75, %77 : vector<256x512xf32>
    %cst_54 = arith.constant 0.000000e+00 : f32
    %79 = vector.broadcast %cst_54 : f32 to vector<256x512xf32>
    %80 = arith.maximumf %78, %79 : vector<256x512xf32>
    %c0_55 = arith.constant 0 : index
    %c0_56 = arith.constant 0 : index
    %81 = vector.load %arg9[%c0_55, %c0_56] : memref<256x512xf32, #tpu.memory_space<vmem>>, vector<256x512xf32>
    tpu.vector_store %arg9[%c0_55, %c0_56], %80 {strides = array<i32>} : memref<256x512xf32, #tpu.memory_space<vmem>>, vector<256x512xf32>,
    return
  }
  func.func @transform_0(%arg0: i32) -> (i32, i32, i32) {
    %c0_i32 = arith.constant 0 : i32
    %c0_i32_0 = arith.constant 0 : i32
    %c0_i32_1 = arith.constant 0 : i32
    return %arg0, %c0_i32, %c0_i32_0 : i32, i32, i32
  }
  func.func @transform_1(%arg0: i32) -> (i32, i32) {
    %c0_i32 = arith.constant 0 : i32
    %c0_i32_0 = arith.constant 0 : i32
    return %arg0, %c0_i32 : i32, i32
  }
  func.func @transform_2(%arg0: i32) -> (i32, i32, i32) {
    %c0_i32 = arith.constant 0 : i32
    %c0_i32_0 = arith.constant 0 : i32
    %c0_i32_1 = arith.constant 0 : i32
    %c0_i32_2 = arith.constant 0 : i32
    return %c0_i32, %c0_i32_0, %c0_i32_1 : i32, i32, i32
  }
  func.func @transform_3(%arg0: i32) -> (i32, i32) {
    %c0_i32 = arith.constant 0 : i32
    %c0_i32_0 = arith.constant 0 : i32
    %c0_i32_1 = arith.constant 0 : i32
    return %c0_i32, %c0_i32_0 : i32, i32
  }
  func.func @transform_4(%arg0: i32) -> (i32, i32, i32) {
    %c0_i32 = arith.constant 0 : i32
    %c0_i32_0 = arith.constant 0 : i32
    %c0_i32_1 = arith.constant 0 : i32
    %c0_i32_2 = arith.constant 0 : i32
    return %c0_i32, %c0_i32_0, %c0_i32_1 : i32, i32, i32
  }
  func.func @transform_5(%arg0: i32) -> (i32, i32) {
    %c0_i32 = arith.constant 0 : i32
    %c0_i32_0 = arith.constant 0 : i32
    %c0_i32_1 = arith.constant 0 : i32
    return %c0_i32, %c0_i32_0 : i32, i32
  }
  func.func @transform_6(%arg0: i32) -> (i32, i32, i32) {
    %c0_i32 = arith.constant 0 : i32
    %c0_i32_0 = arith.constant 0 : i32
    %c0_i32_1 = arith.constant 0 : i32
    %c0_i32_2 = arith.constant 0 : i32
    return %c0_i32, %c0_i32_0, %c0_i32_1 : i32, i32, i32
  }
  func.func @transform_7(%arg0: i32) -> (i32, i32) {
    %c0_i32 = arith.constant 0 : i32
    %c0_i32_0 = arith.constant 0 : i32
    %c0_i32_1 = arith.constant 0 : i32
    return %c0_i32, %c0_i32_0 : i32, i32
  }
  func.func @transform_8(%arg0: i32) -> (i32, i32) {
    %c0_i32 = arith.constant 0 : i32
    %c0_i32_0 = arith.constant 0 : i32
    return %arg0, %c0_i32 : i32, i32
  }
}

</mosaic_0001>

<bundles_post_ra>
// kernel: spectral_molecule_encoder.1
= control target key start
LH: loop header
LB: loop body
LE: loop exit
PB: predicated region body
PF: predicated region fallthrough
CT: control target
= control target key end

     0   :  { %s15626_s0 = inlined_call_operand.hbm [shape: bf16[2,256,256], index: 0, kind: input, shape index: {}]   ;;  %s15627_s1 = inlined_call_operand.hbm [shape: f32[512,32], index: 1, kind: input, shape index: {}]   ;;  %s15628_s2 = inlined_call_operand.hbm [shape: bf16[3,32,128], index: 2, kind: input, shape index: {}]   ;;  %s15629_s3 = inlined_call_operand.vmem [shape: f32[1,128], index: 3, kind: input, shape index: {}]   ;;  %s15630_s4 = inlined_call_operand.hbm [shape: bf16[3,128,256], index: 4, kind: input, shape index: {}]   ;;  %s15631_s5 = inlined_call_operand.vmem [shape: f32[1,256], index: 5, kind: input, shape index: {}]   ;;  %s15632_s6 = inlined_call_operand.hbm [shape: bf16[3,256,512], index: 6, kind: input, shape index: {}]   ;;  %s15633_s7 = inlined_call_operand.vmem [shape: f32[1,512], index: 7, kind: input, shape index: {}]   ;;  %s15634_s8 = inlined_call_operand.hbm [shape: f32[512,512], index: 8, kind: output, shape index: {}]  }
   0x1   :  { %16166 = sst [smem:[#allocation269_spill]] %s15626_s0 }
   0x2   :  { %16167 = sst [smem:[#allocation270_spill]] %s15628_s2 }
   0x3   :  { %16168 = sst [smem:[#allocation271_spill]] %s15630_s4 }
   0x4   :  { %16169 = sst [smem:[#allocation272_spill]] %s15632_s6 }
   0x5   :  { %13 = vsyncpa [#allocation3], 0 }
   0x6   :  { %15 = vsyncpa [#allocation3 + $0x1], 0 }
   0x7   :  { %16 = vsyncpa [#allocation6], 0 }
   0x8   :  { %18 = vsyncpa [#allocation6 + $0x1], 0 }
   0x9   :  { %19 = vsyncpa [#allocation9], 0 }
   0xa   :  { %20 = vsyncpa [#allocation4], 0 }
   0xb   :  { %22 = vsyncpa [#allocation4 + $0x1], 0  ;;  %s9944_s27 = smov 0   ;;  %s9946_s28 = smov 0  }
   0xc   :  { %s9948_s29 = smov 0   ;;  %s9950_s30 = smov 0  }
   0xd LB: > { %16170 = sst [smem:[#allocation17_spill]] %s9882_s29  ;;  %s9965_s9 = sadd.s32 4294967295, %s9886_s30   ;;  %s9886_s30 = sphi %s9950_s30, %s17783_s30   ;;  %s9882_s29 = sphi %s9948_s29, %s17780_s29   ;;  %s9878_s28 = sphi %s9946_s28, %s17782_s28   ;;  %s9874_s27 = sphi %s9944_s27, %s17781_s27  }
   0xe   : > { %s8053_s10 = sadd.s32 4294967294, %s9886_s30   ;;  %p48_p0 = scmp.ne.s32.totalorder %s9878_s28, %s9874_s27 }
   0xf   : > { %p49_p1 = scmp.eq.s32.totalorder %s9965_s9, 0  ;;  %p224_p2 = scmp.eq.s32.totalorder %s9965_s9, 1 }
  0x10   : > { %p230_p3 = scmp.eq.s32.totalorder %s8053_s10, 1  ;;  %p8054_p5 = scmp.ge.s32.totalorder %s9886_s30, 1 }
  0x11   : > { %p9974_p4 = por %p49_p1, %p48_p0  ;;  %p237_p7 = scmp.lt.s32.totalorder %s9886_s30, 3 }
  0x12   : > { %p9979_p6 = por %p230_p3, %p48_p0  ;;  %s16173_s2 = sld [smem:[#allocation270_spill]] }
  0x13   : > { %p9987_p8 = pnand %p8054_p5, %p237_p7  ;;  %s9888_s17 = smov [#allocation7]  }
  0x14   : > { %s250_s18 = sshll.u32 %s9888_s17, 4  ;;  %s16176_s4 = sld [smem:[#allocation271_spill]]  ;;  %s251_s18 = int_to_ptr.vmem [resolvable:$true] %s250_s18 }
  0x15   : > { %p9562_p9 = pneg %p9987_p8  ;;  %s9889_s23 = smov 64  }
  0x16   : > { %s9890_s24 = smov 4   ;;  %s9891_s25 = smov [#allocation8]  }
  0x17   : > { %p9995_p10 = pnand %p9562_p9, %p49_p1  ;;  %s267_s26 = sshll.u32 %s9891_s25, 4  ;;  %s268_s26 = int_to_ptr.vmem [resolvable:$true] %s267_s26 }
  0x18   : > { %s248_s15 = sshll.u32 %s16173_s2, 4  ;;  %s15635_s10 = smov 128   ;;  %s249_s15 = int_to_ptr.hbm [resolvable:$true] %s248_s15 }
  0x19   : > { %9565 = dma.hbm_to_vmem [thread:$0]  (!%p9995_p10), %s249_s15, 768, %s251_s18, [#allocation6], %s9889_s23, %s9889_s23, %s9890_s24  }
  0x1a   : > { %s265_s22 = sshll.u32 %s16176_s4, 4  ;;  %s15637_s13 = smov 8   ;;  %s266_s22 = int_to_ptr.hbm [resolvable:$true] %s265_s22 }
  0x1b   : > { %9568 = dma.hbm_to_vmem [thread:$0]  (!%p9995_p10), %s266_s22, 6144, %s268_s26, [#allocation9], %s15635_s10, %s15635_s10, %s15637_s13  }
  0x1c   : > { %s16177_s6 = sld [smem:[#allocation272_spill]]  ;;  %s9894_s18 = smov [#allocation10]  }
  0x1d   : > { %s284_s20 = sshll.u32 %s9894_s18, 4  ;;  %s9895_s21 = smov 256   ;;  %s285_s20 = int_to_ptr.vmem [resolvable:$true] %s284_s20 }
  0x1e   : > { %s9896_s23 = smov 16   ;;  %s10016_s24 = sadd.s32 1, %s9886_s30  }
  0x1f   : > { %s32_s22 = ssub.s32 %s9886_s30, %s10016_s24  ;;  %s35_s25 = sadd.s32 1, %s9882_s29 }
  0x20   : > { %p33_p12 = scmp.eq.s32.totalorder %s32_s22, 0  ;;  %p42_p13 = scmp.ne.s32.totalorder %s9882_s29, %s9878_s28 }
  0x21   : > { %p43_p0 = scmp.eq.s32.totalorder %s9886_s30, 0  ;;  %p9586_p3 = scmp.lt.s32.totalorder %s9886_s30, 2 }
  0x22   : > { %s282_s15 = sshll.u32 %s16177_s6, 4  ;;  %p10030_p7 = por %p224_p2, %p42_p13  ;;  %s283_s15 = int_to_ptr.hbm [resolvable:$true] %s282_s15 }
  0x23   : > { %9571 = dma.hbm_to_vmem [thread:$0]  (!%p9995_p10), %s283_s15, 24576, %s285_s20, [#allocation9], %s9895_s21, %s9895_s21, %s9896_s23  }
  0x24   : > { %s10026_s26 = scalar_select %p33_p12, %s9882_s29, %s35_s25  }
  0x25   : > { %p44_p5 = por %p43_p0, %p42_p13  ;;  %s301_s19 = sand.u32 1, %s9882_s29  }
  0x26   : > { %16178 = sst [smem:[#allocation18_spill]] %s10026_s26  ;;  %s9238_s17 = sshll.u32 %s9886_s30, 8 }
  0x27   : > { %s8059_s15 = sshll.u32 %s301_s19, 8  ;;  %s16180_s0 = sld [smem:[#allocation269_spill]] }
  0x28   : > { %s305_s22 = scalar_lea.vmem [#allocation2], %s8059_s15  ;;  %p10041_p9 = pnand %p9586_p3, %p44_p5 }
  0x29   : > { %s313_s10 = sshll.u32 %s305_s22, 4  ;;  %s332_s4 = scalar_lea.hbm %s15627_s1, %s9238_s17  ;;  %s314_s10 = int_to_ptr.vmem [resolvable:$true] %s313_s10 }
  0x2a   : > { %s327_s6 = scalar_lea.vmem [#allocation5], %s8059_s15  ;;  %s333_s18 = sshll.u32 %s332_s4, 4  ;;  %s334_s18 = int_to_ptr.hbm [resolvable:$true] %s333_s18 }
  0x2b   : > { %s10048_s26 = sshll.u32 %s327_s6, 4  ;;  %s302_s20 = scalar_lea.sflag [#allocation3], %s301_s19  ;;  %s336_s26 = int_to_ptr.vmem [resolvable:$true] %s10048_s26 }
  0x2c   : > { %p9752_p10 = pneg %p10041_p9 }
  0x2d   : > { %s310_s21 = scalar_lea.hbm %s16180_s0, %s9238_s17  ;;  %s9755_s13 = scalar_lea.hbm %s16180_s0, 512 }
  0x2e   : > { %s311_s23 = sshll.u32 %s310_s21, 4  ;;  %s312_s23 = int_to_ptr.hbm [resolvable:$true] %s311_s23 }
  0x2f   : > { %s9748_s21 = sshra.s32 %s312_s23, 4  ;;  %s9749_s21 = int_to_ptr.hbm [resolvable:$true] %s9748_s21 }
  0x30   : > { %s9750_s22 = scalar_lea.hbm %s9749_s21, 256  ;;  %p9756_p0 = scmp.lt.s32.totalorder %s9749_s21, %s16180_s0 }
  0x31   : > { %p9751_p2 = scmp.ne.s32.totalorder %s9749_s21, %s9750_s22  ;;  %p9757_p3 = scmp.lt.s32.totalorder %s9755_s13, %s9750_s22 }
  0x33   : > { %p9753_p12 = pnand %p9752_p10, %p9751_p2  ;;  %p9758_p5 = por %p9757_p3, %p9756_p0 }
  0x35   : > { %p9754_p13 = pneg %p9753_p12 }
  0x37   : > { %p9759_p11 = pnand %p9758_p5, %p9754_p13 }
  0x39   : > { %9762 = shalt.err (!%p9759_p11)
}
  0x3a   : > { %s16182_s4 = smov 8   ;;  %s16183_s6 = smov 128  }
  0x3b   : > { %9575 = dma.hbm_to_vmem [thread:$0]  (!%p10041_p9), %s312_s23, 4096, %s314_s10, %s302_s20, %s16183_s6, %s16183_s6, %s16182_s4  }
  0x3c   : > { %s323_s29 = sand.u32 1, %s9886_s30   ;;  %s9778_s2 = sshra.s32 %s334_s18, 4  ;;  %s9779_s2 = int_to_ptr.hbm [resolvable:$true] %s9778_s2 }
  0x3d   : > { %s324_s19 = scalar_lea.sflag [#allocation6], %s323_s29  ;;  %s9780_s21 = scalar_lea.hbm %s9779_s2, 256 }
  0x3e   : > { %p9781_p2 = scmp.ne.s32.totalorder %s9779_s2, %s9780_s21  ;;  %s9785_s17 = scalar_lea.hbm %s15627_s1, 512 }
  0x3f   : > { %p9786_p13 = scmp.lt.s32.totalorder %s9779_s2, %s15627_s1  ;;  %p9787_p0 = scmp.lt.s32.totalorder %s9785_s17, %s9780_s21 }
  0x40   : > { %p9783_p11 = pnand %p9781_p2, %p9752_p10 }
  0x41   : > { %p9788_p3 = por %p9787_p0, %p9786_p13 }
  0x42   : > { %p9784_p12 = pneg %p9783_p11 }
  0x44   : > { %p9789_p5 = pnand %p9788_p3, %p9784_p12 }
  0x46   : > { %9792 = shalt.err (!%p9789_p5)
}
  0x47   : > { %9578 = dma.hbm_to_vmem [thread:$0]  (!%p10041_p9), %s334_s18, 4096, %s336_s26, %s324_s19, %s16183_s6, %s16183_s6, %s16182_s4  }
  0x48   : > { %347 = sbr.rel (%p9987_p8) target bundleno = 4579 (0x11e3), region = 52 }
  0x4d   : > { %s10085_s10 = sand.u32 1, %s9878_s28  }
  0x4e   : > { %s8066_s0 = sshll.u32 %s10085_s10, 8  ;;  %s350_s23 = scalar_lea.sflag [#allocation3], %s10085_s10 }
  0x4f   : > { %s10089_s20 = scalar_lea.vmem [#allocation2], %s8066_s0 }
  0x50   : > { %9853 = dma.done.wait (%p9974_p4), %s350_s23, 4096  }
  0x51   : > { %9855 = vsyncadd (%p9974_p4), %s350_s23, 4294963200  ;;  %s359_s26 = sand.u32 1, %s9965_s9   ;;  %s10096_s25 = scalar_lea.vmem [#allocation5], %s8066_s0 }
  0x52   : > { %s360_s16 = scalar_lea.sflag [#allocation6], %s359_s26 }
  0x53   : > { %9857 = dma.done.wait (%p9974_p4), %s360_s16, 4096  }
  0x54   : > { %9859 = vsyncadd (%p9974_p4), %s360_s16, 4294963200 }
  0x55   : > { %9861 = dma.done.wait (%p49_p1), [#allocation6], 768  }
  0x56   : > { %9863 = vsyncadd (%p49_p1), [#allocation6], 4294966528 }
  0x57   : > { %9865 = dma.done.wait (%p49_p1), [#allocation9], 30720  }
  0x58   : > { %9867 = vsyncadd (%p49_p1), [#allocation9], 4294936576  ;;  %v466_v0 = vld [vmem:[%s10096_s25 + $0x70] sm:$0xff]  ;;  %v467_v1 = vld [vmem:[%s10096_s25 + $0x78] sm:$0xff]  ;;  %vm1117_vm0 = vcmask 261120   ;;  %s8071_s2 = sshll.u32 %s10085_s10, 10 }
  0x59   : > { %v464_v2 = vld [vmem:[%s10096_s25 + $0x60] sm:$0xff]  ;;  %v10113_v3 = vpack.c.bf16 %v467_v1, %v466_v0  ;;  %v465_v4 = vld [vmem:[%s10096_s25 + $0x68] sm:$0xff]  ;;  %v462_v6 = vld [vmem:[%s10096_s25 + $0x50] sm:$0xff]  ;;  %s14836_s21 = scalar_lea.vmem [#allocation11], %s8071_s2  ;;  %s9519_s17 = sshll.u32 %s9965_s9, 10 }
  0x5a   : > { %v10117_v5 = vpack.c.bf16 %v465_v4, %v464_v2  ;;  %v463_v7 = vld [vmem:[%s10096_s25 + $0x58] sm:$0xff]  ;;  %v460_v9 = vld [vmem:[%s10096_s25 + $0x40] sm:$0xff]  ;;  %v461_v10 = vld [vmem:[%s10096_s25 + $0x48] sm:$0xff]  ;;  %s7925_s23 = scalar_lea.hbm %s15634_s8, %s9519_s17  ;;  %s7913_s9 = scalar_lea.sflag [#allocation4], %s10085_s10 }
  0x5b   : > { %9520 = vmatpush.bf16.msra.mxu1 %v10113_v3  ;;  %660 = vmatpush.bf16.msra.mxu0 %v10113_v3  ;;  %v10125_v8 = vpack.c.bf16 %v463_v7, %v462_v6  ;;  %v10133_v11 = vpack.c.bf16 %v461_v10, %v460_v9  ;;  %v10137_v12 = vld [vmem:[%s10096_s25 + $0x30] sm:$0xff]  ;;  %v10140_v13 = vld [vmem:[%s10096_s25 + $0x38] sm:$0xff]  ;;  %v10151_v15 = vld [vmem:[%s10096_s25 + $0x20] sm:$0xff]  ;;  %s7928_s26 = sshll.u32 %s7925_s23, 4  ;;  %s9828_s4 = scalar_lea.hbm %s15634_s8, 2048  ;;  %s7929_s26 = int_to_ptr.hbm [resolvable:$true] %s7928_s26 }
  0x5c   : > { %9521 = vmatpush.bf16.msra.mxu2 %v10113_v3  ;;  %9522 = vmatpush.bf16.msra.mxu3 %v10113_v3  ;;  %16184 = vst [vmem:[#allocation19_spill] sm:$0xff] %v10137_v12  ;;  %v10147_v14 = vpack.c.bf16 %v10140_v13, %v10137_v12  ;;  %v10154_v16 = vld [vmem:[%s10096_s25 + $0x28] sm:$0xff]  ;;  %v10165_v18 = vld [vmem:[%s10096_s25 + $0x10] sm:$0xff]  ;;  %v10168_v19 = vld [vmem:[%s10096_s25 + $0x18] sm:$0xff]  ;;  %s9822_s16 = sshra.s32 %s7929_s26, 4  ;;  %s9823_s16 = int_to_ptr.hbm [resolvable:$true] %s9822_s16 }
  0x5d   : > { %16185 = vst [vmem:[#allocation20_spill] sm:$0xff] %v10140_v13  ;;  %v10161_v17 = vpack.c.bf16 %v10154_v16, %v10151_v15  ;;  %v10175_v20 = vpack.c.bf16 %v10168_v19, %v10165_v18  ;;  %v10179_v21 = vld [vmem:[%s10096_s25] sm:$0xff]  ;;  %v10182_v22 = vld [vmem:[%s10096_s25 + $0x8] sm:$0xff]  ;;  %v482_v27 = vld [vmem:[%s10096_s25 + $0xf0] sm:$0xff]  ;;  %p9829_p9 = scmp.lt.s32.totalorder %s9823_s16, %s15634_s8 }
  0x5e   : > { %16186 = vst [vmem:[#allocation21_spill] sm:$0xff] %v10151_v15  ;;  %v10189_v23 = vpack.c.bf16 %v10182_v22, %v10179_v21  ;;  %v8106_v24 = vld [vmem:[%s10089_s20 + $0x40] sm:$0xf]  ;;  %v9249_v25 = vld [vmem:[%s10089_s20 + $0x44] sm:$0xf0]  ;;  %v483_v28 = vld [vmem:[%s10096_s25 + $0xf8] sm:$0xff] }
  0x5f   : > { %9523 = vmatpush.bf16.msra.mxu1 %v10117_v5  ;;  %661 = vmatpush.bf16.msra.mxu0 %v10117_v5  ;;  %16187 = vst [vmem:[#allocation22_spill] sm:$0xff] %v10154_v16  ;;  %v10196_v26 = vor.u32 %v9249_v25, %v8106_v24  ;;  %v10204_v29 = vpack.c.bf16 %v483_v28, %v482_v27  ;;  %v480_v30 = vld [vmem:[%s10096_s25 + $0xe0] sm:$0xff]  ;;  %v481_v31 = vld [vmem:[%s10096_s25 + $0xe8] sm:$0xff]  ;;  %v478_v33 = vld [vmem:[%s10096_s25 + $0xd0] sm:$0xff] }
  0x60   : > { %9524 = vmatpush.bf16.msra.mxu2 %v10117_v5  ;;  %9525 = vmatpush.bf16.msra.mxu3 %v10117_v5  ;;  %16188 = vst [vmem:[#allocation23_spill] sm:$0xff] %v10165_v18  ;;  %v10210_v32 = vpack.c.bf16 %v481_v31, %v480_v30  ;;  %v479_v34 = vld [vmem:[%s10096_s25 + $0xd8] sm:$0xff]  ;;  %v476_v36 = vld [vmem:[%s10096_s25 + $0xc0] sm:$0xff]  ;;  %v477_v37 = vld [vmem:[%s10096_s25 + $0xc8] sm:$0xff] }
  0x61   : > { %16189 = vst [vmem:[#allocation24_spill] sm:$0xff] %v10168_v19  ;;  %v10215_v35 = vpack.c.bf16 %v479_v34, %v478_v33  ;;  %v8114_v38 = vld [vmem:[%s10089_s20 + $0x50] sm:$0xf]  ;;  %v9251_v39 = vld [vmem:[%s10089_s20 + $0x54] sm:$0xf0]  ;;  %v10222_v40 = vpack.c.bf16 %v477_v37, %v476_v36  ;;  %v472_v45 = vld [vmem:[%s10096_s25 + $0xa0] sm:$0xff] }
  0x62   : > { %16190 = vst [vmem:[#allocation25_spill] sm:$0xff] %v10179_v21  ;;  %v10224_v41 = vor.u32 %v9251_v39, %v8114_v38  ;;  %v474_v42 = vld [vmem:[%s10096_s25 + $0xb0] sm:$0xff]  ;;  %v475_v43 = vld [vmem:[%s10096_s25 + $0xb8] sm:$0xff]  ;;  %v473_v46 = vld [vmem:[%s10096_s25 + $0xa8] sm:$0xff] }
  0x63   : > { %9526 = vmatpush.bf16.msra.mxu1 %v10125_v8  ;;  %662 = vmatpush.bf16.msra.mxu0 %v10125_v8  ;;  %16191 = vst [vmem:[#allocation26_spill] sm:$0xff] %v10182_v22  ;;  %v10229_v44 = vpack.c.bf16 %v475_v43, %v474_v42  ;;  %v10235_v47 = vpack.c.bf16 %v473_v46, %v472_v45  ;;  %v470_v48 = vld [vmem:[%s10096_s25 + $0x90] sm:$0xff]  ;;  %v471_v49 = vld [vmem:[%s10096_s25 + $0x98] sm:$0xff]  ;;  %v8074_v50 = vld [vmem:[%s10089_s20] sm:$0xf] }
  0x64   : > { %9527 = vmatpush.bf16.msra.mxu2 %v10125_v8  ;;  %9528 = vmatpush.bf16.msra.mxu3 %v10125_v8  ;;  %16192 = vst [vmem:[#allocation27_spill] sm:$0xff] %v10196_v26  ;;  %v9241_v51 = vld [vmem:[%s10089_s20 + $0x4] sm:$0xf0]  ;;  %v10244_v53 = vpack.c.bf16 %v471_v49, %v470_v48  ;;  %v10248_v54 = vld [vmem:[%s10096_s25 + $0x80] sm:$0xff]  ;;  %v8082_v60 = vld [vmem:[%s10089_s20 + $0x10] sm:$0xf] }
  0x65   : > { %16193 = vst [vmem:[#allocation28_spill] sm:$0xff] %v10224_v41  ;;  %v10241_v52 = vor.u32 %v9241_v51, %v8074_v50  ;;  %v10251_v55 = vld [vmem:[%s10096_s25 + $0x88] sm:$0xff]  ;;  %v8122_v56 = vld [vmem:[%s10089_s20 + $0x60] sm:$0xf]  ;;  %v9243_v61 = vld [vmem:[%s10089_s20 + $0x14] sm:$0xf0] }
  0x66   : > { %16195 = vst [vmem:[#allocation30_spill] sm:$0xff] %v10248_v54  ;;  %v9253_v57 = vld [vmem:[%s10089_s20 + $0x64] sm:$0xf0]  ;;  %v10258_v58 = vpack.c.bf16 %v10251_v55, %v10248_v54  ;;  %v10266_v62 = vor.u32 %v9243_v61, %v8082_v60  ;;  %v8130_v63 = vld [vmem:[%s10089_s20 + $0x70] sm:$0xf] }
  0x67   : > { %9529 = vmatpush.bf16.msra.mxu1 %v10133_v11  ;;  %663 = vmatpush.bf16.msra.mxu0 %v10133_v11  ;;  %16194 = vst [vmem:[#allocation29_spill] sm:$0xff] %v10241_v52  ;;  %v10260_v59 = vor.u32 %v9253_v57, %v8122_v56  ;;  %v9255_v0 = vld [vmem:[%s10089_s20 + $0x74] sm:$0xf0]  ;;  %v8090_v2 = vld [vmem:[%s10089_s20 + $0x20] sm:$0xf] }
  0x68   : > { %9530 = vmatpush.bf16.msra.mxu2 %v10133_v11  ;;  %9531 = vmatpush.bf16.msra.mxu3 %v10133_v11  ;;  %16196 = vst [vmem:[#allocation31_spill] sm:$0xff] %v10251_v55  ;;  %v10271_v1 = vor.u32 %v9255_v0, %v8130_v63  ;;  %v9245_v4 = vld [vmem:[%s10089_s20 + $0x24] sm:$0xf0]  ;;  %v9240_v7 = vld [vmem:[%s10089_s20 + $0x4] sm:$0xf] }
  0x69   : > { %16197 = vst [vmem:[#allocation32_spill] sm:$0xff] %v10260_v59  ;;  %v10276_v6 = vor.u32 %v9245_v4, %v8090_v2  ;;  %v8076_v9 = vld [vmem:[%s10089_s20 + $0x8] sm:$0xf0]  ;;  %v8098_v24 = vld [vmem:[%s10089_s20 + $0x30] sm:$0xf] }
  0x6a   : > { %16198 = vst [vmem:[#allocation33_spill] sm:$0xff] %v10266_v62  ;;  %v10281_v10 = vor.u32 %v9240_v7, %v8076_v9  ;;  %v9247_v25 = vld [vmem:[%s10089_s20 + $0x34] sm:$0xf0]  ;;  %v9242_v28 = vld [vmem:[%s10089_s20 + $0x14] sm:$0xf] }
  0x6b   : > { %9532 = vmatpush.bf16.msra.mxu1 %v10147_v14  ;;  %664 = vmatpush.bf16.msra.mxu0 %v10147_v14  ;;  %16199 = vst [vmem:[#allocation34_spill] sm:$0xff] %v10271_v1  ;;  %v10286_v27 = vor.u32 %v9247_v25, %v8098_v24  ;;  %v8084_v30 = vld [vmem:[%s10089_s20 + $0x18] sm:$0xf0]  ;;  %v9244_v33 = vld [vmem:[%s10089_s20 + $0x24] sm:$0xf]  ;;  %v9274_v25 = vld [vmem:[#allocation7 + $0x10] sm:$0xff] }
  0x6c   : > { %9533 = vmatpush.bf16.msra.mxu2 %v10147_v14  ;;  %9534 = vmatpush.bf16.msra.mxu3 %v10147_v14  ;;  %16200 = vst [vmem:[#allocation35_spill] sm:$0xff] %v10276_v6  ;;  %v10291_v31 = vor.u32 %v9242_v28, %v8084_v30  ;;  %v8092_v34 = vld [vmem:[%s10089_s20 + $0x28] sm:$0xf0]  ;;  %v9246_v37 = vld [vmem:[%s10089_s20 + $0x34] sm:$0xf]  ;;  %v9275_v9 = vld [vmem:[#allocation7 + $0x18] sm:$0xff] }
  0x6d   : > { %16201 = vst [vmem:[#allocation36_spill] sm:$0xff] %v10281_v10  ;;  %v10296_v36 = vor.u32 %v9244_v33, %v8092_v34  ;;  %v8100_v38 = vld [vmem:[%s10089_s20 + $0x38] sm:$0xf0]  ;;  %v9248_v42 = vld [vmem:[%s10089_s20 + $0x44] sm:$0xf] }
  0x6e   : > { %16202 = vst [vmem:[#allocation37_spill] sm:$0xff] %v10286_v27  ;;  %v10301_v39 = vor.u32 %v9246_v37, %v8100_v38  ;;  %v8108_v43 = vld [vmem:[%s10089_s20 + $0x48] sm:$0xf0]  ;;  %v9250_v49 = vld [vmem:[%s10089_s20 + $0x54] sm:$0xf] }
  0x6f   : > { %9535 = vmatpush.bf16.msra.mxu1 %v10161_v17  ;;  %665 = vmatpush.bf16.msra.mxu0 %v10161_v17  ;;  %16203 = vst [vmem:[#allocation38_spill] sm:$0xff] %v10291_v31  ;;  %v10306_v45 = vor.u32 %v9248_v42, %v8108_v43  ;;  %v8116_v50 = vld [vmem:[%s10089_s20 + $0x58] sm:$0xf0]  ;;  %v8138_v60 = vld [vmem:[%s10089_s20 + $0x80] sm:$0xf] }
  0x70   : > { %9536 = vmatpush.bf16.msra.mxu2 %v10161_v17  ;;  %9537 = vmatpush.bf16.msra.mxu3 %v10161_v17  ;;  %16204 = vst [vmem:[#allocation39_spill] sm:$0xff] %v10296_v36  ;;  %v10315_v51 = vor.u32 %v9250_v49, %v8116_v50  ;;  %v9257_v61 = vld [vmem:[%s10089_s20 + $0x84] sm:$0xf0]  ;;  %v9252_v0 = vld [vmem:[%s10089_s20 + $0x64] sm:$0xf] }
  0x71   : > { %16205 = vst [vmem:[#allocation40_spill] sm:$0xff] %v10301_v39  ;;  %v10324_v63 = vor.u32 %v9257_v61, %v8138_v60  ;;  %v8124_v2 = vld [vmem:[%s10089_s20 + $0x68] sm:$0xf0]  ;;  %v8146_v28 = vld [vmem:[%s10089_s20 + $0x90] sm:$0xf] }
  0x72   : > { %16206 = vst [vmem:[#allocation41_spill] sm:$0xff] %v10306_v45  ;;  %v10329_v4 = vor.u32 %v9252_v0, %v8124_v2  ;;  %v9259_v30 = vld [vmem:[%s10089_s20 + $0x94] sm:$0xf0]  ;;  %v9254_v34 = vld [vmem:[%s10089_s20 + $0x74] sm:$0xf] }
  0x73   : > { %9538 = vmatpush.bf16.msra.mxu1 %v10175_v20  ;;  %666 = vmatpush.bf16.msra.mxu0 %v10175_v20  ;;  %16207 = vst [vmem:[#allocation42_spill] sm:$0xff] %v10315_v51  ;;  %v10338_v33 = vor.u32 %v9259_v30, %v8146_v28  ;;  %v8132_v37 = vld [vmem:[%s10089_s20 + $0x78] sm:$0xf0]  ;;  %v8154_v60 = vld [vmem:[%s10089_s20 + $0xa0] sm:$0xf] }
  0x74   : > { %9539 = vmatpush.bf16.msra.mxu2 %v10175_v20  ;;  %9540 = vmatpush.bf16.msra.mxu3 %v10175_v20  ;;  %16208 = vst [vmem:[#allocation43_spill] sm:$0xff] %v10324_v63  ;;  %v10343_v38 = vor.u32 %v9254_v34, %v8132_v37  ;;  %v9261_v61 = vld [vmem:[%s10089_s20 + $0xa4] sm:$0xf0]  ;;  %v9256_v2 = vld [vmem:[%s10089_s20 + $0x84] sm:$0xf] }
  0x75   : > { %16209 = vst [vmem:[#allocation44_spill] sm:$0xff] %v10329_v4  ;;  %v10352_v0 = vor.u32 %v9261_v61, %v8154_v60  ;;  %v8162_v60 = vld [vmem:[%s10089_s20 + $0xb0] sm:$0xf]  ;;  %v9263_v61 = vld [vmem:[%s10089_s20 + $0xb4] sm:$0xf0] }
  0x76   : > { %16210 = vst [vmem:[#allocation45_spill] sm:$0xff] %v10338_v33  ;;  %v10364_v13 = vor.u32 %v9263_v61, %v8162_v60  ;;  %v9258_v12 = vld [vmem:[%s10089_s20 + $0x94] sm:$0xf]  ;;  %v8148_v16 = vld [vmem:[%s10089_s20 + $0x98] sm:$0xf0] }
  0x77   : > { %9541 = vmatpush.bf16.msra.mxu1 %v10189_v23  ;;  %667 = vmatpush.bf16.msra.mxu0 %v10189_v23  ;;  %16211 = vst [vmem:[#allocation46_spill] sm:$0xff] %v10343_v38  ;;  %v9260_v19 = vld [vmem:[%s10089_s20 + $0xa4] sm:$0xf] }
  0x78   : > { %9542 = vmatpush.bf16.msra.mxu2 %v10189_v23  ;;  %9543 = vmatpush.bf16.msra.mxu3 %v10189_v23  ;;  %16212 = vst [vmem:[#allocation47_spill] sm:$0xff] %v10352_v0 }
  0x79   : > { %16214 = vst [vmem:[#allocation49_spill] sm:$0xff] %v10364_v13 }
  0x7a   : > { %688 = vmatmul.bf16.vlgmr.msra.gmra.mxu1 %v10196_v26  ;;  %668 = vmatmul.bf16.vlgmr.msra.gmra.mxu0 %v10241_v52 }
  0x7b   : > { %749 = vmatpush.bf16.msrb.mxu1 %v10204_v29  ;;  %708 = vmatmul.bf16.vlgmr.msra.gmra.mxu2 %v10324_v63 }
  0x7c   : > { %1172 = vmatpush.bf16.msrb.mxu0 %v9275_v9  ;;  %v8140_v9 = vld [vmem:[%s10089_s20 + $0x88] sm:$0xf0] }
  0x7f   : > { %750 = vmatpush.bf16.msrb.mxu1 %v10210_v32 }
  0x80   : > { %1173 = vmatpush.bf16.msrb.mxu0 %v9274_v25  ;;  %v10357_v25 = vor.u32 %v9256_v2, %v8140_v9  ;;  %v10371_v9 = vor.u32 %v9258_v12, %v8148_v16  ;;  %v8156_v12 = vld [vmem:[%s10089_s20 + $0xa8] sm:$0xf0] }
  0x81   : > { %v10385_v16 = vor.u32 %v9260_v19, %v8156_v12  ;;  %v9262_v19 = vld [vmem:[%s10089_s20 + $0xb4] sm:$0xf]  ;;  %v8164_v12 = vld [vmem:[%s10089_s20 + $0xb8] sm:$0xf0] }
  0x82   : > { %16213 = vst [vmem:[#allocation48_spill] sm:$0xff] %v10357_v25  ;;  %v10399_v22 = vor.u32 %v9262_v19, %v8164_v12  ;;  %v9264_v19 = vld [vmem:[%s10089_s20 + $0xc4] sm:$0xf]  ;;  %v8172_v12 = vld [vmem:[%s10089_s20 + $0xc8] sm:$0xf0] }
  0x83   : > { %751 = vmatpush.bf16.msrb.mxu1 %v10215_v35  ;;  %16215 = vst [vmem:[#allocation50_spill] sm:$0xff] %v10371_v9  ;;  %v10413_v21 = vor.u32 %v9264_v19, %v8172_v12 }
  0x84   : > { %16217 = vst [vmem:[#allocation52_spill] sm:$0xff] %v10385_v16 }
  0x85   : > { %16219 = vst [vmem:[#allocation54_spill] sm:$0xff] %v10399_v22 }
  0x86   : > { %16221 = vst [vmem:[#allocation56_spill] sm:$0xff] %v10413_v21 }
  0x87   : > { %752 = vmatpush.bf16.msrb.mxu1 %v10222_v40 }
  0x8a   : > { %693 = vmatmul.bf16.gmra.mxu1 %v10224_v41  ;;  %673 = vmatmul.bf16.gmra.mxu0 %v10266_v62 }
  0x8b   : > { %753 = vmatpush.bf16.msrb.mxu1 %v10229_v44  ;;  %713 = vmatmul.bf16.gmra.mxu2 %v10338_v33 }
  0x8f   : > { %754 = vmatpush.bf16.msrb.mxu1 %v10235_v47 }
  0x93   : > { %755 = vmatpush.bf16.msrb.mxu1 %v10244_v53 }
  0x97   : > { %756 = vmatpush.bf16.msrb.mxu1 %v10258_v58 }
  0x9a   : > { %698 = vmatmul.bf16.gmra.mxu1 %v10260_v59  ;;  %678 = vmatmul.bf16.gmra.mxu0 %v10276_v6 }
  0x9b   : > { %718 = vmatmul.bf16.gmra.mxu2 %v10352_v0 }
  0xaa   : > { %703 = vmatmul.bf16.gmra.mxu1 %v10271_v1  ;;  %683 = vmatmul.bf16.gmra.mxu0 %v10286_v27 }
  0xab   : > { %723 = vmatmul.bf16.gmra.mxu2 %v10364_v13 }
  0xba   : > { %757 = vmatmul.bf16.vlgmr.msrb.gmra.mxu1 %v10281_v10 }
  0xca   : > { %762 = vmatmul.bf16.gmra.mxu1 %v10291_v31 }
  0xda   : > { %767 = vmatmul.bf16.gmra.mxu1 %v10296_v36 }
  0xea   : > { %772 = vmatmul.bf16.gmra.mxu1 %v10301_v39 }
  0xf7   : > { %v10308_v46 = vpop.f32.mrf.mxu1  ;;  %v669_v43 = vpop.f32.mrf.mxu0 }
  0xfa   : > { %777 = vmatmul.bf16.gmra.mxu1 %v10306_v45 }
  0xff   : > { %v10311_v48 = vpop.f32.mrf.mxu1  ;;  %v671_v50 = vpop.f32.mrf.mxu0 }
 0x107   : > { %v10317_v56 = vpop.f32.mrf.mxu1  ;;  %v674_v30 = vpop.f32.mrf.mxu0 }
 0x10a   : > { %782 = vmatmul.bf16.gmra.mxu1 %v10315_v51 }
 0x10f   : > { %v10320_v57 = vpop.f32.mrf.mxu1  ;;  %v676_v2 = vpop.f32.mrf.mxu0 }
 0x117   : > { %v10331_v7 = vpop.f32.mrf.mxu1 }
 0x11a   : > { %787 = vmatmul.bf16.gmra.mxu1 %v10329_v4 }
 0x11f   : > { %v10334_v24 = vpop.f32.mrf.mxu1 }
 0x127   : > { %v10345_v42 = vpop.f32.mrf.mxu1 }
 0x12a   : > { %792 = vmatmul.bf16.gmra.mxu1 %v10343_v38 }
 0x12f   : > { %v10348_v49 = vpop.f32.mrf.mxu1 }
 0x137   : > { %v758_v28 = vpop.f32.mrf.mxu1 }
 0x138   : > { %v759_v37 = vadd.f32 %v758_v28, %v669_v43  ;;  %v9265_v28 = vld [vmem:[%s10089_s20 + $0xc4] sm:$0xf0] }
 0x13a   : > { %797 = vmatmul.bf16.gmra.mxu1 %v10357_v25 }
 0x13f   : > { %v760_v34 = vpop.f32.mrf.mxu1 }
 0x140   : > { %v761_v55 = vadd.f32 %v760_v34, %v671_v50  ;;  %v8170_v50 = vld [vmem:[%s10089_s20 + $0xc0] sm:$0xf] }
 0x142   : > { %v10362_v54 = vpack.c.bf16 %v761_v55, %v759_v37  ;;  %v10376_v55 = vor.u32 %v9265_v28, %v8170_v50  ;;  %v679_v37 = vpop.f32.mrf.mxu0  ;;  %v8178_v28 = vld [vmem:[%s10089_s20 + $0xd0] sm:$0xf] }
 0x144   : > { %8208 = vmatmul.msk.bf16.vlgmr.msrb.gmra.mxu0 %vm1117_vm0, %v10362_v54  ;;  %16216 = vst [vmem:[#allocation51_spill] sm:$0xff] %v10376_v55  ;;  %728 = vmatmul.bf16.vlgmr.msra.gmra.mxu3 %v10376_v55 }
 0x147   : > { %v763_v43 = vpop.f32.mrf.mxu1 }
 0x148   : > { %v764_v60 = vadd.f32 %v763_v43, %v674_v30 }
 0x14a   : > { %802 = vmatmul.bf16.gmra.mxu1 %v10371_v9  ;;  %v681_v50 = vpop.f32.mrf.mxu0  ;;  %v9267_v9 = vld [vmem:[%s10089_s20 + $0xd4] sm:$0xf0] }
 0x14b   : > { %v10390_v30 = vor.u32 %v9267_v9, %v8178_v28  ;;  %v8186_v9 = vld [vmem:[%s10089_s20 + $0xe0] sm:$0xf]  ;;  %v9269_v28 = vld [vmem:[%s10089_s20 + $0xe4] sm:$0xf0] }
 0x14d   : > { %16218 = vst [vmem:[#allocation53_spill] sm:$0xff] %v10390_v30 }
 0x14f   : > { %v765_v34 = vpop.f32.mrf.mxu1 }
 0x150   : > { %v766_v61 = vadd.f32 %v765_v34, %v676_v2 }
 0x152   : > { %v10379_v15 = vpack.c.bf16 %v766_v61, %v764_v60  ;;  %v684_v61 = vpop.f32.mrf.mxu0 }
 0x154   : > { %8209 = vmatmul.msk.bf16.gmra.mxu0 %vm1117_vm0, %v10379_v15  ;;  %733 = vmatmul.bf16.gmra.mxu3 %v10390_v30 }
 0x157   : > { %v768_v18 = vpop.f32.mrf.mxu1 }
 0x158   : > { %v769_v43 = vadd.f32 %v768_v18, %v679_v37  ;;  %v10404_v18 = vor.u32 %v9269_v28, %v8186_v9  ;;  %v8194_v9 = vld [vmem:[%s10089_s20 + $0xf0] sm:$0xf]  ;;  %v9271_v28 = vld [vmem:[%s10089_s20 + $0xf4] sm:$0xf0] }
 0x159   : > { %v10418_v25 = vor.u32 %v9271_v28, %v8194_v9 }
 0x15a   : > { %807 = vmatmul.bf16.gmra.mxu1 %v10385_v16  ;;  %16220 = vst [vmem:[#allocation55_spill] sm:$0xff] %v10404_v18  ;;  %v686_v37 = vpop.f32.mrf.mxu0 }
 0x15b   : > { %16222 = vst [vmem:[#allocation57_spill] sm:$0xff] %v10418_v25 }
 0x15f   : > { %v770_v2 = vpop.f32.mrf.mxu1 }
 0x160   : > { %v771_v34 = vadd.f32 %v770_v2, %v681_v50 }
 0x162   : > { %v10393_v60 = vpack.c.bf16 %v771_v34, %v769_v43 }
 0x164   : > { %8210 = vmatmul.msk.bf16.gmra.mxu0 %vm1117_vm0, %v10393_v60  ;;  %738 = vmatmul.bf16.gmra.mxu3 %v10404_v18 }
 0x167   : > { %v773_v16 = vpop.f32.mrf.mxu1 }
 0x168   : > { %v774_v2 = vadd.f32 %v773_v16, %v684_v61 }
 0x16a   : > { %812 = vmatmul.bf16.gmra.mxu1 %v10399_v22 }
 0x16f   : > { %v775_v50 = vpop.f32.mrf.mxu1 }
 0x170   : > { %v776_v43 = vadd.f32 %v775_v50, %v686_v37 }
 0x172   : > { %v10407_v34 = vpack.c.bf16 %v776_v43, %v774_v2  ;;  %v9266_v2 = vld [vmem:[%s10089_s20 + $0xd4] sm:$0xf]  ;;  %v8180_v43 = vld [vmem:[%s10089_s20 + $0xd8] sm:$0xf0] }
 0x173   : > { %v10426_v19 = vor.u32 %v9266_v2, %v8180_v43 }
 0x174   : > { %8211 = vmatmul.msk.bf16.gmra.mxu0 %vm1117_vm0, %v10407_v34  ;;  %743 = vmatmul.bf16.gmra.mxu3 %v10418_v25 }
 0x175   : > { %16223 = vst [vmem:[#allocation58_spill] sm:$0xff] %v10426_v19 }
 0x177   : > { %v778_v22 = vpop.f32.mrf.mxu1 }
 0x178   : > { %v779_v61 = vadd.f32 %v778_v22, %v10308_v46  ;;  %v9273_v22 = vld [vmem:[#allocation7 + $0x8] sm:$0xff] }
 0x179   : > { %1321 = vmatpush.bf16.msra.mxu1 %v9273_v22 }
 0x17a   : > { %817 = vmatmul.bf16.gmra.mxu1 %v10413_v21 }
 0x17f   : > { %v780_v16 = vpop.f32.mrf.mxu1 }
 0x180   : > { %v781_v37 = vadd.f32 %v780_v16, %v10311_v48  ;;  %v9268_v48 = vld [vmem:[%s10089_s20 + $0xe4] sm:$0xf]  ;;  %v8188_v16 = vld [vmem:[%s10089_s20 + $0xe8] sm:$0xf0] }
 0x182   : > { %v842_v50 = vpack.c.bf16 %v781_v37, %v779_v61  ;;  %v9272_v61 = vld [vmem:[#allocation7] sm:$0xff]  ;;  %v10434_v37 = vor.u32 %v9268_v48, %v8188_v16 }
 0x183   : > { %1322 = vmatpush.bf16.msra.mxu1 %v9272_v61 }
 0x184   : > { %8212 = vmatmul.msk.bf16.gmra.mxu0 %vm1117_vm0, %v842_v50  ;;  %16224 = vst [vmem:[#allocation59_spill] sm:$0xff] %v10434_v37 }
 0x187   : > { %v783_v12 = vpop.f32.mrf.mxu1 }
 0x188   : > { %v784_v28 = vadd.f32 %v783_v12, %v10317_v56 }
 0x18a   : > { %822 = vmatmul.bf16.gmra.mxu1 %v10426_v19  ;;  %v709_v19 = vpop.f32.mrf.mxu2 }
 0x18f   : > { %v785_v9 = vpop.f32.mrf.mxu1 }
 0x190   : > { %v786_v21 = vadd.f32 %v785_v9, %v10320_v57  ;;  %v9270_v9 = vld [vmem:[%s10089_s20 + $0xf4] sm:$0xf] }
 0x192   : > { %v843_v46 = vpack.c.bf16 %v786_v21, %v784_v28  ;;  %v8196_v21 = vld [vmem:[%s10089_s20 + $0xf8] sm:$0xf0]  ;;  %s7926_s20 = sshll.u32 %s14836_s21, 4  ;;  %s7927_s20 = int_to_ptr.vmem [resolvable:$true] %s7926_s20 }
 0x193   : > { %v10442_v28 = vor.u32 %v9270_v9, %v8196_v21 }
 0x194   : > { %8213 = vmatmul.msk.bf16.gmra.mxu0 %vm1117_vm0, %v843_v46 }
 0x195   : > { %16225 = vst [vmem:[#allocation60_spill] sm:$0xff] %v10442_v28 }
 0x197   : > { %v788_v2 = vpop.f32.mrf.mxu1 }
 0x198   : > { %v789_v56 = vadd.f32 %v788_v2, %v10331_v7 }
 0x19a   : > { %827 = vmatmul.bf16.gmra.mxu1 %v10434_v37  ;;  %v711_v37 = vpop.f32.mrf.mxu2 }
 0x19f   : > { %v790_v43 = vpop.f32.mrf.mxu1 }
 0x1a0   : > { %v791_v57 = vadd.f32 %v790_v43, %v10334_v24 }
 0x1a2   : > { %v844_v12 = vpack.c.bf16 %v791_v57, %v789_v56  ;;  %v714_v2 = vpop.f32.mrf.mxu2 }
 0x1a4   : > { %8214 = vmatmul.msk.bf16.gmra.mxu0 %vm1117_vm0, %v844_v12 }
 0x1a7   : > { %v793_v22 = vpop.f32.mrf.mxu1 }
 0x1a8   : > { %v794_v16 = vadd.f32 %v793_v22, %v10345_v42 }
 0x1aa   : > { %832 = vmatmul.bf16.gmra.mxu1 %v10442_v28  ;;  %v716_v42 = vpop.f32.mrf.mxu2 }
 0x1af   : > { %v795_v48 = vpop.f32.mrf.mxu1 }
 0x1b0   : > { %v796_v61 = vadd.f32 %v795_v48, %v10348_v49 }
 0x1b2   : > { %v845_v7 = vpack.c.bf16 %v796_v61, %v794_v16 }
 0x1b4   : > { %854 = vmatpush.bf16.msrb.mxu2 %v845_v7  ;;  %8215 = vmatmul.msk.bf16.gmra.mxu0 %vm1117_vm0, %v845_v7 }
 0x1b7   : > { %v798_v24 = vpop.f32.mrf.mxu1 }
 0x1b8   : > { %855 = vmatpush.bf16.msrb.mxu2 %v844_v12  ;;  %v799_v56 = vadd.f32 %v798_v24, %v709_v19  ;;  %v719_v19 = vpop.f32.mrf.mxu2 }
 0x1ba   : > { %8232 = vmatmul.msk.bf16.vlgmr.msra.gmra.mxu1 %vm1117_vm0, %v10189_v23 }
 0x1bc   : > { %856 = vmatpush.bf16.msrb.mxu2 %v843_v46 }
 0x1bf   : > { %v800_v43 = vpop.f32.mrf.mxu1 }
 0x1c0   : > { %v801_v57 = vadd.f32 %v800_v43, %v711_v37  ;;  %857 = vmatpush.bf16.msrb.mxu2 %v842_v50 }
 0x1c1   : > { %v10474_v61 = vpop.f32.mrf.mxu0 }
 0x1c2   : > { %v10450_v9 = vpack.c.bf16 %v801_v57, %v799_v56 }
 0x1c4   : > { %858 = vmatpush.bf16.msrb.mxu2 %v10407_v34  ;;  %8216 = vmatmul.msk.bf16.gmra.mxu0 %vm1117_vm0, %v10450_v9 }
 0x1c7   : > { %v803_v49 = vpop.f32.mrf.mxu1  ;;  %v729_v48 = vpop.f32.mrf.mxu3 }
 0x1c8   : > { %859 = vmatpush.bf16.msrb.mxu2 %v10393_v60  ;;  %v804_v46 = vadd.f32 %v803_v49, %v714_v2  ;;  %v721_v60 = vpop.f32.mrf.mxu2 }
 0x1c9   : > { %v10478_v57 = vpop.f32.mrf.mxu0 }
 0x1ca   : > { %8233 = vmatmul.msk.bf16.gmra.mxu1 %vm1117_vm0, %v10175_v20 }
 0x1cc   : > { %860 = vmatpush.bf16.msrb.mxu2 %v10379_v15 }
 0x1cf   : > { %v805_v23 = vpop.f32.mrf.mxu1  ;;  %v731_v43 = vpop.f32.mrf.mxu3 }
 0x1d0   : > { %v806_v50 = vadd.f32 %v805_v23, %v716_v42  ;;  %861 = vmatpush.bf16.msrb.mxu2 %v10362_v54  ;;  %v724_v22 = vpop.f32.mrf.mxu2 }
 0x1d2   : > { %v10460_v37 = vpack.c.bf16 %v806_v50, %v804_v46 }
 0x1d3   : > { %862 = vmatmul.bf16.vlgmr.msrb.gmra.mxu2 %v10241_v52 }
 0x1d4   : > { %8217 = vmatmul.msk.bf16.gmra.mxu0 %vm1117_vm0, %v10460_v37 }
 0x1d7   : > { %v808_v34 = vpop.f32.mrf.mxu1  ;;  %v734_v42 = vpop.f32.mrf.mxu3 }
 0x1d8   : > { %v809_v15 = vadd.f32 %v808_v34, %v719_v19  ;;  %v726_v16 = vpop.f32.mrf.mxu2  ;;  %v10482_v19 = vpop.f32.mrf.mxu0 }
 0x1da   : > { %8234 = vmatmul.msk.bf16.gmra.mxu1 %vm1117_vm0, %v10161_v17 }
 0x1df   : > { %v810_v20 = vpop.f32.mrf.mxu1  ;;  %v736_v50 = vpop.f32.mrf.mxu3 }
 0x1e0   : > { %v811_v12 = vadd.f32 %v810_v20, %v721_v60  ;;  %v10488_v60 = vpop.f32.mrf.mxu0 }
 0x1e2   : > { %v10467_v21 = vpack.c.bf16 %v811_v12, %v809_v15 }
 0x1e3   : > { %867 = vmatmul.bf16.gmra.mxu2 %v10266_v62 }
 0x1e4   : > { %8218 = vmatmul.msk.bf16.gmra.mxu0 %vm1117_vm0, %v10467_v21 }
 0x1e7   : > { %v813_v54 = vpop.f32.mrf.mxu1  ;;  %v739_v12 = vpop.f32.mrf.mxu3 }
 0x1e8   : > { %v814_v7 = vadd.f32 %v813_v54, %v724_v22  ;;  %v10492_v54 = vpop.f32.mrf.mxu0 }
 0x1ea   : > { %8235 = vmatmul.msk.bf16.gmra.mxu1 %vm1117_vm0, %v10147_v14 }
 0x1ef   : > { %v815_v17 = vpop.f32.mrf.mxu1 }
 0x1f0   : > { %v816_v24 = vadd.f32 %v815_v17, %v726_v16  ;;  %v741_v16 = vpop.f32.mrf.mxu3 }
 0x1f2   : > { %v849_v2 = vpack.c.bf16 %v816_v24, %v814_v7 }
 0x1f3   : > { %872 = vmatmul.bf16.gmra.mxu2 %v10276_v6 }
 0x1f4   : > { %8219 = vmatmul.msk.bf16.gmra.mxu0 %vm1117_vm0, %v849_v2 }
 0x1f7   : > { %v818_v56 = vpop.f32.mrf.mxu1 }
 0x1f8   : > { %v819_v49 = vadd.f32 %v818_v56, %v729_v48  ;;  %v744_v56 = vpop.f32.mrf.mxu3 }
 0x1fa   : > { %8236 = vmatmul.msk.bf16.gmra.mxu1 %vm1117_vm0, %v10133_v11 }
 0x1ff   : > { %v820_v14 = vpop.f32.mrf.mxu1 }
 0x200   : > { %v821_v23 = vadd.f32 %v820_v14, %v731_v43 }
 0x202   : > { %v850_v46 = vpack.c.bf16 %v821_v23, %v819_v49  ;;  %v746_v49 = vpop.f32.mrf.mxu3 }
 0x203   : > { %877 = vmatmul.bf16.gmra.mxu2 %v10286_v27 }
 0x204   : > { %8220 = vmatmul.msk.bf16.gmra.mxu0 %vm1117_vm0, %v850_v46 }
 0x207   : > { %v823_v34 = vpop.f32.mrf.mxu1 }
 0x208   : > { %v824_v11 = vadd.f32 %v823_v34, %v734_v42 }
 0x20a   : > { %8237 = vmatmul.msk.bf16.gmra.mxu1 %vm1117_vm0, %v10125_v8  ;;  %v10496_v8 = vpop.f32.mrf.mxu0 }
 0x20f   : > { %v825_v20 = vpop.f32.mrf.mxu1 }
 0x210   : > { %v826_v15 = vadd.f32 %v825_v20, %v736_v50 }
 0x212   : > { %v851_v22 = vpack.c.bf16 %v826_v15, %v824_v11  ;;  %v10500_v14 = vpop.f32.mrf.mxu0 }
 0x213   : > { %882 = vmatmul.bf16.gmra.mxu2 %v10196_v26  ;;  %v16238_v26 = vld [vmem:[#allocation48_spill] sm:$0xff] }
 0x214   : > { %8221 = vmatmul.msk.bf16.gmra.mxu0 %vm1117_vm0, %v851_v22 }
 0x217   : > { %v828_v48 = vpop.f32.mrf.mxu1 }
 0x218   : > { %v829_v7 = vadd.f32 %v828_v48, %v739_v12 }
 0x21a   : > { %8238 = vmatmul.msk.bf16.gmra.mxu1 %vm1117_vm0, %v10117_v5  ;;  %v10505_v20 = vpop.f32.mrf.mxu0 }
 0x21f   : > { %v830_v17 = vpop.f32.mrf.mxu1 }
 0x220   : > { %v831_v24 = vadd.f32 %v830_v17, %v741_v16 }
 0x222   : > { %v852_v43 = vpack.c.bf16 %v831_v24, %v829_v7 }
 0x223   : > { %887 = vmatmul.bf16.gmra.mxu2 %v10224_v41 }
 0x224   : > { %8222 = vmatmul.msk.bf16.gmra.mxu0 %vm1117_vm0, %v852_v43 }
 0x227   : > { %v833_v42 = vpop.f32.mrf.mxu1 }
 0x228   : > { %v834_v23 = vadd.f32 %v833_v42, %v744_v56 }
 0x22a   : > { %8239 = vmatmul.msk.bf16.gmra.mxu1 %vm1117_vm0, %v10113_v3 }
 0x22f   : > { %v835_v5 = vpop.f32.mrf.mxu1 }
 0x230   : > { %v836_v50 = vadd.f32 %v835_v5, %v746_v49 }
 0x232   : > { %v853_v34 = vpack.c.bf16 %v836_v50, %v834_v23 }
 0x233   : > { %892 = vmatmul.bf16.gmra.mxu2 %v10260_v59 }
 0x234   : > { %943 = vmatpush.bf16.msrb.mxu3 %v853_v34  ;;  %8223 = vmatmul.msk.bf16.gmra.mxu0 %vm1117_vm0, %v853_v34 }
 0x237   : > { %v10508_v11 = vpop.f32.mrf.mxu1 }
 0x238   : > { %944 = vmatpush.bf16.msrb.mxu3 %v852_v43 }
 0x23a   : > { %8240 = vmatmul.msk.bf16.gmra.mxu1 %vm1117_vm0, %v10258_v58 }
 0x23c   : > { %945 = vmatpush.bf16.msrb.mxu3 %v851_v22 }
 0x23f   : > { %v10512_v3 = vpop.f32.mrf.mxu1 }
 0x240   : > { %946 = vmatpush.bf16.msrb.mxu3 %v850_v46 }
 0x243   : > { %897 = vmatmul.bf16.gmra.mxu2 %v10271_v1 }
 0x244   : > { %947 = vmatpush.bf16.msrb.mxu3 %v849_v2  ;;  %v1195_v2 = vpop.f32.mrf.mxu0 }
 0x247   : > { %v10515_v15 = vpop.f32.mrf.mxu1 }
 0x248   : > { %948 = vmatpush.bf16.msrb.mxu3 %v10467_v21 }
 0x24a   : > { %8241 = vmatmul.msk.bf16.gmra.mxu1 %vm1117_vm0, %v10244_v53 }
 0x24c   : > { %949 = vmatpush.bf16.msrb.mxu3 %v10460_v37  ;;  %v10536_v37 = vpop.f32.mrf.mxu0 }
 0x24d   : > { %16226 = vst [vmem:[#allocation61_spill] sm:$0xff] %v10536_v37 }
 0x24f   : > { %v10521_v12 = vpop.f32.mrf.mxu1 }
 0x250   : > { %950 = vmatpush.bf16.msrb.mxu3 %v10450_v9 }
 0x253   : > { %951 = vmatmul.bf16.vlgmr.msrb.gmra.mxu3 %v10281_v10  ;;  %902 = vmatmul.bf16.gmra.mxu2 %v10324_v63 }
 0x254   : > { %v10546_v48 = vpop.f32.mrf.mxu0 }
 0x256   : > { %v10526_v58 = vpop.f32.mrf.mxu2 }
 0x257   : > { %v10528_v46 = vpop.f32.mrf.mxu1 }
 0x25a   : > { %8242 = vmatmul.msk.bf16.gmra.mxu1 %vm1117_vm0, %v10235_v47 }
 0x25c   : > { %v10554_v17 = vpop.f32.mrf.mxu0 }
 0x25e   : > { %v10532_v21 = vpop.f32.mrf.mxu2 }
 0x25f   : > { %v10534_v53 = vpop.f32.mrf.mxu1 }
 0x263   : > { %956 = vmatmul.bf16.gmra.mxu3 %v10291_v31  ;;  %907 = vmatmul.bf16.gmra.mxu2 %v10338_v33 }
 0x264   : > { %v10564_v56 = vpop.f32.mrf.mxu0 }
 0x266   : > { %v10540_v9 = vpop.f32.mrf.mxu2 }
 0x267   : > { %v10542_v22 = vpop.f32.mrf.mxu1 }
 0x26a   : > { %8243 = vmatmul.msk.bf16.gmra.mxu1 %vm1117_vm0, %v10229_v44 }
 0x26c   : > { %v10574_v23 = vpop.f32.mrf.mxu0 }
 0x26e   : > { %v10548_v47 = vpop.f32.mrf.mxu2 }
 0x26f   : > { %v10550_v16 = vpop.f32.mrf.mxu1 }
 0x273   : > { %961 = vmatmul.bf16.gmra.mxu3 %v10296_v36  ;;  %912 = vmatmul.bf16.gmra.mxu2 %v10352_v0  ;;  %v9277_v36 = vld [vmem:[#allocation7 + $0x28] sm:$0xff] }
 0x274   : > { %v10582_v34 = vpop.f32.mrf.mxu0  ;;  %1491 = vmatpush.bf16.msra.mxu2 %v9277_v36  ;;  %v9276_v36 = vld [vmem:[#allocation7 + $0x20] sm:$0xff] }
 0x276   : > { %v10556_v7 = vpop.f32.mrf.mxu2 }
 0x277   : > { %v1344_v24 = vpop.f32.mrf.mxu1 }
 0x278   : > { %v10558_v43 = vadd.f32 %v1344_v24, %v1195_v2  ;;  %1492 = vmatpush.bf16.msra.mxu2 %v9276_v36 }
 0x27a   : > { %8244 = vmatmul.msk.bf16.gmra.mxu1 %vm1117_vm0, %v10222_v40 }
 0x27e   : > { %v10562_v44 = vpop.f32.mrf.mxu2 }
 0x27f   : > { %v10566_v42 = vpop.f32.mrf.mxu1 }
 0x280   : > { %16227 = vst [vmem:[#allocation62_spill] sm:$0xff] %v10566_v42 }
 0x283   : > { %966 = vmatmul.bf16.gmra.mxu3 %v10301_v39  ;;  %917 = vmatmul.bf16.gmra.mxu2 %v10364_v13  ;;  %v10592_v13 = vpop.f32.mrf.mxu0 }
 0x286   : > { %v10570_v49 = vpop.f32.mrf.mxu2 }
 0x287   : > { %v10572_v5 = vpop.f32.mrf.mxu1 }
 0x288   : > { %16228 = vst [vmem:[#allocation63_spill] sm:$0xff] %v10572_v5 }
 0x28a   : > { %8245 = vmatmul.msk.bf16.gmra.mxu1 %vm1117_vm0, %v10215_v35 }
 0x28e   : > { %v10578_v40 = vpop.f32.mrf.mxu2 }
 0x28f   : > { %v10580_v50 = vpop.f32.mrf.mxu1 }
 0x293   : > { %971 = vmatmul.bf16.gmra.mxu3 %v10306_v45  ;;  %922 = vmatmul.bf16.gmra.mxu2 %v10376_v55  ;;  %v10602_v55 = vpop.f32.mrf.mxu0 }
 0x294   : > { %16229 = vst [vmem:[#allocation64_spill] sm:$0xff] %v10602_v55 }
 0x296   : > { %v10586_v2 = vpop.f32.mrf.mxu2 }
 0x297   : > { %v10588_v24 = vpop.f32.mrf.mxu1 }
 0x29a   : > { %8246 = vmatmul.msk.bf16.gmra.mxu1 %vm1117_vm0, %v10210_v32 }
 0x29b   : > { %v10612_v31 = vpop.f32.mrf.mxu0 }
 0x29c   : > { %16230 = vst [vmem:[#allocation65_spill] sm:$0xff] %v10612_v31 }
 0x29e   : > { %v10594_v35 = vpop.f32.mrf.mxu2 }
 0x29f   : > { %v10596_v39 = vpop.f32.mrf.mxu1 }
 0x2a3   : > { %976 = vmatmul.bf16.gmra.mxu3 %v10315_v51  ;;  %927 = vmatmul.bf16.gmra.mxu2 %v10390_v30  ;;  %v10620_v63 = vpop.f32.mrf.mxu0 }
 0x2a4   : > { %16232 = vst [vmem:[#allocation67_spill] sm:$0xff] %v10620_v63 }
 0x2a6   : > { %v10600_v45 = vpop.f32.mrf.mxu2 }
 0x2a7   : > { %v10604_v0 = vpop.f32.mrf.mxu1 }
 0x2aa   : > { %8247 = vmatmul.msk.bf16.gmra.mxu1 %vm1117_vm0, %v10204_v29 }
 0x2ab   : > { %v10628_v1 = vpop.f32.mrf.mxu0 }
 0x2ac   : > { %16234 = vst [vmem:[#allocation69_spill] sm:$0xff] %v10628_v1 }
 0x2ae   : > { %v10608_v32 = vpop.f32.mrf.mxu2 }
 0x2af   : > { %v10610_v33 = vpop.f32.mrf.mxu1 }
 0x2b3   : > { %981 = vmatmul.bf16.gmra.mxu3 %v10329_v4  ;;  %932 = vmatmul.bf16.gmra.mxu2 %v10404_v18  ;;  %v10636_v59 = vpop.f32.mrf.mxu0 }
 0x2b4   : > { %16236 = vst [vmem:[#allocation71_spill] sm:$0xff] %v10636_v59 }
 0x2b6   : > { %v10616_v30 = vpop.f32.mrf.mxu2 }
 0x2b7   : > { %v10618_v51 = vpop.f32.mrf.mxu1 }
 0x2b8   : > { %16231 = vst [vmem:[#allocation66_spill] sm:$0xff] %v10618_v51  ;;  %v16244_v51 = vld [vmem:[#allocation26_spill] sm:$0xff] }
 0x2bb   : > { %v10645_v36 = vpop.f32.mrf.mxu0 }
 0x2bc   : > { %16240 = vst [vmem:[#allocation74_spill] sm:$0xff] %v10645_v36 }
 0x2be   : > { %v10622_v10 = vpop.f32.mrf.mxu2 }
 0x2bf   : > { %v10624_v29 = vpop.f32.mrf.mxu1 }
 0x2c0   : > { %16233 = vst [vmem:[#allocation68_spill] sm:$0xff] %v10624_v29 }
 0x2c3   : > { %986 = vmatmul.bf16.gmra.mxu3 %v10343_v38  ;;  %937 = vmatmul.bf16.gmra.mxu2 %v10418_v25 }
 0x2c6   : > { %v10630_v4 = vpop.f32.mrf.mxu2 }
 0x2c7   : > { %v10632_v18 = vpop.f32.mrf.mxu1 }
 0x2c8   : > { %16235 = vst [vmem:[#allocation70_spill] sm:$0xff] %v10632_v18  ;;  %v10653_v18 = vpop.f32.mrf.mxu0 }
 0x2c9   : > { %16242 = vst [vmem:[#allocation76_spill] sm:$0xff] %v10653_v18 }
 0x2ce   : > { %v10634_v31 = vpop.f32.mrf.mxu2 }
 0x2cf   : > { %v10638_v41 = vpop.f32.mrf.mxu1 }
 0x2d0   : > { %16237 = vst [vmem:[#allocation72_spill] sm:$0xff] %v10638_v41 }
 0x2d3   : > { %991 = vmatmul.bf16.gmra.mxu3 %v16238_v26  ;;  %v16243_v26 = vld [vmem:[#allocation25_spill] sm:$0xff] }
 0x2d6   : > { %v952_v29 = vpop.f32.mrf.mxu3  ;;  %v10641_v27 = vpop.f32.mrf.mxu2 }
 0x2d7   : > { %v10643_v38 = vpop.f32.mrf.mxu1  ;;  %v953_v25 = vadd.f32 %v952_v29, %v10526_v58 }
 0x2d8   : > { %16239 = vst [vmem:[#allocation73_spill] sm:$0xff] %v10643_v38  ;;  %v16245_v38 = vld [vmem:[#allocation50_spill] sm:$0xff] }
 0x2d9   : > { %v1032_v62 = vmul.f32 2.0, %v953_v25  ;;  %v10664_v25 = vpop.f32.mrf.mxu0 }
 0x2da   : > { %16247 = vst [vmem:[#allocation26_spill] sm:$0xff] %v10664_v25 }
 0x2db   : > { %v1064_v63 = vsub.f32 %v1032_v62, %v16243_v26 }
 0x2de   : > { %v954_v1 = vpop.f32.mrf.mxu3  ;;  %v10648_v6 = vpop.f32.mrf.mxu2 }
 0x2df   : > { %v955_v52 = vadd.f32 %v954_v1, %v10532_v21  ;;  %v10651_v59 = vpop.f32.mrf.mxu1 }
 0x2e0   : > { %16241 = vst [vmem:[#allocation75_spill] sm:$0xff] %v10651_v59 }
 0x2e1   : > { %v1033_v41 = vmul.f32 2.0, %v955_v52 }
 0x2e3   : > { %v1065_v55 = vsub.f32 %v1033_v41, %v16244_v51  ;;  %996 = vmatmul.bf16.gmra.mxu3 %v16245_v38  ;;  %v16250_v38 = vld [vmem:[#allocation24_spill] sm:$0xff] }
 0x2e5   : > { %v1404_v36 = vpack.c.bf16 %v1065_v55, %v1064_v63  ;;  %v16249_v63 = vld [vmem:[#allocation23_spill] sm:$0xff] }
 0x2e6   : > { %v957_v42 = vpop.f32.mrf.mxu3  ;;  %v10658_v58 = vpop.f32.mrf.mxu2 }
 0x2e7   : > { %v10660_v29 = vpop.f32.mrf.mxu1  ;;  %8256 = vmatmul.msk.bf16.vlgmr.msra.gmra.mxu2 %vm1117_vm0, %v1404_v36  ;;  %v958_v1 = vadd.f32 %v957_v42, %v10540_v9  ;;  %v1235_v42 = vpop.f32.mrf.mxu0 }
 0x2e8   : > { %16246 = vst [vmem:[#allocation25_spill] sm:$0xff] %v10660_v29  ;;  %v16251_v29 = vld [vmem:[#allocation52_spill] sm:$0xff] }
 0x2e9   : > { %v1034_v26 = vmul.f32 2.0, %v958_v1 }
 0x2eb   : > { %v1066_v55 = vsub.f32 %v1034_v26, %v16249_v63  ;;  %v16252_v63 = vld [vmem:[#allocation21_spill] sm:$0xff] }
 0x2ee   : > { %v959_v52 = vpop.f32.mrf.mxu3  ;;  %v10666_v21 = vpop.f32.mrf.mxu2 }
 0x2ef   : > { %v960_v41 = vadd.f32 %v959_v52, %v10548_v47  ;;  %v10669_v62 = vpop.f32.mrf.mxu1 }
 0x2f0   : > { %16248 = vst [vmem:[#allocation77_spill] sm:$0xff] %v10669_v62  ;;  %v16254_v62 = vld [vmem:[#allocation54_spill] sm:$0xff] }
 0x2f1   : > { %v1035_v51 = vmul.f32 2.0, %v960_v41 }
 0x2f3   : > { %v1067_v59 = vsub.f32 %v1035_v51, %v16250_v38  ;;  %1001 = vmatmul.bf16.gmra.mxu3 %v16251_v29 }
 0x2f5   : > { %v1405_v36 = vpack.c.bf16 %v1067_v59, %v1066_v55  ;;  %v16253_v55 = vld [vmem:[#allocation22_spill] sm:$0xff] }
 0x2f6   : > { %v962_v18 = vpop.f32.mrf.mxu3  ;;  %v10674_v9 = vpop.f32.mrf.mxu2 }
 0x2f7   : > { %v1384_v25 = vpop.f32.mrf.mxu1  ;;  %8257 = vmatmul.msk.bf16.gmra.mxu2 %vm1117_vm0, %v1405_v36  ;;  %v963_v47 = vadd.f32 %v962_v18, %v10556_v7 }
 0x2f8   : > { %v10677_v1 = vadd.f32 %v1384_v25, %v1235_v42 }
 0x2f9   : > { %v1036_v26 = vmul.f32 2.0, %v963_v47 }
 0x2fb   : > { %v1068_v59 = vsub.f32 %v1036_v26, %v16252_v63 }
 0x2fe   : > { %v964_v52 = vpop.f32.mrf.mxu3  ;;  %v10680_v41 = vpop.f32.mrf.mxu2 }
 0x2ff   : > { %v965_v38 = vadd.f32 %v964_v52, %v10562_v44  ;;  %v16255_v52 = vld [vmem:[#allocation19_spill] sm:$0xff] }
 0x301   : > { %v1037_v51 = vmul.f32 2.0, %v965_v38  ;;  %v16256_v38 = vld [vmem:[#allocation20_spill] sm:$0xff] }
 0x303   : > { %v1069_v29 = vsub.f32 %v1037_v51, %v16253_v55  ;;  %1006 = vmatmul.bf16.gmra.mxu3 %v16254_v62  ;;  %v16257_v51 = vld [vmem:[#allocation56_spill] sm:$0xff] }
 0x305   : > { %v1406_v37 = vpack.c.bf16 %v1069_v29, %v1068_v59 }
 0x306   : > { %v967_v5 = vpop.f32.mrf.mxu3  ;;  %v10687_v25 = vpop.f32.mrf.mxu2 }
 0x307   : > { %8258 = vmatmul.msk.bf16.gmra.mxu2 %vm1117_vm0, %v1406_v37  ;;  %v968_v18 = vadd.f32 %v967_v5, %v10570_v49 }
 0x309   : > { %v1038_v36 = vmul.f32 2.0, %v968_v18 }
 0x30b   : > { %v1070_v26 = vsub.f32 %v1038_v36, %v16255_v52  ;;  %v16258_v52 = vld [vmem:[#allocation58_spill] sm:$0xff] }
 0x30e   : > { %v969_v7 = vpop.f32.mrf.mxu3  ;;  %v10691_v47 = vpop.f32.mrf.mxu2 }
 0x30f   : > { %v970_v44 = vadd.f32 %v969_v7, %v10578_v40  ;;  %v9635_v7 = vld [vmem:[%s10096_s25 + $0x40] sm:$0xff] }
 0x311   : > { %v1039_v42 = vmul.f32 2.0, %v970_v44  ;;  %v9636_v44 = vld [vmem:[%s10096_s25 + $0x48] sm:$0xff] }
 0x313   : > { %v1071_v29 = vsub.f32 %v1039_v42, %v16256_v38  ;;  %1011 = vmatmul.bf16.gmra.mxu3 %v16257_v51 }
 0x315   : > { %v1407_v37 = vpack.c.bf16 %v1071_v29, %v1070_v26 }
 0x316   : > { %v972_v63 = vpop.f32.mrf.mxu3  ;;  %v10698_v5 = vpop.f32.mrf.mxu2 }
 0x317   : > { %8259 = vmatmul.msk.bf16.gmra.mxu2 %vm1117_vm0, %v1407_v37  ;;  %v973_v49 = vadd.f32 %v972_v63, %v10586_v2 }
 0x319   : > { %v1040_v40 = vmul.f32 2.0, %v973_v49 }
 0x31b   : > { %v1072_v36 = vsub.f32 %v1040_v40, %v9635_v7  ;;  %v9637_v40 = vld [vmem:[%s10096_s25 + $0x50] sm:$0xff] }
 0x31e   : > { %v974_v59 = vpop.f32.mrf.mxu3  ;;  %v10704_v29 = vpop.f32.mrf.mxu2 }
 0x31f   : > { %v975_v55 = vadd.f32 %v974_v59, %v10594_v35 }
 0x321   : > { %v1041_v18 = vmul.f32 2.0, %v975_v55 }
 0x323   : > { %v1073_v42 = vsub.f32 %v1041_v18, %v9636_v44  ;;  %1016 = vmatmul.bf16.gmra.mxu3 %v16258_v52  ;;  %v9638_v18 = vld [vmem:[%s10096_s25 + $0x58] sm:$0xff] }
 0x325   : > { %v1408_v26 = vpack.c.bf16 %v1073_v42, %v1072_v36  ;;  %v16259_v36 = vld [vmem:[#allocation59_spill] sm:$0xff] }
 0x326   : > { %v977_v38 = vpop.f32.mrf.mxu3  ;;  %v10709_v49 = vpop.f32.mrf.mxu2 }
 0x327   : > { %8260 = vmatmul.msk.bf16.gmra.mxu2 %vm1117_vm0, %v1408_v26  ;;  %v978_v2 = vadd.f32 %v977_v38, %v10600_v45 }
 0x329   : > { %v1042_v63 = vmul.f32 2.0, %v978_v2 }
 0x32b   : > { %v1074_v55 = vsub.f32 %v1042_v63, %v9637_v40 }
 0x32e   : > { %v979_v37 = vpop.f32.mrf.mxu3  ;;  %v10715_v45 = vpop.f32.mrf.mxu2 }
 0x32f   : > { %v980_v35 = vadd.f32 %v979_v37, %v10608_v32 }
 0x331   : > { %v1043_v59 = vmul.f32 2.0, %v980_v35  ;;  %v9639_v35 = vld [vmem:[%s10096_s25 + $0x60] sm:$0xff] }
 0x333   : > { %v1075_v7 = vsub.f32 %v1043_v59, %v9638_v18  ;;  %1021 = vmatmul.bf16.gmra.mxu3 %v16259_v36  ;;  %v9640_v59 = vld [vmem:[%s10096_s25 + $0x68] sm:$0xff] }
 0x335   : > { %v1409_v44 = vpack.c.bf16 %v1075_v7, %v1074_v55 }
 0x336   : > { %v982_v42 = vpop.f32.mrf.mxu3  ;;  %v10722_v55 = vpop.f32.mrf.mxu2 }
 0x337   : > { %8261 = vmatmul.msk.bf16.gmra.mxu2 %vm1117_vm0, %v1409_v44  ;;  %v983_v26 = vadd.f32 %v982_v42, %v10616_v30 }
 0x339   : > { %v1044_v38 = vmul.f32 2.0, %v983_v26 }
 0x33b   : > { %v1076_v63 = vsub.f32 %v1044_v38, %v9639_v35  ;;  %v9641_v38 = vld [vmem:[%s10096_s25 + $0x70] sm:$0xff] }
 0x33e   : > { %v984_v32 = vpop.f32.mrf.mxu3  ;;  %v10726_v44 = vpop.f32.mrf.mxu2 }
 0x33f   : > { %v985_v2 = vadd.f32 %v984_v32, %v10622_v10 }
 0x341   : > { %v1045_v37 = vmul.f32 2.0, %v985_v2 }
 0x343   : > { %v1077_v40 = vsub.f32 %v1045_v37, %v9640_v59  ;;  %1026 = vmatmul.bf16.gmra.mxu3 %v10442_v28  ;;  %v9642_v37 = vld [vmem:[%s10096_s25 + $0x78] sm:$0xff] }
 0x345   : > { %v1410_v18 = vpack.c.bf16 %v1077_v40, %v1076_v63 }
 0x346   : > { %v987_v7 = vpop.f32.mrf.mxu3  ;;  %v10732_v63 = vpop.f32.mrf.mxu2 }
 0x347   : > { %8262 = vmatmul.msk.bf16.gmra.mxu2 %vm1117_vm0, %v1410_v18  ;;  %v988_v30 = vadd.f32 %v987_v7, %v10630_v4 }
 0x349   : > { %v1046_v42 = vmul.f32 2.0, %v988_v30 }
 0x34b   : > { %v1078_v2 = vsub.f32 %v1046_v42, %v9641_v38  ;;  %v16261_v42 = vld [vmem:[#allocation31_spill] sm:$0xff] }
 0x34e   : > { %v989_v10 = vpop.f32.mrf.mxu3  ;;  %v10736_v36 = vpop.f32.mrf.mxu2 }
 0x34f   : > { %v990_v26 = vadd.f32 %v989_v10, %v10634_v31  ;;  %v16260_v31 = vld [vmem:[#allocation30_spill] sm:$0xff] }
 0x351   : > { %v1047_v32 = vmul.f32 2.0, %v990_v26 }
 0x353   : > { %v1079_v35 = vsub.f32 %v1047_v32, %v9642_v37 }
 0x355   : > { %v1411_v59 = vpack.c.bf16 %v1079_v35, %v1078_v2 }
 0x356   : > { %v992_v28 = vpop.f32.mrf.mxu3 }
 0x357   : > { %8263 = vmatmul.msk.bf16.gmra.mxu2 %vm1117_vm0, %v1411_v59  ;;  %v993_v40 = vadd.f32 %v992_v28, %v10641_v27  ;;  %v1325_v27 = vadd.f32 %v10508_v11, %v10474_v61 }
 0x359   : > { %v1048_v18 = vmul.f32 2.0, %v993_v40  ;;  %v1327_v40 = vadd.f32 %v10512_v3, %v10478_v57 }
 0x35b   : > { %v1080_v10 = vsub.f32 %v1048_v18, %v16260_v31  ;;  %v9644_v31 = vld [vmem:[%s10096_s25 + $0x98] sm:$0xff] }
 0x35e   : > { %v994_v4 = vpop.f32.mrf.mxu3 }
 0x35f   : > { %v995_v7 = vadd.f32 %v994_v4, %v10648_v6 }
 0x361   : > { %v1049_v30 = vmul.f32 2.0, %v995_v7  ;;  %v9643_v7 = vld [vmem:[%s10096_s25 + $0x90] sm:$0xff] }
 0x363   : > { %v1081_v26 = vsub.f32 %v1049_v30, %v16261_v42 }
 0x365   : > { %v1412_v32 = vpack.c.bf16 %v1081_v26, %v1080_v10 }
 0x366   : > { %v997_v38 = vpop.f32.mrf.mxu3 }
 0x367   : > { %8264 = vmatmul.msk.bf16.gmra.mxu2 %vm1117_vm0, %v1412_v32  ;;  %v998_v2 = vadd.f32 %v997_v38, %v10658_v58 }
 0x369   : > { %v1050_v35 = vmul.f32 2.0, %v998_v2 }
 0x36a   : > { %v1494_v28 = vpop.f32.mrf.mxu2 }
 0x36b   : > { %v10744_v6 = vadd.f32 %v1494_v28, %v1325_v27  ;;  %v1082_v30 = vsub.f32 %v1050_v35, %v9643_v7  ;;  %v1332_v27 = vadd.f32 %v10521_v12, %v10488_v60 }
 0x36e   : > { %v999_v37 = vpop.f32.mrf.mxu3 }
 0x36f   : > { %v1000_v59 = vadd.f32 %v999_v37, %v10666_v21  ;;  %v1330_v21 = vadd.f32 %v10515_v15, %v10482_v19  ;;  %v9645_v37 = vld [vmem:[%s10096_s25 + $0xa0] sm:$0xff] }
 0x371   : > { %v1051_v4 = vmul.f32 2.0, %v1000_v59  ;;  %v9646_v59 = vld [vmem:[%s10096_s25 + $0xa8] sm:$0xff] }
 0x372   : > { %v1496_v18 = vpop.f32.mrf.mxu2 }
 0x373   : > { %v1083_v10 = vsub.f32 %v1051_v4, %v9644_v31  ;;  %v10751_v61 = vadd.f32 %v1496_v18, %v1327_v40  ;;  %v1337_v31 = vadd.f32 %v10534_v53, %v10496_v8 }
 0x375   : > { %v1413_v11 = vpack.c.bf16 %v1083_v10, %v1082_v30 }
 0x376   : > { %v1002_v58 = vpop.f32.mrf.mxu3 }
 0x377   : > { %8265 = vmatmul.msk.bf16.gmra.mxu2 %vm1117_vm0, %v1413_v11  ;;  %v1003_v57 = vadd.f32 %v1002_v58, %v10674_v9  ;;  %v9647_v58 = vld [vmem:[%s10096_s25 + $0xb0] sm:$0xff] }
 0x379   : > { %v1052_v32 = vmul.f32 2.0, %v1003_v57 }
 0x37a   : > { %v1499_v42 = vpop.f32.mrf.mxu2 }
 0x37b   : > { %v10757_v3 = vadd.f32 %v1499_v42, %v1330_v21  ;;  %v1084_v35 = vsub.f32 %v1052_v32, %v9645_v37  ;;  %v9648_v42 = vld [vmem:[%s10096_s25 + $0xb8] sm:$0xff] }
 0x37e   : > { %v1004_v26 = vpop.f32.mrf.mxu3 }
 0x37f   : > { %v1005_v38 = vadd.f32 %v1004_v26, %v10680_v41  ;;  %v1335_v41 = vadd.f32 %v10528_v46, %v10492_v54 }
 0x381   : > { %v1053_v28 = vmul.f32 2.0, %v1005_v38 }
 0x382   : > { %v1501_v2 = vpop.f32.mrf.mxu2 }
 0x383   : > { %v1085_v40 = vsub.f32 %v1053_v28, %v9646_v59  ;;  %v10764_v19 = vadd.f32 %v1501_v2, %v1332_v27  ;;  %v1342_v28 = vadd.f32 %v10550_v16, %v10505_v20 }
 0x385   : > { %v1414_v15 = vpack.c.bf16 %v1085_v40, %v1084_v35  ;;  %v9649_v35 = vld [vmem:[%s10096_s25 + $0xc0] sm:$0xff]  ;;  %v9650_v40 = vld [vmem:[%s10096_s25 + $0xc8] sm:$0xff] }
 0x386   : > { %v1007_v9 = vpop.f32.mrf.mxu3 }
 0x387   : > { %8266 = vmatmul.msk.bf16.gmra.mxu2 %vm1117_vm0, %v1414_v15  ;;  %v1008_v60 = vadd.f32 %v1007_v9, %v10687_v25 }
 0x389   : > { %v1054_v7 = vmul.f32 2.0, %v1008_v60 }
 0x38a   : > { %v1504_v4 = vpop.f32.mrf.mxu2 }
 0x38b   : > { %v10770_v12 = vadd.f32 %v1504_v4, %v1335_v41  ;;  %v1086_v21 = vsub.f32 %v1054_v7, %v9647_v58  ;;  %v9651_v7 = vld [vmem:[%s10096_s25 + $0xd0] sm:$0xff] }
 0x38e   : > { %v1009_v18 = vpop.f32.mrf.mxu3 }
 0x38f   : > { %v1010_v30 = vadd.f32 %v1009_v18, %v10691_v47  ;;  %v1340_v47 = vadd.f32 %v10542_v22, %v10500_v14 }
 0x391   : > { %v1055_v10 = vmul.f32 2.0, %v1010_v30 }
 0x392   : > { %v1506_v11 = vpop.f32.mrf.mxu2 }
 0x393   : > { %v1087_v57 = vsub.f32 %v1055_v10, %v9648_v42  ;;  %v10777_v54 = vadd.f32 %v1506_v11, %v1337_v31  ;;  %v9652_v31 = vld [vmem:[%s10096_s25 + $0xd8] sm:$0xff] }
 0x395   : > { %v1415_v46 = vpack.c.bf16 %v1087_v57, %v1086_v21 }
 0x396   : > { %v1012_v25 = vpop.f32.mrf.mxu3 }
 0x397   : > { %8267 = vmatmul.msk.bf16.gmra.mxu2 %vm1117_vm0, %v1415_v46  ;;  %v1013_v8 = vadd.f32 %v1012_v25, %v10698_v5  ;;  %v9653_v25 = vld [vmem:[%s10096_s25 + $0xe0] sm:$0xff] }
 0x399   : > { %v1056_v38 = vmul.f32 2.0, %v1013_v8 }
 0x39a   : > { %v1509_v26 = vpop.f32.mrf.mxu2 }
 0x39b   : > { %v10783_v53 = vadd.f32 %v1509_v26, %v1340_v47  ;;  %v1088_v59 = vsub.f32 %v1056_v38, %v9649_v35  ;;  %v9654_v26 = vld [vmem:[%s10096_s25 + $0xe8] sm:$0xff] }
 0x39e   : > { %v1014_v32 = vpop.f32.mrf.mxu3 }
 0x39f   : > { %v1015_v27 = vadd.f32 %v1014_v32, %v10704_v29 }
 0x3a1   : > { %v1057_v2 = vmul.f32 2.0, %v1015_v27 }
 0x3a2   : > { %v1511_v37 = vpop.f32.mrf.mxu2 }
 0x3a3   : > { %v1089_v14 = vsub.f32 %v1057_v2, %v9650_v40  ;;  %v10790_v22 = vadd.f32 %v1511_v37, %v1342_v28 }
 0x3a5   : > { %v1416_v5 = vpack.c.bf16 %v1089_v14, %v1088_v59  ;;  %v9655_v59 = vld [vmem:[%s10096_s25 + $0xf0] sm:$0xff]  ;;  %v9656_v14 = vld [vmem:[%s10096_s25 + $0xf8] sm:$0xff]  ;;  %s9824_s25 = scalar_lea.hbm %s9823_s16, 1024 }
 0x3a6   : > { %v1017_v15 = vpop.f32.mrf.mxu3  ;;  %p9825_p1 = scmp.ne.s32.totalorder %s9823_s16, %s9824_s25  ;;  %p9830_p10 = scmp.lt.s32.totalorder %s9828_s4, %s9824_s25 }
 0x3a7   : > { %8268 = vmatmul.msk.bf16.gmra.mxu2 %vm1117_vm0, %v1416_v5  ;;  %v1018_v29 = vadd.f32 %v1017_v15, %v10709_v49 }
 0x3a8   : > { %p9826_p4 = pnand %p9825_p1, %p10030_p7  ;;  %p9831_p2 = por %p9830_p10, %p9829_p9 }
 0x3a9   : > { %v1058_v16 = vmul.f32 2.0, %v1018_v29  ;;  %v1360_v29 = vadd.f32 %v10604_v0, %v10582_v34  ;;  %v1352_v0 = vadd.f32 %v10580_v50, %v10554_v17 }
 0x3aa   : > { %v1514_v9 = vpop.f32.mrf.mxu2  ;;  %p9827_p8 = pneg %p9826_p4 }
 0x3ab   : > { %v10795_v41 = vadd.f32 %v1514_v9, %v10558_v43  ;;  %v1090_v30 = vsub.f32 %v1058_v16, %v9651_v7  ;;  %v1362_v16 = vadd.f32 %v10610_v33, %v10592_v13 }
 0x3ac   : > { %p9832_p11 = pnand %p9831_p2, %p9827_p8 }
 0x3ae   : > { %v1019_v20 = vpop.f32.mrf.mxu3 }
 0x3af   : > { %v1020_v4 = vadd.f32 %v1019_v20, %v10715_v45 }
 0x3b1   : > { %v1059_v60 = vmul.f32 2.0, %v1020_v4  ;;  %v10822_v4 = vld [vmem:[%s15629_s3] ss:$0 sm:$0xff] }
 0x3b2   : > { %v1516_v18 = vpop.f32.mrf.mxu2 }
 0x3b3   : > { %v1091_v10 = vsub.f32 %v1059_v60, %v9652_v31  ;;  %v16266_v31 = vld [vmem:[#allocation61_spill] sm:$0xff] }
 0x3b5   : > { %v1417_v11 = vpack.c.bf16 %v1091_v10, %v1090_v30  ;;  %v16267_v10 = vld [vmem:[#allocation62_spill] sm:$0xff] }
 0x3b6   : > { %v1022_v58 = vpop.f32.mrf.mxu3 }
 0x3b7   : > { %8269 = vmatmul.msk.bf16.gmra.mxu2 %vm1117_vm0, %v1417_v11  ;;  %v1023_v43 = vadd.f32 %v1022_v58, %v10722_v55  ;;  %v1347_v11 = vadd.f32 %v16267_v10, %v16266_v31 }
 0x3b9   : > { %v1060_v42 = vmul.f32 2.0, %v1023_v43 }
 0x3ba   : > { %v1519_v49 = vpop.f32.mrf.mxu2 }
 0x3bb   : > { %v1092_v47 = vsub.f32 %v1060_v42, %v9653_v25 }
 0x3be   : > { %v1024_v21 = vpop.f32.mrf.mxu3 }
 0x3bf   : > { %v1025_v57 = vadd.f32 %v1024_v21, %v10726_v44  ;;  %v16269_v21 = vld [vmem:[#allocation64_spill] sm:$0xff] }
 0x3c1   : > { %v1061_v45 = vmul.f32 2.0, %v1025_v57  ;;  %v1583_v57 = vadd.f32 %v1516_v18, %v1347_v11  ;;  %v16292_v11 = vld [vmem:[#allocation29_spill] sm:$0xff] }
 0x3c2   : > { %v1521_v46 = vpop.f32.mrf.mxu2 }
 0x3c3   : > { %v1093_v8 = vsub.f32 %v1061_v45, %v9654_v26  ;;  %v1585_v30 = vadd.f32 %v1521_v46, %v1352_v0  ;;  %v10864_v18 = vadd.f32 %v10822_v4, %v1583_v57 }
 0x3c5   : > { %v1418_v32 = vpack.c.bf16 %v1093_v8, %v1092_v47  ;;  %v10847_v45 = vadd.f32 %v10822_v4, %v1585_v30  ;;  %16274 = vst [vmem:[#allocation31_spill] sm:$0xff] %v10864_v18  ;;  %v16291_v30 = vld [vmem:[#allocation73_spill] sm:$0xff] }
 0x3c6   : > { %v1027_v38 = vpop.f32.mrf.mxu3 }
 0x3c7   : > { %8270 = vmatmul.msk.bf16.gmra.mxu2 %vm1117_vm0, %v1418_v32  ;;  %v1028_v28 = vadd.f32 %v1027_v38, %v10732_v63  ;;  %v1357_v63 = vadd.f32 %v10596_v39, %v10574_v23  ;;  %16271 = vst [vmem:[#allocation19_spill] sm:$0xff] %v10847_v45  ;;  %v15718_v32 = vmax.f32 %v10847_v45, 0.0 }
 0x3c9   : > { %v1062_v2 = vmul.f32 2.0, %v1028_v28 }
 0x3ca   : > { %v1524_v27 = vpop.f32.mrf.mxu2 }
 0x3cb   : > { %v1094_v40 = vsub.f32 %v1062_v2, %v9655_v59  ;;  %v15720_v2 = vmax.f32 %v10864_v18, 0.0 }
 0x3ce   : > { %v1029_v55 = vpop.f32.mrf.mxu3 }
 0x3cf   : > { %v1030_v37 = vadd.f32 %v1029_v55, %v10736_v36  ;;  %v1355_v36 = vadd.f32 %v10588_v24, %v10564_v56  ;;  %v16263_v56 = vld [vmem:[#allocation63_spill] sm:$0xff]  ;;  %v10881_v55 = vadd.f32 %v10822_v4, %v10790_v22  ;;  %v10900_v22 = vadd.f32 %v10822_v4, %v10777_v54 }
 0x3d0   : > { %v1350_v24 = vadd.f32 %v16263_v56, %v10546_v48  ;;  %v16270_v48 = vld [vmem:[#allocation66_spill] sm:$0xff] }
 0x3d1   : > { %v1063_v44 = vmul.f32 2.0, %v1030_v37  ;;  %v1586_v34 = vadd.f32 %v1524_v27, %v1355_v36  ;;  %v1365_v42 = vadd.f32 %v16270_v48, %v16269_v21  ;;  %v10875_v27 = vadd.f32 %v10822_v4, %v10795_v41  ;;  %16277 = vst [vmem:[#allocation62_spill] sm:$0xff] %v10881_v55  ;;  %v16293_v48 = vld [vmem:[#allocation76_spill] sm:$0xff] }
 0x3d2   : > { %v1526_v35 = vpop.f32.mrf.mxu2  ;;  %v1584_v58 = vadd.f32 %v1519_v49, %v1350_v24  ;;  %v10894_v41 = vadd.f32 %v10822_v4, %v10783_v53  ;;  %16280 = vst [vmem:[#allocation78_spill] sm:$0xff] %v10900_v22  ;;  %v15722_v59 = vmax.f32 %v10881_v55, 0.0  ;;  %v10911_v53 = vadd.f32 %v10822_v4, %v10770_v12  ;;  %v16290_v24 = vld [vmem:[#allocation71_spill] sm:$0xff] }
 0x3d3   : > { %v1095_v5 = vsub.f32 %v1063_v44, %v9656_v14  ;;  %v1587_v60 = vadd.f32 %v1526_v35, %v1357_v63  ;;  %v10840_v17 = vadd.f32 %v10822_v4, %v1586_v34  ;;  %16276 = vst [vmem:[#allocation61_spill] sm:$0xff] %v10875_v27  ;;  %v15721_v35 = vmax.f32 %v10875_v27, 0.0 }
 0x3d4   : > { %v10857_v47 = vadd.f32 %v10822_v4, %v1584_v58  ;;  %16279 = vst [vmem:[#allocation66_spill] sm:$0xff] %v10894_v41  ;;  %v15723_v14 = vmax.f32 %v10894_v41, 0.0  ;;  %v15725_v36 = vmax.f32 %v10911_v53, 0.0  ;;  %v1375_v31 = vadd.f32 %v16291_v30, %v16290_v24  ;;  %v16296_v24 = vld [vmem:[#allocation35_spill] sm:$0xff] }
 0x3d5   : > { %v1419_v15 = vpack.c.bf16 %v1095_v5, %v1094_v40  ;;  %v10832_v13 = vadd.f32 %v10822_v4, %v1587_v60  ;;  %16268 = vst [vmem:[#allocation22_spill] sm:$0xff] %v10840_v17  ;;  %v15717_v26 = vmax.f32 %v10840_v17, 0.0  ;;  %v10907_v40 = vpack.c.bf16 %v15720_v2, %v15721_v35  ;;  %v16283_v5 = vld [vmem:[#allocation67_spill] sm:$0xff] }
 0x3d6   : > { %16273 = vst [vmem:[#allocation30_spill] sm:$0xff] %v10857_v47  ;;  %v15719_v28 = vmax.f32 %v10857_v47, 0.0  ;;  %v10926_v63 = vpack.c.bf16 %v15722_v59, %v15723_v14  ;;  %v16298_v59 = vld [vmem:[#allocation27_spill] sm:$0xff] }
 0x3d7   : > { %8271 = vmatmul.msk.bf16.gmra.mxu2 %vm1117_vm0, %v1419_v15  ;;  %16264 = vst [vmem:[#allocation24_spill] sm:$0xff] %v10832_v13  ;;  %v15716_v46 = vmax.f32 %v10832_v13, 0.0  ;;  %v16284_v15 = vld [vmem:[#allocation70_spill] sm:$0xff] }
 0x3d8   : > { %v10888_v37 = vpack.c.bf16 %v15718_v32, %v15719_v28  ;;  %16281 = vst [vmem:[#allocation79_spill] sm:$0xff] %v10907_v40  ;;  %v1370_v54 = vadd.f32 %v16284_v15, %v16283_v5  ;;  %v16295_v5 = vld [vmem:[#allocation33_spill] sm:$0xff] }
 0x3d9   : > { %v10871_v38 = vpack.c.bf16 %v15716_v46, %v15717_v26  ;;  %16282 = vst [vmem:[#allocation80_spill] sm:$0xff] %v10911_v53 }
 0x3da   : > { %v1529_v9 = vpop.f32.mrf.mxu2  ;;  %16278 = vst [vmem:[#allocation64_spill] sm:$0xff] %v10888_v37 }
 0x3db   : > { %v1588_v20 = vadd.f32 %v1529_v9, %v1360_v29  ;;  %16275 = vst [vmem:[#allocation63_spill] sm:$0xff] %v10871_v38  ;;  %v10919_v9 = vadd.f32 %v10822_v4, %v10764_v19  ;;  %v15724_v29 = vmax.f32 %v10900_v22, 0.0  ;;  %v10938_v19 = vadd.f32 %v10822_v4, %v10751_v61 }
 0x3dc   : > { %16286 = vst [vmem:[#allocation70_spill] sm:$0xff] %v10926_v63 }
 0x3dd   : > { %v10827_v39 = vadd.f32 %v10822_v4, %v1588_v20  ;;  %16285 = vst [vmem:[#allocation67_spill] sm:$0xff] %v10919_v9  ;;  %v10930_v20 = vadd.f32 %v10822_v4, %v10757_v3  ;;  %v15726_v60 = vmax.f32 %v10919_v9, 0.0  ;;  %v10949_v3 = vadd.f32 %v10822_v4, %v10744_v6 }
 0x3de   : > { %v15728_v34 = vmax.f32 %v10938_v19, 0.0 }
 0x3df   : > { %16262 = vst [vmem:[#allocation23_spill] sm:$0xff] %v10827_v39  ;;  %v15715_v50 = vmax.f32 %v10827_v39, 0.0  ;;  %v15727_v0 = vmax.f32 %v10930_v20, 0.0  ;;  %v15729_v56 = vmax.f32 %v10949_v3, 0.0 }
 0x3e0   : > { %16287 = vst [vmem:[#allocation81_spill] sm:$0xff] %v10930_v20 }
 0x3e1   : > { %v10958_v61 = vpack.c.bf16 %v15726_v60, %v15727_v0  ;;  %v10968_v6 = vpack.c.bf16 %v15728_v34, %v15729_v56 }
 0x3e2   : > { %v1531_v7 = vpop.f32.mrf.mxu2 }
 0x3e3   : > { %v1589_v23 = vadd.f32 %v1531_v7, %v1362_v16  ;;  %v10945_v7 = vpack.c.bf16 %v15724_v29, %v15725_v36  ;;  %16289 = vst [vmem:[#allocation83_spill] sm:$0xff] %v10958_v61 }
 0x3e5   : > { %v10835_v33 = vadd.f32 %v10822_v4, %v1589_v23  ;;  %16288 = vst [vmem:[#allocation82_spill] sm:$0xff] %v10945_v7 }
 0x3e7   : > { %16265 = vst [vmem:[#allocation21_spill] sm:$0xff] %v10835_v33  ;;  %v15714_v43 = vmax.f32 %v10835_v33, 0.0 }
 0x3e9   : > { %v10854_v49 = vpack.c.bf16 %v15714_v43, %v15715_v50  ;;  %v1237_v43 = vpop.f32.mrf.mxu0 }
 0x3ea   : > { %v1534_v25 = vpop.f32.mrf.mxu2 }
 0x3eb   : > { %16272 = vst [vmem:[#allocation20_spill] sm:$0xff] %v10854_v49  ;;  %v10860_v8 = vadd.f32 %v1534_v25, %v1365_v42  ;;  %1690 = vmatpush.bf16.msra.mxu3 %v10854_v49  ;;  %v16294_v42 = vld [vmem:[#allocation25_spill] sm:$0xff] }
 0x3ec   : > { %v1380_v57 = vadd.f32 %v16294_v42, %v16293_v48  ;;  %v16297_v48 = vld [vmem:[#allocation37_spill] sm:$0xff] }
 0x3ef   : > { %1691 = vmatpush.bf16.msra.mxu3 %v10871_v38 }
 0x3f2   : > { %v10890_v44 = vpop.f32.mrf.mxu2 }
 0x3f3   : > { %1692 = vmatpush.bf16.msra.mxu3 %v10888_v37 }
 0x3f7   : > { %1693 = vmatpush.bf16.msra.mxu3 %v10907_v40 }
 0x3fa   : > { %v1539_v12 = vpop.f32.mrf.mxu2 }
 0x3fb   : > { %v10933_v16 = vadd.f32 %v1539_v12, %v1370_v54  ;;  %1694 = vmatpush.bf16.msra.mxu3 %v10926_v63  ;;  %v1386_v54 = vpop.f32.mrf.mxu1 }
 0x3ff   : > { %1695 = vmatpush.bf16.msra.mxu3 %v10945_v7 }
 0x402   : > { %v10960_v23 = vpop.f32.mrf.mxu2 }
 0x403   : > { %1696 = vmatpush.bf16.msra.mxu3 %v10958_v61 }
 0x407   : > { %1697 = vmatpush.bf16.msra.mxu3 %v10968_v6 }
 0x40a   : > { %v1544_v10 = vpop.f32.mrf.mxu2  ;;  %1698 = vmatmul.bf16.vlgmr.msra.gmra.mxu3 %v16292_v11 }
 0x40b   : > { %v10974_v58 = vadd.f32 %v1544_v10, %v1375_v31  ;;  %v1389_v31 = vpop.f32.mrf.mxu1  ;;  %v1240_v10 = vpop.f32.mrf.mxu0 }
 0x40c   : > { %v1390_v27 = vadd.f32 %v1389_v31, %v1240_v10 }
 0x412   : > { %v10976_v21 = vpop.f32.mrf.mxu2 }
 0x413   : > { %v1391_v26 = vpop.f32.mrf.mxu1  ;;  %v1242_v32 = vpop.f32.mrf.mxu0 }
 0x414   : > { %v1392_v45 = vadd.f32 %v1391_v26, %v1242_v32 }
 0x41a   : > { %v1549_v25 = vpop.f32.mrf.mxu2  ;;  %1703 = vmatmul.bf16.gmra.mxu3 %v16295_v5 }
 0x41b   : > { %v10981_v15 = vadd.f32 %v1549_v25, %v1380_v57  ;;  %v1394_v42 = vpop.f32.mrf.mxu1  ;;  %v1245_v2 = vpop.f32.mrf.mxu0 }
 0x41c   : > { %v1395_v49 = vadd.f32 %v1394_v42, %v1245_v2  ;;  %v16317_v42 = vld [vmem:[#allocation69_spill] sm:$0xff] }
 0x422   : > { %v1551_v12 = vpop.f32.mrf.mxu2 }
 0x423   : > { %v1396_v25 = vpop.f32.mrf.mxu1  ;;  %v1247_v14 = vpop.f32.mrf.mxu0 }
 0x424   : > { %v1397_v56 = vadd.f32 %v1396_v25, %v1247_v14  ;;  %v1387_v14 = vadd.f32 %v1386_v54, %v1237_v43  ;;  %v16306_v43 = vld [vmem:[#allocation32_spill] sm:$0xff]  ;;  %v11052_v25 = vadd.f32 %v10822_v4, %v10981_v15 }
 0x425   : > { %v16323_v15 = vld [vmem:[#allocation68_spill] sm:$0xff] }
 0x426   : > { %16319 = vst [vmem:[#allocation69_spill] sm:$0xff] %v11052_v25 }
 0x42a   : > { %v1554_v50 = vpop.f32.mrf.mxu2  ;;  %1708 = vmatmul.bf16.gmra.mxu3 %v16296_v24 }
 0x42b   : > { %v1598_v30 = vadd.f32 %v1554_v50, %v10677_v1  ;;  %v1399_v36 = vpop.f32.mrf.mxu1  ;;  %v1250_v60 = vpop.f32.mrf.mxu0  ;;  %v16299_v50 = vld [vmem:[#allocation28_spill] sm:$0xff] }
 0x42c   : > { %v1400_v0 = vadd.f32 %v1399_v36, %v1250_v60 }
 0x432   : > { %v1556_v46 = vpop.f32.mrf.mxu2 }
 0x433   : > { %v1401_v34 = vpop.f32.mrf.mxu1  ;;  %v1252_v39 = vpop.f32.mrf.mxu0 }
 0x434   : > { %v1402_v13 = vadd.f32 %v1401_v34, %v1252_v39  ;;  %v11033_v34 = vadd.f32 %v10822_v4, %v1598_v30  ;;  %v16318_v30 = vld [vmem:[#allocation72_spill] sm:$0xff] }
 0x43a   : > { %v1559_v28 = vpop.f32.mrf.mxu2  ;;  %1713 = vmatmul.bf16.gmra.mxu3 %v16297_v48 }
 0x43b   : > { %v1600_v60 = vadd.f32 %v1559_v28, %v1390_v27 }
 0x442   : > { %v1561_v57 = vpop.f32.mrf.mxu2 }
 0x443   : > { %v1601_v40 = vadd.f32 %v1561_v57, %v1392_v45  ;;  %v1372_v57 = vadd.f32 %v16318_v30, %v16317_v42 }
 0x44a   : > { %v1564_v35 = vpop.f32.mrf.mxu2  ;;  %1718 = vmatmul.bf16.gmra.mxu3 %v16298_v59 }
 0x44b   : > { %v1602_v47 = vadd.f32 %v1564_v35, %v1395_v49 }
 0x44d   : > { %v10998_v39 = vadd.f32 %v10822_v4, %v1602_v47  ;;  %v16307_v47 = vld [vmem:[#allocation26_spill] sm:$0xff] }
 0x44f   : > { %16303 = vst [vmem:[#allocation25_spill] sm:$0xff] %v10998_v39 }
 0x452   : > { %v1566_v29 = vpop.f32.mrf.mxu2 }
 0x453   : > { %v1603_v17 = vadd.f32 %v1566_v29, %v1397_v56  ;;  %v16313_v29 = vld [vmem:[#allocation75_spill] sm:$0xff] }
 0x455   : > { %v10992_v55 = vadd.f32 %v10822_v4, %v1603_v17 }
 0x457   : > { %16301 = vst [vmem:[#allocation73_spill] sm:$0xff] %v10992_v55  ;;  %v15749_v45 = vmax.f32 %v10992_v55, 0.0  ;;  %v8322_v55 = vld [vmem:[#allocation8 + $0xe0] sm:$0xf] }
 0x45a   : > { %v1569_v1 = vpop.f32.mrf.mxu2  ;;  %1723 = vmatmul.bf16.gmra.mxu3 %v16299_v50 }
 0x45b   : > { %v1604_v33 = vadd.f32 %v1569_v1, %v1400_v0  ;;  %v1593_v1 = vadd.f32 %v10960_v23, %v1372_v57  ;;  %v15756_v23 = vmax.f32 %v11052_v25, 0.0 }
 0x45d   : > { %v10989_v37 = vadd.f32 %v10822_v4, %v1604_v33  ;;  %v1599_v33 = vadd.f32 %v1556_v46, %v1387_v14  ;;  %v15750_v46 = vmax.f32 %v10998_v39, 0.0  ;;  %v9307_v39 = vld [vmem:[#allocation8 + $0xe4] sm:$0xf0] }
 0x45f   : > { %16300 = vst [vmem:[#allocation71_spill] sm:$0xff] %v10989_v37  ;;  %v15748_v26 = vmax.f32 %v10989_v37, 0.0  ;;  %v11021_v28 = vadd.f32 %v10822_v4, %v1599_v33  ;;  %v11028_v35 = vpack.c.bf16 %v15749_v45, %v15750_v46  ;;  %v16336_v45 = vld [vmem:[#allocation38_spill] sm:$0xff]  ;;  %v16337_v46 = vld [vmem:[#allocation45_spill] sm:$0xff] }
 0x460   : > { %v9309_v37 = vld [vmem:[#allocation8 + $0xf4] sm:$0xf0] }
 0x461   : > { %16311 = vst [vmem:[#allocation86_spill] sm:$0xff] %v11028_v35  ;;  %v15753_v31 = vmax.f32 %v11021_v28, 0.0 }
 0x462   : > { %v1571_v38 = vpop.f32.mrf.mxu2 }
 0x463   : > { %v1605_v18 = vadd.f32 %v1571_v38, %v1402_v13  ;;  %v11003_v13 = vadd.f32 %v10822_v4, %v1601_v40  ;;  %v11016_v38 = vadd.f32 %v10822_v4, %v1600_v60  ;;  %v16312_v40 = vld [vmem:[#allocation74_spill] sm:$0xff] }
 0x464   : > { %v1377_v0 = vadd.f32 %v16313_v29, %v16312_v40  ;;  %16314 = vst [vmem:[#allocation74_spill] sm:$0xff] %v11033_v34  ;;  %v11077_v40 = vadd.f32 %v10822_v4, %v1593_v1  ;;  %v11105_v1 = vadd.f32 %v10822_v4, %v10860_v8  ;;  %v16334_v8 = vld [vmem:[#allocation36_spill] sm:$0xff] }
 0x465   : > { %v10995_v36 = vadd.f32 %v10822_v4, %v1605_v18  ;;  %16304 = vst [vmem:[#allocation84_spill] sm:$0xff] %v11003_v13  ;;  %v16308_v18 = vld [vmem:[#allocation77_spill] sm:$0xff]  ;;  %v15751_v2 = vmax.f32 %v11003_v13, 0.0  ;;  %v15752_v56 = vmax.f32 %v11016_v38, 0.0  ;;  %v8323_v13 = vor.u32 %v9307_v39, %v8322_v55  ;;  %v8290_v55 = vld [vmem:[#allocation8 + $0xa0] sm:$0xf] }
 0x466   : > { %v1382_v32 = vadd.f32 %v16308_v18, %v16307_v47  ;;  %16309 = vst [vmem:[#allocation26_spill] sm:$0xff] %v11016_v38  ;;  %v1595_v54 = vadd.f32 %v10976_v21, %v1377_v0  ;;  %v15754_v21 = vmax.f32 %v11033_v34, 0.0  ;;  %v16322_v47 = vld [vmem:[#allocation65_spill] sm:$0xff]  ;;  %v15759_v30 = vmax.f32 %v11077_v40, 0.0  ;;  %v9299_v39 = vld [vmem:[#allocation8 + $0xa4] sm:$0xf0] }
 0x467   : > { %16302 = vst [vmem:[#allocation76_spill] sm:$0xff] %v10995_v36  ;;  %v15747_v49 = vmax.f32 %v10995_v36, 0.0  ;;  %v11046_v10 = vpack.c.bf16 %v15751_v2, %v15752_v56  ;;  %v1367_v18 = vadd.f32 %v16323_v15, %v16322_v47  ;;  %v8330_v36 = vld [vmem:[#allocation8 + $0xf0] sm:$0xf] }
 0x468   : > { %v1597_v27 = vadd.f32 %v1551_v12, %v1382_v32  ;;  %16310 = vst [vmem:[#allocation77_spill] sm:$0xff] %v11021_v28  ;;  %v11058_v14 = vadd.f32 %v10822_v4, %v1595_v54  ;;  %v11065_v33 = vpack.c.bf16 %v15753_v31, %v15754_v21  ;;  %v11071_v32 = vadd.f32 %v10822_v4, %v10974_v58  ;;  %v16327_v54 = vld [vmem:[#allocation34_spill] sm:$0xff]  ;;  %v16338_v31 = vld [vmem:[#allocation39_spill] sm:$0xff]  ;;  %v16345_v28 = vld [vmem:[#allocation53_spill] sm:$0xff] }
 0x469   : > { %v11010_v17 = vpack.c.bf16 %v15747_v49, %v15748_v26  ;;  %16316 = vst [vmem:[#allocation87_spill] sm:$0xff] %v11046_v10  ;;  %v11089_v58 = vadd.f32 %v10822_v4, %v10933_v16  ;;  %v16339_v21 = vld [vmem:[#allocation47_spill] sm:$0xff]  ;;  %v8314_v34 = vld [vmem:[#allocation8 + $0xd0] sm:$0xf] }
 0x46a   : > { %1728 = vmatmul.bf16.gmra.mxu3 %v16306_v43  ;;  %v11039_v12 = vadd.f32 %v10822_v4, %v1597_v27  ;;  %16320 = vst [vmem:[#allocation72_spill] sm:$0xff] %v11058_v14  ;;  %v1591_v27 = vadd.f32 %v10890_v44, %v1367_v18  ;;  %v15757_v29 = vmax.f32 %v11058_v14, 0.0  ;;  %v15758_v42 = vmax.f32 %v11071_v32, 0.0 }
 0x46b   : > { %16305 = vst [vmem:[#allocation85_spill] sm:$0xff] %v11010_v17  ;;  %1779 = vmatpush.bf16.msra.mxu0 %v11010_v17  ;;  %v15760_v16 = vmax.f32 %v11089_v58, 0.0  ;;  %v15762_v18 = vmax.f32 %v11105_v1, 0.0  ;;  %v8331_v17 = vor.u32 %v9309_v37, %v8330_v36  ;;  %v8298_v36 = vld [vmem:[#allocation8 + $0xb0] sm:$0xf] }
 0x46c   : > { %16315 = vst [vmem:[#allocation75_spill] sm:$0xff] %v11039_v12  ;;  %v15755_v60 = vmax.f32 %v11039_v12, 0.0  ;;  %v11094_v44 = vadd.f32 %v10822_v4, %v1591_v27  ;;  %v11101_v57 = vpack.c.bf16 %v15757_v29, %v15758_v42  ;;  %v16335_v27 = vld [vmem:[#allocation43_spill] sm:$0xff]  ;;  %v16340_v29 = vld [vmem:[#allocation40_spill] sm:$0xff]  ;;  %v16341_v42 = vld [vmem:[#allocation49_spill] sm:$0xff] }
 0x46d   : > { %16321 = vst [vmem:[#allocation88_spill] sm:$0xff] %v11065_v33  ;;  %v11114_v15 = vpack.c.bf16 %v15759_v30, %v15760_v16  ;;  %2239 = vmatpush.bf16.msrb.mxu3 %v8331_v17  ;;  %v8306_v12 = vld [vmem:[#allocation8 + $0xc0] sm:$0xf]  ;;  %v9301_v17 = vld [vmem:[#allocation8 + $0xb4] sm:$0xf0] }
 0x46e   : > { %16324 = vst [vmem:[#allocation65_spill] sm:$0xff] %v11071_v32  ;;  %v11084_v0 = vpack.c.bf16 %v15755_v60, %v15756_v23  ;;  %v15761_v47 = vmax.f32 %v11094_v44, 0.0  ;;  %v8299_v14 = vor.u32 %v9301_v17, %v8298_v36  ;;  %v16349_v17 = vld [vmem:[#allocation57_spill] sm:$0xff] }
 0x46f   : > { %1780 = vmatpush.bf16.msra.mxu0 %v11028_v35  ;;  %16325 = vst [vmem:[#allocation68_spill] sm:$0xff] %v11077_v40  ;;  %v16347_v40 = vld [vmem:[#allocation55_spill] sm:$0xff] }
 0x470   : > { %16326 = vst [vmem:[#allocation89_spill] sm:$0xff] %v11084_v0  ;;  %v11122_v4 = vpack.c.bf16 %v15761_v47, %v15762_v18  ;;  %v16342_v47 = vld [vmem:[#allocation41_spill] sm:$0xff]  ;;  %v16343_v18 = vld [vmem:[#allocation51_spill] sm:$0xff] }
 0x471   : > { %16328 = vst [vmem:[#allocation90_spill] sm:$0xff] %v11089_v58  ;;  %2240 = vmatpush.bf16.msrb.mxu3 %v8323_v13  ;;  %v8291_v13 = vor.u32 %v9299_v39, %v8290_v55  ;;  %v8282_v58 = vld [vmem:[#allocation8 + $0x90] sm:$0xf] }
 0x472   : > { %16329 = vst [vmem:[#allocation91_spill] sm:$0xff] %v11094_v44  ;;  %v16351_v44 = vld [vmem:[#allocation50_spill] sm:$0xff] }
 0x473   : > { %1781 = vmatpush.bf16.msra.mxu0 %v11046_v10  ;;  %16330 = vst [vmem:[#allocation92_spill] sm:$0xff] %v11101_v57  ;;  %v16344_v10 = vld [vmem:[#allocation42_spill] sm:$0xff] }
 0x474   : > { %16331 = vst [vmem:[#allocation93_spill] sm:$0xff] %v11105_v1 }
 0x475   : > { %16332 = vst [vmem:[#allocation94_spill] sm:$0xff] %v11114_v15 }
 0x476   : > { %16333 = vst [vmem:[#allocation95_spill] sm:$0xff] %v11122_v4 }
 0x477   : > { %1782 = vmatpush.bf16.msra.mxu0 %v11065_v33  ;;  %v9305_v33 = vld [vmem:[#allocation8 + $0xd4] sm:$0xf0] }
 0x478   : > { %v8315_v25 = vor.u32 %v9305_v33, %v8314_v34  ;;  %v9297_v34 = vld [vmem:[#allocation8 + $0x94] sm:$0xf0] }
 0x479   : > { %v8283_v33 = vor.u32 %v9297_v34, %v8282_v58 }
 0x47a   : > { %1733 = vmatmul.bf16.gmra.mxu3 %v16327_v54 }
 0x47b   : > { %1783 = vmatpush.bf16.msra.mxu0 %v11084_v0  ;;  %v9303_v0 = vld [vmem:[#allocation8 + $0xc4] sm:$0xf0]  ;;  %2241 = vmatpush.bf16.msrb.mxu3 %v8315_v25 }
 0x47c   : > { %v8307_v37 = vor.u32 %v9303_v0, %v8306_v12  ;;  %v8274_v12 = vld [vmem:[#allocation8 + $0x80] sm:$0xf]  ;;  %v9295_v0 = vld [vmem:[#allocation8 + $0x84] sm:$0xf0] }
 0x47f   : > { %1784 = vmatpush.bf16.msra.mxu0 %v11101_v57  ;;  %2242 = vmatpush.bf16.msrb.mxu3 %v8307_v37  ;;  %v16346_v57 = vld [vmem:[#allocation44_spill] sm:$0xff]  ;;  %v8275_v37 = vor.u32 %v9295_v0, %v8274_v12 }
 0x483   : > { %1785 = vmatpush.bf16.msra.mxu0 %v11114_v15  ;;  %2243 = vmatpush.bf16.msrb.mxu3 %v8299_v14  ;;  %v16348_v14 = vld [vmem:[#allocation46_spill] sm:$0xff]  ;;  %v16350_v15 = vld [vmem:[#allocation48_spill] sm:$0xff] }
 0x487   : > { %1786 = vmatpush.bf16.msra.mxu0 %v11122_v4  ;;  %2244 = vmatpush.bf16.msrb.mxu3 %v8291_v13 }
 0x48a   : > { %1787 = vmatmul.bf16.vlgmr.msra.gmra.mxu0 %v16334_v8  ;;  %1738 = vmatmul.bf16.gmra.mxu3 %v16335_v27 }
 0x48b   : > { %2245 = vmatpush.bf16.msrb.mxu3 %v8283_v33 }
 0x48d   : > { %v11127_v49 = vpop.f32.mrf.mxu3 }
 0x48f   : > { %2246 = vmatpush.bf16.msrb.mxu3 %v8275_v37 }
 0x495   : > { %v11129_v26 = vpop.f32.mrf.mxu3 }
 0x49a   : > { %1792 = vmatmul.bf16.gmra.mxu0 %v16336_v45  ;;  %1743 = vmatmul.bf16.gmra.mxu3 %v16337_v46 }
 0x49d   : > { %v11133_v2 = vpop.f32.mrf.mxu3 }
 0x4a5   : > { %v11135_v56 = vpop.f32.mrf.mxu3 }
 0x4aa   : > { %1797 = vmatmul.bf16.gmra.mxu0 %v16338_v31  ;;  %1748 = vmatmul.bf16.gmra.mxu3 %v16339_v21 }
 0x4ad   : > { %v11139_v60 = vpop.f32.mrf.mxu3 }
 0x4b5   : > { %v11141_v23 = vpop.f32.mrf.mxu3 }
 0x4ba   : > { %1802 = vmatmul.bf16.gmra.mxu0 %v16340_v29  ;;  %1753 = vmatmul.bf16.gmra.mxu3 %v16341_v42 }
 0x4bd   : > { %v11145_v30 = vpop.f32.mrf.mxu3 }
 0x4c5   : > { %v11147_v16 = vpop.f32.mrf.mxu3 }
 0x4ca   : > { %1807 = vmatmul.bf16.gmra.mxu0 %v16342_v47  ;;  %1758 = vmatmul.bf16.gmra.mxu3 %v16343_v18 }
 0x4cd   : > { %v11151_v35 = vpop.f32.mrf.mxu3 }
 0x4d5   : > { %v11153_v38 = vpop.f32.mrf.mxu3 }
 0x4da   : > { %1812 = vmatmul.bf16.gmra.mxu0 %v16344_v10  ;;  %1763 = vmatmul.bf16.gmra.mxu3 %v16345_v28 }
 0x4dd   : > { %v11157_v32 = vpop.f32.mrf.mxu3 }
 0x4e5   : > { %v11161_v25 = vpop.f32.mrf.mxu3 }
 0x4ea   : > { %1817 = vmatmul.bf16.gmra.mxu0 %v16346_v57  ;;  %1768 = vmatmul.bf16.gmra.mxu3 %v16347_v40 }
 0x4ed   : > { %v11163_v36 = vpop.f32.mrf.mxu3 }
 0x4f5   : > { %v11167_v55 = vpop.f32.mrf.mxu3 }
 0x4fa   : > { %1822 = vmatmul.bf16.gmra.mxu0 %v16348_v14  ;;  %1773 = vmatmul.bf16.gmra.mxu3 %v16349_v17 }
 0x4fd   : > { %v11169_v13 = vpop.f32.mrf.mxu3 }
 0x505   : > { %v11176_v0 = vpop.f32.mrf.mxu3 }
 0x507   : > { %v1788_v39 = vpop.f32.mrf.mxu0 }
 0x508   : > { %v1789_v34 = vadd.f32 %v1788_v39, %v11127_v49  ;;  %v16352_v39 = vld [vmem:[#allocation52_spill] sm:$0xff] }
 0x50a   : > { %1827 = vmatmul.bf16.gmra.mxu0 %v16350_v15 }
 0x50d   : > { %v11180_v1 = vpop.f32.mrf.mxu3 }
 0x50f   : > { %v1790_v58 = vpop.f32.mrf.mxu0 }
 0x510   : > { %v1791_v33 = vadd.f32 %v1790_v58, %v11129_v26 }
 0x512   : > { %v11174_v12 = vpack.c.bf16 %v1791_v33, %v1789_v34 }
 0x514   : > { %2247 = vmatmul.bf16.vlgmr.msrb.gmra.mxu3 %v11174_v12 }
 0x515   : > { %v11187_v49 = vpop.f32.mrf.mxu3 }
 0x517   : > { %v1793_v37 = vpop.f32.mrf.mxu0 }
 0x518   : > { %v1794_v41 = vadd.f32 %v1793_v37, %v11133_v2 }
 0x51a   : > { %1832 = vmatmul.bf16.gmra.mxu0 %v16351_v44 }
 0x51d   : > { %v11192_v53 = vpop.f32.mrf.mxu3 }
 0x51f   : > { %v1795_v4 = vpop.f32.mrf.mxu0 }
 0x520   : > { %v1796_v63 = vadd.f32 %v1795_v4, %v11135_v56 }
 0x522   : > { %v11184_v22 = vpack.c.bf16 %v1796_v63, %v1794_v41 }
 0x524   : > { %2252 = vmatmul.bf16.gmra.mxu3 %v11184_v22 }
 0x525   : > { %v11198_v63 = vpop.f32.mrf.mxu3 }
 0x527   : > { %v1798_v26 = vpop.f32.mrf.mxu0 }
 0x528   : > { %v1799_v34 = vadd.f32 %v1798_v26, %v11139_v60  ;;  %v9308_v26 = vld [vmem:[#allocation8 + $0xf4] sm:$0xf] }
 0x52a   : > { %1837 = vmatmul.bf16.gmra.mxu0 %v16352_v39 }
 0x52d   : > { %v11205_v60 = vpop.f32.mrf.mxu3 }
 0x52f   : > { %v1800_v58 = vpop.f32.mrf.mxu0 }
 0x530   : > { %v1801_v33 = vadd.f32 %v1800_v58, %v11141_v23  ;;  %v8332_v58 = vld [vmem:[#allocation8 + $0xf8] sm:$0xf0] }
 0x532   : > { %v11194_v7 = vpack.c.bf16 %v1801_v33, %v1799_v34  ;;  %v8335_v34 = vor.u32 %v9308_v26, %v8332_v58  ;;  %v9306_v33 = vld [vmem:[#allocation8 + $0xe4] sm:$0xf]  ;;  %v8308_v58 = vld [vmem:[#allocation8 + $0xc8] sm:$0xf0] }
 0x533   : > { %v9302_v26 = vld [vmem:[#allocation8 + $0xc4] sm:$0xf] }
 0x534   : > { %2257 = vmatmul.bf16.gmra.mxu3 %v11194_v7  ;;  %2328 = vmatpush.bf16.msrb.mxu0 %v8335_v34  ;;  %v8311_v34 = vor.u32 %v9302_v26, %v8308_v58 }
 0x537   : > { %v1803_v41 = vpop.f32.mrf.mxu0 }
 0x538   : > { %v1804_v56 = vadd.f32 %v1803_v41, %v11145_v30  ;;  %v11208_v30 = vpop.f32.mrf.mxu3 }
 0x53a   : > { %1842 = vmatmul.bf16.gmra.mxu0 %v16254_v62  ;;  %v8324_v62 = vld [vmem:[#allocation8 + $0xe8] sm:$0xf0] }
 0x53b   : > { %v8327_v39 = vor.u32 %v9306_v33, %v8324_v62  ;;  %v8300_v33 = vld [vmem:[#allocation8 + $0xb8] sm:$0xf0] }
 0x53d   : > { %2329 = vmatpush.bf16.msrb.mxu0 %v8327_v39  ;;  %v9300_v39 = vld [vmem:[#allocation8 + $0xb4] sm:$0xf] }
 0x53f   : > { %v1805_v2 = vpop.f32.mrf.mxu0 }
 0x540   : > { %v1806_v4 = vadd.f32 %v1805_v2, %v11147_v16  ;;  %v9304_v2 = vld [vmem:[#allocation8 + $0xd4] sm:$0xf]  ;;  %v11215_v61 = vpop.f32.mrf.mxu3 }
 0x542   : > { %v11202_v37 = vpack.c.bf16 %v1806_v4, %v1804_v56  ;;  %v8316_v56 = vld [vmem:[#allocation8 + $0xd8] sm:$0xf0] }
 0x543   : > { %v8319_v4 = vor.u32 %v9304_v2, %v8316_v56  ;;  %v9296_v2 = vld [vmem:[#allocation8 + $0x94] sm:$0xf]  ;;  %v8284_v56 = vld [vmem:[#allocation8 + $0x98] sm:$0xf0] }
 0x544   : > { %2262 = vmatmul.bf16.gmra.mxu3 %v11202_v37 }
 0x545   : > { %2330 = vmatpush.bf16.msrb.mxu0 %v8319_v4  ;;  %v8287_v4 = vor.u32 %v9296_v2, %v8284_v56 }
 0x547   : > { %v1808_v23 = vpop.f32.mrf.mxu0 }
 0x548   : > { %v1809_v16 = vadd.f32 %v1808_v23, %v11151_v35  ;;  %v11222_v58 = vpop.f32.mrf.mxu3 }
 0x549   : > { %2331 = vmatpush.bf16.msrb.mxu0 %v8311_v34  ;;  %v8276_v34 = vld [vmem:[#allocation8 + $0x88] sm:$0xf0] }
 0x54a   : > { %1847 = vmatmul.bf16.gmra.mxu0 %v16257_v51  ;;  %v8303_v51 = vor.u32 %v9300_v39, %v8300_v33 }
 0x54d   : > { %2332 = vmatpush.bf16.msrb.mxu0 %v8303_v51  ;;  %v9294_v51 = vld [vmem:[#allocation8 + $0x84] sm:$0xf] }
 0x54e   : > { %v8279_v39 = vor.u32 %v9294_v51, %v8276_v34 }
 0x54f   : > { %v1810_v9 = vpop.f32.mrf.mxu0 }
 0x550   : > { %v1811_v41 = vadd.f32 %v1810_v9, %v11153_v38  ;;  %v9298_v9 = vld [vmem:[#allocation8 + $0xa4] sm:$0xf]  ;;  %v8292_v38 = vld [vmem:[#allocation8 + $0xa8] sm:$0xf0] }
 0x551   : > { %v8295_v35 = vor.u32 %v9298_v9, %v8292_v38  ;;  %v16353_v9 = vld [vmem:[#allocation59_spill] sm:$0xff] }
 0x552   : > { %v11212_v20 = vpack.c.bf16 %v1811_v41, %v1809_v16 }
 0x553   : > { %2333 = vmatpush.bf16.msrb.mxu0 %v8295_v35 }
 0x554   : > { %2267 = vmatmul.bf16.gmra.mxu3 %v11212_v20 }
 0x557   : > { %v1813_v62 = vpop.f32.mrf.mxu0  ;;  %2334 = vmatpush.bf16.msrb.mxu0 %v8287_v4 }
 0x558   : > { %v1814_v16 = vadd.f32 %v1813_v62, %v11157_v32  ;;  %v11226_v32 = vpop.f32.mrf.mxu3 }
 0x55a   : > { %1852 = vmatmul.bf16.gmra.mxu0 %v16258_v52 }
 0x55b   : > { %2335 = vmatpush.bf16.msrb.mxu0 %v8279_v39 }
 0x55f   : > { %v1815_v23 = vpop.f32.mrf.mxu0 }
 0x560   : > { %v1816_v41 = vadd.f32 %v1815_v23, %v11161_v25 }
 0x562   : > { %v11220_v26 = vpack.c.bf16 %v1816_v41, %v1814_v16  ;;  %v1761_v16 = vpop.f32.mrf.mxu3  ;;  %v16354_v41 = vld [vmem:[#allocation60_spill] sm:$0xff] }
 0x564   : > { %2272 = vmatmul.bf16.gmra.mxu3 %v11220_v26 }
 0x567   : > { %v1818_v33 = vpop.f32.mrf.mxu0 }
 0x568   : > { %v1819_v62 = vadd.f32 %v1818_v33, %v11163_v36 }
 0x56a   : > { %1857 = vmatmul.bf16.gmra.mxu0 %v16353_v9  ;;  %v1764_v51 = vpop.f32.mrf.mxu3 }
 0x56f   : > { %v1820_v25 = vpop.f32.mrf.mxu0 }
 0x570   : > { %v1821_v38 = vadd.f32 %v1820_v25, %v11167_v55 }
 0x572   : > { %v11230_v35 = vpack.c.bf16 %v1821_v38, %v1819_v62  ;;  %v1766_v55 = vpop.f32.mrf.mxu3 }
 0x574   : > { %2277 = vmatmul.bf16.gmra.mxu3 %v11230_v35 }
 0x577   : > { %v1823_v23 = vpop.f32.mrf.mxu0 }
 0x578   : > { %v1824_v56 = vadd.f32 %v1823_v23, %v11169_v13 }
 0x57a   : > { %1862 = vmatmul.bf16.gmra.mxu0 %v16354_v41  ;;  %v1769_v25 = vpop.f32.mrf.mxu3 }
 0x57f   : > { %v1825_v2 = vpop.f32.mrf.mxu0 }
 0x580   : > { %v1826_v4 = vadd.f32 %v1825_v2, %v11176_v0 }
 0x582   : > { %v11236_v34 = vpack.c.bf16 %v1826_v4, %v1824_v56 }
 0x584   : > { %1884 = vmatpush.bf16.msrb.mxu1 %v11236_v34  ;;  %2282 = vmatmul.bf16.gmra.mxu3 %v11236_v34 }
 0x587   : > { %v1828_v36 = vpop.f32.mrf.mxu0 }
 0x588   : > { %1885 = vmatpush.bf16.msrb.mxu1 %v11230_v35  ;;  %v1829_v13 = vadd.f32 %v1828_v36, %v11180_v1  ;;  %v1771_v1 = vpop.f32.mrf.mxu3 }
 0x58a   : > { %2336 = vmatmul.bf16.vlgmr.msrb.gmra.mxu0 %v11174_v12 }
 0x58c   : > { %1886 = vmatpush.bf16.msrb.mxu1 %v11220_v26 }
 0x58f   : > { %v1830_v39 = vpop.f32.mrf.mxu0 }
 0x590   : > { %v1831_v0 = vadd.f32 %v1830_v39, %v11187_v49  ;;  %1887 = vmatpush.bf16.msrb.mxu1 %v11212_v20  ;;  %v1774_v4 = vpop.f32.mrf.mxu3 }
 0x592   : > { %v11246_v33 = vpack.c.bf16 %v1831_v0, %v1829_v13 }
 0x594   : > { %1888 = vmatpush.bf16.msrb.mxu1 %v11202_v37  ;;  %2287 = vmatmul.bf16.gmra.mxu3 %v11246_v33 }
 0x597   : > { %v1833_v62 = vpop.f32.mrf.mxu0 }
 0x598   : > { %1889 = vmatpush.bf16.msrb.mxu1 %v11194_v7  ;;  %v1834_v49 = vadd.f32 %v1833_v62, %v11192_v53 }
 0x59a   : > { %2341 = vmatmul.bf16.gmra.mxu0 %v11184_v22 }
 0x59c   : > { %1890 = vmatpush.bf16.msrb.mxu1 %v11184_v22 }
 0x59f   : > { %v1835_v38 = vpop.f32.mrf.mxu0 }
 0x5a0   : > { %v1836_v23 = vadd.f32 %v1835_v38, %v11198_v63  ;;  %1891 = vmatpush.bf16.msrb.mxu1 %v11174_v12  ;;  %v1776_v12 = vpop.f32.mrf.mxu3 }
 0x5a2   : > { %v11256_v2 = vpack.c.bf16 %v1836_v23, %v1834_v49 }
 0x5a3   : > { %1892 = vmatmul.bf16.vlgmr.msrb.gmra.mxu1 %v16292_v11 }
 0x5a4   : > { %2292 = vmatmul.bf16.gmra.mxu3 %v11256_v2 }
 0x5a7   : > { %v1838_v56 = vpop.f32.mrf.mxu0 }
 0x5a8   : > { %v1839_v22 = vadd.f32 %v1838_v56, %v11205_v60  ;;  %v11268_v13 = vpop.f32.mrf.mxu3 }
 0x5aa   : > { %2346 = vmatmul.bf16.gmra.mxu0 %v11194_v7 }
 0x5af   : > { %v1840_v36 = vpop.f32.mrf.mxu0 }
 0x5b0   : > { %v1841_v39 = vadd.f32 %v1840_v36, %v11208_v30  ;;  %v11276_v38 = vpop.f32.mrf.mxu3 }
 0x5b2   : > { %v11263_v53 = vpack.c.bf16 %v1841_v39, %v1839_v22 }
 0x5b3   : > { %1897 = vmatmul.bf16.gmra.mxu1 %v16295_v5 }
 0x5b4   : > { %2297 = vmatmul.bf16.gmra.mxu3 %v11263_v53 }
 0x5b7   : > { %v1843_v63 = vpop.f32.mrf.mxu0 }
 0x5b8   : > { %v1844_v7 = vadd.f32 %v1843_v63, %v11215_v61  ;;  %v11280_v56 = vpop.f32.mrf.mxu3 }
 0x5ba   : > { %2351 = vmatmul.bf16.gmra.mxu0 %v11202_v37 }
 0x5bf   : > { %v1845_v0 = vpop.f32.mrf.mxu0 }
 0x5c0   : > { %v1846_v62 = vadd.f32 %v1845_v0, %v11222_v58  ;;  %v11284_v36 = vpop.f32.mrf.mxu3 }
 0x5c2   : > { %v11272_v60 = vpack.c.bf16 %v1846_v62, %v1844_v7 }
 0x5c3   : > { %1902 = vmatmul.bf16.gmra.mxu1 %v16296_v24  ;;  %v16397_v24 = vld [vmem:[#allocation62_spill] sm:$0xff] }
 0x5c4   : > { %2302 = vmatmul.bf16.gmra.mxu3 %v11272_v60  ;;  %v16398_v5 = vmax.f32 %v16397_v24, 0.0 }
 0x5c7   : > { %v1848_v30 = vpop.f32.mrf.mxu0 }
 0x5c8   : > { %v1849_v37 = vadd.f32 %v1848_v30, %v11226_v32 }
 0x5ca   : > { %2356 = vmatmul.bf16.gmra.mxu0 %v11212_v20  ;;  %v11287_v20 = vpop.f32.mrf.mxu3 }
 0x5cf   : > { %v1850_v49 = vpop.f32.mrf.mxu0 }
 0x5d0   : > { %v1851_v23 = vadd.f32 %v1850_v49, %v1761_v16 }
 0x5d2   : > { %v1880_v61 = vpack.c.bf16 %v1851_v23, %v1849_v37  ;;  %v11290_v7 = vpop.f32.mrf.mxu3 }
 0x5d3   : > { %1907 = vmatmul.bf16.gmra.mxu1 %v16297_v48 }
 0x5d4   : > { %2307 = vmatmul.bf16.gmra.mxu3 %v1880_v61 }
 0x5d7   : > { %v1853_v58 = vpop.f32.mrf.mxu0 }
 0x5d8   : > { %v1854_v39 = vadd.f32 %v1853_v58, %v1764_v51 }
 0x5da   : > { %2361 = vmatmul.bf16.gmra.mxu0 %v11220_v26 }
 0x5df   : > { %v1855_v22 = vpop.f32.mrf.mxu0 }
 0x5e0   : > { %v1856_v63 = vadd.f32 %v1855_v22, %v1766_v55  ;;  %v11296_v55 = vpop.f32.mrf.mxu3 }
 0x5e2   : > { %v1881_v0 = vpack.c.bf16 %v1856_v63, %v1854_v39 }
 0x5e3   : > { %1912 = vmatmul.bf16.gmra.mxu1 %v16298_v59 }
 0x5e4   : > { %2312 = vmatmul.bf16.gmra.mxu3 %v1881_v0 }
 0x5e7   : > { %v1858_v32 = vpop.f32.mrf.mxu0 }
 0x5e8   : > { %v1859_v62 = vadd.f32 %v1858_v32, %v1769_v25  ;;  %v11302_v25 = vpop.f32.mrf.mxu3 }
 0x5ea   : > { %2366 = vmatmul.bf16.gmra.mxu0 %v11230_v35 }
 0x5ef   : > { %v1860_v16 = vpop.f32.mrf.mxu0 }
 0x5f0   : > { %v1861_v30 = vadd.f32 %v1860_v16, %v1771_v1  ;;  %v11344_v32 = vpop.f32.mrf.mxu3 }
 0x5f2   : > { %v11292_v26 = vpack.c.bf16 %v1861_v30, %v1859_v62 }
 0x5f3   : > { %1917 = vmatmul.bf16.gmra.mxu1 %v16299_v50 }
 0x5f4   : > { %2317 = vmatmul.bf16.gmra.mxu3 %v11292_v26 }
 0x5f7   : > { %v1863_v51 = vpop.f32.mrf.mxu0 }
 0x5f8   : > { %v1864_v37 = vadd.f32 %v1863_v51, %v1774_v4  ;;  %v11352_v62 = vpop.f32.mrf.mxu3 }
 0x5fa   : > { %2371 = vmatmul.bf16.gmra.mxu0 %v11236_v34 }
 0x5ff   : > { %v1865_v49 = vpop.f32.mrf.mxu0 }
 0x600   : > { %v1866_v23 = vadd.f32 %v1865_v49, %v1776_v12 }
 0x602   : > { %v11299_v35 = vpack.c.bf16 %v1866_v23, %v1864_v37  ;;  %v8394_v37 = vld [vmem:[#allocation8 + $0x70] sm:$0xf]  ;;  %v9293_v23 = vld [vmem:[#allocation8 + $0x74] sm:$0xf0] }
 0x603   : > { %1922 = vmatmul.bf16.gmra.mxu1 %v16306_v43 }
 0x604   : > { %1973 = vmatpush.bf16.msrb.mxu2 %v11299_v35  ;;  %2322 = vmatmul.bf16.gmra.mxu3 %v11299_v35 }
 0x607   : > { %v11316_v1 = vpop.f32.mrf.mxu0 }
 0x608   : > { %1974 = vmatpush.bf16.msrb.mxu2 %v11292_v26  ;;  %16355 = vst [vmem:[#allocation96_spill] sm:$0xff] %v11316_v1  ;;  %v8460_v1 = vld [vmem:[#allocation8 + $0x178] sm:$0xf0] }
 0x60a   : > { %2376 = vmatmul.bf16.gmra.mxu0 %v11246_v33 }
 0x60c   : > { %1975 = vmatpush.bf16.msrb.mxu2 %v1881_v0 }
 0x60f   : > { %v11323_v12 = vpop.f32.mrf.mxu0 }
 0x610   : > { %1976 = vmatpush.bf16.msrb.mxu2 %v1880_v61  ;;  %16356 = vst [vmem:[#allocation97_spill] sm:$0xff] %v11323_v12 }
 0x613   : > { %1927 = vmatmul.bf16.gmra.mxu1 %v16327_v54 }
 0x614   : > { %1977 = vmatpush.bf16.msrb.mxu2 %v11272_v60 }
 0x618   : > { %1978 = vmatpush.bf16.msrb.mxu2 %v11263_v53 }
 0x61a   : > { %2381 = vmatmul.bf16.gmra.mxu0 %v11256_v2 }
 0x61c   : > { %1979 = vmatpush.bf16.msrb.mxu2 %v11256_v2  ;;  %v11329_v2 = vpop.f32.mrf.mxu0 }
 0x61d   : > { %16357 = vst [vmem:[#allocation98_spill] sm:$0xff] %v11329_v2 }
 0x620   : > { %v11313_v34 = vpop.f32.mrf.mxu1  ;;  %1980 = vmatpush.bf16.msrb.mxu2 %v11246_v33 }
 0x623   : > { %1932 = vmatmul.bf16.gmra.mxu1 %v16335_v27  ;;  %1981 = vmatmul.bf16.vlgmr.msrb.gmra.mxu2 %v16334_v8 }
 0x624   : > { %v11336_v39 = vpop.f32.mrf.mxu0 }
 0x625   : > { %16358 = vst [vmem:[#allocation99_spill] sm:$0xff] %v11336_v39  ;;  %v9323_v39 = vld [vmem:[#allocation8 + $0x164] sm:$0xf0] }
 0x628   : > { %v11320_v4 = vpop.f32.mrf.mxu1 }
 0x62a   : > { %2386 = vmatmul.bf16.gmra.mxu0 %v11263_v53 }
 0x62c   : > { %v11342_v63 = vpop.f32.mrf.mxu0 }
 0x62d   : > { %16359 = vst [vmem:[#allocation100_spill] sm:$0xff] %v11342_v63  ;;  %v8452_v63 = vld [vmem:[#allocation8 + $0x168] sm:$0xf0] }
 0x630   : > { %v11325_v58 = vpop.f32.mrf.mxu1 }
 0x633   : > { %1937 = vmatmul.bf16.gmra.mxu1 %v16337_v46  ;;  %1986 = vmatmul.bf16.gmra.mxu2 %v16336_v45  ;;  %v9289_v45 = vld [vmem:[#allocation8 + $0x54] sm:$0xf0] }
 0x638   : > { %v11331_v33 = vpop.f32.mrf.mxu1 }
 0x63a   : > { %2391 = vmatmul.bf16.gmra.mxu0 %v11272_v60  ;;  %v11350_v60 = vpop.f32.mrf.mxu0 }
 0x63b   : > { %16360 = vst [vmem:[#allocation101_spill] sm:$0xff] %v11350_v60 }
 0x640   : > { %v11334_v22 = vpop.f32.mrf.mxu1 }
 0x642   : > { %v11356_v51 = vpop.f32.mrf.mxu0 }
 0x643   : > { %1942 = vmatmul.bf16.gmra.mxu1 %v16339_v21  ;;  %1991 = vmatmul.bf16.gmra.mxu2 %v16338_v31  ;;  %16361 = vst [vmem:[#allocation102_spill] sm:$0xff] %v11356_v51  ;;  %v8395_v21 = vor.u32 %v9293_v23, %v8394_v37  ;;  %v8370_v37 = vld [vmem:[#allocation8 + $0x40] sm:$0xf]  ;;  %v9287_v23 = vld [vmem:[#allocation8 + $0x44] sm:$0xf0] }
 0x645   : > { %2497 = vmatpush.bf16.msra.mxu1 %v8395_v21 }
 0x648   : > { %v11340_v53 = vpop.f32.mrf.mxu1 }
 0x64a   : > { %2396 = vmatmul.bf16.gmra.mxu0 %v1880_v61  ;;  %v11358_v61 = vpop.f32.mrf.mxu3  ;;  %v11366_v27 = vpop.f32.mrf.mxu0 }
 0x64b   : > { %16362 = vst [vmem:[#allocation103_spill] sm:$0xff] %v11366_v27  ;;  %v9310_v27 = vld [vmem:[#allocation8 + $0x104] sm:$0xf] }
 0x650   : > { %v11346_v16 = vpop.f32.mrf.mxu1 }
 0x652   : > { %v11368_v54 = vpop.f32.mrf.mxu3 }
 0x653   : > { %1947 = vmatmul.bf16.gmra.mxu1 %v16341_v42  ;;  %1996 = vmatmul.bf16.gmra.mxu2 %v16340_v29  ;;  %v8386_v42 = vld [vmem:[#allocation8 + $0x60] sm:$0xf]  ;;  %v9291_v29 = vld [vmem:[#allocation8 + $0x64] sm:$0xf0] }
 0x654   : > { %v8387_v31 = vor.u32 %v9291_v29, %v8386_v42  ;;  %v8362_v29 = vld [vmem:[#allocation8 + $0x30] sm:$0xf]  ;;  %v9285_v42 = vld [vmem:[#allocation8 + $0x34] sm:$0xf0] }
 0x656   : > { %2498 = vmatpush.bf16.msra.mxu1 %v8387_v31  ;;  %v11373_v31 = vpop.f32.mrf.mxu0 }
 0x657   : > { %16363 = vst [vmem:[#allocation104_spill] sm:$0xff] %v11373_v31  ;;  %v16407_v31 = vld [vmem:[#allocation64_spill] sm:$0xff] }
 0x658   : > { %v11354_v30 = vpop.f32.mrf.mxu1 }
 0x65a   : > { %2401 = vmatmul.bf16.gmra.mxu0 %v1881_v0  ;;  %v8378_v0 = vld [vmem:[#allocation8 + $0x50] sm:$0xf] }
 0x65b   : > { %v8379_v8 = vor.u32 %v9289_v45, %v8378_v0  ;;  %v11377_v45 = vpop.f32.mrf.mxu3  ;;  %v8458_v0 = vld [vmem:[#allocation8 + $0x170] sm:$0xf] }
 0x65d   : > { %2499 = vmatpush.bf16.msra.mxu1 %v8379_v8  ;;  %v9283_v8 = vld [vmem:[#allocation8 + $0x24] sm:$0xf0] }
 0x65e   : > { %v11382_v50 = vpop.f32.mrf.mxu0 }
 0x65f   : > { %16364 = vst [vmem:[#allocation105_spill] sm:$0xff] %v11382_v50 }
 0x660   : > { %v11360_v49 = vpop.f32.mrf.mxu1 }
 0x663   : > { %1952 = vmatmul.bf16.gmra.mxu1 %v16343_v18  ;;  %2001 = vmatmul.bf16.gmra.mxu2 %v16342_v47  ;;  %v8371_v18 = vor.u32 %v9287_v23, %v8370_v37  ;;  %v8363_v47 = vor.u32 %v9285_v42, %v8362_v29  ;;  %v9325_v37 = vld [vmem:[#allocation8 + $0x174] sm:$0xf0]  ;;  %v9324_v23 = vld [vmem:[#allocation8 + $0x174] sm:$0xf]  ;;  %v8346_v29 = vld [vmem:[#allocation8 + $0x10] sm:$0xf] }
 0x664   : > { %v8463_v2 = vor.u32 %v9324_v23, %v8460_v1  ;;  %v9281_v42 = vld [vmem:[#allocation8 + $0x14] sm:$0xf0]  ;;  %v8338_v1 = vld [vmem:[#allocation8] sm:$0xf] }
 0x665   : > { %2500 = vmatpush.bf16.msra.mxu1 %v8371_v18  ;;  %v8459_v18 = vor.u32 %v9325_v37, %v8458_v0  ;;  %v8442_v0 = vld [vmem:[#allocation8 + $0x150] sm:$0xf]  ;;  %v11384_v37 = vpop.f32.mrf.mxu3 }
 0x666   : > { %2877 = vmatpush.bf16.msra.mxu0 %v8463_v2  ;;  %v9321_v2 = vld [vmem:[#allocation8 + $0x154] sm:$0xf0] }
 0x667   : > { %2788 = vmatpush.bf16.msra.mxu3 %v8459_v18  ;;  %v9320_v18 = vld [vmem:[#allocation8 + $0x154] sm:$0xf] }
 0x668   : > { %v11364_v46 = vpop.f32.mrf.mxu1 }
 0x669   : > { %2501 = vmatpush.bf16.msra.mxu1 %v8363_v47  ;;  %v9322_v47 = vld [vmem:[#allocation8 + $0x164] sm:$0xf] }
 0x66a   : > { %2406 = vmatmul.bf16.gmra.mxu0 %v11292_v26  ;;  %v8354_v26 = vld [vmem:[#allocation8 + $0x20] sm:$0xf] }
 0x66b   : > { %v8355_v43 = vor.u32 %v9283_v8, %v8354_v26  ;;  %v8455_v8 = vor.u32 %v9322_v47, %v8452_v63  ;;  %v8436_v63 = vld [vmem:[#allocation8 + $0x148] sm:$0xf0] }
 0x66d   : > { %2502 = vmatpush.bf16.msra.mxu1 %v8355_v43  ;;  %2878 = vmatpush.bf16.msra.mxu0 %v8455_v8  ;;  %v9279_v43 = vld [vmem:[#allocation8 + $0x4] sm:$0xf0]  ;;  %v9317_v8 = vld [vmem:[#allocation8 + $0x134] sm:$0xf0] }
 0x66e   : > { %v8339_v23 = vor.u32 %v9279_v43, %v8338_v1  ;;  %v9316_v1 = vld [vmem:[#allocation8 + $0x134] sm:$0xf] }
 0x670   : > { %v11371_v21 = vpop.f32.mrf.mxu1 }
 0x673   : > { %1957 = vmatmul.bf16.gmra.mxu1 %v16345_v28  ;;  %2006 = vmatmul.bf16.gmra.mxu2 %v16344_v10  ;;  %v8450_v28 = vld [vmem:[#allocation8 + $0x160] sm:$0xf]  ;;  %v8347_v10 = vor.u32 %v9281_v42, %v8346_v29  ;;  %v8444_v29 = vld [vmem:[#allocation8 + $0x158] sm:$0xf0]  ;;  %v8443_v42 = vor.u32 %v9321_v2, %v8442_v0  ;;  %v11392_v2 = vpop.f32.mrf.mxu3 }
 0x674   : > { %v8451_v26 = vor.u32 %v9323_v39, %v8450_v28  ;;  %v8447_v60 = vor.u32 %v9320_v18, %v8444_v29  ;;  %v8434_v28 = vld [vmem:[#allocation8 + $0x140] sm:$0xf]  ;;  %v8428_v0 = vld [vmem:[#allocation8 + $0x138] sm:$0xf0] }
 0x675   : > { %2503 = vmatpush.bf16.msra.mxu1 %v8347_v10  ;;  %v9319_v10 = vld [vmem:[#allocation8 + $0x144] sm:$0xf0]  ;;  %v8418_v29 = vld [vmem:[#allocation8 + $0x120] sm:$0xf] }
 0x676   : > { %2789 = vmatpush.bf16.msra.mxu3 %v8451_v26  ;;  %2879 = vmatpush.bf16.msra.mxu0 %v8447_v60  ;;  %v8435_v39 = vor.u32 %v9319_v10, %v8434_v28  ;;  %v8426_v26 = vld [vmem:[#allocation8 + $0x130] sm:$0xf]  ;;  %v8431_v60 = vor.u32 %v9316_v1, %v8428_v0  ;;  %v9314_v28 = vld [vmem:[#allocation8 + $0x124] sm:$0xf] }
 0x677   : > { %v8427_v43 = vor.u32 %v9317_v8, %v8426_v26  ;;  %v9312_v26 = vld [vmem:[#allocation8 + $0x114] sm:$0xf] }
 0x678   : > { %v11379_v12 = vpop.f32.mrf.mxu1 }
 0x679   : > { %2504 = vmatpush.bf16.msra.mxu1 %v8339_v23  ;;  %v11390_v23 = vpop.f32.mrf.mxu0 }
 0x67a   : > { %2411 = vmatmul.bf16.gmra.mxu0 %v11299_v35  ;;  %2790 = vmatpush.bf16.msra.mxu3 %v8443_v42  ;;  %v9318_v35 = vld [vmem:[#allocation8 + $0x144] sm:$0xf]  ;;  %16365 = vst [vmem:[#allocation106_spill] sm:$0xff] %v11390_v23  ;;  %v9315_v42 = vld [vmem:[#allocation8 + $0x124] sm:$0xf0] }
 0x67b   : > { %v8439_v47 = vor.u32 %v9318_v35, %v8436_v63  ;;  %v8419_v10 = vor.u32 %v9315_v42, %v8418_v29  ;;  %v8420_v35 = vld [vmem:[#allocation8 + $0x128] sm:$0xf0]  ;;  %v8410_v63 = vld [vmem:[#allocation8 + $0x110] sm:$0xf]  ;;  %v11400_v29 = vpop.f32.mrf.mxu3 }
 0x67d   : > { %2880 = vmatpush.bf16.msra.mxu0 %v8439_v47  ;;  %v9313_v47 = vld [vmem:[#allocation8 + $0x114] sm:$0xf0] }
 0x67e   : > { %2791 = vmatpush.bf16.msra.mxu3 %v8435_v39  ;;  %v8423_v39 = vor.u32 %v9314_v28, %v8420_v35  ;;  %v8411_v8 = vor.u32 %v9313_v47, %v8410_v63  ;;  %v8404_v28 = vld [vmem:[#allocation8 + $0x108] sm:$0xf0] }
 0x680   : > { %v11386_v51 = vpop.f32.mrf.mxu1 }
 0x681   : > { %2881 = vmatpush.bf16.msra.mxu0 %v8431_v60  ;;  %v9311_v60 = vld [vmem:[#allocation8 + $0x104] sm:$0xf0] }
 0x682   : > { %2792 = vmatpush.bf16.msra.mxu3 %v8427_v43  ;;  %v8402_v43 = vld [vmem:[#allocation8 + $0x100] sm:$0xf] }
 0x683   : > { %1962 = vmatmul.bf16.gmra.mxu1 %v16347_v40  ;;  %2011 = vmatmul.bf16.gmra.mxu2 %v16346_v57  ;;  %v8412_v40 = vld [vmem:[#allocation8 + $0x118] sm:$0xf0]  ;;  %v11398_v57 = vpop.f32.mrf.mxu0  ;;  %v8403_v42 = vor.u32 %v9311_v60, %v8402_v43 }
 0x684   : > { %v8415_v1 = vor.u32 %v9312_v26, %v8412_v40  ;;  %16366 = vst [vmem:[#allocation107_spill] sm:$0xff] %v11398_v57 }
 0x685   : > { %2882 = vmatpush.bf16.msra.mxu0 %v8423_v39  ;;  %v11408_v39 = vpop.f32.mrf.mxu3 }
 0x686   : > { %2793 = vmatpush.bf16.msra.mxu3 %v8419_v10  ;;  %v8407_v10 = vor.u32 %v9310_v27, %v8404_v28 }
 0x688   : > { %v11394_v18 = vpop.f32.mrf.mxu1 }
 0x689   : > { %2883 = vmatpush.bf16.msra.mxu0 %v8415_v1 }
 0x68a   : > { %2794 = vmatpush.bf16.msra.mxu3 %v8411_v8 }
 0x68b   : > { %v11406_v35 = vpop.f32.mrf.mxu0 }
 0x68c   : > { %16367 = vst [vmem:[#allocation108_spill] sm:$0xff] %v11406_v35 }
 0x68d   : > { %2884 = vmatpush.bf16.msra.mxu0 %v8407_v10  ;;  %v11416_v26 = vpop.f32.mrf.mxu3 }
 0x68e   : > { %2795 = vmatpush.bf16.msra.mxu3 %v8403_v42  ;;  %16369 = vst [vmem:[#allocation110_spill] sm:$0xff] %v11416_v26  ;;  %v16372_v26 = vmax.f32 %v10938_v19, 0.0 }
 0x690   : > { %v11396_v0 = vpop.f32.mrf.mxu1 }
 0x693   : > { %1967 = vmatmul.bf16.gmra.mxu1 %v16349_v17  ;;  %2016 = vmatmul.bf16.gmra.mxu2 %v16348_v14  ;;  %v11414_v47 = vpop.f32.mrf.mxu0  ;;  %v16371_v14 = vmax.f32 %v10949_v3, 0.0 }
 0x694   : > { %16368 = vst [vmem:[#allocation109_spill] sm:$0xff] %v11414_v47 }
 0x695   : > { %v11424_v10 = vpop.f32.mrf.mxu3 }
 0x698   : > { %v11404_v40 = vpop.f32.mrf.mxu1 }
 0x69b   : > { %v11421_v60 = vpop.f32.mrf.mxu0 }
 0x69c   : > { %16370 = vst [vmem:[#allocation111_spill] sm:$0xff] %v11421_v60  ;;  %v16389_v60 = vld [vmem:[#allocation54_spill] sm:$0xff] }
 0x6a0   : > { %v11410_v63 = vpop.f32.mrf.mxu1 }
 0x6a3   : > { %2021 = vmatmul.bf16.gmra.mxu2 %v16350_v15  ;;  %2505 = vmatmul.bf16.vlgmr.msra.gmra.mxu1 %v10968_v6 }
 0x6a6   : > { %v1982_v8 = vpop.f32.mrf.mxu2 }
 0x6a7   : > { %v1983_v1 = vadd.f32 %v1982_v8, %v11313_v34  ;;  %v16373_v34 = vld [vmem:[#allocation83_spill] sm:$0xff] }
 0x6a8   : > { %v11418_v27 = vpop.f32.mrf.mxu1 }
 0x6a9   : > { %v2062_v42 = vmul.f32 2.0, %v1983_v1  ;;  %v11436_v1 = vpop.f32.mrf.mxu0 }
 0x6aa   : > { %16374 = vst [vmem:[#allocation83_spill] sm:$0xff] %v11436_v1  ;;  %v16381_v1 = vld [vmem:[#allocation52_spill] sm:$0xff] }
 0x6ab   : > { %v2094_v50 = vsub.f32 %v2062_v42, %v16371_v14 }
 0x6ae   : > { %v1984_v43 = vpop.f32.mrf.mxu2 }
 0x6af   : > { %v1985_v28 = vadd.f32 %v1984_v43, %v11320_v4  ;;  %v11438_v43 = vpop.f32.mrf.mxu3 }
 0x6b0   : > { %v11426_v17 = vpop.f32.mrf.mxu1  ;;  %16375 = vst [vmem:[#allocation112_spill] sm:$0xff] %v11438_v43  ;;  %v16382_v43 = vld [vmem:[#allocation82_spill] sm:$0xff] }
 0x6b1   : > { %v2063_v15 = vmul.f32 2.0, %v1985_v28  ;;  %v11444_v28 = vpop.f32.mrf.mxu0 }
 0x6b2   : > { %16376 = vst [vmem:[#allocation113_spill] sm:$0xff] %v11444_v28  ;;  %v16387_v28 = vld [vmem:[#allocation78_spill] sm:$0xff] }
 0x6b3   : > { %v2095_v23 = vsub.f32 %v2063_v15, %v16372_v26  ;;  %2026 = vmatmul.bf16.gmra.mxu2 %v16351_v44  ;;  %2510 = vmatmul.bf16.gmra.mxu1 %v16373_v34  ;;  %v16379_v44 = vld [vmem:[#allocation67_spill] sm:$0xff] }
 0x6b4   : > { %v16380_v35 = vmax.f32 %v16379_v44, 0.0 }
 0x6b5   : > { %v2675_v8 = vpack.c.bf16 %v2095_v23, %v2094_v50  ;;  %v16377_v50 = vld [vmem:[#allocation81_spill] sm:$0xff] }
 0x6b6   : > { %v1987_v57 = vpop.f32.mrf.mxu2  ;;  %v16378_v23 = vmax.f32 %v16377_v50, 0.0 }
 0x6b7   : > { %2796 = vmatmul.bf16.vlgmr.msra.gmra.mxu3 %v2675_v8  ;;  %2885 = vmatmul.bf16.vlgmr.msra.gmra.mxu0 %v2675_v8  ;;  %v1988_v3 = vadd.f32 %v1987_v57, %v11325_v58  ;;  %v11452_v57 = vpop.f32.mrf.mxu3 }
 0x6b8   : > { %v11434_v4 = vpop.f32.mrf.mxu1 }
 0x6b9   : > { %v2064_v42 = vmul.f32 2.0, %v1988_v3 }
 0x6bb   : > { %v2096_v8 = vsub.f32 %v2064_v42, %v16378_v23 }
 0x6be   : > { %v1989_v14 = vpop.f32.mrf.mxu2 }
 0x6bf   : > { %v1990_v19 = vadd.f32 %v1989_v14, %v11331_v33  ;;  %v11459_v42 = vpop.f32.mrf.mxu3 }
 0x6c0   : > { %v11442_v15 = vpop.f32.mrf.mxu1  ;;  %16384 = vst [vmem:[#allocation67_spill] sm:$0xff] %v11459_v42 }
 0x6c1   : > { %v2065_v26 = vmul.f32 2.0, %v1990_v19  ;;  %v11457_v19 = vpop.f32.mrf.mxu0 }
 0x6c2   : > { %16383 = vst [vmem:[#allocation81_spill] sm:$0xff] %v11457_v19 }
 0x6c3   : > { %v2097_v47 = vsub.f32 %v2065_v26, %v16380_v35  ;;  %2031 = vmatmul.bf16.gmra.mxu2 %v16381_v1  ;;  %2515 = vmatmul.bf16.gmra.mxu1 %v16382_v43  ;;  %v16385_v1 = vld [vmem:[#allocation80_spill] sm:$0xff] }
 0x6c5   : > { %v2676_v58 = vpack.c.bf16 %v2097_v47, %v2096_v8  ;;  %v16386_v47 = vmax.f32 %v16385_v1, 0.0 }
 0x6c6   : > { %v1992_v3 = vpop.f32.mrf.mxu2 }
 0x6c7   : > { %2801 = vmatmul.bf16.gmra.mxu3 %v2676_v58  ;;  %2890 = vmatmul.bf16.gmra.mxu0 %v2676_v58  ;;  %v1993_v14 = vadd.f32 %v1992_v3, %v11334_v22  ;;  %v16388_v58 = vmax.f32 %v16387_v28, 0.0  ;;  %v16390_v22 = vld [vmem:[#allocation70_spill] sm:$0xff] }
 0x6c8   : > { %v11454_v33 = vpop.f32.mrf.mxu1 }
 0x6c9   : > { %v2066_v35 = vmul.f32 2.0, %v1993_v14  ;;  %v11470_v42 = vpop.f32.mrf.mxu0 }
 0x6ca   : > { %16391 = vst [vmem:[#allocation82_spill] sm:$0xff] %v11470_v42 }
 0x6cb   : > { %v2098_v8 = vsub.f32 %v2066_v35, %v16386_v47  ;;  %v9292_v47 = vld [vmem:[#allocation8 + $0x74] sm:$0xf] }
 0x6ce   : > { %v1994_v44 = vpop.f32.mrf.mxu2 }
 0x6cf   : > { %v1995_v26 = vadd.f32 %v1994_v44, %v11340_v53  ;;  %v11472_v53 = vpop.f32.mrf.mxu3 }
 0x6d0   : > { %v11462_v50 = vpop.f32.mrf.mxu1  ;;  %16392 = vst [vmem:[#allocation80_spill] sm:$0xff] %v11472_v53 }
 0x6d1   : > { %v2067_v23 = vmul.f32 2.0, %v1995_v26 }
 0x6d3   : > { %v2099_v59 = vsub.f32 %v2067_v23, %v16388_v58  ;;  %2036 = vmatmul.bf16.gmra.mxu2 %v16389_v60  ;;  %2520 = vmatmul.bf16.gmra.mxu1 %v16390_v22  ;;  %v11480_v23 = vpop.f32.mrf.mxu0  ;;  %v16395_v60 = vld [vmem:[#allocation66_spill] sm:$0xff] }
 0x6d4   : > { %16393 = vst [vmem:[#allocation78_spill] sm:$0xff] %v11480_v23  ;;  %v16396_v42 = vmax.f32 %v16395_v60, 0.0  ;;  %v8388_v23 = vld [vmem:[#allocation8 + $0x68] sm:$0xf0]  ;;  %v9288_v60 = vld [vmem:[#allocation8 + $0x54] sm:$0xf] }
 0x6d5   : > { %v2677_v3 = vpack.c.bf16 %v2099_v59, %v2098_v8  ;;  %v8396_v8 = vld [vmem:[#allocation8 + $0x78] sm:$0xf0] }
 0x6d6   : > { %v1997_v19 = vpop.f32.mrf.mxu2 }
 0x6d7   : > { %2806 = vmatmul.bf16.gmra.mxu3 %v2677_v3  ;;  %2895 = vmatmul.bf16.gmra.mxu0 %v2677_v3  ;;  %v1998_v1 = vadd.f32 %v1997_v19, %v11346_v16  ;;  %v11482_v58 = vpop.f32.mrf.mxu3  ;;  %v8399_v3 = vor.u32 %v9292_v47, %v8396_v8  ;;  %v16399_v19 = vld [vmem:[#allocation56_spill] sm:$0xff] }
 0x6d8   : > { %v11474_v14 = vpop.f32.mrf.mxu1  ;;  %16394 = vst [vmem:[#allocation70_spill] sm:$0xff] %v11482_v58  ;;  %v8372_v47 = vld [vmem:[#allocation8 + $0x48] sm:$0xf0] }
 0x6d9   : > { %v2068_v35 = vmul.f32 2.0, %v1998_v1  ;;  %v16400_v1 = vld [vmem:[#allocation79_spill] sm:$0xff]  ;;  %2586 = vmatpush.bf16.msra.mxu2 %v8399_v3 }
 0x6db   : > { %v2100_v48 = vsub.f32 %v2068_v35, %v16396_v42  ;;  %v8380_v42 = vld [vmem:[#allocation8 + $0x58] sm:$0xf0]  ;;  %v11492_v24 = vpop.f32.mrf.mxu0 }
 0x6dc   : > { %v8383_v35 = vor.u32 %v9288_v60, %v8380_v42  ;;  %16401 = vst [vmem:[#allocation66_spill] sm:$0xff] %v11492_v24  ;;  %v8364_v60 = vld [vmem:[#allocation8 + $0x38] sm:$0xf0] }
 0x6de   : > { %v1999_v44 = vpop.f32.mrf.mxu2 }
 0x6df   : > { %v2000_v28 = vadd.f32 %v1999_v44, %v11354_v30  ;;  %v9290_v44 = vld [vmem:[#allocation8 + $0x64] sm:$0xf] }
 0x6e0   : > { %v11478_v26 = vpop.f32.mrf.mxu1  ;;  %v8391_v53 = vor.u32 %v9290_v44, %v8388_v23  ;;  %v9284_v44 = vld [vmem:[#allocation8 + $0x34] sm:$0xf] }
 0x6e1   : > { %v2069_v59 = vmul.f32 2.0, %v2000_v28  ;;  %v8367_v42 = vor.u32 %v9284_v44, %v8364_v60  ;;  %v9278_v44 = vld [vmem:[#allocation8 + $0x4] sm:$0xf]  ;;  %v8340_v60 = vld [vmem:[#allocation8 + $0x8] sm:$0xf0] }
 0x6e2   : > { %2587 = vmatpush.bf16.msra.mxu2 %v8391_v53 }
 0x6e3   : > { %v2101_v16 = vsub.f32 %v2069_v59, %v16398_v5  ;;  %2041 = vmatmul.bf16.gmra.mxu2 %v16399_v19  ;;  %2525 = vmatmul.bf16.gmra.mxu1 %v16400_v1  ;;  %v11495_v59 = vpop.f32.mrf.mxu3  ;;  %v16403_v19 = vld [vmem:[#allocation61_spill] sm:$0xff] }
 0x6e4   : > { %16402 = vst [vmem:[#allocation62_spill] sm:$0xff] %v11495_v59  ;;  %v16404_v24 = vmax.f32 %v16403_v19, 0.0 }
 0x6e5   : > { %v2678_v30 = vpack.c.bf16 %v2101_v16, %v2100_v48  ;;  %v9286_v48 = vld [vmem:[#allocation8 + $0x44] sm:$0xf] }
 0x6e6   : > { %v2002_v28 = vpop.f32.mrf.mxu2  ;;  %2588 = vmatpush.bf16.msra.mxu2 %v8383_v35  ;;  %v8375_v3 = vor.u32 %v9286_v48, %v8372_v47  ;;  %v9282_v48 = vld [vmem:[#allocation8 + $0x24] sm:$0xf]  ;;  %v8356_v47 = vld [vmem:[#allocation8 + $0x28] sm:$0xf0] }
 0x6e7   : > { %2811 = vmatmul.bf16.gmra.mxu3 %v2678_v30  ;;  %2900 = vmatmul.bf16.gmra.mxu0 %v2678_v30  ;;  %v2003_v5 = vadd.f32 %v2002_v28, %v11360_v49  ;;  %v16405_v28 = vld [vmem:[#allocation31_spill] sm:$0xff] }
 0x6e8   : > { %v11490_v58 = vpop.f32.mrf.mxu1  ;;  %v16406_v59 = vmax.f32 %v16405_v28, 0.0 }
 0x6e9   : > { %v2070_v23 = vmul.f32 2.0, %v2003_v5  ;;  %v11506_v5 = vpop.f32.mrf.mxu0 }
 0x6ea   : > { %2589 = vmatpush.bf16.msra.mxu2 %v8375_v3  ;;  %16408 = vst [vmem:[#allocation79_spill] sm:$0xff] %v11506_v5 }
 0x6eb   : > { %v2102_v49 = vsub.f32 %v2070_v23, %v16404_v24  ;;  %v9280_v24 = vld [vmem:[#allocation8 + $0x14] sm:$0xf] }
 0x6ee   : > { %v2004_v8 = vpop.f32.mrf.mxu2  ;;  %2590 = vmatpush.bf16.msra.mxu2 %v8367_v42 }
 0x6ef   : > { %v2005_v16 = vadd.f32 %v2004_v8, %v11364_v46  ;;  %v11508_v8 = vpop.f32.mrf.mxu3 }
 0x6f0   : > { %v11498_v30 = vpop.f32.mrf.mxu1  ;;  %16409 = vst [vmem:[#allocation61_spill] sm:$0xff] %v11508_v8 }
 0x6f1   : > { %v2071_v53 = vmul.f32 2.0, %v2005_v16  ;;  %v8359_v16 = vor.u32 %v9282_v48, %v8356_v47  ;;  %v11513_v28 = vpop.f32.mrf.mxu0 }
 0x6f2   : > { %16410 = vst [vmem:[#allocation31_spill] sm:$0xff] %v11513_v28 }
 0x6f3   : > { %v2103_v35 = vsub.f32 %v2071_v53, %v16406_v59  ;;  %2046 = vmatmul.bf16.gmra.mxu2 %v16258_v52  ;;  %2530 = vmatmul.bf16.gmra.mxu1 %v16407_v31  ;;  %v8348_v59 = vld [vmem:[#allocation8 + $0x18] sm:$0xf0] }
 0x6f4   : > { %2591 = vmatpush.bf16.msra.mxu2 %v8359_v16  ;;  %v8351_v23 = vor.u32 %v9280_v24, %v8348_v59  ;;  %v16412_v52 = vld [vmem:[#allocation30_spill] sm:$0xff] }
 0x6f5   : > { %v2679_v46 = vpack.c.bf16 %v2103_v35, %v2102_v49  ;;  %v8343_v49 = vor.u32 %v9278_v44, %v8340_v60  ;;  %v16413_v24 = vmax.f32 %v16412_v52, 0.0  ;;  %v16416_v44 = vld [vmem:[#allocation63_spill] sm:$0xff] }
 0x6f6   : > { %v2007_v3 = vpop.f32.mrf.mxu2 }
 0x6f7   : > { %2816 = vmatmul.bf16.gmra.mxu3 %v2679_v46  ;;  %2905 = vmatmul.bf16.gmra.mxu0 %v2679_v46  ;;  %v2008_v53 = vadd.f32 %v2007_v3, %v11371_v21  ;;  %v11516_v47 = vpop.f32.mrf.mxu3  ;;  %v16414_v21 = vld [vmem:[#allocation19_spill] sm:$0xff] }
 0x6f8   : > { %v11510_v19 = vpop.f32.mrf.mxu1  ;;  %2592 = vmatpush.bf16.msra.mxu2 %v8351_v23  ;;  %16411 = vst [vmem:[#allocation64_spill] sm:$0xff] %v11516_v47  ;;  %v16415_v3 = vmax.f32 %v16414_v21, 0.0  ;;  %v16432_v47 = vld [vmem:[#allocation95_spill] sm:$0xff] }
 0x6f9   : > { %v2072_v35 = vmul.f32 2.0, %v2008_v53 }
 0x6fb   : > { %v2104_v59 = vsub.f32 %v2072_v35, %v16413_v24 }
 0x6fc   : > { %2593 = vmatpush.bf16.msra.mxu2 %v8343_v49 }
 0x6fe   : > { %v2009_v42 = vpop.f32.mrf.mxu2 }
 0x6ff   : > { %v2010_v48 = vadd.f32 %v2009_v42, %v11379_v12  ;;  %v11528_v42 = vpop.f32.mrf.mxu0  ;;  %v11530_v49 = vpop.f32.mrf.mxu3 }
 0x700   : > { %v11518_v46 = vpop.f32.mrf.mxu1  ;;  %16417 = vst [vmem:[#allocation30_spill] sm:$0xff] %v11528_v42  ;;  %v16424_v42 = vld [vmem:[#allocation20_spill] sm:$0xff] }
 0x701   : > { %v2073_v16 = vmul.f32 2.0, %v2010_v48  ;;  %16418 = vst [vmem:[#allocation19_spill] sm:$0xff] %v11530_v49 }
 0x703   : > { %v2105_v23 = vsub.f32 %v2073_v16, %v16415_v3  ;;  %2051 = vmatmul.bf16.gmra.mxu2 %v16353_v9  ;;  %2535 = vmatmul.bf16.gmra.mxu1 %v16416_v44  ;;  %v16422_v9 = vld [vmem:[#allocation24_spill] sm:$0xff] }
 0x704   : > { %v16423_v5 = vmax.f32 %v16422_v9, 0.0 }
 0x705   : > { %v2680_v60 = vpack.c.bf16 %v2105_v23, %v2104_v59  ;;  %v16420_v59 = vld [vmem:[#allocation22_spill] sm:$0xff] }
 0x706   : > { %v2012_v53 = vpop.f32.mrf.mxu2  ;;  %v16421_v23 = vmax.f32 %v16420_v59, 0.0 }
 0x707   : > { %2821 = vmatmul.bf16.gmra.mxu3 %v2680_v60  ;;  %2910 = vmatmul.bf16.gmra.mxu0 %v2680_v60  ;;  %v2013_v52 = vadd.f32 %v2012_v53, %v11386_v51  ;;  %v11536_v3 = vpop.f32.mrf.mxu0  ;;  %v11544_v51 = vpop.f32.mrf.mxu3 }
 0x708   : > { %v11526_v12 = vpop.f32.mrf.mxu1  ;;  %16419 = vst [vmem:[#allocation63_spill] sm:$0xff] %v11536_v3 }
 0x709   : > { %v2074_v48 = vmul.f32 2.0, %v2013_v52  ;;  %16425 = vst [vmem:[#allocation22_spill] sm:$0xff] %v11544_v51  ;;  %v16440_v51 = vld [vmem:[#allocation94_spill] sm:$0xff] }
 0x70b   : > { %v2106_v60 = vsub.f32 %v2074_v48, %v16421_v23 }
 0x70e   : > { %v2014_v35 = vpop.f32.mrf.mxu2 }
 0x70f   : > { %v2015_v16 = vadd.f32 %v2014_v35, %v11394_v18  ;;  %v11551_v48 = vpop.f32.mrf.mxu3 }
 0x710   : > { %v11534_v24 = vpop.f32.mrf.mxu1  ;;  %16427 = vst [vmem:[#allocation20_spill] sm:$0xff] %v11551_v48 }
 0x711   : > { %v2075_v21 = vmul.f32 2.0, %v2015_v16  ;;  %v11549_v16 = vpop.f32.mrf.mxu0 }
 0x712   : > { %16426 = vst [vmem:[#allocation24_spill] sm:$0xff] %v11549_v16 }
 0x713   : > { %v2107_v28 = vsub.f32 %v2075_v21, %v16423_v5  ;;  %2056 = vmatmul.bf16.gmra.mxu2 %v16354_v41  ;;  %2540 = vmatmul.bf16.gmra.mxu1 %v16424_v42  ;;  %v16428_v41 = vld [vmem:[#allocation23_spill] sm:$0xff] }
 0x714   : > { %v16429_v3 = vmax.f32 %v16428_v41, 0.0 }
 0x715   : > { %v2681_v53 = vpack.c.bf16 %v2107_v28, %v2106_v60  ;;  %v16430_v60 = vld [vmem:[#allocation21_spill] sm:$0xff] }
 0x716   : > { %v2017_v52 = vpop.f32.mrf.mxu2  ;;  %v16431_v8 = vmax.f32 %v16430_v60, 0.0 }
 0x717   : > { %2826 = vmatmul.bf16.gmra.mxu3 %v2681_v53  ;;  %2915 = vmatmul.bf16.gmra.mxu0 %v2681_v53  ;;  %v2018_v35 = vadd.f32 %v2017_v52, %v11396_v0 }
 0x718   : > { %v11546_v18 = vpop.f32.mrf.mxu1 }
 0x719   : > { %v2076_v5 = vmul.f32 2.0, %v2018_v35  ;;  %v11560_v16 = vpop.f32.mrf.mxu0  ;;  %v11562_v35 = vpop.f32.mrf.mxu3 }
 0x71a   : > { %16433 = vst [vmem:[#allocation23_spill] sm:$0xff] %v11560_v16  ;;  %v16438_v16 = vld [vmem:[#allocation91_spill] sm:$0xff] }
 0x71b   : > { %v2108_v28 = vsub.f32 %v2076_v5, %v16429_v3 }
 0x71e   : > { %v2019_v9 = vpop.f32.mrf.mxu2 }
 0x71f   : > { %v2020_v21 = vadd.f32 %v2019_v9, %v11404_v40 }
 0x720   : > { %v2506_v59 = vpop.f32.mrf.mxu1 }
 0x721   : > { %v2077_v23 = vmul.f32 2.0, %v2020_v21  ;;  %v11566_v21 = vpop.f32.mrf.mxu0 }
 0x722   : > { %16434 = vst [vmem:[#allocation21_spill] sm:$0xff] %v11566_v21 }
 0x723   : > { %v2109_v53 = vsub.f32 %v2077_v23, %v16431_v8  ;;  %2545 = vmatmul.bf16.gmra.mxu1 %v16432_v47  ;;  %2594 = vmatmul.bf16.vlgmr.msra.gmra.mxu2 %v10968_v6  ;;  %v11568_v6 = vpop.f32.mrf.mxu3 }
 0x724   : > { %16435 = vst [vmem:[#allocation95_spill] sm:$0xff] %v11568_v6 }
 0x725   : > { %v2682_v0 = vpack.c.bf16 %v2109_v53, %v2108_v28  ;;  %v16436_v28 = vld [vmem:[#allocation93_spill] sm:$0xff] }
 0x726   : > { %v2022_v52 = vpop.f32.mrf.mxu2  ;;  %v16437_v60 = vmax.f32 %v16436_v28, 0.0 }
 0x727   : > { %2831 = vmatmul.bf16.gmra.mxu3 %v2682_v0  ;;  %2920 = vmatmul.bf16.gmra.mxu0 %v2682_v0  ;;  %v2023_v9 = vadd.f32 %v2022_v52, %v11410_v63  ;;  %v16439_v0 = vmax.f32 %v16438_v16, 0.0 }
 0x728   : > { %v2508_v40 = vpop.f32.mrf.mxu1 }
 0x729   : > { %v2078_v3 = vmul.f32 2.0, %v2023_v9  ;;  %v2507_v9 = vadd.f32 %v2506_v59, %v11268_v13  ;;  %v16444_v13 = vld [vmem:[#allocation68_spill] sm:$0xff] }
 0x72a   : > { %v16445_v59 = vmax.f32 %v16444_v13, 0.0 }
 0x72b   : > { %v2110_v53 = vsub.f32 %v2078_v3, %v16437_v60 }
 0x72e   : > { %v2024_v41 = vpop.f32.mrf.mxu2 }
 0x72f   : > { %v2025_v5 = vadd.f32 %v2024_v41, %v11418_v27 }
 0x730   : > { %v2511_v8 = vpop.f32.mrf.mxu1 }
 0x731   : > { %v2079_v23 = vmul.f32 2.0, %v2025_v5  ;;  %v11577_v5 = vpop.f32.mrf.mxu0 }
 0x732   : > { %16441 = vst [vmem:[#allocation93_spill] sm:$0xff] %v11577_v5 }
 0x733   : > { %v2111_v49 = vsub.f32 %v2079_v23, %v16439_v0  ;;  %2550 = vmatmul.bf16.gmra.mxu1 %v16440_v51  ;;  %2599 = vmatmul.bf16.gmra.mxu2 %v16373_v34  ;;  %v2509_v34 = vadd.f32 %v2508_v40, %v11276_v38  ;;  %v2512_v40 = vadd.f32 %v2511_v8, %v11280_v56  ;;  %v16451_v56 = vld [vmem:[#allocation72_spill] sm:$0xff] }
 0x734   : > { %v16452_v8 = vmax.f32 %v16451_v56, 0.0 }
 0x735   : > { %v2683_v63 = vpack.c.bf16 %v2111_v49, %v2110_v53 }
 0x736   : > { %v2027_v52 = vpop.f32.mrf.mxu2 }
 0x737   : > { %2836 = vmatmul.bf16.gmra.mxu3 %v2683_v63  ;;  %2925 = vmatmul.bf16.gmra.mxu0 %v2683_v63  ;;  %v2028_v28 = vadd.f32 %v2027_v52, %v11426_v17  ;;  %v16442_v63 = vld [vmem:[#allocation90_spill] sm:$0xff]  ;;  %v16446_v17 = vld [vmem:[#allocation92_spill] sm:$0xff] }
 0x738   : > { %v2513_v27 = vpop.f32.mrf.mxu1  ;;  %v16443_v21 = vmax.f32 %v16442_v63, 0.0 }
 0x739   : > { %v2080_v23 = vmul.f32 2.0, %v2028_v28  ;;  %v11592_v52 = vpop.f32.mrf.mxu0 }
 0x73a   : > { %v2797_v41 = vpop.f32.mrf.mxu3  ;;  %16447 = vst [vmem:[#allocation91_spill] sm:$0xff] %v11592_v52 }
 0x73b   : > { %v11580_v3 = vadd.f32 %v2797_v41, %v2507_v9  ;;  %v2112_v6 = vsub.f32 %v2080_v23, %v16443_v21 }
 0x73e   : > { %v2029_v16 = vpop.f32.mrf.mxu2 }
 0x73f   : > { %v2030_v60 = vadd.f32 %v2029_v16, %v11434_v4 }
 0x740   : > { %v2516_v0 = vpop.f32.mrf.mxu1 }
 0x741   : > { %v2081_v49 = vmul.f32 2.0, %v2030_v60  ;;  %v11598_v23 = vpop.f32.mrf.mxu0 }
 0x742   : > { %v2799_v53 = vpop.f32.mrf.mxu3  ;;  %16448 = vst [vmem:[#allocation94_spill] sm:$0xff] %v11598_v23 }
 0x743   : > { %v2113_v48 = vsub.f32 %v2081_v49, %v16445_v59  ;;  %v11588_v5 = vadd.f32 %v2799_v53, %v2509_v34  ;;  %2555 = vmatmul.bf16.gmra.mxu1 %v16446_v17  ;;  %2604 = vmatmul.bf16.gmra.mxu2 %v16382_v43  ;;  %v16449_v53 = vld [vmem:[#allocation65_spill] sm:$0xff] }
 0x744   : > { %v16450_v63 = vmax.f32 %v16449_v53, 0.0 }
 0x745   : > { %v2684_v4 = vpack.c.bf16 %v2113_v48, %v2112_v6  ;;  %v2514_v48 = vadd.f32 %v2513_v27, %v11284_v36  ;;  %v2517_v27 = vadd.f32 %v2516_v0, %v11287_v20  ;;  %v16458_v20 = vld [vmem:[#allocation75_spill] sm:$0xff] }
 0x746   : > { %v2032_v9 = vpop.f32.mrf.mxu2  ;;  %v16459_v0 = vmax.f32 %v16458_v20, 0.0 }
 0x747   : > { %2841 = vmatmul.bf16.gmra.mxu3 %v2684_v4  ;;  %2930 = vmatmul.bf16.gmra.mxu0 %v2684_v4  ;;  %v2033_v21 = vadd.f32 %v2032_v9, %v11442_v15  ;;  %v16453_v4 = vld [vmem:[#allocation89_spill] sm:$0xff] }
 0x748   : > { %v2518_v38 = vpop.f32.mrf.mxu1 }
 0x749   : > { %v2082_v60 = vmul.f32 2.0, %v2033_v21  ;;  %v11610_v36 = vpop.f32.mrf.mxu0 }
 0x74a   : > { %v2802_v41 = vpop.f32.mrf.mxu3  ;;  %16454 = vst [vmem:[#allocation90_spill] sm:$0xff] %v11610_v36 }
 0x74b   : > { %v11596_v28 = vadd.f32 %v2802_v41, %v2512_v40  ;;  %v2114_v13 = vsub.f32 %v2082_v60, %v16450_v63 }
 0x74e   : > { %v2034_v16 = vpop.f32.mrf.mxu2 }
 0x74f   : > { %v2035_v43 = vadd.f32 %v2034_v16, %v11454_v33 }
 0x750   : > { %v2521_v34 = vpop.f32.mrf.mxu1 }
 0x751   : > { %v2083_v6 = vmul.f32 2.0, %v2035_v43 }
 0x752   : > { %v2804_v49 = vpop.f32.mrf.mxu3 }
 0x753   : > { %v2115_v59 = vsub.f32 %v2083_v6, %v16452_v8  ;;  %v11606_v15 = vadd.f32 %v2804_v49, %v2514_v48  ;;  %2560 = vmatmul.bf16.gmra.mxu1 %v16453_v4  ;;  %2609 = vmatmul.bf16.gmra.mxu2 %v16390_v22  ;;  %v11617_v22 = vpop.f32.mrf.mxu0  ;;  %v2519_v49 = vadd.f32 %v2518_v38, %v11290_v7 }
 0x754   : > { %16455 = vst [vmem:[#allocation68_spill] sm:$0xff] %v11617_v22  ;;  %v2522_v7 = vadd.f32 %v2521_v34, %v11296_v55  ;;  %v16463_v34 = vld [vmem:[#allocation77_spill] sm:$0xff] }
 0x755   : > { %v2685_v9 = vpack.c.bf16 %v2115_v59, %v2114_v13  ;;  %v16456_v13 = vld [vmem:[#allocation69_spill] sm:$0xff]  ;;  %v16464_v20 = vmax.f32 %v16463_v34, 0.0  ;;  %v16468_v34 = vld [vmem:[#allocation84_spill] sm:$0xff] }
 0x756   : > { %v2037_v40 = vpop.f32.mrf.mxu2  ;;  %v16457_v56 = vmax.f32 %v16456_v13, 0.0 }
 0x757   : > { %2846 = vmatmul.bf16.gmra.mxu3 %v2685_v9  ;;  %2935 = vmatmul.bf16.gmra.mxu0 %v2685_v9  ;;  %v2038_v21 = vadd.f32 %v2037_v40, %v11462_v50  ;;  %v16460_v9 = vld [vmem:[#allocation88_spill] sm:$0xff] }
 0x758   : > { %v2523_v33 = vpop.f32.mrf.mxu1 }
 0x759   : > { %v2084_v43 = vmul.f32 2.0, %v2038_v21 }
 0x75a   : > { %v2807_v41 = vpop.f32.mrf.mxu3 }
 0x75b   : > { %v11614_v16 = vadd.f32 %v2807_v41, %v2517_v27  ;;  %v2116_v8 = vsub.f32 %v2084_v43, %v16457_v56  ;;  %v11631_v41 = vpop.f32.mrf.mxu0  ;;  %v16461_v56 = vld [vmem:[#allocation74_spill] sm:$0xff] }
 0x75e   : > { %v2039_v60 = vpop.f32.mrf.mxu2 }
 0x75f   : > { %v2040_v48 = vadd.f32 %v2039_v60, %v11474_v14 }
 0x760   : > { %v2526_v6 = vpop.f32.mrf.mxu1 }
 0x761   : > { %v2085_v53 = vmul.f32 2.0, %v2040_v48 }
 0x762   : > { %v2809_v63 = vpop.f32.mrf.mxu3 }
 0x763   : > { %v2117_v59 = vsub.f32 %v2085_v53, %v16459_v0  ;;  %v11624_v50 = vadd.f32 %v2809_v63, %v2519_v49  ;;  %2565 = vmatmul.bf16.gmra.mxu1 %v16460_v9  ;;  %2614 = vmatmul.bf16.gmra.mxu2 %v16400_v1  ;;  %v2524_v53 = vadd.f32 %v2523_v33, %v11302_v25 }
 0x764   : > { %v2527_v33 = vadd.f32 %v2526_v6, %v11344_v32  ;;  %v16469_v32 = vmax.f32 %v16468_v34, 0.0  ;;  %v16473_v34 = vld [vmem:[#allocation73_spill] sm:$0xff] }
 0x765   : > { %v2686_v14 = vpack.c.bf16 %v2117_v59, %v2116_v8  ;;  %v16462_v8 = vmax.f32 %v16461_v56, 0.0  ;;  %v16466_v56 = vld [vmem:[#allocation26_spill] sm:$0xff] }
 0x766   : > { %v2042_v40 = vpop.f32.mrf.mxu2 }
 0x767   : > { %2851 = vmatmul.bf16.gmra.mxu3 %v2686_v14  ;;  %2940 = vmatmul.bf16.gmra.mxu0 %v2686_v14  ;;  %v2043_v21 = vadd.f32 %v2042_v40, %v11478_v26  ;;  %v16465_v26 = vld [vmem:[#allocation87_spill] sm:$0xff]  ;;  %v11648_v14 = vpop.f32.mrf.mxu0 }
 0x768   : > { %v11628_v27 = vpop.f32.mrf.mxu1 }
 0x769   : > { %v2086_v48 = vmul.f32 2.0, %v2043_v21 }
 0x76a   : > { %v2812_v38 = vpop.f32.mrf.mxu3 }
 0x76b   : > { %v11634_v60 = vadd.f32 %v2812_v38, %v2522_v7  ;;  %v2118_v55 = vsub.f32 %v2086_v48, %v16462_v8  ;;  %v16467_v8 = vmax.f32 %v16466_v56, 0.0 }
 0x76e   : > { %v2044_v43 = vpop.f32.mrf.mxu2 }
 0x76f   : > { %v2045_v49 = vadd.f32 %v2044_v43, %v11490_v58  ;;  %v11656_v48 = vpop.f32.mrf.mxu0 }
 0x770   : > { %v11637_v1 = vpop.f32.mrf.mxu1 }
 0x771   : > { %v2087_v63 = vmul.f32 2.0, %v2045_v49 }
 0x772   : > { %v2814_v13 = vpop.f32.mrf.mxu3 }
 0x773   : > { %v2119_v0 = vsub.f32 %v2087_v63, %v16464_v20  ;;  %v11644_v59 = vadd.f32 %v2814_v13, %v2524_v53  ;;  %2570 = vmatmul.bf16.gmra.mxu1 %v16465_v26  ;;  %2619 = vmatmul.bf16.gmra.mxu2 %v16407_v31  ;;  %v16470_v20 = vld [vmem:[#allocation86_spill] sm:$0xff] }
 0x775   : > { %v2687_v58 = vpack.c.bf16 %v2119_v0, %v2118_v55 }
 0x776   : > { %v2047_v40 = vpop.f32.mrf.mxu2 }
 0x777   : > { %2856 = vmatmul.bf16.gmra.mxu3 %v2687_v58  ;;  %2945 = vmatmul.bf16.gmra.mxu0 %v2687_v58  ;;  %v2048_v38 = vadd.f32 %v2047_v40, %v11498_v30 }
 0x778   : > { %v11650_v25 = vpop.f32.mrf.mxu1 }
 0x779   : > { %v2088_v49 = vmul.f32 2.0, %v2048_v38 }
 0x77a   : > { %v2817_v7 = vpop.f32.mrf.mxu3 }
 0x77b   : > { %v11654_v21 = vadd.f32 %v2817_v7, %v2527_v33  ;;  %v2120_v55 = vsub.f32 %v2088_v49, %v16467_v8 }
 0x77e   : > { %v2049_v43 = vpop.f32.mrf.mxu2 }
 0x77f   : > { %v2050_v31 = vadd.f32 %v2049_v43, %v11510_v19  ;;  %v11667_v19 = vpop.f32.mrf.mxu0 }
 0x780   : > { %v2536_v53 = vpop.f32.mrf.mxu1 }
 0x781   : > { %v2089_v63 = vmul.f32 2.0, %v2050_v31 }
 0x782   : > { %v11659_v13 = vpop.f32.mrf.mxu3 }
 0x783   : > { %v2121_v6 = vsub.f32 %v2089_v63, %v16469_v32  ;;  %2575 = vmatmul.bf16.gmra.mxu1 %v16470_v20  ;;  %2624 = vmatmul.bf16.gmra.mxu2 %v16416_v44  ;;  %v16471_v44 = vld [vmem:[#allocation25_spill] sm:$0xff]  ;;  %v16474_v32 = vmax.f32 %v16473_v34, 0.0 }
 0x784   : > { %v16472_v8 = vmax.f32 %v16471_v44, 0.0 }
 0x785   : > { %v2688_v30 = vpack.c.bf16 %v2121_v6, %v2120_v55 }
 0x786   : > { %v2052_v0 = vpop.f32.mrf.mxu2 }
 0x787   : > { %2861 = vmatmul.bf16.gmra.mxu3 %v2688_v30  ;;  %2950 = vmatmul.bf16.gmra.mxu0 %v2688_v30  ;;  %v2053_v33 = vadd.f32 %v2052_v0, %v11518_v46  ;;  %v11671_v56 = vpop.f32.mrf.mxu0  ;;  %v16475_v30 = vld [vmem:[#allocation85_spill] sm:$0xff] }
 0x788   : > { %v2538_v58 = vpop.f32.mrf.mxu1 }
 0x789   : > { %v2090_v38 = vmul.f32 2.0, %v2053_v33 }
 0x78a   : > { %v2822_v40 = vpop.f32.mrf.mxu3 }
 0x78b   : > { %v2122_v55 = vsub.f32 %v2090_v38, %v16472_v8 }
 0x78e   : > { %v2054_v7 = vpop.f32.mrf.mxu2 }
 0x78f   : > { %v2055_v43 = vadd.f32 %v2054_v7, %v11526_v12 }
 0x790   : > { %v2541_v49 = vpop.f32.mrf.mxu1 }
 0x791   : > { %v2091_v31 = vmul.f32 2.0, %v2055_v43  ;;  %v11680_v43 = vpop.f32.mrf.mxu0 }
 0x792   : > { %v2824_v63 = vpop.f32.mrf.mxu3 }
 0x793   : > { %v2123_v6 = vsub.f32 %v2091_v31, %v16474_v32  ;;  %2580 = vmatmul.bf16.gmra.mxu1 %v16475_v30  ;;  %2629 = vmatmul.bf16.gmra.mxu2 %v16424_v42  ;;  %v16476_v32 = vld [vmem:[#allocation71_spill] sm:$0xff] }
 0x794   : > { %v16477_v52 = vmax.f32 %v16476_v32, 0.0 }
 0x795   : > { %v2689_v46 = vpack.c.bf16 %v2123_v6, %v2122_v55  ;;  %v16478_v55 = vld [vmem:[#allocation76_spill] sm:$0xff] }
 0x796   : > { %v2057_v0 = vpop.f32.mrf.mxu2  ;;  %v16479_v6 = vmax.f32 %v16478_v55, 0.0 }
 0x797   : > { %2866 = vmatmul.bf16.gmra.mxu3 %v2689_v46  ;;  %2955 = vmatmul.bf16.gmra.mxu0 %v2689_v46  ;;  %v2058_v7 = vadd.f32 %v2057_v0, %v11534_v24 }
 0x798   : > { %v2543_v12 = vpop.f32.mrf.mxu1 }
 0x799   : > { %v2092_v44 = vmul.f32 2.0, %v2058_v7  ;;  %v11690_v24 = vpop.f32.mrf.mxu0  ;;  %v2544_v32 = vadd.f32 %v2543_v12, %v11400_v29 }
 0x79a   : > { %v2827_v33 = vpop.f32.mrf.mxu3 }
 0x79b   : > { %v2124_v42 = vsub.f32 %v2092_v44, %v16477_v52  ;;  %v11698_v52 = vld [vmem:[%s15631_s5] sm:$0x3] }
 0x79e   : > { %v2059_v36 = vpop.f32.mrf.mxu2 }
 0x79f   : > { %v2060_v38 = vadd.f32 %v2059_v36, %v11546_v18  ;;  %v2542_v36 = vadd.f32 %v2541_v49, %v11392_v2  ;;  %v2534_v49 = vadd.f32 %v11650_v25, %v11368_v54  ;;  %v2529_v54 = vadd.f32 %v11628_v27, %v11352_v62 }
 0x7a0   : > { %v2546_v8 = vpop.f32.mrf.mxu1 }
 0x7a1   : > { %v2093_v31 = vmul.f32 2.0, %v2060_v38  ;;  %v11704_v38 = vperm.slane %v11698_v52, 0 }
 0x7a2   : > { %v2829_v34 = vpop.f32.mrf.mxu3 }
 0x7a3   : > { %v2125_v23 = vsub.f32 %v2093_v31, %v16479_v6  ;;  %2634 = vmatmul.bf16.gmra.mxu2 %v16432_v47  ;;  %v2539_v47 = vadd.f32 %v2538_v58, %v11384_v37  ;;  %v2537_v31 = vadd.f32 %v2536_v53, %v11377_v45  ;;  %v2532_v37 = vadd.f32 %v11637_v1, %v11358_v61 }
 0x7a4   : > { %v2988_v58 = vadd.f32 %v2824_v63, %v2534_v49  ;;  %v2984_v1 = vadd.f32 %v11659_v13, %v2529_v54  ;;  %v11774_v49 = vadd.f32 %v11704_v38, %v11644_v59  ;;  %v11796_v54 = vadd.f32 %v11704_v38, %v11624_v50 }
 0x7a5   : > { %v2690_v46 = vpack.c.bf16 %v2125_v23, %v2124_v42  ;;  %v2992_v42 = vadd.f32 %v2829_v34, %v2539_v47  ;;  %v2990_v55 = vadd.f32 %v2827_v33, %v2537_v31  ;;  %v2986_v53 = vadd.f32 %v2822_v40, %v2532_v37  ;;  %v11745_v40 = vpop.f32.mrf.mxu0 }
 0x7a6   : > { %v11688_v22 = vpop.f32.mrf.mxu2  ;;  %v11735_v33 = vadd.f32 %v11704_v38, %v2988_v58  ;;  %v2547_v34 = vadd.f32 %v2546_v8, %v11408_v39  ;;  %v11755_v39 = vadd.f32 %v11704_v38, %v2984_v1  ;;  %16492 = vst [vmem:[#allocation86_spill] sm:$0xff] %v11774_v49  ;;  %v11815_v50 = vadd.f32 %v11704_v38, %v11606_v15 }
 0x7a7   : > { %2871 = vmatmul.bf16.gmra.mxu3 %v2690_v46  ;;  %2960 = vmatmul.bf16.gmra.mxu0 %v2690_v46  ;;  %v11717_v45 = vadd.f32 %v11704_v38, %v2992_v42  ;;  %v11727_v12 = vadd.f32 %v11704_v38, %v2990_v55  ;;  %v11748_v13 = vadd.f32 %v11704_v38, %v2986_v53  ;;  %v15844_v53 = vmax.f32 %v11774_v49, 0.0 }
 0x7a8   : > { %v11692_v0 = vpop.f32.mrf.mxu1  ;;  %16485 = vst [vmem:[#allocation75_spill] sm:$0xff] %v11735_v33  ;;  %v15840_v8 = vmax.f32 %v11735_v33, 0.0  ;;  %v15842_v55 = vmax.f32 %v11755_v39, 0.0 }
 0x7a9   : > { %16480 = vst [vmem:[#allocation92_spill] sm:$0xff] %v11692_v0  ;;  %v15838_v62 = vmax.f32 %v11717_v45, 0.0  ;;  %v15841_v42 = vmax.f32 %v11748_v13, 0.0  ;;  %v16525_v0 = vld [vmem:[#allocation106_spill] sm:$0xff] }
 0x7aa   : > { %v2832_v18 = vpop.f32.mrf.mxu3  ;;  %16482 = vst [vmem:[#allocation72_spill] sm:$0xff] %v11717_v45 }
 0x7ab   : > { %v2994_v23 = vadd.f32 %v2832_v18, %v2542_v36  ;;  %16484 = vst [vmem:[#allocation69_spill] sm:$0xff] %v11727_v12  ;;  %v15839_v36 = vmax.f32 %v11727_v12, 0.0 }
 0x7ac   : > { %16487 = vst [vmem:[#allocation74_spill] sm:$0xff] %v11748_v13 }
 0x7ad   : > { %v11711_v6 = vadd.f32 %v11704_v38, %v2994_v23  ;;  %16489 = vst [vmem:[#allocation87_spill] sm:$0xff] %v11755_v39  ;;  %v11762_v23 = vpack.c.bf16 %v15838_v62, %v15839_v36  ;;  %v11792_v59 = vpop.f32.mrf.mxu0  ;;  %v11829_v36 = vadd.f32 %v11704_v38, %v11596_v28 }
 0x7ae   : > { %v11700_v7 = vpop.f32.mrf.mxu2  ;;  %16496 = vst [vmem:[#allocation71_spill] sm:$0xff] %v11796_v54 }
 0x7af   : > { %16481 = vst [vmem:[#allocation65_spill] sm:$0xff] %v11711_v6 }
 0x7b0   : > { %v2551_v44 = vpop.f32.mrf.mxu1  ;;  %16490 = vst [vmem:[#allocation26_spill] sm:$0xff] %v11762_v23 }
 0x7b1   : > { %16499 = vst [vmem:[#allocation115_spill] sm:$0xff] %v11815_v50 }
 0x7b2   : > { %v2834_v2 = vpop.f32.mrf.mxu3  ;;  %16501 = vst [vmem:[#allocation117_spill] sm:$0xff] %v11829_v36 }
 0x7b3   : > { %v2996_v46 = vadd.f32 %v2834_v2, %v2544_v32  ;;  %2639 = vmatmul.bf16.gmra.mxu2 %v16440_v51  ;;  %v15837_v51 = vmax.f32 %v11711_v6, 0.0  ;;  %v11768_v32 = vadd.f32 %v11704_v38, %v11654_v21  ;;  %v11787_v21 = vadd.f32 %v11704_v38, %v11634_v60 }
 0x7b5   : > { %v11720_v29 = vadd.f32 %v11704_v38, %v2996_v46  ;;  %16491 = vst [vmem:[#allocation84_spill] sm:$0xff] %v11768_v32  ;;  %v11781_v46 = vpack.c.bf16 %v15840_v8, %v15841_v42  ;;  %v15843_v58 = vmax.f32 %v11768_v32, 0.0  ;;  %v11837_v42 = vadd.f32 %v11704_v38, %v11588_v5  ;;  %v11846_v28 = vpop.f32.mrf.mxu0 }
 0x7b6   : > { %v11724_v25 = vpop.f32.mrf.mxu2  ;;  %16495 = vst [vmem:[#allocation85_spill] sm:$0xff] %v11787_v21 }
 0x7b7   : > { %16483 = vst [vmem:[#allocation89_spill] sm:$0xff] %v11720_v29  ;;  %v15836_v61 = vmax.f32 %v11720_v29, 0.0  ;;  %v11803_v60 = vpack.c.bf16 %v15842_v55, %v15843_v58  ;;  %v15848_v55 = vmax.f32 %v11815_v50, 0.0  ;;  %v15858_v5 = vmax.f32 %v11837_v42, 0.0 }
 0x7b8   : > { %v11732_v63 = vpop.f32.mrf.mxu1  ;;  %16493 = vst [vmem:[#allocation25_spill] sm:$0xff] %v11781_v46 }
 0x7b9   : > { %v11743_v27 = vpack.c.bf16 %v15836_v61, %v15837_v51  ;;  %16497 = vst [vmem:[#allocation76_spill] sm:$0xff] %v11803_v60  ;;  %v2552_v51 = vadd.f32 %v2551_v44, %v11424_v10 }
 0x7ba   : > { %v2837_v18 = vpop.f32.mrf.mxu3  ;;  %16503 = vst [vmem:[#allocation119_spill] sm:$0xff] %v11837_v42 }
 0x7bb   : > { %16486 = vst [vmem:[#allocation88_spill] sm:$0xff] %v11743_v27  ;;  %v11751_v47 = vadd.f32 %v2837_v18, %v2547_v34  ;;  %3196 = vmatpush.bf16.msrb.mxu1 %v11743_v27  ;;  %v15845_v34 = vmax.f32 %v11787_v21, 0.0  ;;  %v15846_v18 = vmax.f32 %v11796_v54, 0.0 }
 0x7bd   : > { %16488 = vst [vmem:[#allocation77_spill] sm:$0xff] %v11751_v47  ;;  %v11822_v61 = vpack.c.bf16 %v15844_v53, %v15845_v34 }
 0x7be   : > { %v11764_v31 = vpop.f32.mrf.mxu2 }
 0x7bf   : > { %3197 = vmatpush.bf16.msrb.mxu1 %v11762_v23  ;;  %16500 = vst [vmem:[#allocation116_spill] sm:$0xff] %v11822_v61 }
 0x7c0   : > { %v2556_v2 = vpop.f32.mrf.mxu1 }
 0x7c2   : > { %v11783_v37 = vpop.f32.mrf.mxu3 }
 0x7c3   : > { %16494 = vst [vmem:[#allocation73_spill] sm:$0xff] %v11783_v37  ;;  %2644 = vmatmul.bf16.gmra.mxu2 %v16446_v17  ;;  %3198 = vmatpush.bf16.msrb.mxu1 %v11781_v46  ;;  %v11809_v17 = vadd.f32 %v11704_v38, %v11614_v16 }
 0x7c5   : > { %16498 = vst [vmem:[#allocation114_spill] sm:$0xff] %v11809_v17  ;;  %v15847_v15 = vmax.f32 %v11809_v17, 0.0 }
 0x7c6   : > { %v11805_v1 = vpop.f32.mrf.mxu2 }
 0x7c7   : > { %3199 = vmatpush.bf16.msrb.mxu1 %v11803_v60  ;;  %v11844_v10 = vpack.c.bf16 %v15846_v18, %v15847_v15 }
 0x7c8   : > { %v11825_v16 = vpop.f32.mrf.mxu1 }
 0x7c9   : > { %16504 = vst [vmem:[#allocation120_spill] sm:$0xff] %v11844_v10 }
 0x7ca   : > { %v2842_v62 = vpop.f32.mrf.mxu3 }
 0x7cb   : > { %v11832_v8 = vadd.f32 %v2842_v62, %v2552_v51  ;;  %3200 = vmatpush.bf16.msrb.mxu1 %v11822_v61  ;;  %v11852_v51 = vadd.f32 %v11704_v38, %v11580_v3  ;;  %v15849_v62 = vmax.f32 %v11829_v36, 0.0  ;;  %v16510_v61 = vld [vmem:[#allocation104_spill] sm:$0xff] }
 0x7cd   : > { %16502 = vst [vmem:[#allocation118_spill] sm:$0xff] %v11832_v8  ;;  %v11861_v58 = vpack.c.bf16 %v15848_v55, %v15849_v62  ;;  %v15859_v34 = vmax.f32 %v11852_v51, 0.0  ;;  %v11877_v55 = vpop.f32.mrf.mxu0  ;;  %v2557_v62 = vadd.f32 %v2556_v2, %v11452_v57 }
 0x7ce   : > { %v11848_v44 = vpop.f32.mrf.mxu2  ;;  %16505 = vst [vmem:[#allocation121_spill] sm:$0xff] %v11852_v51  ;;  %v16520_v51 = vld [vmem:[#allocation27_spill] sm:$0xff] }
 0x7cf   : > { %3201 = vmatpush.bf16.msrb.mxu1 %v11844_v10  ;;  %16506 = vst [vmem:[#allocation122_spill] sm:$0xff] %v11861_v58  ;;  %v11872_v18 = vpack.c.bf16 %v15858_v5, %v15859_v34 }
 0x7d0   : > { %v2561_v3 = vpop.f32.mrf.mxu1 }
 0x7d1   : > { %16508 = vst [vmem:[#allocation124_spill] sm:$0xff] %v11872_v18 }
 0x7d2   : > { %v11863_v53 = vpop.f32.mrf.mxu3 }
 0x7d3   : > { %16507 = vst [vmem:[#allocation123_spill] sm:$0xff] %v11863_v53  ;;  %2649 = vmatmul.bf16.gmra.mxu2 %v16453_v4  ;;  %3202 = vmatpush.bf16.msrb.mxu1 %v11861_v58 }
 0x7d5   : > { %v2916_v60 = vpop.f32.mrf.mxu0 }
 0x7d6   : > { %v11874_v15 = vpop.f32.mrf.mxu2 }
 0x7d7   : > { %3203 = vmatpush.bf16.msrb.mxu1 %v11872_v18  ;;  %v16511_v18 = vld [vmem:[#allocation80_spill] sm:$0xff] }
 0x7d8   : > { %v11883_v23 = vpop.f32.mrf.mxu1  ;;  %v2562_v57 = vadd.f32 %v2561_v3, %v16511_v18 }
 0x7da   : > { %v2847_v27 = vpop.f32.mrf.mxu3  ;;  %3204 = vmatmul.bf16.vlgmr.msrb.gmra.mxu1 %v16292_v11 }
 0x7db   : > { %v11881_v4 = vadd.f32 %v2847_v27, %v2557_v62  ;;  %v16512_v62 = vld [vmem:[#allocation33_spill] sm:$0xff] }
 0x7dd   : > { %16509 = vst [vmem:[#allocation125_spill] sm:$0xff] %v11881_v4  ;;  %v2918_v6 = vpop.f32.mrf.mxu0 }
 0x7de   : > { %v11885_v46 = vpop.f32.mrf.mxu2 }
 0x7e0   : > { %v2566_v58 = vpop.f32.mrf.mxu1 }
 0x7e2   : > { %v11887_v5 = vpop.f32.mrf.mxu3 }
 0x7e3   : > { %2654 = vmatmul.bf16.gmra.mxu2 %v16460_v9 }
 0x7e5   : > { %v2921_v9 = vpop.f32.mrf.mxu0 }
 0x7e6   : > { %v2615_v34 = vpop.f32.mrf.mxu2 }
 0x7e7   : > { %v2616_v10 = vadd.f32 %v2615_v34, %v16510_v61  ;;  %v16514_v34 = vld [vmem:[#allocation62_spill] sm:$0xff] }
 0x7e8   : > { %v11898_v12 = vpop.f32.mrf.mxu1  ;;  %v2567_v18 = vadd.f32 %v2566_v58, %v16514_v34  ;;  %v16517_v58 = vld [vmem:[#allocation37_spill] sm:$0xff] }
 0x7e9   : > { %v11893_v2 = vadd.f32 %v11745_v40, %v2616_v10  ;;  %v16515_v40 = vld [vmem:[#allocation35_spill] sm:$0xff] }
 0x7ea   : > { %v2852_v27 = vpop.f32.mrf.mxu3  ;;  %3209 = vmatmul.bf16.gmra.mxu1 %v16512_v62 }
 0x7eb   : > { %v11896_v29 = vadd.f32 %v2852_v27, %v2562_v57 }
 0x7ed   : > { %16513 = vst [vmem:[#allocation104_spill] sm:$0xff] %v11896_v29  ;;  %v2923_v27 = vpop.f32.mrf.mxu0 }
 0x7ee   : > { %v2617_v45 = vpop.f32.mrf.mxu2 }
 0x7f0   : > { %v11907_v13 = vpop.f32.mrf.mxu1 }
 0x7f2   : > { %v11900_v33 = vpop.f32.mrf.mxu3 }
 0x7f3   : > { %2659 = vmatmul.bf16.gmra.mxu2 %v16465_v26 }
 0x7f5   : > { %v11914_v49 = vpop.f32.mrf.mxu0 }
 0x7f6   : > { %v2620_v61 = vpop.f32.mrf.mxu2  ;;  %16516 = vst [vmem:[#allocation80_spill] sm:$0xff] %v11914_v49  ;;  %v16521_v49 = vld [vmem:[#allocation109_spill] sm:$0xff] }
 0x7f7   : > { %v2621_v53 = vadd.f32 %v2620_v61, %v16525_v0 }
 0x7f8   : > { %v11912_v32 = vpop.f32.mrf.mxu1 }
 0x7fa   : > { %v2857_v3 = vpop.f32.mrf.mxu3  ;;  %3214 = vmatmul.bf16.gmra.mxu1 %v16515_v40 }
 0x7fb   : > { %v11905_v10 = vadd.f32 %v2857_v3, %v2567_v18 }
 0x7fd   : > { %v11924_v54 = vpop.f32.mrf.mxu0 }
 0x7fe   : > { %v2622_v57 = vpop.f32.mrf.mxu2  ;;  %16518 = vst [vmem:[#allocation62_spill] sm:$0xff] %v11924_v54  ;;  %v16523_v54 = vld [vmem:[#allocation107_spill] sm:$0xff] }
 0x7ff   : > { %v2623_v11 = vadd.f32 %v2622_v57, %v16523_v54  ;;  %v16536_v57 = vld [vmem:[#allocation101_spill] sm:$0xff] }
 0x800   : > { %v11919_v18 = vpop.f32.mrf.mxu1 }
 0x802   : > { %v11909_v39 = vpop.f32.mrf.mxu3 }
 0x803   : > { %2664 = vmatmul.bf16.gmra.mxu2 %v16470_v20  ;;  %v16519_v20 = vld [vmem:[#allocation111_spill] sm:$0xff] }
 0x805   : > { %v11932_v8 = vpop.f32.mrf.mxu0 }
 0x806   : > { %v2625_v26 = vpop.f32.mrf.mxu2 }
 0x808   : > { %v2578_v36 = vpop.f32.mrf.mxu1 }
 0x80a   : > { %v11916_v21 = vpop.f32.mrf.mxu3  ;;  %3219 = vmatmul.bf16.gmra.mxu1 %v16517_v58  ;;  %v16522_v58 = vld [vmem:[#allocation108_spill] sm:$0xff] }
 0x80b   : > { %v2626_v62 = vadd.f32 %v2625_v26, %v16522_v58  ;;  %v16527_v26 = vld [vmem:[#allocation105_spill] sm:$0xff]  ;;  %v2989_v58 = vadd.f32 %v11877_v55, %v2623_v11 }
 0x80d   : > { %v2991_v29 = vadd.f32 %v2916_v60, %v2626_v62 }
 0x80e   : > { %v2627_v34 = vpop.f32.mrf.mxu2 }
 0x80f   : > { %v2628_v40 = vadd.f32 %v2627_v34, %v16521_v49 }
 0x811   : > { %v2993_v4 = vadd.f32 %v2918_v6, %v2628_v40  ;;  %v2581_v6 = vpop.f32.mrf.mxu1 }
 0x812   : > { %v11921_v3 = vpop.f32.mrf.mxu3 }
 0x813   : > { %2669 = vmatmul.bf16.gmra.mxu2 %v16475_v30  ;;  %v11935_v30 = vperm.slane %v11698_v52, 1 }
 0x815   : > { %v11946_v52 = vadd.f32 %v11935_v30, %v2993_v4  ;;  %v11953_v0 = vadd.f32 %v11935_v30, %v2991_v29  ;;  %v11963_v4 = vadd.f32 %v11935_v30, %v2989_v58 }
 0x816   : > { %v2630_v17 = vpop.f32.mrf.mxu2 }
 0x817   : > { %v2631_v50 = vadd.f32 %v2630_v17, %v16519_v20  ;;  %v16524_v17 = vld [vmem:[#allocation83_spill] sm:$0xff]  ;;  %16528 = vst [vmem:[#allocation109_spill] sm:$0xff] %v11946_v52  ;;  %v15887_v61 = vmax.f32 %v11946_v52, 0.0  ;;  %v15888_v40 = vmax.f32 %v11953_v0, 0.0 }
 0x818   : > { %16530 = vst [vmem:[#allocation107_spill] sm:$0xff] %v11953_v0 }
 0x819   : > { %v2995_v47 = vadd.f32 %v2921_v9, %v2631_v50  ;;  %v2618_v50 = vadd.f32 %v2617_v45, %v16527_v26  ;;  %v16531_v45 = vld [vmem:[#allocation103_spill] sm:$0xff]  ;;  %16532 = vst [vmem:[#allocation83_spill] sm:$0xff] %v11963_v4  ;;  %v11993_v26 = vpack.c.bf16 %v15887_v61, %v15888_v40  ;;  %v16550_v61 = vld [vmem:[#allocation22_spill] sm:$0xff] }
 0x81a   : > { %v11927_v42 = vpop.f32.mrf.mxu3  ;;  %3224 = vmatmul.bf16.gmra.mxu1 %v16520_v51  ;;  %v2613_v62 = vadd.f32 %v11885_v46, %v16531_v45  ;;  %v2582_v45 = vadd.f32 %v2581_v6, %v11562_v35  ;;  %v2577_v40 = vadd.f32 %v11919_v18, %v16550_v61  ;;  %v16554_v61 = vld [vmem:[#allocation19_spill] sm:$0xff] }
 0x81b   : > { %v11941_v51 = vadd.f32 %v11935_v30, %v2995_v47  ;;  %v2985_v11 = vadd.f32 %v11792_v59, %v2618_v50  ;;  %v16540_v50 = vld [vmem:[#allocation100_spill] sm:$0xff] }
 0x81c   : > { %v2981_v34 = vadd.f32 %v11690_v24, %v2613_v62  ;;  %v2606_v58 = vadd.f32 %v11805_v1, %v16540_v50  ;;  %v12000_v24 = vadd.f32 %v11935_v30, %v11893_v2  ;;  %v16542_v62 = vld [vmem:[#allocation99_spill] sm:$0xff]  ;;  %v2583_v1 = vpop.f32.mrf.mxu1  ;;  %v16544_v2 = vld [vmem:[#allocation97_spill] sm:$0xff] }
 0x81d   : > { %16526 = vst [vmem:[#allocation111_spill] sm:$0xff] %v11941_v51  ;;  %v15886_v47 = vmax.f32 %v11941_v51, 0.0  ;;  %v2598_v50 = vadd.f32 %v11700_v7, %v16544_v2  ;;  %v16549_v7 = vld [vmem:[#allocation96_spill] sm:$0xff]  ;;  %v16616_v51 = vld [vmem:[#allocation47_spill] sm:$0xff] }
 0x81e   : > { %v2632_v37 = vpop.f32.mrf.mxu2  ;;  %16541 = vst [vmem:[#allocation101_spill] sm:$0xff] %v12000_v24  ;;  %v2596_v2 = vadd.f32 %v11688_v22, %v16549_v7  ;;  %v16564_v7 = vld [vmem:[#allocation68_spill] sm:$0xff] }
 0x81f   : > { %v2633_v20 = vadd.f32 %v2632_v37, %v16524_v17  ;;  %v2987_v37 = vadd.f32 %v11846_v28, %v2621_v53  ;;  %v11972_v53 = vpop.f32.mrf.mxu0  ;;  %v16534_v28 = vld [vmem:[#allocation102_spill] sm:$0xff]  ;;  %v11985_v17 = vadd.f32 %v11935_v30, %v2985_v11  ;;  %v2603_v11 = vadd.f32 %v11764_v31, %v16542_v62  ;;  %v16546_v31 = vld [vmem:[#allocation20_spill] sm:$0xff] }
 0x820   : > { %v2611_v46 = vadd.f32 %v11874_v15, %v16534_v28  ;;  %v15889_v15 = vmax.f32 %v11963_v4, 0.0  ;;  %16539 = vst [vmem:[#allocation102_spill] sm:$0xff] %v11993_v26  ;;  %v2579_v6 = vadd.f32 %v2578_v36, %v16546_v31  ;;  %v2975_v62 = vadd.f32 %v11667_v19, %v2606_v58  ;;  %v16557_v31 = vld [vmem:[#allocation64_spill] sm:$0xff]  ;;  %v16620_v4 = vld [vmem:[#allocation94_spill] sm:$0xff] }
 0x821   : > { %v2997_v49 = vadd.f32 %v2923_v27, %v2633_v20  ;;  %v11977_v59 = vadd.f32 %v11935_v30, %v2987_v37  ;;  %v2608_v27 = vadd.f32 %v11848_v44, %v16536_v57  ;;  %16537 = vst [vmem:[#allocation103_spill] sm:$0xff] %v11985_v17  ;;  %v12009_v57 = vadd.f32 %v11935_v30, %v2981_v34 }
 0x822   : > { %v2869_v9 = vpop.f32.mrf.mxu3  ;;  %v2979_v44 = vadd.f32 %v11680_v43, %v2611_v46  ;;  %v15895_v43 = vmax.f32 %v11985_v17, 0.0 }
 0x823   : > { %v11949_v54 = vadd.f32 %v11935_v30, %v2997_v49  ;;  %16535 = vst [vmem:[#allocation105_spill] sm:$0xff] %v11977_v59  ;;  %v16538_v49 = vld [vmem:[#allocation28_spill] sm:$0xff]  ;;  %v15890_v37 = vmax.f32 %v11977_v59, 0.0  ;;  %v2977_v28 = vadd.f32 %v11671_v56, %v2608_v27  ;;  %v16547_v27 = vld [vmem:[#allocation98_spill] sm:$0xff]  ;;  %v3024_v36 = vadd.f32 %v2869_v9, %v2579_v6 }
 0x824   : > { %16543 = vst [vmem:[#allocation28_spill] sm:$0xff] %v12009_v57  ;;  %v2601_v34 = vadd.f32 %v11724_v25, %v16547_v27  ;;  %v2973_v25 = vadd.f32 %v11656_v48, %v2603_v11  ;;  %v15897_v58 = vmax.f32 %v12009_v57, 0.0  ;;  %v2574_v9 = vadd.f32 %v11912_v32, %v16554_v61 }
 0x825   : > { %16529 = vst [vmem:[#allocation108_spill] sm:$0xff] %v11949_v54  ;;  %v15885_v60 = vmax.f32 %v11949_v54, 0.0  ;;  %v12020_v35 = vpack.c.bf16 %v15889_v15, %v15890_v37  ;;  %v16551_v15 = vld [vmem:[#allocation95_spill] sm:$0xff]  ;;  %v12038_v19 = vadd.f32 %v11935_v30, %v2977_v28  ;;  %v12058_v28 = vadd.f32 %v11935_v30, %v2975_v62 }
 0x826   : > { %v11960_v55 = vpop.f32.mrf.mxu2  ;;  %v2584_v37 = vadd.f32 %v2583_v1, %v16551_v15  ;;  %v3022_v15 = vadd.f32 %v11927_v42, %v2577_v40  ;;  %v2971_v11 = vadd.f32 %v11648_v14, %v2601_v34  ;;  %v2572_v6 = vadd.f32 %v11907_v13, %v16557_v31  ;;  %v16615_v54 = vld [vmem:[#allocation39_spill] sm:$0xff] }
 0x827   : > { %v11970_v29 = vpack.c.bf16 %v15885_v60, %v15886_v47  ;;  %16545 = vst [vmem:[#allocation100_spill] sm:$0xff] %v12020_v35  ;;  %v12027_v60 = vadd.f32 %v11935_v30, %v2979_v44  ;;  %v15896_v47 = vmax.f32 %v12000_v24, 0.0  ;;  %v3020_v32 = vadd.f32 %v11921_v3, %v2574_v9  ;;  %v16562_v3 = vld [vmem:[#allocation61_spill] sm:$0xff] }
 0x828   : > { %16552 = vst [vmem:[#allocation97_spill] sm:$0xff] %v12038_v19  ;;  %v12065_v42 = vadd.f32 %v11704_v38, %v3024_v36  ;;  %v15901_v14 = vmax.f32 %v12038_v19, 0.0  ;;  %v12087_v27 = vadd.f32 %v11704_v38, %v3022_v15  ;;  %v2967_v36 = vadd.f32 %v16564_v7, %v2596_v2  ;;  %v16623_v24 = vld [vmem:[#allocation93_spill] sm:$0xff]  ;;  %v16625_v19 = vld [vmem:[#allocation90_spill] sm:$0xff] }
 0x829   : > { %16533 = vst [vmem:[#allocation106_spill] sm:$0xff] %v11970_v29  ;;  %3374 = vmatpush.bf16.msrb.mxu3 %v11970_v29  ;;  %v12047_v22 = vpack.c.bf16 %v15895_v43, %v15896_v47  ;;  %v15898_v1 = vmax.f32 %v12027_v60, 0.0  ;;  %v12098_v61 = vadd.f32 %v11704_v38, %v3020_v32 }
 0x82a   : > { %v2872_v20 = vpop.f32.mrf.mxu3  ;;  %3229 = vmatmul.bf16.gmra.mxu1 %v16538_v49  ;;  %16548 = vst [vmem:[#allocation99_spill] sm:$0xff] %v12027_v60  ;;  %v15894_v32 = vmax.f32 %v12087_v27, 0.0  ;;  %v16624_v60 = vld [vmem:[#allocation21_spill] sm:$0xff] }
 0x82b   : > { %v3026_v56 = vadd.f32 %v2872_v20, %v2582_v45  ;;  %v12040_v20 = vpop.f32.mrf.mxu0  ;;  %16553 = vst [vmem:[#allocation20_spill] sm:$0xff] %v12047_v22  ;;  %v2969_v45 = vadd.f32 %v11631_v41, %v2598_v50  ;;  %v12072_v41 = vadd.f32 %v11935_v30, %v2973_v25  ;;  %v12079_v13 = vpack.c.bf16 %v15897_v58, %v15898_v1 }
 0x82c   : > { %16556 = vst [vmem:[#allocation96_spill] sm:$0xff] %v12058_v28  ;;  %v12093_v25 = vadd.f32 %v11935_v30, %v2971_v11  ;;  %v16571_v11 = vld [vmem:[#allocation70_spill] sm:$0xff] }
 0x82d   : > { %3375 = vmatpush.bf16.msrb.mxu3 %v11993_v26  ;;  %v12053_v48 = vadd.f32 %v11704_v38, %v3026_v56  ;;  %16558 = vst [vmem:[#allocation22_spill] sm:$0xff] %v12065_v42  ;;  %v3018_v56 = vadd.f32 %v11916_v21, %v2572_v6  ;;  %v15893_v21 = vmax.f32 %v12065_v42, 0.0  ;;  %v12109_v2 = vadd.f32 %v11935_v30, %v2969_v45 }
 0x82e   : > { %v12012_v46 = vpop.f32.mrf.mxu2  ;;  %16560 = vst [vmem:[#allocation19_spill] sm:$0xff] %v12072_v41  ;;  %v15903_v15 = vmax.f32 %v12072_v41, 0.0  ;;  %v2564_v31 = vadd.f32 %v11883_v23, %v16571_v11  ;;  %v12127_v45 = vadd.f32 %v11935_v30, %v2967_v36  ;;  %v15899_v23 = vmax.f32 %v12098_v61, 0.0 }
 0x82f   : > { %16555 = vst [vmem:[#allocation98_spill] sm:$0xff] %v12053_v48  ;;  %v15892_v34 = vmax.f32 %v12053_v48, 0.0  ;;  %v12122_v6 = vadd.f32 %v11704_v38, %v3018_v56  ;;  %v12141_v56 = vpack.c.bf16 %v15893_v21, %v15894_v32  ;;  %v15905_v36 = vmax.f32 %v12109_v2, 0.0 }
 0x830   : > { %16561 = vst [vmem:[#allocation64_spill] sm:$0xff] %v12079_v13  ;;  %v3012_v7 = vadd.f32 %v11900_v33, %v2564_v31  ;;  %v15906_v32 = vmax.f32 %v12127_v45, 0.0 }
 0x831   : > { %3376 = vmatpush.bf16.msrb.mxu3 %v12020_v35  ;;  %16563 = vst [vmem:[#allocation61_spill] sm:$0xff] %v12087_v27  ;;  %v15900_v21 = vmax.f32 %v12122_v6, 0.0  ;;  %v16614_v27 = vld [vmem:[#allocation37_spill] sm:$0xff] }
 0x832   : > { %v2874_v18 = vpop.f32.mrf.mxu3  ;;  %16565 = vst [vmem:[#allocation68_spill] sm:$0xff] %v12093_v25  ;;  %v12164_v47 = vadd.f32 %v11704_v38, %v3012_v7 }
 0x833   : > { %v3028_v44 = vadd.f32 %v2874_v18, %v2584_v37  ;;  %v2569_v37 = vadd.f32 %v11898_v12, %v16562_v3  ;;  %v15902_v18 = vmax.f32 %v12058_v28, 0.0  ;;  %16566 = vst [vmem:[#allocation126_spill] sm:$0xff] %v12098_v61  ;;  %v15904_v3 = vmax.f32 %v12093_v25, 0.0 }
 0x834   : > { %16568 = vst [vmem:[#allocation128_spill] sm:$0xff] %v12109_v2 }
 0x835   : > { %v12068_v40 = vadd.f32 %v11704_v38, %v3028_v44  ;;  %3377 = vmatpush.bf16.msrb.mxu3 %v12047_v22  ;;  %v3016_v12 = vadd.f32 %v11909_v39, %v2569_v37  ;;  %v16569_v44 = vld [vmem:[#allocation32_spill] sm:$0xff]  ;;  %v12117_v39 = vpack.c.bf16 %v15901_v14, %v15902_v18  ;;  %16572 = vst [vmem:[#allocation70_spill] sm:$0xff] %v12122_v6  ;;  %v12130_v37 = vpop.f32.mrf.mxu0  ;;  %v16607_v22 = vld [vmem:[#allocation33_spill] sm:$0xff] }
 0x836   : > { %v12083_v50 = vpop.f32.mrf.mxu2  ;;  %16573 = vst [vmem:[#allocation129_spill] sm:$0xff] %v12127_v45  ;;  %v12151_v33 = vpack.c.bf16 %v15903_v15, %v15904_v3  ;;  %v16588_v15 = vld [vmem:[#allocation110_spill] sm:$0xff]  ;;  %v16589_v3 = vld [vmem:[#allocation92_spill] sm:$0xff] }
 0x837   : > { %16559 = vst [vmem:[#allocation95_spill] sm:$0xff] %v12068_v40  ;;  %v15891_v62 = vmax.f32 %v12068_v40, 0.0 }
 0x838   : > { %16570 = vst [vmem:[#allocation32_spill] sm:$0xff] %v12117_v39 }
 0x839   : > { %v12105_v9 = vpack.c.bf16 %v15891_v62, %v15892_v34  ;;  %3378 = vmatpush.bf16.msrb.mxu3 %v12079_v13  ;;  %v12134_v62 = vadd.f32 %v11704_v38, %v3016_v12  ;;  %16575 = vst [vmem:[#allocation131_spill] sm:$0xff] %v12141_v56  ;;  %v16577_v12 = vld [vmem:[#allocation67_spill] sm:$0xff]  ;;  %v12157_v34 = vadd.f32 %v11704_v38, %v11905_v10  ;;  %v16608_v13 = vld [vmem:[#allocation36_spill] sm:$0xff] }
 0x83a   : > { %3234 = vmatmul.bf16.gmra.mxu1 %v16569_v44  ;;  %16576 = vst [vmem:[#allocation132_spill] sm:$0xff] %v12151_v33  ;;  %v2559_v31 = vadd.f32 %v11825_v16, %v16577_v12  ;;  %v12171_v16 = vpack.c.bf16 %v15899_v23, %v15900_v21  ;;  %v12178_v10 = vpack.c.bf16 %v15905_v36, %v15906_v32  ;;  %v16583_v12 = vld [vmem:[#allocation104_spill] sm:$0xff]  ;;  %v16585_v23 = vld [vmem:[#allocation123_spill] sm:$0xff]  ;;  %v16592_v32 = vld [vmem:[#allocation29_spill] sm:$0xff] }
 0x83b   : > { %16567 = vst [vmem:[#allocation127_spill] sm:$0xff] %v12105_v9  ;;  %3285 = vmatpush.bf16.msrb.mxu2 %v12105_v9  ;;  %v15907_v58 = vmax.f32 %v12134_v62, 0.0  ;;  %v15908_v1 = vmax.f32 %v12157_v34, 0.0  ;;  %v16598_v9 = vld [vmem:[#allocation118_spill] sm:$0xff] }
 0x83c   : > { %16574 = vst [vmem:[#allocation130_spill] sm:$0xff] %v12134_v62  ;;  %v3008_v43 = vadd.f32 %v11887_v5, %v2559_v31  ;;  %v16582_v5 = vld [vmem:[#allocation112_spill] sm:$0xff]  ;;  %v12184_v31 = vadd.f32 %v11704_v38, %v16583_v12  ;;  %v12227_v26 = vadd.f32 %v11704_v38, %v16598_v9 }
 0x83d   : > { %3379 = vmatpush.bf16.msrb.mxu3 %v12117_v39  ;;  %16578 = vst [vmem:[#allocation67_spill] sm:$0xff] %v12157_v34  ;;  %v2554_v7 = vadd.f32 %v11732_v63, %v16582_v5  ;;  %v12197_v63 = vpack.c.bf16 %v15907_v58, %v15908_v1  ;;  %v12200_v5 = vpop.f32.mrf.mxu0  ;;  %v16593_v58 = vld [vmem:[#allocation73_spill] sm:$0xff] }
 0x83e   : > { %v12145_v11 = vpop.f32.mrf.mxu2  ;;  %16579 = vst [vmem:[#allocation133_spill] sm:$0xff] %v12164_v47  ;;  %v12190_v14 = vadd.f32 %v11704_v38, %v3008_v43  ;;  %v15917_v36 = vmax.f32 %v12184_v31, 0.0  ;;  %v15930_v35 = vmax.f32 %v12227_v26, 0.0 }
 0x83f   : > { %3286 = vmatpush.bf16.msrb.mxu2 %v12141_v56  ;;  %16580 = vst [vmem:[#allocation134_spill] sm:$0xff] %v12171_v16  ;;  %v3004_v21 = vadd.f32 %v16585_v23, %v2554_v7  ;;  %v2549_v23 = vadd.f32 %v16589_v3, %v16588_v15  ;;  %v16590_v7 = vld [vmem:[#allocation125_spill] sm:$0xff]  ;;  %v16595_v15 = vmax.f32 %v12164_v47, 0.0 }
 0x840   : > { %16581 = vst [vmem:[#allocation135_spill] sm:$0xff] %v12178_v10  ;;  %v12208_v43 = vadd.f32 %v11704_v38, %v16590_v7  ;;  %v15922_v29 = vmax.f32 %v12190_v14, 0.0  ;;  %v16597_v7 = vld [vmem:[#allocation34_spill] sm:$0xff]  ;;  %v16621_v47 = vld [vmem:[#allocation41_spill] sm:$0xff] }
 0x841   : > { %3380 = vmatpush.bf16.msrb.mxu3 %v12151_v33  ;;  %16584 = vst [vmem:[#allocation112_spill] sm:$0xff] %v12184_v31  ;;  %v3000_v1 = vadd.f32 %v16593_v58, %v2549_v23  ;;  %v12215_v18 = vadd.f32 %v11704_v38, %v3004_v21  ;;  %v12222_v3 = vpack.c.bf16 %v16595_v15, %v15917_v36  ;;  %v16602_v36 = vld [vmem:[#allocation77_spill] sm:$0xff]  ;;  %v16622_v31 = vld [vmem:[#allocation91_spill] sm:$0xff] }
 0x842   : > { %16586 = vst [vmem:[#allocation104_spill] sm:$0xff] %v12190_v14  ;;  %v15923_v56 = vmax.f32 %v12208_v43, 0.0  ;;  %v12245_v9 = vadd.f32 %v11704_v38, %v16602_v36 }
 0x843   : > { %3287 = vmatpush.bf16.msrb.mxu2 %v12171_v16  ;;  %16587 = vst [vmem:[#allocation123_spill] sm:$0xff] %v12197_v63  ;;  %v12232_v58 = vadd.f32 %v11704_v38, %v3000_v1  ;;  %v16604_v16 = vmax.f32 %v12215_v18, 0.0 }
 0x844   : > { %16591 = vst [vmem:[#allocation110_spill] sm:$0xff] %v12208_v43  ;;  %v12239_v23 = vpack.c.bf16 %v15922_v29, %v15923_v56  ;;  %v15944_v56 = vmax.f32 %v12245_v9, 0.0 }
 0x845   : > { %3381 = vmatpush.bf16.msrb.mxu3 %v12178_v10  ;;  %16594 = vst [vmem:[#allocation92_spill] sm:$0xff] %v12215_v18  ;;  %v12249_v1 = vpop.f32.mrf.mxu0  ;;  %v15943_v21 = vmax.f32 %v12232_v58, 0.0  ;;  %v12256_v29 = vpack.c.bf16 %v16604_v16, %v15930_v35  ;;  %v16609_v16 = vld [vmem:[#allocation43_spill] sm:$0xff] }
 0x846   : > { %v12202_v12 = vpop.f32.mrf.mxu2  ;;  %16596 = vst [vmem:[#allocation125_spill] sm:$0xff] %v12222_v3 }
 0x847   : > { %3288 = vmatpush.bf16.msrb.mxu2 %v12197_v63  ;;  %16599 = vst [vmem:[#allocation29_spill] sm:$0xff] %v12227_v26  ;;  %v12264_v38 = vpack.c.bf16 %v15943_v21, %v15944_v56  ;;  %v16612_v21 = vld [vmem:[#allocation38_spill] sm:$0xff]  ;;  %v16613_v56 = vld [vmem:[#allocation45_spill] sm:$0xff] }
 0x848   : > { %3382 = vmatmul.bf16.vlgmr.msrb.gmra.mxu3 %v16592_v32  ;;  %16600 = vst [vmem:[#allocation73_spill] sm:$0xff] %v12232_v58 }
 0x849   : > { %16601 = vst [vmem:[#allocation34_spill] sm:$0xff] %v12239_v23 }
 0x84a   : > { %3239 = vmatmul.bf16.gmra.mxu1 %v16597_v7  ;;  %16603 = vst [vmem:[#allocation118_spill] sm:$0xff] %v12245_v9  ;;  %v16626_v9 = vld [vmem:[#allocation23_spill] sm:$0xff] }
 0x84b   : > { %3289 = vmatpush.bf16.msrb.mxu2 %v12222_v3  ;;  %16605 = vst [vmem:[#allocation77_spill] sm:$0xff] %v12256_v29 }
 0x84c   : > { %16606 = vst [vmem:[#allocation136_spill] sm:$0xff] %v12264_v38 }
 0x84d   : > { %v2946_v63 = vpop.f32.mrf.mxu0 }
 0x84e   : > { %v12241_v15 = vpop.f32.mrf.mxu2 }
 0x84f   : > { %3290 = vmatpush.bf16.msrb.mxu2 %v12239_v23  ;;  %v16610_v23 = vld [vmem:[#allocation63_spill] sm:$0xff] }
 0x853   : > { %3291 = vmatpush.bf16.msrb.mxu2 %v12256_v29  ;;  %v16611_v29 = vld [vmem:[#allocation35_spill] sm:$0xff] }
 0x855   : > { %v2948_v3 = vpop.f32.mrf.mxu0 }
 0x856   : > { %v2650_v36 = vpop.f32.mrf.mxu2 }
 0x857   : > { %3292 = vmatpush.bf16.msrb.mxu2 %v12264_v38 }
 0x858   : > { %3387 = vmatmul.bf16.gmra.mxu3 %v16607_v22 }
 0x85a   : > { %3293 = vmatmul.bf16.vlgmr.msrb.gmra.mxu2 %v16608_v13  ;;  %3244 = vmatmul.bf16.gmra.mxu1 %v16609_v16 }
 0x85d   : > { %v2951_v38 = vpop.f32.mrf.mxu0 }
 0x85e   : > { %v2652_v35 = vpop.f32.mrf.mxu2 }
 0x865   : > { %v2953_v42 = vpop.f32.mrf.mxu0 }
 0x866   : > { %v2655_v39 = vpop.f32.mrf.mxu2 }
 0x867   : > { %v2656_v33 = vadd.f32 %v2655_v39, %v16610_v23  ;;  %v16617_v23 = vld [vmem:[#allocation27_spill] sm:$0xff] }
 0x868   : > { %3392 = vmatmul.bf16.gmra.mxu3 %v16611_v29 }
 0x869   : > { %v3015_v10 = vadd.f32 %v2946_v63, %v2656_v33  ;;  %v16618_v33 = vld [vmem:[#allocation40_spill] sm:$0xff]  ;;  %v16619_v63 = vld [vmem:[#allocation49_spill] sm:$0xff] }
 0x86a   : > { %3298 = vmatmul.bf16.gmra.mxu2 %v16612_v21  ;;  %3249 = vmatmul.bf16.gmra.mxu1 %v16613_v56 }
 0x86d   : > { %v2956_v6 = vpop.f32.mrf.mxu0 }
 0x86e   : > { %v2657_v40 = vpop.f32.mrf.mxu2 }
 0x875   : > { %v2958_v52 = vpop.f32.mrf.mxu0 }
 0x876   : > { %v2660_v48 = vpop.f32.mrf.mxu2 }
 0x877   : > { %v2661_v41 = vadd.f32 %v2660_v48, %v16626_v9  ;;  %v12339_v9 = vadd.f32 %v11935_v30, %v3015_v10 }
 0x878   : > { %3397 = vmatmul.bf16.gmra.mxu3 %v16614_v27 }
 0x879   : > { %16642 = vst [vmem:[#allocation21_spill] sm:$0xff] %v12339_v9 }
 0x87a   : > { %3303 = vmatmul.bf16.gmra.mxu2 %v16615_v54  ;;  %3254 = vmatmul.bf16.gmra.mxu1 %v16616_v51 }
 0x87d   : > { %v2961_v62 = vpop.f32.mrf.mxu0 }
 0x87e   : > { %v2662_v61 = vpop.f32.mrf.mxu2 }
 0x87f   : > { %v2663_v18 = vadd.f32 %v2662_v61, %v16624_v60  ;;  %v16638_v61 = vld [vmem:[#allocation42_spill] sm:$0xff] }
 0x885   : > { %v2963_v58 = vpop.f32.mrf.mxu0 }
 0x886   : > { %v2665_v39 = vpop.f32.mrf.mxu2 }
 0x887   : > { %v2666_v14 = vadd.f32 %v2665_v39, %v16623_v24 }
 0x888   : > { %3402 = vmatmul.bf16.gmra.mxu3 %v16617_v23 }
 0x889   : > { %v3023_v25 = vadd.f32 %v2956_v6, %v2666_v14 }
 0x88a   : > { %3308 = vmatmul.bf16.gmra.mxu2 %v16618_v33  ;;  %3259 = vmatmul.bf16.gmra.mxu1 %v16619_v63 }
 0x88b   : > { %v12299_v60 = vadd.f32 %v11935_v30, %v3023_v25  ;;  %v16637_v25 = vld [vmem:[#allocation79_spill] sm:$0xff] }
 0x88d   : > { %16631 = vst [vmem:[#allocation63_spill] sm:$0xff] %v12299_v60 }
 0x88e   : > { %v2667_v0 = vpop.f32.mrf.mxu2 }
 0x88f   : > { %v2668_v17 = vadd.f32 %v2667_v0, %v16622_v31  ;;  %v3021_v0 = vadd.f32 %v2953_v42, %v2663_v18  ;;  %v2648_v18 = vadd.f32 %v12241_v15, %v16637_v25 }
 0x891   : > { %v3025_v26 = vadd.f32 %v2958_v52, %v2668_v17  ;;  %v3019_v52 = vadd.f32 %v2951_v38, %v2661_v41  ;;  %v16635_v41 = vld [vmem:[#allocation31_spill] sm:$0xff]  ;;  %v16643_v38 = vld [vmem:[#allocation78_spill] sm:$0xff]  ;;  %v3009_v39 = vadd.f32 %v12130_v37, %v2648_v18  ;;  %v15986_v37 = vmax.f32 %v12339_v9, 0.0 }
 0x892   : > { %v2651_v14 = vadd.f32 %v2650_v36, %v16635_v41  ;;  %v2643_v36 = vadd.f32 %v12145_v11, %v16643_v38  ;;  %v16653_v18 = vld [vmem:[#allocation62_spill] sm:$0xff] }
 0x893   : > { %v12293_v24 = vadd.f32 %v11935_v30, %v3025_v26 }
 0x894   : > { %v3011_v15 = vadd.f32 %v12200_v5, %v2651_v14  ;;  %v16646_v5 = vld [vmem:[#allocation82_spill] sm:$0xff] }
 0x895   : > { %16629 = vst [vmem:[#allocation36_spill] sm:$0xff] %v12293_v24  ;;  %v15981_v26 = vmax.f32 %v12293_v24, 0.0 }
 0x896   : > { %v2670_v34 = vpop.f32.mrf.mxu2  ;;  %v12360_v11 = vadd.f32 %v11935_v30, %v3011_v15 }
 0x897   : > { %v2671_v59 = vadd.f32 %v2670_v34, %v16620_v4  ;;  %v16628_v34 = vld [vmem:[#allocation24_spill] sm:$0xff] }
 0x898   : > { %3407 = vmatmul.bf16.gmra.mxu3 %v16538_v49  ;;  %v2658_v45 = vadd.f32 %v2657_v40, %v16628_v34  ;;  %v12305_v40 = vadd.f32 %v11935_v30, %v3021_v0  ;;  %16647 = vst [vmem:[#allocation24_spill] sm:$0xff] %v12360_v11 }
 0x899   : > { %v3027_v43 = vadd.f32 %v2961_v62, %v2671_v59  ;;  %v12317_v62 = vadd.f32 %v11935_v30, %v3019_v52  ;;  %v16648_v52 = vld [vmem:[#allocation81_spill] sm:$0xff] }
 0x89a   : > { %3313 = vmatmul.bf16.gmra.mxu2 %v16621_v47  ;;  %16633 = vst [vmem:[#allocation35_spill] sm:$0xff] %v12305_v40  ;;  %v15983_v31 = vmax.f32 %v12305_v40, 0.0 }
 0x89b   : > { %v12289_v2 = vadd.f32 %v11935_v30, %v3027_v43  ;;  %16636 = vst [vmem:[#allocation94_spill] sm:$0xff] %v12317_v62 }
 0x89d   : > { %16627 = vst [vmem:[#allocation33_spill] sm:$0xff] %v12289_v2  ;;  %v15980_v17 = vmax.f32 %v12289_v2, 0.0 }
 0x89e   : > { %v2672_v57 = vpop.f32.mrf.mxu2 }
 0x89f   : > { %v2673_v28 = vadd.f32 %v2672_v57, %v16625_v19  ;;  %v16632_v19 = vld [vmem:[#allocation30_spill] sm:$0xff] }
 0x8a0   : > { %v2653_v48 = vadd.f32 %v2652_v35, %v16632_v19  ;;  %v15982_v35 = vmax.f32 %v12299_v60, 0.0  ;;  %v2638_v19 = vadd.f32 %v12012_v46, %v16648_v52 }
 0x8a1   : > { %v3029_v4 = vadd.f32 %v2963_v58, %v2673_v28  ;;  %v3017_v28 = vadd.f32 %v2948_v3, %v2658_v45  ;;  %v16641_v3 = vld [vmem:[#allocation66_spill] sm:$0xff] }
 0x8a2   : > { %v3013_v6 = vadd.f32 %v12249_v1, %v2653_v48  ;;  %v12333_v43 = vpack.c.bf16 %v15981_v26, %v15982_v35  ;;  %v2646_v58 = vadd.f32 %v12202_v12, %v16641_v3  ;;  %v15984_v1 = vmax.f32 %v12317_v62, 0.0  ;;  %v16667_v26 = vld [vmem:[#allocation48_spill] sm:$0xff] }
 0x8a3   : > { %v12296_v59 = vadd.f32 %v11935_v30, %v3029_v4  ;;  %v12326_v45 = vadd.f32 %v11935_v30, %v3017_v28  ;;  %v2641_v12 = vadd.f32 %v12083_v50, %v16646_v5  ;;  %v3005_v48 = vadd.f32 %v11972_v53, %v2643_v36  ;;  %v16651_v50 = vld [vmem:[#allocation113_spill] sm:$0xff]  ;;  %v3205_v5 = vpop.f32.mrf.mxu1 }
 0x8a4   : > { %16640 = vst [vmem:[#allocation93_spill] sm:$0xff] %v12333_v43  ;;  %v12347_v4 = vadd.f32 %v11935_v30, %v3013_v6  ;;  %v12354_v10 = vpack.c.bf16 %v15983_v31, %v15984_v1  ;;  %v3007_v0 = vadd.f32 %v12040_v20, %v2646_v58  ;;  %v12368_v28 = vadd.f32 %v11935_v30, %v3009_v39  ;;  %v16658_v39 = vld [vmem:[#allocation44_spill] sm:$0xff] }
 0x8a5   : > { %16630 = vst [vmem:[#allocation43_spill] sm:$0xff] %v12296_v59  ;;  %v15979_v57 = vmax.f32 %v12296_v59, 0.0  ;;  %v15985_v34 = vmax.f32 %v12326_v45, 0.0  ;;  %v2636_v14 = vadd.f32 %v11960_v55, %v16651_v50  ;;  %v3003_v25 = vadd.f32 %v11932_v8, %v2641_v12  ;;  %v16656_v8 = vld [vmem:[#allocation80_spill] sm:$0xff] }
 0x8a6   : > { %16639 = vst [vmem:[#allocation91_spill] sm:$0xff] %v12326_v45  ;;  %v15987_v41 = vmax.f32 %v12347_v4, 0.0  ;;  %v12381_v46 = vadd.f32 %v11935_v30, %v3007_v0  ;;  %v15988_v53 = vmax.f32 %v12360_v11, 0.0  ;;  %v3001_v6 = vadd.f32 %v16653_v18, %v2638_v19 }
 0x8a7   : > { %v12312_v42 = vpack.c.bf16 %v15979_v57, %v15980_v17  ;;  %16644 = vst [vmem:[#allocation90_spill] sm:$0xff] %v12347_v4  ;;  %v12375_v20 = vpack.c.bf16 %v15985_v34, %v15986_v37  ;;  %v12387_v3 = vadd.f32 %v11935_v30, %v3005_v48  ;;  %v15989_v58 = vmax.f32 %v12368_v28, 0.0  ;;  %v16666_v17 = vld [vmem:[#allocation53_spill] sm:$0xff]  ;;  %v16668_v37 = vld [vmem:[#allocation55_spill] sm:$0xff] }
 0x8a8   : > { %3412 = vmatmul.bf16.gmra.mxu3 %v16569_v44  ;;  %16645 = vst [vmem:[#allocation23_spill] sm:$0xff] %v12354_v10  ;;  %v12394_v55 = vpack.c.bf16 %v15987_v41, %v15988_v53  ;;  %v2999_v15 = vadd.f32 %v16656_v8, %v2636_v14  ;;  %v12399_v38 = vadd.f32 %v11935_v30, %v3003_v25  ;;  %v15990_v36 = vmax.f32 %v12381_v46, 0.0  ;;  %v16665_v8 = vld [vmem:[#allocation46_spill] sm:$0xff] }
 0x8a9   : > { %16634 = vst [vmem:[#allocation45_spill] sm:$0xff] %v12312_v42  ;;  %3463 = vmatpush.bf16.msrb.mxu0 %v12312_v42  ;;  %v12405_v12 = vadd.f32 %v11935_v30, %v3001_v6  ;;  %v15991_v0 = vmax.f32 %v12387_v3, 0.0  ;;  %v16663_v6 = vld [vmem:[#allocation51_spill] sm:$0xff]  ;;  %v16671_v42 = vld [vmem:[#allocation57_spill] sm:$0xff] }
 0x8aa   : > { %3318 = vmatmul.bf16.gmra.mxu2 %v16638_v61  ;;  %16649 = vst [vmem:[#allocation30_spill] sm:$0xff] %v12368_v28  ;;  %v12412_v52 = vpack.c.bf16 %v15989_v58, %v15990_v36  ;;  %v12415_v19 = vadd.f32 %v11935_v30, %v2999_v15  ;;  %v15992_v48 = vmax.f32 %v12399_v38, 0.0  ;;  %v16670_v36 = vld [vmem:[#allocation50_spill] sm:$0xff]  ;;  %v16680_v28 = vld [vmem:[#allocation60_spill] sm:$0xff] }
 0x8ab   : > { %16650 = vst [vmem:[#allocation31_spill] sm:$0xff] %v12375_v20  ;;  %v15993_v50 = vmax.f32 %v12405_v12, 0.0  ;;  %v3207_v18 = vpop.f32.mrf.mxu1  ;;  %3264 = vmatmul.bf16.gmra.mxu1 %v16663_v6 }
 0x8ac   : > { %16652 = vst [vmem:[#allocation79_spill] sm:$0xff] %v12381_v46  ;;  %v12424_v14 = vpack.c.bf16 %v15991_v0, %v15992_v48  ;;  %v15994_v25 = vmax.f32 %v12415_v19, 0.0 }
 0x8ad   : > { %3464 = vmatpush.bf16.msrb.mxu0 %v12333_v43  ;;  %16654 = vst [vmem:[#allocation66_spill] sm:$0xff] %v12387_v3 }
 0x8ae   : > { %16655 = vst [vmem:[#allocation78_spill] sm:$0xff] %v12394_v55  ;;  %v12433_v30 = vpack.c.bf16 %v15993_v50, %v15994_v25 }
 0x8af   : > { %16657 = vst [vmem:[#allocation82_spill] sm:$0xff] %v12399_v38 }
 0x8b0   : > { %16659 = vst [vmem:[#allocation81_spill] sm:$0xff] %v12405_v12 }
 0x8b1   : > { %3465 = vmatpush.bf16.msrb.mxu0 %v12354_v10  ;;  %16660 = vst [vmem:[#allocation113_spill] sm:$0xff] %v12412_v52 }
 0x8b2   : > { %16661 = vst [vmem:[#allocation62_spill] sm:$0xff] %v12415_v19 }
 0x8b3   : > { %16662 = vst [vmem:[#allocation80_spill] sm:$0xff] %v12424_v14  ;;  %v3210_v15 = vpop.f32.mrf.mxu1 }
 0x8b4   : > { %16664 = vst [vmem:[#allocation137_spill] sm:$0xff] %v12433_v30 }
 0x8b5   : > { %3466 = vmatpush.bf16.msrb.mxu0 %v12375_v20 }
 0x8b8   : > { %3417 = vmatmul.bf16.gmra.mxu3 %v16597_v7 }
 0x8b9   : > { %3467 = vmatpush.bf16.msrb.mxu0 %v12394_v55 }
 0x8ba   : > { %3323 = vmatmul.bf16.gmra.mxu2 %v16658_v39 }
 0x8bb   : > { %v3212_v57 = vpop.f32.mrf.mxu1  ;;  %3269 = vmatmul.bf16.gmra.mxu1 %v16666_v17 }
 0x8bd   : > { %3468 = vmatpush.bf16.msrb.mxu0 %v12412_v52 }
 0x8c1   : > { %3469 = vmatpush.bf16.msrb.mxu0 %v12424_v14 }
 0x8c3   : > { %v3215_v35 = vpop.f32.mrf.mxu1 }
 0x8c5   : > { %3470 = vmatpush.bf16.msrb.mxu0 %v12433_v30 }
 0x8c8   : > { %3471 = vmatmul.bf16.vlgmr.msrb.gmra.mxu0 %v16608_v13  ;;  %3422 = vmatmul.bf16.gmra.mxu3 %v16609_v16 }
 0x8ca   : > { %3328 = vmatmul.bf16.gmra.mxu2 %v16665_v8 }
 0x8cb   : > { %v3217_v34 = vpop.f32.mrf.mxu1  ;;  %3274 = vmatmul.bf16.gmra.mxu1 %v16668_v37 }
 0x8d3   : > { %v3220_v0 = vpop.f32.mrf.mxu1 }
 0x8d8   : > { %3476 = vmatmul.bf16.gmra.mxu0 %v16612_v21  ;;  %3427 = vmatmul.bf16.gmra.mxu3 %v16613_v56 }
 0x8da   : > { %3333 = vmatmul.bf16.gmra.mxu2 %v16667_v26 }
 0x8db   : > { %v3222_v25 = vpop.f32.mrf.mxu1  ;;  %3279 = vmatmul.bf16.gmra.mxu1 %v16671_v42 }
 0x8dd   : > { %v3294_v31 = vpop.f32.mrf.mxu2 }
 0x8de   : > { %v3295_v1 = vadd.f32 %v3294_v31, %v3205_v5 }
 0x8e5   : > { %v3296_v41 = vpop.f32.mrf.mxu2 }
 0x8e6   : > { %v3297_v53 = vadd.f32 %v3296_v41, %v3207_v18  ;;  %v3225_v41 = vpop.f32.mrf.mxu1 }
 0x8e8   : > { %v12444_v58 = vpack.c.bf16 %v3297_v53, %v3295_v1  ;;  %3481 = vmatmul.bf16.gmra.mxu0 %v16615_v54  ;;  %3432 = vmatmul.bf16.gmra.mxu3 %v16616_v51  ;;  %v16673_v1 = vld [vmem:[#allocation52_spill] sm:$0xff] }
 0x8ea   : > { %16669 = vst [vmem:[#allocation138_spill] sm:$0xff] %v12444_v58  ;;  %3338 = vmatmul.bf16.gmra.mxu2 %v16670_v36 }
 0x8ed   : > { %v3299_v48 = vpop.f32.mrf.mxu2 }
 0x8ee   : > { %v3300_v50 = vadd.f32 %v3299_v48, %v3210_v15  ;;  %v12455_v10 = vpop.f32.mrf.mxu1 }
 0x8f5   : > { %v3301_v31 = vpop.f32.mrf.mxu2 }
 0x8f6   : > { %v3302_v5 = vadd.f32 %v3301_v31, %v3212_v57  ;;  %v16675_v57 = vld [vmem:[#allocation54_spill] sm:$0xff] }
 0x8f8   : > { %v12450_v43 = vpack.c.bf16 %v3302_v5, %v3300_v50  ;;  %3486 = vmatmul.bf16.gmra.mxu0 %v16618_v33  ;;  %3437 = vmatmul.bf16.gmra.mxu3 %v16619_v63  ;;  %v3230_v50 = vpop.f32.mrf.mxu1 }
 0x8fa   : > { %16672 = vst [vmem:[#allocation139_spill] sm:$0xff] %v12450_v43  ;;  %3343 = vmatmul.bf16.gmra.mxu2 %v16673_v1 }
 0x8fd   : > { %v3304_v53 = vpop.f32.mrf.mxu2 }
 0x8fe   : > { %v3305_v18 = vadd.f32 %v3304_v53, %v3215_v35  ;;  %v16677_v35 = vld [vmem:[#allocation56_spill] sm:$0xff] }
 0x900   : > { %v3232_v55 = vpop.f32.mrf.mxu1 }
 0x905   : > { %v3306_v20 = vpop.f32.mrf.mxu2 }
 0x906   : > { %v3307_v48 = vadd.f32 %v3306_v20, %v3217_v34  ;;  %v3383_v20 = vpop.f32.mrf.mxu3 }
 0x908   : > { %v12457_v15 = vpack.c.bf16 %v3307_v48, %v3305_v18  ;;  %3491 = vmatmul.bf16.gmra.mxu0 %v16621_v47  ;;  %v3235_v53 = vpop.f32.mrf.mxu1 }
 0x90a   : > { %16674 = vst [vmem:[#allocation140_spill] sm:$0xff] %v12457_v15  ;;  %3348 = vmatmul.bf16.gmra.mxu2 %v16675_v57 }
 0x90d   : > { %v3309_v31 = vpop.f32.mrf.mxu2 }
 0x90e   : > { %v3310_v5 = vadd.f32 %v3309_v31, %v3220_v0  ;;  %v3385_v2 = vpop.f32.mrf.mxu3  ;;  %3442 = vmatmul.bf16.gmra.mxu3 %v16663_v6  ;;  %v16678_v0 = vld [vmem:[#allocation58_spill] sm:$0xff] }
 0x910   : > { %v3237_v48 = vpop.f32.mrf.mxu1 }
 0x915   : > { %v3311_v52 = vpop.f32.mrf.mxu2 }
 0x916   : > { %v3312_v14 = vadd.f32 %v3311_v52, %v3222_v25  ;;  %v3388_v25 = vpop.f32.mrf.mxu3 }
 0x918   : > { %v12461_v30 = vpack.c.bf16 %v3312_v14, %v3310_v5  ;;  %3496 = vmatmul.bf16.gmra.mxu0 %v16638_v61  ;;  %v3240_v52 = vpop.f32.mrf.mxu1 }
 0x91a   : > { %16676 = vst [vmem:[#allocation141_spill] sm:$0xff] %v12461_v30  ;;  %3353 = vmatmul.bf16.gmra.mxu2 %v16677_v35 }
 0x91d   : > { %v3314_v34 = vpop.f32.mrf.mxu2 }
 0x91e   : > { %v3315_v18 = vadd.f32 %v3314_v34, %v3225_v41  ;;  %v3390_v24 = vpop.f32.mrf.mxu3  ;;  %3447 = vmatmul.bf16.gmra.mxu3 %v16666_v17  ;;  %v16679_v41 = vld [vmem:[#allocation59_spill] sm:$0xff] }
 0x920   : > { %v3242_v31 = vpop.f32.mrf.mxu1 }
 0x925   : > { %v3316_v59 = vpop.f32.mrf.mxu2 }
 0x926   : > { %v3393_v40 = vpop.f32.mrf.mxu3 }
 0x928   : > { %3501 = vmatmul.bf16.gmra.mxu0 %v16658_v39  ;;  %v3245_v34 = vpop.f32.mrf.mxu1 }
 0x92a   : > { %3358 = vmatmul.bf16.gmra.mxu2 %v16678_v0 }
 0x92d   : > { %v3319_v14 = vpop.f32.mrf.mxu2 }
 0x92e   : > { %v3395_v11 = vpop.f32.mrf.mxu3  ;;  %3452 = vmatmul.bf16.gmra.mxu3 %v16668_v37  ;;  %v3320_v37 = vadd.f32 %v3319_v14, %v3230_v50 }
 0x930   : > { %v12471_v4 = vpop.f32.mrf.mxu1 }
 0x935   : > { %v3321_v5 = vpop.f32.mrf.mxu2 }
 0x936   : > { %v3398_v12 = vpop.f32.mrf.mxu3 }
 0x938   : > { %3506 = vmatmul.bf16.gmra.mxu0 %v16665_v8  ;;  %v3250_v8 = vpop.f32.mrf.mxu1 }
 0x93a   : > { %3363 = vmatmul.bf16.gmra.mxu2 %v16679_v41 }
 0x93d   : > { %v3324_v60 = vpop.f32.mrf.mxu2 }
 0x93e   : > { %v3400_v33 = vpop.f32.mrf.mxu3  ;;  %3457 = vmatmul.bf16.gmra.mxu3 %v16671_v42 }
 0x945   : > { %v3326_v62 = vpop.f32.mrf.mxu2  ;;  %v3472_v45 = vpop.f32.mrf.mxu0 }
 0x946   : > { %v3473_v9 = vadd.f32 %v3472_v45, %v3383_v20  ;;  %v3325_v45 = vadd.f32 %v3324_v60, %v3235_v53  ;;  %v3327_v20 = vadd.f32 %v3326_v62, %v3237_v48  ;;  %v3317_v62 = vadd.f32 %v3316_v59, %v12455_v10 }
 0x948   : > { %3511 = vmatmul.bf16.gmra.mxu0 %v16667_v26 }
 0x94a   : > { %3368 = vmatmul.bf16.gmra.mxu2 %v16680_v28 }
 0x94d   : > { %v3329_v46 = vpop.f32.mrf.mxu2  ;;  %v3474_v3 = vpop.f32.mrf.mxu0 }
 0x94e   : > { %v3475_v38 = vadd.f32 %v3474_v3, %v3385_v2  ;;  %v3330_v39 = vadd.f32 %v3329_v46, %v3240_v52  ;;  %v3322_v2 = vadd.f32 %v3321_v5, %v3232_v55  ;;  %v12482_v3 = vpack.c.bf16 %v3327_v20, %v3325_v45 }
 0x94f   : > { %v12495_v55 = vpack.c.bf16 %v3317_v62, %v3315_v18 }
 0x950   : > { %v12476_v19 = vpack.c.bf16 %v3475_v38, %v3473_v9  ;;  %16682 = vst [vmem:[#allocation143_spill] sm:$0xff] %v12482_v3  ;;  %v12485_v9 = vpop.f32.mrf.mxu1  ;;  %v3403_v38 = vpop.f32.mrf.mxu3 }
 0x951   : > { %16684 = vst [vmem:[#allocation145_spill] sm:$0xff] %v12495_v55 }
 0x955   : > { %v3331_v61 = vpop.f32.mrf.mxu2  ;;  %v3477_v17 = vpop.f32.mrf.mxu0 }
 0x956   : > { %v3332_v47 = vadd.f32 %v3331_v61, %v3242_v31  ;;  %v3478_v6 = vadd.f32 %v3477_v17, %v3388_v25  ;;  %v12488_v17 = vpack.c.bf16 %v3322_v2, %v3320_v37 }
 0x958   : > { %v12479_v26 = vpack.c.bf16 %v3332_v47, %v3330_v39  ;;  %3516 = vmatmul.bf16.gmra.mxu0 %v16670_v36  ;;  %16683 = vst [vmem:[#allocation144_spill] sm:$0xff] %v12488_v17  ;;  %v3255_v50 = vpop.f32.mrf.mxu1  ;;  %v12501_v59 = vpop.f32.mrf.mxu3 }
 0x95a   : > { %16681 = vst [vmem:[#allocation142_spill] sm:$0xff] %v12479_v26  ;;  %3584 = vmatpush.bf16.msra.mxu1 %v12479_v26 }
 0x95d   : > { %v3334_v46 = vpop.f32.mrf.mxu2  ;;  %v3479_v60 = vpop.f32.mrf.mxu0 }
 0x95e   : > { %v12490_v61 = vadd.f32 %v3334_v46, %v3245_v34  ;;  %v3480_v47 = vadd.f32 %v3479_v60, %v3390_v24  ;;  %3585 = vmatpush.bf16.msra.mxu1 %v12482_v3 }
 0x960   : > { %v12493_v39 = vpack.c.bf16 %v3480_v47, %v3478_v6  ;;  %v12508_v18 = vpop.f32.mrf.mxu1  ;;  %v12510_v14 = vpop.f32.mrf.mxu3 }
 0x962   : > { %3586 = vmatpush.bf16.msra.mxu1 %v12488_v17 }
 0x965   : > { %v12498_v53 = vpop.f32.mrf.mxu2  ;;  %v3482_v48 = vpop.f32.mrf.mxu0 }
 0x966   : > { %v3483_v52 = vadd.f32 %v3482_v48, %v3393_v40  ;;  %3587 = vmatpush.bf16.msra.mxu1 %v12495_v55 }
 0x968   : > { %3521 = vmatmul.bf16.gmra.mxu0 %v16673_v1  ;;  %v3410_v34 = vpop.f32.mrf.mxu3 }
 0x96a   : > { %3588 = vmatpush.bf16.msra.mxu1 %v12461_v30 }
 0x96d   : > { %v3339_v24 = vpop.f32.mrf.mxu2  ;;  %v3484_v10 = vpop.f32.mrf.mxu0 }
 0x96e   : > { %v12505_v37 = vadd.f32 %v3339_v24, %v3250_v8  ;;  %v3485_v6 = vadd.f32 %v3484_v10, %v3395_v11  ;;  %3589 = vmatpush.bf16.msra.mxu1 %v12457_v15  ;;  %v3260_v11 = vpop.f32.mrf.mxu1 }
 0x970   : > { %v12512_v40 = vpack.c.bf16 %v3485_v6, %v3483_v52  ;;  %v3413_v46 = vpop.f32.mrf.mxu3 }
 0x972   : > { %16685 = vst [vmem:[#allocation146_spill] sm:$0xff] %v12512_v40  ;;  %3590 = vmatpush.bf16.msra.mxu1 %v12450_v43 }
 0x975   : > { %v12515_v25 = vpop.f32.mrf.mxu2  ;;  %v3487_v31 = vpop.f32.mrf.mxu0 }
 0x976   : > { %v3488_v5 = vadd.f32 %v3487_v31, %v3398_v12  ;;  %3591 = vmatpush.bf16.msra.mxu1 %v12444_v58  ;;  %v12524_v62 = vpop.f32.mrf.mxu1 }
 0x978   : > { %3526 = vmatmul.bf16.gmra.mxu0 %v16675_v57  ;;  %v3415_v52 = vpop.f32.mrf.mxu3 }
 0x979   : > { %3592 = vmatmul.bf16.vlgmr.msra.gmra.mxu1 %v16592_v32 }
 0x97d   : > { %v3344_v8 = vpop.f32.mrf.mxu2  ;;  %v3489_v45 = vpop.f32.mrf.mxu0 }
 0x97e   : > { %v12520_v20 = vadd.f32 %v3344_v8, %v3255_v50  ;;  %v3490_v2 = vadd.f32 %v3489_v45, %v3400_v33  ;;  %v3265_v24 = vpop.f32.mrf.mxu1 }
 0x980   : > { %v12522_v60 = vpack.c.bf16 %v3490_v2, %v3488_v5  ;;  %v3418_v33 = vpop.f32.mrf.mxu3 }
 0x982   : > { %16686 = vst [vmem:[#allocation147_spill] sm:$0xff] %v12522_v60 }
 0x985   : > { %v12526_v47 = vpop.f32.mrf.mxu2  ;;  %v3492_v12 = vpop.f32.mrf.mxu0 }
 0x986   : > { %v3493_v48 = vadd.f32 %v3492_v12, %v3403_v38  ;;  %v12534_v8 = vpop.f32.mrf.mxu1 }
 0x988   : > { %3531 = vmatmul.bf16.gmra.mxu0 %v16677_v35  ;;  %v3420_v38 = vpop.f32.mrf.mxu3 }
 0x989   : > { %3597 = vmatmul.bf16.gmra.mxu1 %v16607_v22 }
 0x98d   : > { %v3349_v10 = vpop.f32.mrf.mxu2  ;;  %v3494_v6 = vpop.f32.mrf.mxu0 }
 0x98e   : > { %v12530_v50 = vadd.f32 %v3349_v10, %v3260_v11  ;;  %v3270_v26 = vpop.f32.mrf.mxu1 }
 0x990   : > { %v3423_v11 = vpop.f32.mrf.mxu3 }
 0x995   : > { %v12532_v31 = vpop.f32.mrf.mxu2  ;;  %v3497_v5 = vpop.f32.mrf.mxu0 }
 0x996   : > { %v3272_v10 = vpop.f32.mrf.mxu1 }
 0x998   : > { %3536 = vmatmul.bf16.gmra.mxu0 %v16678_v0  ;;  %v12542_v30 = vpop.f32.mrf.mxu3 }
 0x999   : > { %3602 = vmatmul.bf16.gmra.mxu1 %v16611_v29  ;;  %16687 = vst [vmem:[#allocation148_spill] sm:$0xff] %v12542_v30 }
 0x99d   : > { %v3354_v45 = vpop.f32.mrf.mxu2  ;;  %v3499_v2 = vpop.f32.mrf.mxu0 }
 0x99e   : > { %v12538_v12 = vadd.f32 %v3354_v45, %v3265_v24  ;;  %v3275_v0 = vpop.f32.mrf.mxu1  ;;  %v3500_v30 = vadd.f32 %v3499_v2, %v3410_v34 }
 0x9a0   : > { %v3428_v24 = vpop.f32.mrf.mxu3 }
 0x9a5   : > { %v3356_v3 = vpop.f32.mrf.mxu2  ;;  %v3502_v17 = vpop.f32.mrf.mxu0 }
 0x9a6   : > { %v3503_v63 = vadd.f32 %v3502_v17, %v3413_v46 }
 0x9a8   : > { %3541 = vmatmul.bf16.gmra.mxu0 %v16679_v41  ;;  %v3277_v41 = vpop.f32.mrf.mxu1  ;;  %v12551_v51 = vpop.f32.mrf.mxu3 }
 0x9a9   : > { %3607 = vmatmul.bf16.gmra.mxu1 %v16614_v27 }
 0x9ad   : > { %v3359_v55 = vpop.f32.mrf.mxu2  ;;  %v3504_v35 = vpop.f32.mrf.mxu0 }
 0x9ae   : > { %v3505_v58 = vadd.f32 %v3504_v35, %v3415_v52 }
 0x9b0   : > { %v12549_v54 = vpack.c.bf16 %v3505_v58, %v3503_v63 }
 0x9b2   : > { %16689 = vst [vmem:[#allocation150_spill] sm:$0xff] %v12549_v54 }
 0x9b5   : > { %v3361_v57 = vpop.f32.mrf.mxu2  ;;  %v3507_v15 = vpop.f32.mrf.mxu0 }
 0x9b6   : > { %v3508_v43 = vadd.f32 %v3507_v15, %v3418_v33  ;;  %v3362_v33 = vadd.f32 %v3361_v57, %v3272_v10 }
 0x9b8   : > { %3546 = vmatmul.bf16.gmra.mxu0 %v16680_v28 }
 0x9b9   : > { %3612 = vmatmul.bf16.gmra.mxu1 %v16617_v23  ;;  %v3498_v23 = vadd.f32 %v3497_v5, %v12510_v14 }
 0x9bd   : > { %v3364_v45 = vpop.f32.mrf.mxu2  ;;  %v3509_v1 = vpop.f32.mrf.mxu0 }
 0x9be   : > { %v3510_v36 = vadd.f32 %v3509_v1, %v3420_v38  ;;  %v3495_v1 = vadd.f32 %v3494_v6, %v12501_v59  ;;  %v3360_v6 = vadd.f32 %v3359_v55, %v3270_v26  ;;  %v3352_v26 = vadd.f32 %v12532_v31, %v12524_v62 }
 0x9bf   : > { %v3342_v62 = vadd.f32 %v12515_v25, %v12485_v9 }
 0x9c0   : > { %v12546_v42 = vpack.c.bf16 %v3510_v36, %v3508_v43  ;;  %v12558_v43 = vpack.c.bf16 %v3500_v30, %v3498_v23  ;;  %v3280_v36 = vpop.f32.mrf.mxu1  ;;  %v12562_v63 = vpack.c.bf16 %v3495_v1, %v3493_v48  ;;  %v3365_v30 = vadd.f32 %v3364_v45, %v3275_v0 }
 0x9c1   : > { %v3357_v0 = vadd.f32 %v3356_v3, %v12534_v8  ;;  %v12595_v3 = vpack.c.bf16 %v3352_v26, %v12530_v50  ;;  %v16703_v26 = vld [vmem:[#allocation49_spill] sm:$0xff] }
 0x9c2   : > { %16688 = vst [vmem:[#allocation149_spill] sm:$0xff] %v12546_v42  ;;  %3762 = vmatpush.bf16.msra.mxu3 %v12546_v42  ;;  %v16706_v42 = vld [vmem:[#allocation41_spill] sm:$0xff] }
 0x9c3   : > { %16690 = vst [vmem:[#allocation151_spill] sm:$0xff] %v12558_v43  ;;  %v12591_v57 = vpack.c.bf16 %v3357_v0, %v12538_v12  ;;  %v3337_v12 = vadd.f32 %v12498_v53, %v12471_v4 }
 0x9c4   : > { %16691 = vst [vmem:[#allocation152_spill] sm:$0xff] %v12562_v63 }
 0x9c5   : > { %v3366_v28 = vpop.f32.mrf.mxu2  ;;  %v3512_v27 = vpop.f32.mrf.mxu0  ;;  %16695 = vst [vmem:[#allocation156_spill] sm:$0xff] %v12591_v57  ;;  %v12622_v9 = vpack.c.bf16 %v3337_v12, %v12490_v61 }
 0x9c6   : > { %v12554_v21 = vadd.f32 %v3512_v27, %v3423_v11  ;;  %3763 = vmatpush.bf16.msra.mxu3 %v12549_v54  ;;  %v3433_v27 = vpop.f32.mrf.mxu3  ;;  %v3367_v14 = vadd.f32 %v3366_v28, %v3277_v41  ;;  %v12583_v41 = vpack.c.bf16 %v3362_v33, %v3360_v6  ;;  %16696 = vst [vmem:[#allocation157_spill] sm:$0xff] %v12595_v3  ;;  %v9416_v54 = vld [vmem:[#allocation10 + $0x2cc] sm:$0xf0] }
 0x9c8   : > { %v3282_v35 = vpop.f32.mrf.mxu1  ;;  %v12576_v5 = vpack.c.bf16 %v3367_v14, %v3365_v30  ;;  %16694 = vst [vmem:[#allocation155_spill] sm:$0xff] %v12583_v41 }
 0x9c9   : > { %3617 = vmatmul.bf16.gmra.mxu1 %v16538_v49 }
 0x9ca   : > { %3764 = vmatpush.bf16.msra.mxu3 %v12558_v43  ;;  %16693 = vst [vmem:[#allocation154_spill] sm:$0xff] %v12576_v5 }
 0x9cd   : > { %v3369_v58 = vpop.f32.mrf.mxu2  ;;  %v12564_v15 = vpop.f32.mrf.mxu0 }
 0x9ce   : > { %3765 = vmatpush.bf16.msra.mxu3 %v12562_v63  ;;  %v3370_v17 = vadd.f32 %v3369_v58, %v3280_v36  ;;  %v12574_v52 = vpop.f32.mrf.mxu3  ;;  %v16699_v58 = vld [vmem:[#allocation37_spill] sm:$0xff] }
 0x9d2   : > { %3766 = vmatpush.bf16.msra.mxu3 %v12522_v60  ;;  %v8546_v60 = vld [vmem:[#allocation10 + $0x2a0] sm:$0xf] }
 0x9d5   : > { %v3371_v59 = vpop.f32.mrf.mxu2  ;;  %v3517_v23 = vpop.f32.mrf.mxu0 }
 0x9d6   : > { %v3372_v34 = vadd.f32 %v3371_v59, %v3282_v35  ;;  %v12568_v46 = vadd.f32 %v3517_v23, %v3428_v24  ;;  %3767 = vmatpush.bf16.msra.mxu3 %v12512_v40  ;;  %v3438_v55 = vpop.f32.mrf.mxu3  ;;  %v16698_v24 = vld [vmem:[#allocation38_spill] sm:$0xff]  ;;  %v16701_v59 = vld [vmem:[#allocation39_spill] sm:$0xff] }
 0x9d8   : > { %v12571_v48 = vpack.c.bf16 %v3372_v34, %v3370_v17  ;;  %v16700_v17 = vld [vmem:[#allocation47_spill] sm:$0xff] }
 0x9d9   : > { %3622 = vmatmul.bf16.gmra.mxu1 %v16569_v44  ;;  %v16702_v34 = vld [vmem:[#allocation27_spill] sm:$0xff] }
 0x9da   : > { %16692 = vst [vmem:[#allocation153_spill] sm:$0xff] %v12571_v48  ;;  %3673 = vmatpush.bf16.msra.mxu2 %v12571_v48  ;;  %3768 = vmatpush.bf16.msra.mxu3 %v12493_v39  ;;  %v8562_v48 = vld [vmem:[#allocation10 + $0x2c0] sm:$0xf] }
 0x9dd   : > { %v12580_v28 = vpop.f32.mrf.mxu0 }
 0x9de   : > { %3674 = vmatpush.bf16.msra.mxu2 %v12576_v5  ;;  %3769 = vmatpush.bf16.msra.mxu3 %v12476_v19  ;;  %v12611_v50 = vpop.f32.mrf.mxu3  ;;  %v8563_v5 = vor.u32 %v9416_v54, %v8562_v48  ;;  %v8530_v54 = vld [vmem:[#allocation10 + $0x280] sm:$0xf]  ;;  %v9408_v48 = vld [vmem:[#allocation10 + $0x28c] sm:$0xf0] }
 0x9e1   : > { %3770 = vmatmul.bf16.vlgmr.msra.gmra.mxu3 %v16592_v32  ;;  %v3347_v32 = vadd.f32 %v12526_v47, %v12508_v18  ;;  %v12617_v18 = vpack.c.bf16 %v3342_v62, %v12505_v37 }
 0x9e2   : > { %3675 = vmatpush.bf16.msra.mxu2 %v12583_v41 }
 0x9e3   : > { %v12607_v31 = vpack.c.bf16 %v3347_v32, %v12520_v20 }
 0x9e5   : > { %v3522_v38 = vpop.f32.mrf.mxu0  ;;  %16697 = vst [vmem:[#allocation158_spill] sm:$0xff] %v12607_v31 }
 0x9e6   : > { %v12597_v8 = vadd.f32 %v3522_v38, %v3433_v27  ;;  %3676 = vmatpush.bf16.msra.mxu2 %v12591_v57  ;;  %v3443_v11 = vpop.f32.mrf.mxu3 }
 0x9e9   : > { %3627 = vmatmul.bf16.gmra.mxu1 %v16597_v7 }
 0x9ea   : > { %3677 = vmatpush.bf16.msra.mxu2 %v12595_v3  ;;  %v9412_v3 = vld [vmem:[#allocation10 + $0x2ac] sm:$0xf0] }
 0x9ed   : > { %v12609_v2 = vpop.f32.mrf.mxu0 }
 0x9ee   : > { %3678 = vmatpush.bf16.msra.mxu2 %v12607_v31  ;;  %v12636_v61 = vpop.f32.mrf.mxu3 }
 0x9f1   : > { %3775 = vmatmul.bf16.gmra.mxu3 %v16607_v22 }
 0x9f2   : > { %3679 = vmatpush.bf16.msra.mxu2 %v12617_v18 }
 0x9f5   : > { %v3527_v25 = vpop.f32.mrf.mxu0 }
 0x9f6   : > { %v12624_v20 = vadd.f32 %v3527_v25, %v3438_v55  ;;  %v12626_v47 = vpop.f32.mrf.mxu1  ;;  %3680 = vmatpush.bf16.msra.mxu2 %v12622_v9  ;;  %v3448_v45 = vpop.f32.mrf.mxu3  ;;  %v16704_v55 = vld [vmem:[#allocation40_spill] sm:$0xff] }
 0x9f9   : > { %3632 = vmatmul.bf16.gmra.mxu1 %v16609_v16  ;;  %3681 = vmatmul.bf16.vlgmr.msra.gmra.mxu2 %v16608_v13 }
 0x9fd   : > { %v12631_v4 = vpop.f32.mrf.mxu0 }
 0x9fe   : > { %v12633_v22 = vpop.f32.mrf.mxu1  ;;  %v3450_v27 = vpop.f32.mrf.mxu3 }
 0xa01   : > { %3780 = vmatmul.bf16.gmra.mxu3 %v16611_v29 }
 0xa05   : > { %v3532_v53 = vpop.f32.mrf.mxu0 }
 0xa06   : > { %v12638_v37 = vadd.f32 %v3532_v53, %v3443_v11  ;;  %v12640_v10 = vpop.f32.mrf.mxu1  ;;  %v3453_v14 = vpop.f32.mrf.mxu3  ;;  %v8578_v11 = vld [vmem:[#allocation10 + $0x2e0] sm:$0xf]  ;;  %v9420_v53 = vld [vmem:[#allocation10 + $0x2ec] sm:$0xf0] }
 0xa09   : > { %3637 = vmatmul.bf16.gmra.mxu1 %v16613_v56  ;;  %3686 = vmatmul.bf16.gmra.mxu2 %v16698_v24 }
 0xa0d   : > { %v3534_v1 = vpop.f32.mrf.mxu0 }
 0xa0e   : > { %v12644_v36 = vpop.f32.mrf.mxu1  ;;  %v3455_v0 = vpop.f32.mrf.mxu3 }
 0xa11   : > { %3785 = vmatmul.bf16.gmra.mxu3 %v16699_v58  ;;  %v8579_v58 = vor.u32 %v9420_v53, %v8578_v11  ;;  %v8547_v11 = vor.u32 %v9412_v3, %v8546_v60  ;;  %v9404_v60 = vld [vmem:[#allocation10 + $0x26c] sm:$0xf0] }
 0xa13   : > { %4517 = vmatpush.bf16.msrb.mxu1 %v8579_v58 }
 0xa15   : > { %v3537_v35 = vpop.f32.mrf.mxu0 }
 0xa16   : > { %v12647_v29 = vpop.f32.mrf.mxu1  ;;  %v3458_v62 = vpop.f32.mrf.mxu3 }
 0xa17   : > { %4518 = vmatpush.bf16.msrb.mxu1 %v8563_v5 }
 0xa19   : > { %3642 = vmatmul.bf16.gmra.mxu1 %v16700_v17  ;;  %3691 = vmatmul.bf16.gmra.mxu2 %v16701_v59 }
 0xa1b   : > { %4519 = vmatpush.bf16.msrb.mxu1 %v8547_v11 }
 0xa1d   : > { %v3539_v23 = vpop.f32.mrf.mxu0 }
 0xa1e   : > { %v12651_v30 = vpop.f32.mrf.mxu1  ;;  %v3460_v43 = vpop.f32.mrf.mxu3  ;;  %v3540_v58 = vadd.f32 %v3539_v23, %v3450_v27  ;;  %v3530_v27 = vadd.f32 %v12631_v4, %v12611_v50  ;;  %v8466_v50 = vld [vmem:[#allocation10 + $0x200] sm:$0xf]  ;;  %v9392_v4 = vld [vmem:[#allocation10 + $0x20c] sm:$0xf0] }
 0xa21   : > { %3790 = vmatmul.bf16.gmra.mxu3 %v16702_v34  ;;  %v16705_v34 = vld [vmem:[#allocation51_spill] sm:$0xff] }
 0xa25   : > { %v3542_v6 = vpop.f32.mrf.mxu0 }
 0xa26   : > { %v12654_v33 = vpop.f32.mrf.mxu1  ;;  %v3543_v53 = vadd.f32 %v3542_v6, %v3453_v14  ;;  %v16710_v14 = vld [vmem:[#allocation53_spill] sm:$0xff]  ;;  %v16711_v6 = vld [vmem:[#allocation42_spill] sm:$0xff] }
 0xa29   : > { %3647 = vmatmul.bf16.gmra.mxu1 %v16703_v26  ;;  %3696 = vmatmul.bf16.gmra.mxu2 %v16704_v55 }
 0xa2d   : > { %v3544_v38 = vpop.f32.mrf.mxu0 }
 0xa2e   : > { %v12658_v32 = vpop.f32.mrf.mxu1  ;;  %v3545_v40 = vadd.f32 %v3544_v38, %v3455_v0  ;;  %v9396_v0 = vld [vmem:[#allocation10 + $0x22c] sm:$0xf0]  ;;  %v3525_v38 = vadd.f32 %v12609_v2, %v12574_v52  ;;  %v16715_v52 = vld [vmem:[#allocation148_spill] sm:$0xff] }
 0xa31   : > { %3795 = vmatmul.bf16.gmra.mxu3 %v16538_v49 }
 0xa35   : > { %v3547_v12 = vpop.f32.mrf.mxu0 }
 0xa36   : > { %v12661_v25 = vpop.f32.mrf.mxu1  ;;  %v3548_v63 = vadd.f32 %v3547_v12, %v3458_v62  ;;  %v12671_v62 = vpack.c.bf16 %v3545_v40, %v3543_v53  ;;  %v8498_v40 = vld [vmem:[#allocation10 + $0x240] sm:$0xf]  ;;  %v12693_v12 = vpack.c.bf16 %v3530_v27, %v12624_v20  ;;  %v12700_v53 = vpack.c.bf16 %v3525_v38, %v12597_v8  ;;  %v16720_v8 = vld [vmem:[#allocation57_spill] sm:$0xff] }
 0xa37   : > { %v16717_v20 = vld [vmem:[#allocation55_spill] sm:$0xff]  ;;  %v16724_v38 = vld [vmem:[#allocation121_spill] sm:$0xff] }
 0xa38   : > { %16708 = vst [vmem:[#allocation37_spill] sm:$0xff] %v12671_v62 }
 0xa39   : > { %3652 = vmatmul.bf16.gmra.mxu1 %v16705_v34  ;;  %3701 = vmatmul.bf16.gmra.mxu2 %v16706_v42  ;;  %16713 = vst [vmem:[#allocation27_spill] sm:$0xff] %v12693_v12 }
 0xa3a   : > { %16714 = vst [vmem:[#allocation49_spill] sm:$0xff] %v12700_v53 }
 0xa3d   : > { %v3549_v41 = vpop.f32.mrf.mxu0 }
 0xa3e   : > { %v3550_v57 = vadd.f32 %v3549_v41, %v3460_v43  ;;  %v12665_v49 = vpop.f32.mrf.mxu1  ;;  %v8531_v43 = vor.u32 %v9408_v48, %v8530_v54  ;;  %v3538_v41 = vadd.f32 %v3537_v35, %v3448_v45  ;;  %v9400_v45 = vld [vmem:[#allocation10 + $0x24c] sm:$0xf0]  ;;  %v8467_v54 = vor.u32 %v9392_v4, %v8466_v50  ;;  %v16726_v4 = vld [vmem:[#allocation119_spill] sm:$0xff] }
 0xa3f   : > { %v8499_v23 = vor.u32 %v9400_v45, %v8498_v40 }
 0xa40   : > { %v12667_v31 = vpack.c.bf16 %v3550_v57, %v3548_v63  ;;  %4520 = vmatpush.bf16.msrb.mxu1 %v8531_v43  ;;  %v8514_v63 = vld [vmem:[#allocation10 + $0x260] sm:$0xf]  ;;  %v12677_v57 = vpack.c.bf16 %v3540_v58, %v3538_v41  ;;  %v16718_v58 = vld [vmem:[#allocation44_spill] sm:$0xff]  ;;  %v16721_v43 = vld [vmem:[#allocation46_spill] sm:$0xff] }
 0xa41   : > { %3800 = vmatmul.bf16.gmra.mxu3 %v16569_v44  ;;  %v3535_v44 = vadd.f32 %v3534_v1, %v12636_v61  ;;  %v8515_v3 = vor.u32 %v9404_v60, %v8514_v63  ;;  %v8482_v1 = vld [vmem:[#allocation10 + $0x220] sm:$0xf]  ;;  %v16723_v60 = vld [vmem:[#allocation138_spill] sm:$0xff] }
 0xa42   : > { %16707 = vst [vmem:[#allocation38_spill] sm:$0xff] %v12667_v31  ;;  %3851 = vmatpush.bf16.msra.mxu0 %v12667_v31  ;;  %v8483_v11 = vor.u32 %v9396_v0, %v8482_v1 }
 0xa43   : > { %16709 = vst [vmem:[#allocation47_spill] sm:$0xff] %v12677_v57  ;;  %v12685_v35 = vpack.c.bf16 %v3535_v44, %v12638_v37  ;;  %v3520_v37 = vadd.f32 %v12580_v28, %v12551_v51 }
 0xa44   : > { %4521 = vmatpush.bf16.msrb.mxu1 %v8515_v3 }
 0xa45   : > { %16712 = vst [vmem:[#allocation39_spill] sm:$0xff] %v12685_v35  ;;  %v12708_v2 = vpack.c.bf16 %v3520_v37, %v12568_v46  ;;  %v16727_v37 = vmax.f32 %v16726_v4, 0.0 }
 0xa46   : > { %v12673_v5 = vpop.f32.mrf.mxu1  ;;  %3852 = vmatpush.bf16.msra.mxu0 %v12671_v62 }
 0xa47   : > { %16716 = vst [vmem:[#allocation40_spill] sm:$0xff] %v12708_v2 }
 0xa48   : > { %4522 = vmatpush.bf16.msrb.mxu1 %v8499_v23 }
 0xa49   : > { %3657 = vmatmul.bf16.gmra.mxu1 %v16710_v14  ;;  %3706 = vmatmul.bf16.gmra.mxu2 %v16711_v6 }
 0xa4a   : > { %3853 = vmatpush.bf16.msra.mxu0 %v12677_v57 }
 0xa4c   : > { %4523 = vmatpush.bf16.msrb.mxu1 %v8483_v11  ;;  %v16725_v11 = vmax.f32 %v16724_v38, 0.0 }
 0xa4e   : > { %v12687_v61 = vpop.f32.mrf.mxu1  ;;  %3854 = vmatpush.bf16.msra.mxu0 %v12685_v35 }
 0xa50   : > { %4524 = vmatpush.bf16.msrb.mxu1 %v8467_v54 }
 0xa51   : > { %3805 = vmatmul.bf16.gmra.mxu3 %v16597_v7  ;;  %v3515_v7 = vadd.f32 %v12564_v15, %v16715_v52 }
 0xa52   : > { %3855 = vmatpush.bf16.msra.mxu0 %v12693_v12  ;;  %v16742_v12 = vld [vmem:[#allocation54_spill] sm:$0xff] }
 0xa53   : > { %v12714_v51 = vpack.c.bf16 %v3515_v7, %v12554_v21 }
 0xa55   : > { %16719 = vst [vmem:[#allocation51_spill] sm:$0xff] %v12714_v51 }
 0xa56   : > { %v12702_v48 = vpop.f32.mrf.mxu1  ;;  %3856 = vmatpush.bf16.msra.mxu0 %v12700_v53  ;;  %v16743_v53 = vld [vmem:[#allocation141_spill] sm:$0xff] }
 0xa59   : > { %3662 = vmatmul.bf16.gmra.mxu1 %v16717_v20  ;;  %3711 = vmatmul.bf16.gmra.mxu2 %v16718_v58 }
 0xa5a   : > { %3857 = vmatpush.bf16.msra.mxu0 %v12708_v2 }
 0xa5e   : > { %v12716_v28 = vpop.f32.mrf.mxu1  ;;  %3858 = vmatpush.bf16.msra.mxu0 %v12714_v51 }
 0xa61   : > { %3810 = vmatmul.bf16.gmra.mxu3 %v16609_v16  ;;  %3859 = vmatmul.bf16.vlgmr.msra.gmra.mxu0 %v16608_v13  ;;  %v16722_v13 = vld [vmem:[#allocation48_spill] sm:$0xff] }
 0xa64   : > { %v12721_v15 = vpop.f32.mrf.mxu3 }
 0xa66   : > { %v12723_v46 = vpop.f32.mrf.mxu1 }
 0xa69   : > { %3667 = vmatmul.bf16.gmra.mxu1 %v16720_v8  ;;  %3716 = vmatmul.bf16.gmra.mxu2 %v16721_v43 }
 0xa6c   : > { %v12727_v41 = vpop.f32.mrf.mxu3 }
 0xa6e   : > { %v12729_v21 = vpop.f32.mrf.mxu1 }
 0xa71   : > { %3815 = vmatmul.bf16.gmra.mxu3 %v16613_v56  ;;  %3864 = vmatmul.bf16.gmra.mxu0 %v16698_v24 }
 0xa74   : > { %v12733_v63 = vpop.f32.mrf.mxu3 }
 0xa76   : > { %v12735_v16 = vpop.f32.mrf.mxu1 }
 0xa79   : > { %3721 = vmatmul.bf16.gmra.mxu2 %v16722_v13  ;;  %4525 = vmatmul.bf16.vlgmr.msrb.gmra.mxu1 %v16723_v60 }
 0xa7c   : > { %v3682_v44 = vpop.f32.mrf.mxu2  ;;  %v12739_v3 = vpop.f32.mrf.mxu3 }
 0xa7d   : > { %v3683_v45 = vadd.f32 %v3682_v44, %v12626_v47  ;;  %v16728_v47 = vld [vmem:[#allocation50_spill] sm:$0xff] }
 0xa7e   : > { %v12741_v40 = vpop.f32.mrf.mxu1 }
 0xa7f   : > { %v3940_v27 = vmul.f32 2.0, %v3683_v45 }
 0xa81   : > { %3820 = vmatmul.bf16.gmra.mxu3 %v16700_v17  ;;  %3869 = vmatmul.bf16.gmra.mxu0 %v16701_v59  ;;  %v4004_v50 = vsub.f32 %v3940_v27, %v16725_v11  ;;  %v16729_v17 = vld [vmem:[#allocation139_spill] sm:$0xff]  ;;  %v16731_v11 = vld [vmem:[#allocation117_spill] sm:$0xff] }
 0xa84   : > { %v3684_v56 = vpop.f32.mrf.mxu2  ;;  %v12746_v24 = vpop.f32.mrf.mxu3 }
 0xa85   : > { %v3685_v23 = vadd.f32 %v3684_v56, %v12633_v22 }
 0xa86   : > { %v12749_v1 = vpop.f32.mrf.mxu1 }
 0xa87   : > { %v3942_v0 = vmul.f32 2.0, %v3685_v23 }
 0xa89   : > { %v4006_v54 = vsub.f32 %v3942_v0, %v16727_v37  ;;  %3726 = vmatmul.bf16.gmra.mxu2 %v16728_v47  ;;  %4530 = vmatmul.bf16.gmra.mxu1 %v16729_v17  ;;  %v16733_v37 = vld [vmem:[#allocation115_spill] sm:$0xff] }
 0xa8b   : > { %v12757_v59 = vpack.c.bf16 %v4006_v54, %v4004_v50  ;;  %v16732_v50 = vmax.f32 %v16731_v11, 0.0  ;;  %v16734_v54 = vmax.f32 %v16733_v37, 0.0 }
 0xa8c   : > { %v3687_v52 = vpop.f32.mrf.mxu2  ;;  %v12759_v7 = vpop.f32.mrf.mxu3 }
 0xa8d   : > { %16730 = vst [vmem:[#allocation41_spill] sm:$0xff] %v12757_v59  ;;  %v3688_v22 = vadd.f32 %v3687_v52, %v12640_v10  ;;  %v16735_v10 = vld [vmem:[#allocation52_spill] sm:$0xff] }
 0xa8e   : > { %v12761_v44 = vpop.f32.mrf.mxu1 }
 0xa8f   : > { %v3944_v27 = vmul.f32 2.0, %v3688_v22 }
 0xa91   : > { %3825 = vmatmul.bf16.gmra.mxu3 %v16703_v26  ;;  %3874 = vmatmul.bf16.gmra.mxu0 %v16704_v55  ;;  %v4008_v4 = vsub.f32 %v3944_v27, %v16732_v50  ;;  %v16736_v26 = vld [vmem:[#allocation140_spill] sm:$0xff]  ;;  %v9414_v27 = vld [vmem:[#allocation10 + $0x2c4] sm:$0xf] }
 0xa94   : > { %v3689_v45 = vpop.f32.mrf.mxu2  ;;  %v12766_v56 = vpop.f32.mrf.mxu3 }
 0xa95   : > { %v3690_v23 = vadd.f32 %v3689_v45, %v12644_v36  ;;  %v9418_v36 = vld [vmem:[#allocation10 + $0x2e4] sm:$0xf]  ;;  %v8580_v45 = vld [vmem:[#allocation10 + $0x2f0] sm:$0xf0] }
 0xa96   : > { %v12769_v0 = vpop.f32.mrf.mxu1 }
 0xa97   : > { %v3946_v38 = vmul.f32 2.0, %v3690_v23  ;;  %v8583_v23 = vor.u32 %v9418_v36, %v8580_v45  ;;  %v9410_v45 = vld [vmem:[#allocation10 + $0x2a4] sm:$0xf] }
 0xa99   : > { %v4010_v59 = vsub.f32 %v3946_v38, %v16734_v54  ;;  %3731 = vmatmul.bf16.gmra.mxu2 %v16735_v10  ;;  %4535 = vmatmul.bf16.gmra.mxu1 %v16736_v26  ;;  %v8564_v38 = vld [vmem:[#allocation10 + $0x2d0] sm:$0xf0] }
 0xa9a   : > { %4695 = vmatpush.bf16.msrb.mxu3 %v8583_v23  ;;  %v16740_v23 = vld [vmem:[#allocation71_spill] sm:$0xff] }
 0xa9b   : > { %v12777_v55 = vpack.c.bf16 %v4010_v59, %v4008_v4  ;;  %v8567_v4 = vor.u32 %v9414_v27, %v8564_v38  ;;  %v16741_v57 = vmax.f32 %v16740_v23, 0.0  ;;  %v8532_v27 = vld [vmem:[#allocation10 + $0x290] sm:$0xf0] }
 0xa9c   : > { %v3692_v52 = vpop.f32.mrf.mxu2  ;;  %v12779_v31 = vpop.f32.mrf.mxu3 }
 0xa9d   : > { %16737 = vst [vmem:[#allocation53_spill] sm:$0xff] %v12777_v55  ;;  %v3693_v11 = vadd.f32 %v3692_v52, %v12647_v29  ;;  %v8548_v29 = vld [vmem:[#allocation10 + $0x2b0] sm:$0xf0] }
 0xa9e   : > { %v12781_v22 = vpop.f32.mrf.mxu1  ;;  %4696 = vmatpush.bf16.msrb.mxu3 %v8567_v4  ;;  %v8551_v52 = vor.u32 %v9410_v45, %v8548_v29 }
 0xa9f   : > { %v3948_v37 = vmul.f32 2.0, %v3693_v11 }
 0xaa1   : > { %3830 = vmatmul.bf16.gmra.mxu3 %v16705_v34  ;;  %3879 = vmatmul.bf16.gmra.mxu0 %v16706_v42  ;;  %v16738_v34 = vld [vmem:[#allocation114_spill] sm:$0xff] }
 0xaa2   : > { %v16739_v62 = vmax.f32 %v16738_v34, 0.0  ;;  %4697 = vmatpush.bf16.msrb.mxu3 %v8551_v52 }
 0xaa4   : > { %v3694_v50 = vpop.f32.mrf.mxu2  ;;  %v12786_v59 = vpop.f32.mrf.mxu3  ;;  %v4012_v42 = vsub.f32 %v3948_v37, %v16739_v62  ;;  %v9402_v62 = vld [vmem:[#allocation10 + $0x264] sm:$0xf]  ;;  %v8516_v37 = vld [vmem:[#allocation10 + $0x270] sm:$0xf0] }
 0xaa5   : > { %v3695_v54 = vadd.f32 %v3694_v50, %v12651_v30  ;;  %v9406_v30 = vld [vmem:[#allocation10 + $0x284] sm:$0xf]  ;;  %v8519_v45 = vor.u32 %v9402_v62, %v8516_v37  ;;  %v8484_v62 = vld [vmem:[#allocation10 + $0x230] sm:$0xf0] }
 0xaa6   : > { %v12789_v55 = vpop.f32.mrf.mxu1  ;;  %v8535_v4 = vor.u32 %v9406_v30, %v8532_v27 }
 0xaa7   : > { %v3950_v36 = vmul.f32 2.0, %v3695_v54 }
 0xaa8   : > { %4698 = vmatpush.bf16.msrb.mxu3 %v8535_v4  ;;  %v8706_v4 = vld [vmem:[#allocation10 + $0x3e0] sm:$0xf] }
 0xaa9   : > { %v4014_v35 = vsub.f32 %v3950_v36, %v16741_v57  ;;  %3736 = vmatmul.bf16.gmra.mxu2 %v16742_v12  ;;  %4540 = vmatmul.bf16.gmra.mxu1 %v16743_v53  ;;  %v8500_v36 = vld [vmem:[#allocation10 + $0x250] sm:$0xf0] }
 0xaab   : > { %v12797_v11 = vpack.c.bf16 %v4014_v35, %v4012_v42  ;;  %v9398_v35 = vld [vmem:[#allocation10 + $0x244] sm:$0xf] }
 0xaac   : > { %v3697_v38 = vpop.f32.mrf.mxu2  ;;  %v12799_v50 = vpop.f32.mrf.mxu3  ;;  %4699 = vmatpush.bf16.msrb.mxu3 %v8519_v45  ;;  %v8503_v34 = vor.u32 %v9398_v35, %v8500_v36  ;;  %v8690_v36 = vld [vmem:[#allocation10 + $0x3c0] sm:$0xf] }
 0xaad   : > { %16744 = vst [vmem:[#allocation42_spill] sm:$0xff] %v12797_v11  ;;  %v3698_v57 = vadd.f32 %v3697_v38, %v12654_v33  ;;  %v9452_v33 = vld [vmem:[#allocation10 + $0x3ec] sm:$0xf0]  ;;  %v16748_v11 = vld [vmem:[#allocation86_spill] sm:$0xff] }
 0xaae   : > { %v12801_v54 = vpop.f32.mrf.mxu1  ;;  %v8707_v38 = vor.u32 %v9452_v33, %v8706_v4  ;;  %v16749_v2 = vmax.f32 %v16748_v11, 0.0 }
 0xaaf   : > { %16745 = vst [vmem:[#allocation148_spill] sm:$0xff] %v12801_v54  ;;  %v3952_v42 = vmul.f32 2.0, %v3698_v57  ;;  %v16750_v54 = vld [vmem:[#allocation56_spill] sm:$0xff]  ;;  %v16751_v57 = vld [vmem:[#allocation145_spill] sm:$0xff] }
 0xab0   : > { %4700 = vmatpush.bf16.msrb.mxu3 %v8503_v34  ;;  %4606 = vmatpush.bf16.msrb.mxu2 %v8707_v38  ;;  %v9390_v34 = vld [vmem:[#allocation10 + $0x204] sm:$0xf]  ;;  %v8658_v38 = vld [vmem:[#allocation10 + $0x380] sm:$0xf] }
 0xab1   : > { %3835 = vmatmul.bf16.gmra.mxu3 %v16710_v14  ;;  %3884 = vmatmul.bf16.gmra.mxu0 %v16711_v6  ;;  %v9394_v14 = vld [vmem:[#allocation10 + $0x224] sm:$0xf]  ;;  %v16746_v6 = vld [vmem:[#allocation85_spill] sm:$0xff] }
 0xab2   : > { %v16747_v37 = vmax.f32 %v16746_v6, 0.0 }
 0xab4   : > { %v3699_v29 = vpop.f32.mrf.mxu2  ;;  %v12806_v52 = vpop.f32.mrf.mxu3  ;;  %v4016_v45 = vsub.f32 %v3952_v42, %v16747_v37  ;;  %v8468_v42 = vld [vmem:[#allocation10 + $0x210] sm:$0xf0] }
 0xab5   : > { %v3700_v23 = vadd.f32 %v3699_v29, %v12658_v32  ;;  %v8487_v32 = vor.u32 %v9394_v14, %v8484_v62  ;;  %v9448_v29 = vld [vmem:[#allocation10 + $0x3cc] sm:$0xf0]  ;;  %v8471_v6 = vor.u32 %v9390_v34, %v8468_v42  ;;  %v8642_v42 = vld [vmem:[#allocation10 + $0x360] sm:$0xf] }
 0xab6   : > { %v12809_v30 = vpop.f32.mrf.mxu1  ;;  %v8691_v33 = vor.u32 %v9448_v29, %v8690_v36  ;;  %v9440_v62 = vld [vmem:[#allocation10 + $0x38c] sm:$0xf0] }
 0xab7   : > { %v3954_v27 = vmul.f32 2.0, %v3700_v23  ;;  %4701 = vmatpush.bf16.msrb.mxu3 %v8487_v32  ;;  %v8659_v32 = vor.u32 %v9440_v62, %v8658_v38  ;;  %v9432_v38 = vld [vmem:[#allocation10 + $0x34c] sm:$0xf0] }
 0xab8   : > { %4607 = vmatpush.bf16.msrb.mxu2 %v8691_v33 }
 0xab9   : > { %v4018_v51 = vsub.f32 %v3954_v27, %v16749_v2  ;;  %3741 = vmatmul.bf16.gmra.mxu2 %v16750_v54  ;;  %4545 = vmatmul.bf16.gmra.mxu1 %v16751_v57  ;;  %v8674_v2 = vld [vmem:[#allocation10 + $0x3a0] sm:$0xf]  ;;  %v9444_v27 = vld [vmem:[#allocation10 + $0x3ac] sm:$0xf0] }
 0xaba   : > { %v8675_v14 = vor.u32 %v9444_v27, %v8674_v2  ;;  %v16756_v2 = vld [vmem:[#allocation87_spill] sm:$0xff] }
 0xabb   : > { %v12817_v35 = vpack.c.bf16 %v4018_v51, %v4016_v45  ;;  %4702 = vmatpush.bf16.msrb.mxu3 %v8471_v6  ;;  %v16757_v27 = vmax.f32 %v16756_v2, 0.0 }
 0xabc   : > { %v3702_v23 = vpop.f32.mrf.mxu2  ;;  %v12819_v4 = vpop.f32.mrf.mxu3  ;;  %4608 = vmatpush.bf16.msrb.mxu2 %v8675_v14 }
 0xabd   : > { %16752 = vst [vmem:[#allocation55_spill] sm:$0xff] %v12817_v35  ;;  %v3703_v51 = vadd.f32 %v3702_v23, %v12661_v25  ;;  %v9436_v25 = vld [vmem:[#allocation10 + $0x36c] sm:$0xf0]  ;;  %v16758_v35 = vld [vmem:[#allocation58_spill] sm:$0xff] }
 0xabe   : > { %v12821_v11 = vpop.f32.mrf.mxu1  ;;  %v8643_v23 = vor.u32 %v9436_v25, %v8642_v42  ;;  %v9428_v42 = vld [vmem:[#allocation10 + $0x32c] sm:$0xf0] }
 0xabf   : > { %16753 = vst [vmem:[#allocation44_spill] sm:$0xff] %v12821_v11  ;;  %v3956_v36 = vmul.f32 2.0, %v3703_v51  ;;  %v16759_v11 = vld [vmem:[#allocation144_spill] sm:$0xff] }
 0xac0   : > { %4609 = vmatpush.bf16.msrb.mxu2 %v8659_v32 }
 0xac1   : > { %3840 = vmatmul.bf16.gmra.mxu3 %v16717_v20  ;;  %3889 = vmatmul.bf16.gmra.mxu0 %v16718_v58  ;;  %v16754_v20 = vld [vmem:[#allocation84_spill] sm:$0xff] }
 0xac2   : > { %v16755_v6 = vmax.f32 %v16754_v20, 0.0  ;;  %v9424_v20 = vld [vmem:[#allocation10 + $0x30c] sm:$0xf0] }
 0xac4   : > { %v3704_v37 = vpop.f32.mrf.mxu2  ;;  %v12826_v45 = vpop.f32.mrf.mxu3  ;;  %v4020_v58 = vsub.f32 %v3956_v36, %v16755_v6  ;;  %4610 = vmatpush.bf16.msrb.mxu2 %v8643_v23  ;;  %v8610_v36 = vld [vmem:[#allocation10 + $0x320] sm:$0xf] }
 0xac5   : > { %v3705_v29 = vadd.f32 %v3704_v37, %v12665_v49  ;;  %v8626_v49 = vld [vmem:[#allocation10 + $0x340] sm:$0xf]  ;;  %v8611_v25 = vor.u32 %v9428_v42, %v8610_v36 }
 0xac6   : > { %v12829_v34 = vpop.f32.mrf.mxu1  ;;  %v8627_v32 = vor.u32 %v9432_v38, %v8626_v49  ;;  %v8594_v23 = vld [vmem:[#allocation10 + $0x300] sm:$0xf] }
 0xac7   : > { %v3958_v33 = vmul.f32 2.0, %v3705_v29  ;;  %v8595_v2 = vor.u32 %v9424_v20, %v8594_v23  ;;  %v16766_v42 = vld [vmem:[#allocation59_spill] sm:$0xff] }
 0xac8   : > { %4611 = vmatpush.bf16.msrb.mxu2 %v8627_v32  ;;  %v16762_v32 = vld [vmem:[#allocation74_spill] sm:$0xff] }
 0xac9   : > { %v4022_v14 = vsub.f32 %v3958_v33, %v16757_v27  ;;  %3746 = vmatmul.bf16.gmra.mxu2 %v16758_v35  ;;  %4550 = vmatmul.bf16.gmra.mxu1 %v16759_v11 }
 0xacb   : > { %v12837_v51 = vpack.c.bf16 %v4022_v14, %v4020_v58 }
 0xacc   : > { %v3707_v62 = vpop.f32.mrf.mxu2  ;;  %v12839_v37 = vpop.f32.mrf.mxu3  ;;  %4612 = vmatpush.bf16.msrb.mxu2 %v8611_v25  ;;  %v16767_v25 = vld [vmem:[#allocation143_spill] sm:$0xff] }
 0xacd   : > { %16760 = vst [vmem:[#allocation57_spill] sm:$0xff] %v12837_v51  ;;  %v3708_v33 = vadd.f32 %v3707_v62, %v12673_v5  ;;  %v16763_v5 = vmax.f32 %v16762_v32, 0.0 }
 0xace   : > { %v12841_v29 = vpop.f32.mrf.mxu1 }
 0xacf   : > { %v3960_v27 = vmul.f32 2.0, %v3708_v33 }
 0xad0   : > { %4613 = vmatpush.bf16.msrb.mxu2 %v8595_v2 }
 0xad1   : > { %3845 = vmatmul.bf16.gmra.mxu3 %v16720_v8  ;;  %3894 = vmatmul.bf16.gmra.mxu0 %v16721_v43  ;;  %v4024_v62 = vsub.f32 %v3960_v27, %v16763_v5  ;;  %v16764_v8 = vld [vmem:[#allocation75_spill] sm:$0xff] }
 0xad2   : > { %v16765_v36 = vmax.f32 %v16764_v8, 0.0 }
 0xad4   : > { %v3709_v6 = vpop.f32.mrf.mxu2  ;;  %v12846_v58 = vpop.f32.mrf.mxu3 }
 0xad5   : > { %v3710_v14 = vadd.f32 %v3709_v6, %v12687_v61 }
 0xad6   : > { %v12849_v49 = vpop.f32.mrf.mxu1 }
 0xad7   : > { %16761 = vst [vmem:[#allocation46_spill] sm:$0xff] %v12849_v49  ;;  %v3962_v38 = vmul.f32 2.0, %v3710_v14 }
 0xad9   : > { %v4026_v43 = vsub.f32 %v3962_v38, %v16765_v36  ;;  %3751 = vmatmul.bf16.gmra.mxu2 %v16766_v42  ;;  %4555 = vmatmul.bf16.gmra.mxu1 %v16767_v25 }
 0xadb   : > { %v12857_v51 = vpack.c.bf16 %v4026_v43, %v4024_v62 }
 0xadc   : > { %v3712_v23 = vpop.f32.mrf.mxu2  ;;  %v12859_v33 = vpop.f32.mrf.mxu3 }
 0xadd   : > { %16768 = vst [vmem:[#allocation48_spill] sm:$0xff] %v12857_v51  ;;  %v3713_v6 = vadd.f32 %v3712_v23, %v12702_v48  ;;  %v16772_v48 = vld [vmem:[#allocation69_spill] sm:$0xff]  ;;  %v16774_v51 = vld [vmem:[#allocation72_spill] sm:$0xff] }
 0xade   : > { %v12861_v61 = vpop.f32.mrf.mxu1  ;;  %v3860_v20 = vpop.f32.mrf.mxu0  ;;  %v16773_v23 = vmax.f32 %v16772_v48, 0.0 }
 0xadf   : > { %16769 = vst [vmem:[#allocation121_spill] sm:$0xff] %v12861_v61  ;;  %v3861_v2 = vadd.f32 %v3860_v20, %v12721_v15  ;;  %v3964_v38 = vmul.f32 2.0, %v3713_v6  ;;  %v16776_v20 = vld [vmem:[#allocation60_spill] sm:$0xff]  ;;  %v16778_v6 = vld [vmem:[#allocation129_spill] sm:$0xff] }
 0xae1   : > { %3899 = vmatmul.bf16.gmra.mxu0 %v16722_v13  ;;  %4703 = vmatmul.bf16.vlgmr.msrb.gmra.mxu3 %v16723_v60  ;;  %v3941_v8 = vmul.f32 2.0, %v3861_v2  ;;  %v4028_v13 = vsub.f32 %v3964_v38, %v16773_v23  ;;  %v16775_v60 = vmax.f32 %v16774_v51, 0.0  ;;  %v16781_v2 = vld [vmem:[#allocation128_spill] sm:$0xff] }
 0xae4   : > { %v3714_v27 = vpop.f32.mrf.mxu2  ;;  %v12867_v14 = vpop.f32.mrf.mxu3 }
 0xae5   : > { %16770 = vst [vmem:[#allocation119_spill] sm:$0xff] %v12867_v14  ;;  %v3715_v32 = vadd.f32 %v3714_v27, %v12716_v28  ;;  %v16777_v14 = vld [vmem:[#allocation142_spill] sm:$0xff]  ;;  %v16779_v28 = vmax.f32 %v16778_v6, 0.0 }
 0xae6   : > { %v12870_v5 = vpop.f32.mrf.mxu1  ;;  %v3862_v62 = vpop.f32.mrf.mxu0 }
 0xae7   : > { %16771 = vst [vmem:[#allocation50_spill] sm:$0xff] %v12870_v5  ;;  %v3966_v36 = vmul.f32 2.0, %v3715_v32  ;;  %v3863_v43 = vadd.f32 %v3862_v62, %v12727_v41  ;;  %v4005_v27 = vsub.f32 %v3941_v8, %v16779_v28  ;;  %v16782_v32 = vmax.f32 %v16781_v2, 0.0  ;;  %v16786_v2 = vld [vmem:[#allocation89_spill] sm:$0xff] }
 0xae9   : > { %v4030_v61 = vsub.f32 %v3966_v36, %v16775_v60  ;;  %v3943_v15 = vmul.f32 2.0, %v3863_v43  ;;  %3756 = vmatmul.bf16.gmra.mxu2 %v16776_v20  ;;  %4560 = vmatmul.bf16.gmra.mxu1 %v16777_v14 }
 0xaeb   : > { %v12881_v5 = vpack.c.bf16 %v4030_v61, %v4028_v13  ;;  %v4007_v49 = vsub.f32 %v3943_v15, %v16782_v32  ;;  %v16787_v32 = vmax.f32 %v16786_v2, 0.0 }
 0xaec   : > { %v3717_v41 = vpop.f32.mrf.mxu2  ;;  %v12885_v62 = vpop.f32.mrf.mxu3 }
 0xaed   : > { %16780 = vst [vmem:[#allocation139_spill] sm:$0xff] %v12881_v5  ;;  %v12887_v38 = vpack.c.bf16 %v4007_v49, %v4005_v27  ;;  %v3718_v36 = vadd.f32 %v3717_v41, %v12723_v46  ;;  %v16784_v46 = vld [vmem:[#allocation65_spill] sm:$0xff] }
 0xaee   : > { %v12889_v51 = vpop.f32.mrf.mxu1  ;;  %v3865_v60 = vpop.f32.mrf.mxu0  ;;  %v16785_v27 = vmax.f32 %v16784_v46, 0.0 }
 0xaef   : > { %16783 = vst [vmem:[#allocation117_spill] sm:$0xff] %v12887_v38  ;;  %v3866_v61 = vadd.f32 %v3865_v60, %v12733_v63  ;;  %v3968_v48 = vmul.f32 2.0, %v3718_v36  ;;  %v16788_v60 = vld [vmem:[#allocation68_spill] sm:$0xff] }
 0xaf1   : > { %3904 = vmatmul.bf16.gmra.mxu0 %v16728_v47  ;;  %4708 = vmatmul.bf16.gmra.mxu3 %v16729_v17  ;;  %v3945_v15 = vmul.f32 2.0, %v3866_v61  ;;  %v4032_v47 = vsub.f32 %v3968_v48, %v16785_v27  ;;  %v16791_v61 = vld [vmem:[#allocation19_spill] sm:$0xff] }
 0xaf4   : > { %v3719_v8 = vpop.f32.mrf.mxu2  ;;  %v12895_v43 = vpop.f32.mrf.mxu3 }
 0xaf5   : > { %v3720_v23 = vadd.f32 %v3719_v8, %v12729_v21  ;;  %v16789_v21 = vmax.f32 %v16788_v60, 0.0 }
 0xaf6   : > { %v3867_v13 = vpop.f32.mrf.mxu0  ;;  %v12898_v49 = vpop.f32.mrf.mxu1 }
 0xaf7   : > { %v3970_v6 = vmul.f32 2.0, %v3720_v23  ;;  %v3868_v28 = vadd.f32 %v3867_v13, %v12739_v3  ;;  %v4009_v36 = vsub.f32 %v3945_v15, %v16789_v21  ;;  %v16792_v23 = vmax.f32 %v16791_v61, 0.0  ;;  %v16796_v61 = vld [vmem:[#allocation73_spill] sm:$0xff] }
 0xaf9   : > { %v4034_v41 = vsub.f32 %v3970_v6, %v16787_v32  ;;  %v3947_v63 = vmul.f32 2.0, %v3868_v28  ;;  %4565 = vmatmul.bf16.gmra.mxu1 %v12622_v9  ;;  %4614 = vmatmul.bf16.vlgmr.msrb.gmra.mxu2 %v12476_v19 }
 0xafb   : > { %v12909_v8 = vpack.c.bf16 %v4034_v41, %v4032_v47  ;;  %v4011_v38 = vsub.f32 %v3947_v63, %v16792_v23  ;;  %v16797_v23 = vmax.f32 %v16796_v61, 0.0 }
 0xafc   : > { %v3722_v3 = vpop.f32.mrf.mxu2  ;;  %v12913_v13 = vpop.f32.mrf.mxu3 }
 0xafd   : > { %16790 = vst [vmem:[#allocation115_spill] sm:$0xff] %v12909_v8  ;;  %v12915_v48 = vpack.c.bf16 %v4011_v38, %v4009_v36  ;;  %v3723_v28 = vadd.f32 %v3722_v3, %v12735_v16  ;;  %v16794_v16 = vld [vmem:[#allocation118_spill] sm:$0xff] }
 0xafe   : > { %v3870_v46 = vpop.f32.mrf.mxu0  ;;  %v12917_v6 = vpop.f32.mrf.mxu1  ;;  %v16795_v36 = vmax.f32 %v16794_v16, 0.0 }
 0xaff   : > { %16793 = vst [vmem:[#allocation52_spill] sm:$0xff] %v12915_v48  ;;  %v3871_v15 = vadd.f32 %v3870_v46, %v12746_v24  ;;  %v3972_v2 = vmul.f32 2.0, %v3723_v28  ;;  %v16798_v46 = vld [vmem:[#allocation96_spill] sm:$0xff] }
 0xb01   : > { %3909 = vmatmul.bf16.gmra.mxu0 %v16735_v10  ;;  %4713 = vmatmul.bf16.gmra.mxu3 %v16736_v26  ;;  %v3949_v63 = vmul.f32 2.0, %v3871_v15  ;;  %v4036_v10 = vsub.f32 %v3972_v2, %v16795_v36  ;;  %v16801_v15 = vld [vmem:[#allocation97_spill] sm:$0xff] }
 0xb04   : > { %v3724_v27 = vpop.f32.mrf.mxu2  ;;  %v12923_v47 = vpop.f32.mrf.mxu3 }
 0xb05   : > { %v3725_v32 = vadd.f32 %v3724_v27, %v12741_v40  ;;  %v16799_v40 = vmax.f32 %v16798_v46, 0.0 }
 0xb06   : > { %v3872_v41 = vpop.f32.mrf.mxu0  ;;  %v12926_v38 = vpop.f32.mrf.mxu1 }
 0xb07   : > { %v3974_v60 = vmul.f32 2.0, %v3725_v32  ;;  %v3873_v21 = vadd.f32 %v3872_v41, %v12759_v7  ;;  %v4013_v28 = vsub.f32 %v3949_v63, %v16799_v40  ;;  %v16802_v32 = vmax.f32 %v16801_v15, 0.0  ;;  %v16807_v15 = vld [vmem:[#allocation92_spill] sm:$0xff] }
 0xb09   : > { %v4038_v3 = vsub.f32 %v3974_v60, %v16797_v23  ;;  %v3951_v24 = vmul.f32 2.0, %v3873_v21  ;;  %4570 = vmatmul.bf16.gmra.mxu1 %v12617_v18  ;;  %4619 = vmatmul.bf16.gmra.mxu2 %v12493_v39 }
 0xb0b   : > { %v12937_v27 = vpack.c.bf16 %v4038_v3, %v4036_v10  ;;  %v4015_v48 = vsub.f32 %v3951_v24, %v16802_v32  ;;  %v16808_v32 = vmax.f32 %v16807_v15, 0.0 }
 0xb0c   : > { %v3727_v7 = vpop.f32.mrf.mxu2  ;;  %v12941_v41 = vpop.f32.mrf.mxu3 }
 0xb0d   : > { %16800 = vst [vmem:[#allocation140_spill] sm:$0xff] %v12937_v27  ;;  %v12943_v2 = vpack.c.bf16 %v4015_v48, %v4013_v28  ;;  %v3728_v21 = vadd.f32 %v3727_v7, %v12749_v1  ;;  %v16805_v1 = vld [vmem:[#allocation29_spill] sm:$0xff] }
 0xb0e   : > { %v3875_v16 = vpop.f32.mrf.mxu0  ;;  %v12945_v60 = vpop.f32.mrf.mxu1  ;;  %v16806_v28 = vmax.f32 %v16805_v1, 0.0 }
 0xb0f   : > { %16803 = vst [vmem:[#allocation114_spill] sm:$0xff] %v12943_v2  ;;  %v3876_v63 = vadd.f32 %v3875_v16, %v12766_v56  ;;  %v3976_v61 = vmul.f32 2.0, %v3728_v21  ;;  %v16809_v16 = vld [vmem:[#allocation158_spill] sm:$0xff]  ;;  %v16811_v21 = vld [vmem:[#allocation99_spill] sm:$0xff] }
 0xb10   : > { %v16810_v2 = vld [vmem:[#allocation146_spill] sm:$0xff] }
 0xb11   : > { %3914 = vmatmul.bf16.gmra.mxu0 %v16742_v12  ;;  %4718 = vmatmul.bf16.gmra.mxu3 %v16743_v53  ;;  %v3953_v24 = vmul.f32 2.0, %v3876_v63  ;;  %v4040_v12 = vsub.f32 %v3976_v61, %v16806_v28  ;;  %v16814_v63 = vld [vmem:[#allocation28_spill] sm:$0xff]  ;;  %v8708_v28 = vld [vmem:[#allocation10 + $0x3f0] sm:$0xf0] }
 0xb14   : > { %v3729_v36 = vpop.f32.mrf.mxu2  ;;  %v12951_v10 = vpop.f32.mrf.mxu3 }
 0xb15   : > { %v3730_v23 = vadd.f32 %v3729_v36, %v12761_v44  ;;  %v16812_v44 = vmax.f32 %v16811_v21, 0.0 }
 0xb16   : > { %v3877_v3 = vpop.f32.mrf.mxu0  ;;  %v12954_v48 = vpop.f32.mrf.mxu1 }
 0xb17   : > { %16804 = vst [vmem:[#allocation71_spill] sm:$0xff] %v12954_v48  ;;  %v3978_v46 = vmul.f32 2.0, %v3730_v23  ;;  %v3878_v40 = vadd.f32 %v3877_v3, %v12779_v31  ;;  %v4017_v36 = vsub.f32 %v3953_v24, %v16812_v44  ;;  %v16815_v23 = vmax.f32 %v16814_v63, 0.0 }
 0xb19   : > { %v4042_v7 = vsub.f32 %v3978_v46, %v16808_v32  ;;  %v3955_v56 = vmul.f32 2.0, %v3878_v40  ;;  %4575 = vmatmul.bf16.gmra.mxu1 %v16809_v16  ;;  %4624 = vmatmul.bf16.gmra.mxu2 %v16810_v2  ;;  %v9450_v40 = vld [vmem:[#allocation10 + $0x3e4] sm:$0xf] }
 0xb1a   : > { %v8711_v15 = vor.u32 %v9450_v40, %v8708_v28  ;;  %v9442_v40 = vld [vmem:[#allocation10 + $0x3a4] sm:$0xf]  ;;  %v8676_v28 = vld [vmem:[#allocation10 + $0x3b0] sm:$0xf0] }
 0xb1b   : > { %v12965_v27 = vpack.c.bf16 %v4042_v7, %v4040_v12  ;;  %v4019_v8 = vsub.f32 %v3955_v56, %v16815_v23  ;;  %v9446_v12 = vld [vmem:[#allocation10 + $0x3c4] sm:$0xf]  ;;  %v8692_v7 = vld [vmem:[#allocation10 + $0x3d0] sm:$0xf0] }
 0xb1c   : > { %v3732_v31 = vpop.f32.mrf.mxu2  ;;  %v12969_v3 = vpop.f32.mrf.mxu3  ;;  %4784 = vmatpush.bf16.msrb.mxu0 %v8711_v15  ;;  %v8695_v21 = vor.u32 %v9446_v12, %v8692_v7  ;;  %v16823_v7 = vld [vmem:[#allocation157_spill] sm:$0xff] }
 0xb1d   : > { %16813 = vst [vmem:[#allocation54_spill] sm:$0xff] %v12965_v27  ;;  %v12971_v61 = vpack.c.bf16 %v4019_v8, %v4017_v36  ;;  %v3733_v32 = vadd.f32 %v3732_v31, %v12769_v0  ;;  %v16821_v27 = vld [vmem:[#allocation104_spill] sm:$0xff] }
 0xb1e   : > { %v3880_v1 = vpop.f32.mrf.mxu0  ;;  %v12973_v46 = vpop.f32.mrf.mxu1  ;;  %v16822_v5 = vmax.f32 %v16821_v27, 0.0 }
 0xb1f   : > { %16816 = vst [vmem:[#allocation141_spill] sm:$0xff] %v12971_v61  ;;  %v3881_v24 = vadd.f32 %v3880_v1, %v12786_v59  ;;  %v3980_v44 = vmul.f32 2.0, %v3733_v32  ;;  %v8679_v59 = vor.u32 %v9442_v40, %v8676_v28  ;;  %v16819_v1 = vld [vmem:[#allocation110_spill] sm:$0xff]  ;;  %v9438_v28 = vld [vmem:[#allocation10 + $0x384] sm:$0xf] }
 0xb20   : > { %16817 = vst [vmem:[#allocation85_spill] sm:$0xff] %v12973_v46  ;;  %4785 = vmatpush.bf16.msrb.mxu0 %v8695_v21  ;;  %v16820_v15 = vmax.f32 %v16819_v1, 0.0  ;;  %v8660_v1 = vld [vmem:[#allocation10 + $0x390] sm:$0xf0] }
 0xb21   : > { %3919 = vmatmul.bf16.gmra.mxu0 %v16750_v54  ;;  %4723 = vmatmul.bf16.gmra.mxu3 %v16751_v57  ;;  %v3957_v0 = vmul.f32 2.0, %v3881_v24 }
 0xb22   : > { %v4044_v61 = vsub.f32 %v3980_v44, %v16820_v15 }
 0xb24   : > { %v3734_v56 = vpop.f32.mrf.mxu2  ;;  %v12979_v8 = vpop.f32.mrf.mxu3  ;;  %4786 = vmatpush.bf16.msrb.mxu0 %v8679_v59  ;;  %v9434_v59 = vld [vmem:[#allocation10 + $0x364] sm:$0xf] }
 0xb25   : > { %v3735_v36 = vadd.f32 %v3734_v56, %v12781_v22  ;;  %v16824_v22 = vld [vmem:[#allocation147_spill] sm:$0xff]  ;;  %v16825_v56 = vld [vmem:[#allocation101_spill] sm:$0xff] }
 0xb26   : > { %v3882_v63 = vpop.f32.mrf.mxu0  ;;  %v12982_v23 = vpop.f32.mrf.mxu1  ;;  %v16826_v24 = vmax.f32 %v16825_v56, 0.0  ;;  %v8644_v56 = vld [vmem:[#allocation10 + $0x370] sm:$0xf0] }
 0xb27   : > { %16818 = vst [vmem:[#allocation86_spill] sm:$0xff] %v12982_v23  ;;  %v3982_v54 = vmul.f32 2.0, %v3735_v36  ;;  %v3883_v31 = vadd.f32 %v3882_v63, %v12799_v50  ;;  %v16828_v50 = vld [vmem:[#allocation103_spill] sm:$0xff] }
 0xb28   : > { %v4021_v21 = vsub.f32 %v3957_v0, %v16826_v24  ;;  %v16829_v63 = vmax.f32 %v16828_v50, 0.0  ;;  %v8647_v0 = vor.u32 %v9434_v59, %v8644_v56  ;;  %v8628_v24 = vld [vmem:[#allocation10 + $0x350] sm:$0xf0]  ;;  %v9426_v56 = vld [vmem:[#allocation10 + $0x324] sm:$0xf] }
 0xb29   : > { %v4046_v12 = vsub.f32 %v3982_v54, %v16822_v5  ;;  %v3959_v32 = vmul.f32 2.0, %v3883_v31  ;;  %4580 = vmatmul.bf16.gmra.mxu1 %v16823_v7  ;;  %4629 = vmatmul.bf16.gmra.mxu2 %v16824_v22  ;;  %v8663_v5 = vor.u32 %v9438_v28, %v8660_v1  ;;  %v16832_v28 = vld [vmem:[#allocation148_spill] sm:$0xff] }
 0xb2b   : > { %v12993_v36 = vpack.c.bf16 %v4046_v12, %v4044_v61  ;;  %v4023_v40 = vsub.f32 %v3959_v32, %v16829_v63  ;;  %4787 = vmatpush.bf16.msrb.mxu0 %v8663_v5  ;;  %v9430_v32 = vld [vmem:[#allocation10 + $0x344] sm:$0xf] }
 0xb2c   : > { %v3737_v44 = vpop.f32.mrf.mxu2  ;;  %v12997_v15 = vpop.f32.mrf.mxu3  ;;  %v8631_v63 = vor.u32 %v9430_v32, %v8628_v24  ;;  %v16836_v32 = vld [vmem:[#allocation133_spill] sm:$0xff] }
 0xb2d   : > { %16827 = vst [vmem:[#allocation56_spill] sm:$0xff] %v12993_v36  ;;  %v12999_v27 = vpack.c.bf16 %v4023_v40, %v4021_v21  ;;  %v3738_v61 = vadd.f32 %v3737_v44, %v12789_v55  ;;  %v16834_v36 = vld [vmem:[#allocation112_spill] sm:$0xff] }
 0xb2e   : > { %v3885_v54 = vpop.f32.mrf.mxu0  ;;  %v13001_v31 = vpop.f32.mrf.mxu1 }
 0xb2f   : > { %16830 = vst [vmem:[#allocation145_spill] sm:$0xff] %v12999_v27  ;;  %4788 = vmatpush.bf16.msrb.mxu0 %v8647_v0  ;;  %v3886_v12 = vadd.f32 %v3885_v54, %v12806_v52  ;;  %v3984_v40 = vmul.f32 2.0, %v3738_v61  ;;  %v8612_v0 = vld [vmem:[#allocation10 + $0x330] sm:$0xf0]  ;;  %v8586_v54 = vld [vmem:[#allocation10 + $0x2e8] sm:$0xf] }
 0xb30   : > { %16831 = vst [vmem:[#allocation84_spill] sm:$0xff] %v13001_v31  ;;  %v8615_v52 = vor.u32 %v9426_v56, %v8612_v0  ;;  %v9421_v27 = vld [vmem:[#allocation10 + $0x2f4] sm:$0xf0]  ;;  %v16835_v31 = vmax.f32 %v16834_v36, 0.0  ;;  %v16837_v61 = vmax.f32 %v16836_v32, 0.0  ;;  %v16843_v56 = vld [vmem:[#allocation83_spill] sm:$0xff] }
 0xb31   : > { %3924 = vmatmul.bf16.gmra.mxu0 %v16758_v35  ;;  %4728 = vmatmul.bf16.gmra.mxu3 %v16759_v11  ;;  %v3961_v55 = vmul.f32 2.0, %v3886_v12  ;;  %v8587_v12 = vor.u32 %v9421_v27, %v8586_v54  ;;  %v16844_v0 = vmax.f32 %v16843_v56, 0.0  ;;  %v9422_v36 = vld [vmem:[#allocation10 + $0x304] sm:$0xf] }
 0xb32   : > { %v4048_v23 = vsub.f32 %v3984_v40, %v16835_v31  ;;  %v8596_v31 = vld [vmem:[#allocation10 + $0x310] sm:$0xf0]  ;;  %v8570_v40 = vld [vmem:[#allocation10 + $0x2c8] sm:$0xf] }
 0xb33   : > { %4789 = vmatpush.bf16.msrb.mxu0 %v8631_v63  ;;  %v16840_v63 = vld [vmem:[#allocation105_spill] sm:$0xff]  ;;  %4873 = vmatpush.bf16.msra.mxu1 %v8587_v12  ;;  %v8599_v32 = vor.u32 %v9422_v36, %v8596_v31  ;;  %v16847_v36 = vld [vmem:[#allocation44_spill] sm:$0xff] }
 0xb34   : > { %v3739_v21 = vpop.f32.mrf.mxu2  ;;  %v13007_v50 = vpop.f32.mrf.mxu3 }
 0xb35   : > { %v3740_v1 = vadd.f32 %v3739_v21, %v16832_v28  ;;  %v16838_v28 = vld [vmem:[#allocation156_spill] sm:$0xff] }
 0xb36   : > { %v3887_v5 = vpop.f32.mrf.mxu0  ;;  %v13010_v59 = vpop.f32.mrf.mxu1 }
 0xb37   : > { %16833 = vst [vmem:[#allocation87_spill] sm:$0xff] %v13010_v59  ;;  %v3986_v35 = vmul.f32 2.0, %v3740_v1  ;;  %v3888_v44 = vadd.f32 %v3887_v5, %v12819_v4  ;;  %v16839_v59 = vld [vmem:[#allocation152_spill] sm:$0xff]  ;;  %4790 = vmatpush.bf16.msrb.mxu0 %v8615_v52  ;;  %v16841_v4 = vmax.f32 %v16840_v63, 0.0  ;;  %v9409_v63 = vld [vmem:[#allocation10 + $0x294] sm:$0xf0] }
 0xb39   : > { %v4050_v24 = vsub.f32 %v3986_v35, %v16837_v61  ;;  %v3963_v21 = vmul.f32 2.0, %v3888_v44  ;;  %4585 = vmatmul.bf16.gmra.mxu1 %v16838_v28  ;;  %4634 = vmatmul.bf16.gmra.mxu2 %v16839_v59  ;;  %v4025_v1 = vsub.f32 %v3961_v55, %v16841_v4  ;;  %v9417_v61 = vld [vmem:[#allocation10 + $0x2d4] sm:$0xf0] }
 0xb3a   : > { %v8571_v27 = vor.u32 %v9417_v61, %v8570_v40  ;;  %v9413_v55 = vld [vmem:[#allocation10 + $0x2b4] sm:$0xf0]  ;;  %v8522_v61 = vld [vmem:[#allocation10 + $0x268] sm:$0xf] }
 0xb3b   : > { %v13021_v5 = vpack.c.bf16 %v4050_v24, %v4048_v23  ;;  %v4027_v46 = vsub.f32 %v3963_v21, %v16844_v0  ;;  %4791 = vmatpush.bf16.msrb.mxu0 %v8599_v32  ;;  %v8554_v23 = vld [vmem:[#allocation10 + $0x2a8] sm:$0xf] }
 0xb3c   : > { %v3742_v35 = vpop.f32.mrf.mxu2  ;;  %v13025_v44 = vpop.f32.mrf.mxu3  ;;  %4874 = vmatpush.bf16.msra.mxu1 %v8571_v27  ;;  %v8555_v24 = vor.u32 %v9413_v55, %v8554_v23 }
 0xb3d   : > { %16842 = vst [vmem:[#allocation58_spill] sm:$0xff] %v13021_v5  ;;  %v13027_v48 = vpack.c.bf16 %v4027_v46, %v4025_v1  ;;  %v3743_v21 = vadd.f32 %v3742_v35, %v12809_v30  ;;  %v8538_v46 = vld [vmem:[#allocation10 + $0x288] sm:$0xf] }
 0xb3e   : > { %v3890_v52 = vpop.f32.mrf.mxu0  ;;  %v13029_v54 = vpop.f32.mrf.mxu1  ;;  %v8539_v56 = vor.u32 %v9409_v63, %v8538_v46  ;;  %v16853_v63 = vld [vmem:[#allocation155_spill] sm:$0xff] }
 0xb3f   : > { %16845 = vst [vmem:[#allocation144_spill] sm:$0xff] %v13027_v48  ;;  %v3891_v12 = vadd.f32 %v3890_v52, %v12826_v45  ;;  %v3988_v0 = vmul.f32 2.0, %v3743_v21  ;;  %v9405_v45 = vld [vmem:[#allocation10 + $0x274] sm:$0xf0]  ;;  %v16849_v52 = vld [vmem:[#allocation67_spill] sm:$0xff] }
 0xb40   : > { %16846 = vst [vmem:[#allocation74_spill] sm:$0xff] %v13029_v54  ;;  %4875 = vmatpush.bf16.msra.mxu1 %v8555_v24  ;;  %v8523_v27 = vor.u32 %v9405_v45, %v8522_v61  ;;  %v16850_v23 = vmax.f32 %v16849_v52, 0.0  ;;  %v16851_v24 = vld [vmem:[#allocation130_spill] sm:$0xff]  ;;  %v8506_v61 = vld [vmem:[#allocation10 + $0x248] sm:$0xf] }
 0xb41   : > { %3929 = vmatmul.bf16.gmra.mxu0 %v16766_v42  ;;  %4733 = vmatmul.bf16.gmra.mxu3 %v16767_v25  ;;  %v3965_v30 = vmul.f32 2.0, %v3891_v12  ;;  %v16852_v48 = vmax.f32 %v16851_v24, 0.0  ;;  %v9401_v45 = vld [vmem:[#allocation10 + $0x254] sm:$0xf0]  ;;  %v8490_v24 = vld [vmem:[#allocation10 + $0x228] sm:$0xf] }
 0xb42   : > { %v4052_v55 = vsub.f32 %v3988_v0, %v16850_v23 }
 0xb44   : > { %v3744_v4 = vpop.f32.mrf.mxu2  ;;  %v13035_v1 = vpop.f32.mrf.mxu3  ;;  %4876 = vmatpush.bf16.msra.mxu1 %v8539_v56 }
 0xb45   : > { %v3745_v31 = vadd.f32 %v3744_v4, %v16847_v36  ;;  %v16854_v4 = vld [vmem:[#allocation151_spill] sm:$0xff] }
 0xb46   : > { %v3892_v40 = vpop.f32.mrf.mxu0  ;;  %v13038_v32 = vpop.f32.mrf.mxu1  ;;  %v16855_v36 = vld [vmem:[#allocation107_spill] sm:$0xff] }
 0xb47   : > { %16848 = vst [vmem:[#allocation75_spill] sm:$0xff] %v13038_v32  ;;  %v3990_v35 = vmul.f32 2.0, %v3745_v31  ;;  %v3893_v42 = vadd.f32 %v3892_v40, %v12839_v37  ;;  %v16856_v12 = vmax.f32 %v16855_v36, 0.0  ;;  %v16858_v37 = vld [vmem:[#allocation109_spill] sm:$0xff]  ;;  %v9393_v36 = vld [vmem:[#allocation10 + $0x214] sm:$0xf0] }
 0xb48   : > { %v16859_v56 = vmax.f32 %v16858_v37, 0.0  ;;  %4877 = vmatpush.bf16.msra.mxu1 %v8523_v27  ;;  %v9391_v32 = vld [vmem:[#allocation10 + $0x20c] sm:$0xf] }
 0xb49   : > { %v4054_v46 = vsub.f32 %v3990_v35, %v16852_v48  ;;  %v3967_v21 = vmul.f32 2.0, %v3893_v42  ;;  %4590 = vmatmul.bf16.gmra.mxu1 %v16853_v63  ;;  %4639 = vmatmul.bf16.gmra.mxu2 %v16854_v4  ;;  %v4029_v31 = vsub.f32 %v3965_v30, %v16856_v12  ;;  %v8507_v48 = vor.u32 %v9401_v45, %v8506_v61  ;;  %v9397_v30 = vld [vmem:[#allocation10 + $0x234] sm:$0xf0] }
 0xb4b   : > { %v13049_v5 = vpack.c.bf16 %v4054_v46, %v4052_v55  ;;  %v4031_v40 = vsub.f32 %v3967_v21, %v16859_v56  ;;  %v8491_v55 = vor.u32 %v9397_v30, %v8490_v24  ;;  %v8474_v21 = vld [vmem:[#allocation10 + $0x208] sm:$0xf]  ;;  %v16865_v24 = vld [vmem:[#allocation126_spill] sm:$0xff] }
 0xb4c   : > { %v3747_v0 = vpop.f32.mrf.mxu2  ;;  %v13053_v52 = vpop.f32.mrf.mxu3  ;;  %4878 = vmatpush.bf16.msra.mxu1 %v8507_v48  ;;  %v8475_v37 = vor.u32 %v9393_v36, %v8474_v21  ;;  %v16863_v48 = vld [vmem:[#allocation70_spill] sm:$0xff]  ;;  %v16866_v30 = vmax.f32 %v16865_v24, 0.0 }
 0xb4d   : > { %16857 = vst [vmem:[#allocation59_spill] sm:$0xff] %v13049_v5  ;;  %v13055_v35 = vpack.c.bf16 %v4031_v40, %v4029_v31  ;;  %v3748_v46 = vadd.f32 %v3747_v0, %v12829_v34  ;;  %v16867_v5 = vld [vmem:[#allocation154_spill] sm:$0xff] }
 0xb4e   : > { %v3895_v42 = vpop.f32.mrf.mxu0  ;;  %v13057_v23 = vpop.f32.mrf.mxu1 }
 0xb4f   : > { %16860 = vst [vmem:[#allocation143_spill] sm:$0xff] %v13055_v35  ;;  %v3896_v27 = vadd.f32 %v3895_v42, %v12846_v58  ;;  %v3992_v56 = vmul.f32 2.0, %v3748_v46  ;;  %v16864_v58 = vmax.f32 %v16863_v48, 0.0  ;;  %v16868_v46 = vld [vmem:[#allocation150_spill] sm:$0xff] }
 0xb50   : > { %16861 = vst [vmem:[#allocation69_spill] sm:$0xff] %v13057_v23  ;;  %4879 = vmatpush.bf16.msra.mxu1 %v8491_v55 }
 0xb51   : > { %3934 = vmatmul.bf16.gmra.mxu0 %v16776_v20  ;;  %4738 = vmatmul.bf16.gmra.mxu3 %v16777_v14  ;;  %v3969_v34 = vmul.f32 2.0, %v3896_v27  ;;  %v4056_v42 = vsub.f32 %v3992_v56, %v16864_v58  ;;  %v16872_v27 = vld [vmem:[#allocation108_spill] sm:$0xff] }
 0xb54   : > { %v3749_v12 = vpop.f32.mrf.mxu2  ;;  %v13063_v31 = vpop.f32.mrf.mxu3  ;;  %4880 = vmatpush.bf16.msra.mxu1 %v8475_v37 }
 0xb55   : > { %v3750_v40 = vadd.f32 %v3749_v12, %v12841_v29  ;;  %v16869_v29 = vld [vmem:[#allocation111_spill] sm:$0xff] }
 0xb56   : > { %v3897_v61 = vpop.f32.mrf.mxu0  ;;  %v13066_v45 = vpop.f32.mrf.mxu1  ;;  %v16870_v21 = vmax.f32 %v16869_v29, 0.0 }
 0xb57   : > { %16862 = vst [vmem:[#allocation72_spill] sm:$0xff] %v13066_v45  ;;  %v3994_v0 = vmul.f32 2.0, %v3750_v40  ;;  %v3898_v20 = vadd.f32 %v3897_v61, %v12859_v33  ;;  %v16873_v40 = vmax.f32 %v16872_v27, 0.0 }
 0xb58   : > { %v4033_v36 = vsub.f32 %v3969_v34, %v16870_v21  ;;  %v16877_v34 = vld [vmem:[#allocation119_spill] sm:$0xff] }
 0xb59   : > { %v4058_v55 = vsub.f32 %v3994_v0, %v16866_v30  ;;  %v3971_v35 = vmul.f32 2.0, %v3898_v20  ;;  %4595 = vmatmul.bf16.gmra.mxu1 %v16867_v5  ;;  %4644 = vmatmul.bf16.gmra.mxu2 %v16868_v46  ;;  %v16876_v20 = vld [vmem:[#allocation46_spill] sm:$0xff] }
 0xb5b   : > { %v13077_v12 = vpack.c.bf16 %v4058_v55, %v4056_v42  ;;  %v4035_v33 = vsub.f32 %v3971_v35, %v16873_v40  ;;  %v16879_v55 = vld [vmem:[#allocation121_spill] sm:$0xff] }
 0xb5c   : > { %v3752_v37 = vpop.f32.mrf.mxu2  ;;  %v13081_v61 = vpop.f32.mrf.mxu3 }
 0xb5d   : > { %16871 = vst [vmem:[#allocation60_spill] sm:$0xff] %v13077_v12  ;;  %v13083_v56 = vpack.c.bf16 %v4035_v33, %v4033_v36  ;;  %v3753_v58 = vadd.f32 %v3752_v37, %v16876_v20  ;;  %v16881_v37 = vld [vmem:[#allocation61_spill] sm:$0xff]  ;;  %v16883_v12 = vld [vmem:[#allocation22_spill] sm:$0xff] }
 0xb5e   : > { %v3900_v48 = vpop.f32.mrf.mxu0  ;;  %v13085_v0 = vpop.f32.mrf.mxu1  ;;  %v16882_v20 = vmax.f32 %v16881_v37, 0.0 }
 0xb5f   : > { %16874 = vst [vmem:[#allocation142_spill] sm:$0xff] %v13083_v56  ;;  %v3901_v42 = vadd.f32 %v3900_v48, %v16877_v34  ;;  %v3996_v35 = vmul.f32 2.0, %v3753_v58  ;;  %v16885_v34 = vld [vmem:[#allocation153_spill] sm:$0xff]  ;;  %v16887_v58 = vld [vmem:[#allocation62_spill] sm:$0xff] }
 0xb60   : > { %16875 = vst [vmem:[#allocation129_spill] sm:$0xff] %v13085_v0  ;;  %v16884_v0 = vmax.f32 %v16883_v12, 0.0 }
 0xb61   : > { %4743 = vmatmul.bf16.gmra.mxu3 %v12622_v9  ;;  %4792 = vmatmul.bf16.vlgmr.msrb.gmra.mxu0 %v12476_v19  ;;  %v3973_v27 = vmul.f32 2.0, %v3901_v42  ;;  %v4060_v56 = vsub.f32 %v3996_v35, %v16882_v20  ;;  %v16890_v42 = vld [vmem:[#allocation81_spill] sm:$0xff] }
 0xb64   : > { %v3754_v24 = vpop.f32.mrf.mxu2  ;;  %v13091_v30 = vpop.f32.mrf.mxu3 }
 0xb65   : > { %16878 = vst [vmem:[#allocation128_spill] sm:$0xff] %v13091_v30  ;;  %v3755_v29 = vadd.f32 %v3754_v24, %v16879_v55  ;;  %v16886_v30 = vld [vmem:[#allocation149_spill] sm:$0xff]  ;;  %v16888_v24 = vmax.f32 %v16887_v58, 0.0 }
 0xb66   : > { %v3902_v21 = vpop.f32.mrf.mxu0  ;;  %v13094_v36 = vpop.f32.mrf.mxu1 }
 0xb67   : > { %16880 = vst [vmem:[#allocation65_spill] sm:$0xff] %v13094_v36  ;;  %v3998_v40 = vmul.f32 2.0, %v3755_v29  ;;  %v3903_v33 = vadd.f32 %v3902_v21, %v12885_v62  ;;  %v4037_v55 = vsub.f32 %v3973_v27, %v16888_v24  ;;  %v16891_v29 = vmax.f32 %v16890_v42, 0.0  ;;  %v16898_v42 = vld [vmem:[#allocation98_spill] sm:$0xff] }
 0xb69   : > { %v4062_v45 = vsub.f32 %v3998_v40, %v16884_v0  ;;  %v3975_v48 = vmul.f32 2.0, %v3903_v33  ;;  %4600 = vmatmul.bf16.gmra.mxu1 %v16885_v34  ;;  %4649 = vmatmul.bf16.gmra.mxu2 %v16886_v30  ;;  %v16895_v40 = vld [vmem:[#allocation50_spill] sm:$0xff] }
 0xb6b   : > { %v13105_v23 = vpack.c.bf16 %v4062_v45, %v4060_v56  ;;  %v4039_v36 = vsub.f32 %v3975_v48, %v16891_v29  ;;  %v16899_v29 = vmax.f32 %v16898_v42, 0.0 }
 0xb6c   : > { %v3757_v62 = vpop.f32.mrf.mxu2  ;;  %v13109_v21 = vpop.f32.mrf.mxu3 }
 0xb6d   : > { %16889 = vst [vmem:[#allocation89_spill] sm:$0xff] %v13105_v23  ;;  %v13111_v35 = vpack.c.bf16 %v4039_v36, %v4037_v55  ;;  %v3758_v33 = vadd.f32 %v3757_v62, %v16895_v40  ;;  %v16900_v40 = vld [vmem:[#allocation95_spill] sm:$0xff] }
 0xb6e   : > { %16892 = vst [vmem:[#allocation68_spill] sm:$0xff] %v13109_v21  ;;  %v3905_v12 = vpop.f32.mrf.mxu0  ;;  %v13113_v0 = vpop.f32.mrf.mxu1  ;;  %v8524_v21 = vld [vmem:[#allocation10 + $0x278] sm:$0xf0] }
 0xb6f   : > { %16893 = vst [vmem:[#allocation19_spill] sm:$0xff] %v13111_v35  ;;  %v3906_v45 = vadd.f32 %v3905_v12, %v12895_v43  ;;  %v4000_v37 = vmul.f32 2.0, %v3758_v33  ;;  %v16901_v35 = vmax.f32 %v16900_v40, 0.0  ;;  %v16902_v12 = vld [vmem:[#allocation51_spill] sm:$0xff]  ;;  %v16904_v33 = vld [vmem:[#allocation82_spill] sm:$0xff] }
 0xb70   : > { %16894 = vst [vmem:[#allocation118_spill] sm:$0xff] %v13113_v0 }
 0xb71   : > { %4748 = vmatmul.bf16.gmra.mxu3 %v12617_v18  ;;  %4797 = vmatmul.bf16.gmra.mxu0 %v12493_v39  ;;  %v3977_v58 = vmul.f32 2.0, %v3906_v45  ;;  %v4064_v62 = vsub.f32 %v4000_v37, %v16899_v29  ;;  %v16907_v45 = vld [vmem:[#allocation66_spill] sm:$0xff] }
 0xb74   : > { %v3759_v56 = vpop.f32.mrf.mxu2  ;;  %v13119_v27 = vpop.f32.mrf.mxu3 }
 0xb75   : > { %16896 = vst [vmem:[#allocation73_spill] sm:$0xff] %v13119_v27  ;;  %v3760_v20 = vadd.f32 %v3759_v56, %v12889_v51  ;;  %v16903_v27 = vld [vmem:[#allocation138_spill] sm:$0xff]  ;;  %v16905_v51 = vmax.f32 %v16904_v33, 0.0  ;;  %v16915_v33 = vld [vmem:[#allocation79_spill] sm:$0xff] }
 0xb76   : > { %v3907_v48 = vpop.f32.mrf.mxu0  ;;  %v13122_v36 = vpop.f32.mrf.mxu1 }
 0xb77   : > { %16897 = vst [vmem:[#allocation96_spill] sm:$0xff] %v13122_v36  ;;  %v4002_v24 = vmul.f32 2.0, %v3760_v20  ;;  %v3908_v55 = vadd.f32 %v3907_v48, %v12913_v13  ;;  %v4041_v56 = vsub.f32 %v3977_v58, %v16905_v51  ;;  %v16908_v20 = vmax.f32 %v16907_v45, 0.0  ;;  %v16917_v45 = vld [vmem:[#allocation30_spill] sm:$0xff] }
 0xb78   : > { %v16916_v51 = vmax.f32 %v16915_v33, 0.0 }
 0xb79   : > { %v4066_v23 = vsub.f32 %v4002_v24, %v16901_v35  ;;  %v3979_v43 = vmul.f32 2.0, %v3908_v55  ;;  %4654 = vmatmul.bf16.gmra.mxu2 %v16902_v12  ;;  %4881 = vmatmul.bf16.vlgmr.msra.gmra.mxu1 %v16903_v27 }
 0xb7b   : > { %v13133_v0 = vpack.c.bf16 %v4066_v23, %v4064_v62  ;;  %v4043_v36 = vsub.f32 %v3979_v43, %v16908_v20  ;;  %v16914_v43 = vld [vmem:[#allocation40_spill] sm:$0xff] }
 0xb7c   : > { %v13137_v13 = vpop.f32.mrf.mxu2  ;;  %v13139_v48 = vpop.f32.mrf.mxu3 }
 0xb7d   : > { %16906 = vst [vmem:[#allocation97_spill] sm:$0xff] %v13133_v0  ;;  %v13141_v37 = vpack.c.bf16 %v4043_v36, %v4041_v56 }
 0xb7e   : > { %16909 = vst [vmem:[#allocation29_spill] sm:$0xff] %v13139_v48  ;;  %v3910_v35 = vpop.f32.mrf.mxu0  ;;  %v13143_v24 = vpop.f32.mrf.mxu1 }
 0xb7f   : > { %16910 = vst [vmem:[#allocation92_spill] sm:$0xff] %v13141_v37  ;;  %v3911_v58 = vadd.f32 %v3910_v35, %v12923_v47  ;;  %v16918_v47 = vmax.f32 %v16917_v45, 0.0  ;;  %v16924_v45 = vld [vmem:[#allocation49_spill] sm:$0xff] }
 0xb80   : > { %16911 = vst [vmem:[#allocation158_spill] sm:$0xff] %v13143_v24  ;;  %v16934_v24 = vld [vmem:[#allocation27_spill] sm:$0xff] }
 0xb81   : > { %4753 = vmatmul.bf16.gmra.mxu3 %v16809_v16  ;;  %4802 = vmatmul.bf16.gmra.mxu0 %v16810_v2  ;;  %v3981_v62 = vmul.f32 2.0, %v3911_v58 }
 0xb83   : > { %v4045_v56 = vsub.f32 %v3981_v62, %v16916_v51 }
 0xb84   : > { %v13148_v23 = vpop.f32.mrf.mxu2  ;;  %v13150_v55 = vpop.f32.mrf.mxu3 }
 0xb85   : > { %16912 = vst [vmem:[#allocation146_spill] sm:$0xff] %v13150_v55 }
 0xb86   : > { %v3912_v42 = vpop.f32.mrf.mxu0  ;;  %v13152_v29 = vpop.f32.mrf.mxu1 }
 0xb87   : > { %16913 = vst [vmem:[#allocation99_spill] sm:$0xff] %v13152_v29  ;;  %v3913_v36 = vadd.f32 %v3912_v42, %v12941_v41 }
 0xb89   : > { %v3983_v40 = vmul.f32 2.0, %v3913_v36  ;;  %4659 = vmatmul.bf16.gmra.mxu2 %v16914_v43  ;;  %4886 = vmatmul.bf16.gmra.mxu1 %v16729_v17 }
 0xb8b   : > { %v4047_v20 = vsub.f32 %v3983_v40, %v16918_v47  ;;  %v16925_v47 = vld [vmem:[#allocation24_spill] sm:$0xff] }
 0xb8c   : > { %v13161_v35 = vpop.f32.mrf.mxu2  ;;  %v13163_v37 = vpop.f32.mrf.mxu3 }
 0xb8d   : > { %16919 = vst [vmem:[#allocation28_spill] sm:$0xff] %v13163_v37  ;;  %v13165_v0 = vpack.c.bf16 %v4047_v20, %v4045_v56  ;;  %v16926_v20 = vmax.f32 %v16925_v47, 0.0 }
 0xb8e   : > { %v3915_v58 = vpop.f32.mrf.mxu0  ;;  %v13167_v29 = vpop.f32.mrf.mxu1 }
 0xb8f   : > { %16920 = vst [vmem:[#allocation110_spill] sm:$0xff] %v13165_v0  ;;  %v3916_v41 = vadd.f32 %v3915_v58, %v12951_v10 }
 0xb90   : > { %16921 = vst [vmem:[#allocation104_spill] sm:$0xff] %v13167_v29  ;;  %v16927_v29 = vld [vmem:[#allocation90_spill] sm:$0xff] }
 0xb91   : > { %4758 = vmatmul.bf16.gmra.mxu3 %v16823_v7  ;;  %4807 = vmatmul.bf16.gmra.mxu0 %v16824_v22  ;;  %v3985_v33 = vmul.f32 2.0, %v3916_v41  ;;  %v16928_v10 = vmax.f32 %v16927_v29, 0.0 }
 0xb93   : > { %v4049_v0 = vsub.f32 %v3985_v33, %v16926_v20  ;;  %v9415_v33 = vld [vmem:[#allocation10 + $0x2cc] sm:$0xf] }
 0xb94   : > { %v13172_v42 = vpop.f32.mrf.mxu2  ;;  %v13174_v62 = vpop.f32.mrf.mxu3 }
 0xb95   : > { %16922 = vst [vmem:[#allocation157_spill] sm:$0xff] %v13174_v62 }
 0xb96   : > { %v3917_v36 = vpop.f32.mrf.mxu0  ;;  %v13176_v40 = vpop.f32.mrf.mxu1 }
 0xb97   : > { %16923 = vst [vmem:[#allocation147_spill] sm:$0xff] %v13176_v40  ;;  %v3918_v51 = vadd.f32 %v3917_v36, %v12969_v3  ;;  %v9419_v3 = vld [vmem:[#allocation10 + $0x2ec] sm:$0xf]  ;;  %v8588_v36 = vld [vmem:[#allocation10 + $0x2f8] sm:$0xf0] }
 0xb99   : > { %v3987_v56 = vmul.f32 2.0, %v3918_v51  ;;  %4664 = vmatmul.bf16.gmra.mxu2 %v16924_v45  ;;  %4891 = vmatmul.bf16.gmra.mxu1 %v16736_v26  ;;  %v8591_v51 = vor.u32 %v9419_v3, %v8588_v36  ;;  %v9411_v36 = vld [vmem:[#allocation10 + $0x2ac] sm:$0xf] }
 0xb9b   : > { %v4051_v58 = vsub.f32 %v3987_v56, %v16928_v10  ;;  %5051 = vmatpush.bf16.msra.mxu3 %v8591_v51  ;;  %v8572_v56 = vld [vmem:[#allocation10 + $0x2d8] sm:$0xf0] }
 0xb9c   : > { %v13185_v37 = vpop.f32.mrf.mxu2  ;;  %v13187_v62 = vpop.f32.mrf.mxu3 }
 0xb9d   : > { %16929 = vst [vmem:[#allocation101_spill] sm:$0xff] %v13187_v62  ;;  %v13189_v55 = vpack.c.bf16 %v4051_v58, %v4049_v0  ;;  %v8575_v0 = vor.u32 %v9415_v33, %v8572_v56  ;;  %v16937_v33 = vld [vmem:[#allocation91_spill] sm:$0xff] }
 0xb9e   : > { %v3920_v41 = vpop.f32.mrf.mxu0  ;;  %v13191_v40 = vpop.f32.mrf.mxu1  ;;  %v16938_v56 = vmax.f32 %v16937_v33, 0.0 }
 0xb9f   : > { %16930 = vst [vmem:[#allocation103_spill] sm:$0xff] %v13189_v55  ;;  %v3921_v29 = vadd.f32 %v3920_v41, %v12979_v8  ;;  %5052 = vmatpush.bf16.msra.mxu3 %v8575_v0  ;;  %v16935_v8 = vld [vmem:[#allocation21_spill] sm:$0xff]  ;;  %v8540_v0 = vld [vmem:[#allocation10 + $0x298] sm:$0xf0] }
 0xba0   : > { %16931 = vst [vmem:[#allocation148_spill] sm:$0xff] %v13191_v40  ;;  %v8556_v40 = vld [vmem:[#allocation10 + $0x2b8] sm:$0xf0]  ;;  %v16936_v41 = vmax.f32 %v16935_v8, 0.0 }
 0xba1   : > { %4763 = vmatmul.bf16.gmra.mxu3 %v16838_v28  ;;  %4812 = vmatmul.bf16.gmra.mxu0 %v16839_v59  ;;  %v3989_v55 = vmul.f32 2.0, %v3921_v29  ;;  %v8559_v62 = vor.u32 %v9411_v36, %v8556_v40 }
 0xba3   : > { %5053 = vmatpush.bf16.msra.mxu3 %v8559_v62  ;;  %v9403_v62 = vld [vmem:[#allocation10 + $0x26c] sm:$0xf] }
 0xba4   : > { %v13196_v47 = vpop.f32.mrf.mxu2  ;;  %v13198_v20 = vpop.f32.mrf.mxu3  ;;  %v8527_v8 = vor.u32 %v9403_v62, %v8524_v21  ;;  %v9453_v62 = vld [vmem:[#allocation10 + $0x3f4] sm:$0xf0] }
 0xba5   : > { %16932 = vst [vmem:[#allocation112_spill] sm:$0xff] %v13198_v20  ;;  %v4053_v20 = vsub.f32 %v3989_v55, %v16936_v41  ;;  %v8508_v41 = vld [vmem:[#allocation10 + $0x258] sm:$0xf0] }
 0xba6   : > { %v3922_v10 = vpop.f32.mrf.mxu0  ;;  %v13200_v58 = vpop.f32.mrf.mxu1 }
 0xba7   : > { %16933 = vst [vmem:[#allocation133_spill] sm:$0xff] %v13200_v58  ;;  %v3923_v3 = vadd.f32 %v3922_v10, %v12997_v15  ;;  %v9407_v58 = vld [vmem:[#allocation10 + $0x28c] sm:$0xf] }
 0xba8   : > { %v8543_v10 = vor.u32 %v9407_v58, %v8540_v0 }
 0xba9   : > { %v3991_v51 = vmul.f32 2.0, %v3923_v3  ;;  %4669 = vmatmul.bf16.gmra.mxu2 %v16934_v24  ;;  %4896 = vmatmul.bf16.gmra.mxu1 %v16743_v53 }
 0xbaa   : > { %5054 = vmatpush.bf16.msra.mxu3 %v8543_v10  ;;  %v8714_v10 = vld [vmem:[#allocation10 + $0x3e8] sm:$0xf] }
 0xbab   : > { %v4055_v48 = vsub.f32 %v3991_v51, %v16938_v56  ;;  %v9399_v51 = vld [vmem:[#allocation10 + $0x24c] sm:$0xf] }
 0xbac   : > { %v13209_v29 = vpop.f32.mrf.mxu2  ;;  %v13211_v15 = vpop.f32.mrf.mxu3 }
 0xbad   : > { %16939 = vst [vmem:[#allocation156_spill] sm:$0xff] %v13211_v15  ;;  %v13213_v40 = vpack.c.bf16 %v4055_v48, %v4053_v20  ;;  %v8511_v20 = vor.u32 %v9399_v51, %v8508_v41  ;;  %v16946_v51 = vld [vmem:[#allocation94_spill] sm:$0xff] }
 0xbae   : > { %v3925_v3 = vpop.f32.mrf.mxu0  ;;  %v13215_v36 = vpop.f32.mrf.mxu1  ;;  %5055 = vmatpush.bf16.msra.mxu3 %v8527_v8  ;;  %v16945_v8 = vld [vmem:[#allocation39_spill] sm:$0xff] }
 0xbaf   : > { %16940 = vst [vmem:[#allocation152_spill] sm:$0xff] %v13213_v40  ;;  %v3926_v55 = vadd.f32 %v3925_v3, %v13007_v50  ;;  %v9395_v40 = vld [vmem:[#allocation10 + $0x22c] sm:$0xf]  ;;  %v8492_v50 = vld [vmem:[#allocation10 + $0x238] sm:$0xf0] }
 0xbb0   : > { %16941 = vst [vmem:[#allocation105_spill] sm:$0xff] %v13215_v36  ;;  %v8715_v36 = vor.u32 %v9453_v62, %v8714_v10  ;;  %v8495_v15 = vor.u32 %v9395_v40, %v8492_v50  ;;  %v8476_v62 = vld [vmem:[#allocation10 + $0x218] sm:$0xf0] }
 0xbb1   : > { %4768 = vmatmul.bf16.gmra.mxu3 %v16853_v63  ;;  %4817 = vmatmul.bf16.gmra.mxu0 %v16854_v4  ;;  %v3993_v58 = vmul.f32 2.0, %v3926_v55  ;;  %v16947_v55 = vmax.f32 %v16946_v51, 0.0  ;;  %v8479_v40 = vor.u32 %v9391_v32, %v8476_v62  ;;  %v9441_v51 = vld [vmem:[#allocation10 + $0x394] sm:$0xf0]  ;;  %v8650_v62 = vld [vmem:[#allocation10 + $0x368] sm:$0xf] }
 0xbb2   : > { %5056 = vmatpush.bf16.msra.mxu3 %v8511_v20  ;;  %4962 = vmatpush.bf16.msra.mxu2 %v8715_v36 }
 0xbb3   : > { %v4057_v41 = vsub.f32 %v3993_v58, %v16947_v55  ;;  %v9445_v58 = vld [vmem:[#allocation10 + $0x3b4] sm:$0xf0] }
 0xbb4   : > { %v13220_v33 = vpop.f32.mrf.mxu2  ;;  %v13222_v48 = vpop.f32.mrf.mxu3 }
 0xbb5   : > { %16942 = vst [vmem:[#allocation83_spill] sm:$0xff] %v13220_v33 }
 0xbb6   : > { %16943 = vst [vmem:[#allocation44_spill] sm:$0xff] %v13222_v48  ;;  %v3927_v56 = vpop.f32.mrf.mxu0  ;;  %v13224_v0 = vpop.f32.mrf.mxu1  ;;  %v16948_v48 = vld [vmem:[#allocation35_spill] sm:$0xff]  ;;  %5057 = vmatpush.bf16.msra.mxu3 %v8495_v15 }
 0xbb7   : > { %16944 = vst [vmem:[#allocation67_spill] sm:$0xff] %v13224_v0  ;;  %v3928_v21 = vadd.f32 %v3927_v56, %v13025_v44  ;;  %v16949_v0 = vmax.f32 %v16948_v48, 0.0  ;;  %v8698_v44 = vld [vmem:[#allocation10 + $0x3c8] sm:$0xf]  ;;  %v9449_v56 = vld [vmem:[#allocation10 + $0x3d4] sm:$0xf0] }
 0xbb8   : > { %v8682_v48 = vld [vmem:[#allocation10 + $0x3a8] sm:$0xf] }
 0xbb9   : > { %v3995_v3 = vmul.f32 2.0, %v3928_v21  ;;  %4674 = vmatmul.bf16.gmra.mxu2 %v16945_v8  ;;  %4901 = vmatmul.bf16.gmra.mxu1 %v16751_v57  ;;  %v8699_v21 = vor.u32 %v9449_v56, %v8698_v44  ;;  %v8683_v15 = vor.u32 %v9445_v58, %v8682_v48 }
 0xbba   : > { %5058 = vmatpush.bf16.msra.mxu3 %v8479_v40  ;;  %v9437_v40 = vld [vmem:[#allocation10 + $0x374] sm:$0xf0] }
 0xbbb   : > { %v4059_v20 = vsub.f32 %v3995_v3, %v16949_v0  ;;  %4963 = vmatpush.bf16.msra.mxu2 %v8699_v21  ;;  %v8666_v3 = vld [vmem:[#allocation10 + $0x388] sm:$0xf]  ;;  %v8651_v48 = vor.u32 %v9437_v40, %v8650_v62 }
 0xbbc   : > { %v13233_v54 = vpop.f32.mrf.mxu2  ;;  %v13235_v10 = vpop.f32.mrf.mxu3 }
 0xbbd   : > { %16950 = vst [vmem:[#allocation130_spill] sm:$0xff] %v13235_v10  ;;  %v13237_v33 = vpack.c.bf16 %v4059_v20, %v4057_v41  ;;  %v8667_v41 = vor.u32 %v9441_v51, %v8666_v3  ;;  %v16958_v3 = vld [vmem:[#allocation36_spill] sm:$0xff] }
 0xbbe   : > { %v3930_v36 = vpop.f32.mrf.mxu0  ;;  %v13239_v50 = vpop.f32.mrf.mxu1  ;;  %v16959_v51 = vmax.f32 %v16958_v3, 0.0 }
 0xbbf   : > { %16951 = vst [vmem:[#allocation155_spill] sm:$0xff] %v13237_v33  ;;  %4964 = vmatpush.bf16.msra.mxu2 %v8683_v15  ;;  %v3931_v0 = vadd.f32 %v3930_v36, %v13035_v1  ;;  %v16955_v15 = vld [vmem:[#allocation47_spill] sm:$0xff] }
 0xbc0   : > { %16952 = vst [vmem:[#allocation151_spill] sm:$0xff] %v13239_v50  ;;  %v16956_v1 = vld [vmem:[#allocation63_spill] sm:$0xff]  ;;  %v9429_v50 = vld [vmem:[#allocation10 + $0x334] sm:$0xf0] }
 0xbc1   : > { %4773 = vmatmul.bf16.gmra.mxu3 %v16867_v5  ;;  %4822 = vmatmul.bf16.gmra.mxu0 %v16868_v46  ;;  %v3997_v56 = vmul.f32 2.0, %v3931_v0  ;;  %v16957_v36 = vmax.f32 %v16956_v1, 0.0 }
 0xbc3   : > { %4965 = vmatpush.bf16.msra.mxu2 %v8667_v41  ;;  %v4061_v33 = vsub.f32 %v3997_v56, %v16957_v36  ;;  %v9433_v41 = vld [vmem:[#allocation10 + $0x354] sm:$0xf0] }
 0xbc4   : > { %v13244_v55 = vpop.f32.mrf.mxu2  ;;  %v13246_v32 = vpop.f32.mrf.mxu3  ;;  %v9425_v36 = vld [vmem:[#allocation10 + $0x314] sm:$0xf0] }
 0xbc5   : > { %16953 = vst [vmem:[#allocation107_spill] sm:$0xff] %v13246_v32 }
 0xbc6   : > { %v3932_v20 = vpop.f32.mrf.mxu0  ;;  %v13248_v44 = vpop.f32.mrf.mxu1 }
 0xbc7   : > { %16954 = vst [vmem:[#allocation109_spill] sm:$0xff] %v13248_v44  ;;  %v3933_v21 = vadd.f32 %v3932_v20, %v13053_v52  ;;  %4966 = vmatpush.bf16.msra.mxu2 %v8651_v48  ;;  %v8634_v44 = vld [vmem:[#allocation10 + $0x348] sm:$0xf] }
 0xbc8   : > { %v8635_v20 = vor.u32 %v9433_v41, %v8634_v44  ;;  %v8618_v48 = vld [vmem:[#allocation10 + $0x328] sm:$0xf] }
 0xbc9   : > { %v3999_v58 = vmul.f32 2.0, %v3933_v21  ;;  %4679 = vmatmul.bf16.gmra.mxu2 %v16955_v15  ;;  %4906 = vmatmul.bf16.gmra.mxu1 %v16759_v11  ;;  %v8619_v1 = vor.u32 %v9429_v50, %v8618_v48  ;;  %v16965_v48 = vld [vmem:[#allocation37_spill] sm:$0xff] }
 0xbcb   : > { %v4063_v32 = vsub.f32 %v3999_v58, %v16959_v51  ;;  %4967 = vmatpush.bf16.msra.mxu2 %v8635_v20  ;;  %v8602_v58 = vld [vmem:[#allocation10 + $0x308] sm:$0xf] }
 0xbcc   : > { %v13257_v0 = vpop.f32.mrf.mxu2  ;;  %v13259_v52 = vpop.f32.mrf.mxu3 }
 0xbcd   : > { %16960 = vst [vmem:[#allocation70_spill] sm:$0xff] %v13259_v52  ;;  %v13261_v62 = vpack.c.bf16 %v4063_v32, %v4061_v33  ;;  %v8603_v32 = vor.u32 %v9425_v36, %v8602_v58 }
 0xbce   : > { %v3935_v21 = vpop.f32.mrf.mxu0  ;;  %v13263_v40 = vpop.f32.mrf.mxu1 }
 0xbcf   : > { %16961 = vst [vmem:[#allocation126_spill] sm:$0xff] %v13261_v62  ;;  %4968 = vmatpush.bf16.msra.mxu2 %v8619_v1  ;;  %v3936_v56 = vadd.f32 %v3935_v21, %v13063_v31  ;;  %v16966_v31 = vld [vmem:[#allocation33_spill] sm:$0xff]  ;;  %v16968_v62 = vld [vmem:[#allocation43_spill] sm:$0xff] }
 0xbd0   : > { %16962 = vst [vmem:[#allocation154_spill] sm:$0xff] %v13263_v40  ;;  %v16967_v21 = vmax.f32 %v16966_v31, 0.0  ;;  %v16969_v40 = vmax.f32 %v16968_v62, 0.0 }
 0xbd1   : > { %4778 = vmatmul.bf16.gmra.mxu3 %v16885_v34  ;;  %4827 = vmatmul.bf16.gmra.mxu0 %v16886_v30  ;;  %v4001_v41 = vmul.f32 2.0, %v3936_v56 }
 0xbd3   : > { %4969 = vmatpush.bf16.msra.mxu2 %v8603_v32  ;;  %v4065_v1 = vsub.f32 %v4001_v41, %v16967_v21  ;;  %v16975_v41 = vld [vmem:[#allocation38_spill] sm:$0xff] }
 0xbd4   : > { %v13268_v3 = vpop.f32.mrf.mxu2  ;;  %v13270_v33 = vpop.f32.mrf.mxu3 }
 0xbd5   : > { %16963 = vst [vmem:[#allocation150_spill] sm:$0xff] %v13270_v33 }
 0xbd6   : > { %v3937_v44 = vpop.f32.mrf.mxu0  ;;  %v13272_v51 = vpop.f32.mrf.mxu1 }
 0xbd7   : > { %16964 = vst [vmem:[#allocation111_spill] sm:$0xff] %v13272_v51  ;;  %v3938_v50 = vadd.f32 %v3937_v44, %v13081_v61 }
 0xbd9   : > { %v4003_v20 = vmul.f32 2.0, %v3938_v50  ;;  %4684 = vmatmul.bf16.gmra.mxu2 %v16965_v48  ;;  %4911 = vmatmul.bf16.gmra.mxu1 %v16767_v25 }
 0xbdb   : > { %v4067_v52 = vsub.f32 %v4003_v20, %v16969_v40 }
 0xbdc   : > { %v13281_v33 = vpop.f32.mrf.mxu2  ;;  %v13283_v58 = vpop.f32.mrf.mxu3 }
 0xbdd   : > { %16970 = vst [vmem:[#allocation108_spill] sm:$0xff] %v13283_v58  ;;  %v13285_v36 = vpack.c.bf16 %v4067_v52, %v4065_v1 }
 0xbde   : > { %v13287_v56 = vpop.f32.mrf.mxu1  ;;  %v13289_v61 = vpop.f32.mrf.mxu0 }
 0xbdf   : > { %16971 = vst [vmem:[#allocation46_spill] sm:$0xff] %v13285_v36 }
 0xbe0   : > { %16972 = vst [vmem:[#allocation119_spill] sm:$0xff] %v13287_v56 }
 0xbe1   : > { %4832 = vmatmul.bf16.gmra.mxu0 %v16902_v12  ;;  %5059 = vmatmul.bf16.vlgmr.msra.gmra.mxu3 %v16903_v27 }
 0xbe4   : > { %v13293_v32 = vpop.f32.mrf.mxu2  ;;  %v13295_v44 = vpop.f32.mrf.mxu3 }
 0xbe5   : > { %16973 = vst [vmem:[#allocation121_spill] sm:$0xff] %v13295_v44 }
 0xbe6   : > { %v13297_v62 = vpop.f32.mrf.mxu1  ;;  %v13299_v40 = vpop.f32.mrf.mxu0 }
 0xbe7   : > { %16974 = vst [vmem:[#allocation61_spill] sm:$0xff] %v13297_v62 }
 0xbe9   : > { %4689 = vmatmul.bf16.gmra.mxu2 %v16975_v41  ;;  %4916 = vmatmul.bf16.gmra.mxu1 %v16777_v14 }
 0xbec   : > { %v13303_v52 = vpop.f32.mrf.mxu2  ;;  %v13305_v50 = vpop.f32.mrf.mxu3 }
 0xbed   : > { %16976 = vst [vmem:[#allocation22_spill] sm:$0xff] %v13305_v50 }
 0xbee   : > { %v13307_v20 = vpop.f32.mrf.mxu1  ;;  %v13309_v31 = vpop.f32.mrf.mxu0 }
 0xbef   : > { %16977 = vst [vmem:[#allocation153_spill] sm:$0xff] %v13307_v20 }
 0xbf1   : > { %4837 = vmatmul.bf16.gmra.mxu0 %v16914_v43  ;;  %5064 = vmatmul.bf16.gmra.mxu3 %v16729_v17 }
 0xbf4   : > { %v13313_v27 = vpop.f32.mrf.mxu2  ;;  %v13315_v21 = vpop.f32.mrf.mxu3 }
 0xbf5   : > { %16978 = vst [vmem:[#allocation149_spill] sm:$0xff] %v13315_v21 }
 0xbf6   : > { %v13317_v1 = vpop.f32.mrf.mxu0  ;;  %v13319_v36 = vpop.f32.mrf.mxu1 }
 0xbf7   : > { %16979 = vst [vmem:[#allocation62_spill] sm:$0xff] %v13317_v1 }
 0xbf8   : > { %16980 = vst [vmem:[#allocation81_spill] sm:$0xff] %v13319_v36 }
 0xbf9   : > { %4921 = vmatmul.bf16.gmra.mxu1 %v12622_v9  ;;  %4970 = vmatmul.bf16.vlgmr.msra.gmra.mxu2 %v12476_v19 }
 0xbfc   : > { %v13323_v50 = vpop.f32.mrf.mxu2  ;;  %v13325_v20 = vpop.f32.mrf.mxu3 }
 0xbfd   : > { %16981 = vst [vmem:[#allocation50_spill] sm:$0xff] %v13325_v20 }
 0xbfe   : > { %v13327_v62 = vpop.f32.mrf.mxu0  ;;  %v13329_v44 = vpop.f32.mrf.mxu1 }
 0xbff   : > { %16982 = vst [vmem:[#allocation98_spill] sm:$0xff] %v13327_v62 }
 0xc00   : > { %16983 = vst [vmem:[#allocation95_spill] sm:$0xff] %v13329_v44 }
 0xc01   : > { %4842 = vmatmul.bf16.gmra.mxu0 %v16924_v45  ;;  %5069 = vmatmul.bf16.gmra.mxu3 %v16736_v26 }
 0xc04   : > { %v13333_v17 = vpop.f32.mrf.mxu2  ;;  %v13335_v21 = vpop.f32.mrf.mxu3 }
 0xc05   : > { %16984 = vst [vmem:[#allocation51_spill] sm:$0xff] %v13333_v17  ;;  %v8684_v17 = vld [vmem:[#allocation10 + $0x3b8] sm:$0xf0] }
 0xc06   : > { %16985 = vst [vmem:[#allocation138_spill] sm:$0xff] %v13335_v21  ;;  %v13337_v36 = vpop.f32.mrf.mxu0  ;;  %v13339_v56 = vpop.f32.mrf.mxu1 }
 0xc07   : > { %16986 = vst [vmem:[#allocation82_spill] sm:$0xff] %v13337_v36 }
 0xc08   : > { %16987 = vst [vmem:[#allocation66_spill] sm:$0xff] %v13339_v56 }
 0xc09   : > { %4926 = vmatmul.bf16.gmra.mxu1 %v12617_v18  ;;  %4975 = vmatmul.bf16.gmra.mxu2 %v12493_v39 }
 0xc0c   : > { %v13343_v20 = vpop.f32.mrf.mxu2  ;;  %v13345_v58 = vpop.f32.mrf.mxu3 }
 0xc0d   : > { %16988 = vst [vmem:[#allocation40_spill] sm:$0xff] %v13343_v20 }
 0xc0e   : > { %16989 = vst [vmem:[#allocation79_spill] sm:$0xff] %v13345_v58  ;;  %v13347_v44 = vpop.f32.mrf.mxu0  ;;  %v13349_v51 = vpop.f32.mrf.mxu1 }
 0xc0f   : > { %16990 = vst [vmem:[#allocation30_spill] sm:$0xff] %v13347_v44 }
 0xc10   : > { %16991 = vst [vmem:[#allocation49_spill] sm:$0xff] %v13349_v51 }
 0xc11   : > { %4847 = vmatmul.bf16.gmra.mxu0 %v16934_v24  ;;  %5074 = vmatmul.bf16.gmra.mxu3 %v16743_v53  ;;  %v9451_v53 = vld [vmem:[#allocation10 + $0x3ec] sm:$0xf] }
 0xc14   : > { %v13353_v26 = vpop.f32.mrf.mxu2  ;;  %v13355_v21 = vpop.f32.mrf.mxu3 }
 0xc15   : > { %16992 = vst [vmem:[#allocation24_spill] sm:$0xff] %v13353_v26  ;;  %v8716_v26 = vld [vmem:[#allocation10 + $0x3f8] sm:$0xf0] }
 0xc16   : > { %16993 = vst [vmem:[#allocation90_spill] sm:$0xff] %v13355_v21  ;;  %v13357_v56 = vpop.f32.mrf.mxu0  ;;  %v13359_v10 = vpop.f32.mrf.mxu1  ;;  %v8719_v20 = vor.u32 %v9451_v53, %v8716_v26  ;;  %v8700_v21 = vld [vmem:[#allocation10 + $0x3d8] sm:$0xf0] }
 0xc17   : > { %16994 = vst [vmem:[#allocation27_spill] sm:$0xff] %v13357_v56 }
 0xc18   : > { %16995 = vst [vmem:[#allocation21_spill] sm:$0xff] %v13359_v10  ;;  %5140 = vmatpush.bf16.msra.mxu0 %v8719_v20  ;;  %v9447_v10 = vld [vmem:[#allocation10 + $0x3cc] sm:$0xf]  ;;  %v8668_v20 = vld [vmem:[#allocation10 + $0x398] sm:$0xf0] }
 0xc19   : > { %4931 = vmatmul.bf16.gmra.mxu1 %v16809_v16  ;;  %4980 = vmatmul.bf16.gmra.mxu2 %v16810_v2 }
 0xc1c   : > { %v13363_v58 = vpop.f32.mrf.mxu2  ;;  %v13365_v44 = vpop.f32.mrf.mxu3 }
 0xc1d   : > { %16996 = vst [vmem:[#allocation91_spill] sm:$0xff] %v13363_v58  ;;  %v8703_v58 = vor.u32 %v9447_v10, %v8700_v21 }
 0xc1e   : > { %16997 = vst [vmem:[#allocation39_spill] sm:$0xff] %v13365_v44  ;;  %v13367_v51 = vpop.f32.mrf.mxu0  ;;  %v13369_v36 = vpop.f32.mrf.mxu1 }
 0xc1f   : > { %16998 = vst [vmem:[#allocation94_spill] sm:$0xff] %v13367_v51  ;;  %5141 = vmatpush.bf16.msra.mxu0 %v8703_v58  ;;  %v9435_v58 = vld [vmem:[#allocation10 + $0x36c] sm:$0xf] }
 0xc20   : > { %16999 = vst [vmem:[#allocation35_spill] sm:$0xff] %v13369_v36  ;;  %v9443_v36 = vld [vmem:[#allocation10 + $0x3ac] sm:$0xf] }
 0xc21   : > { %4852 = vmatmul.bf16.gmra.mxu0 %v16945_v8  ;;  %5079 = vmatmul.bf16.gmra.mxu3 %v16751_v57  ;;  %v8687_v26 = vor.u32 %v9443_v36, %v8684_v17  ;;  %v9439_v57 = vld [vmem:[#allocation10 + $0x38c] sm:$0xf] }
 0xc22   : > { %v8671_v10 = vor.u32 %v9439_v57, %v8668_v20  ;;  %v9431_v17 = vld [vmem:[#allocation10 + $0x34c] sm:$0xf] }
 0xc23   : > { %5142 = vmatpush.bf16.msra.mxu0 %v8687_v26  ;;  %v8636_v26 = vld [vmem:[#allocation10 + $0x358] sm:$0xf0] }
 0xc24   : > { %v13373_v56 = vpop.f32.mrf.mxu2  ;;  %v13375_v62 = vpop.f32.mrf.mxu3  ;;  %v8639_v57 = vor.u32 %v9431_v17, %v8636_v26  ;;  %v8818_v17 = vld [vmem:[#allocation10 + $0xc0] sm:$0xf] }
 0xc25   : > { %17000 = vst [vmem:[#allocation47_spill] sm:$0xff] %v13373_v56 }
 0xc26   : > { %17001 = vst [vmem:[#allocation63_spill] sm:$0xff] %v13375_v62  ;;  %v13377_v44 = vpop.f32.mrf.mxu0  ;;  %v13379_v51 = vpop.f32.mrf.mxu1 }
 0xc27   : > { %17002 = vst [vmem:[#allocation36_spill] sm:$0xff] %v13377_v44  ;;  %5143 = vmatpush.bf16.msra.mxu0 %v8671_v10  ;;  %v9427_v10 = vld [vmem:[#allocation10 + $0x32c] sm:$0xf] }
 0xc28   : > { %17003 = vst [vmem:[#allocation37_spill] sm:$0xff] %v13379_v51  ;;  %v8652_v51 = vld [vmem:[#allocation10 + $0x378] sm:$0xf0] }
 0xc29   : > { %4936 = vmatmul.bf16.gmra.mxu1 %v16823_v7  ;;  %4985 = vmatmul.bf16.gmra.mxu2 %v16824_v22  ;;  %v8655_v36 = vor.u32 %v9435_v58, %v8652_v51  ;;  %v8834_v51 = vld [vmem:[#allocation10 + $0xe0] sm:$0xf] }
 0xc2b   : > { %5144 = vmatpush.bf16.msra.mxu0 %v8655_v36  ;;  %v9423_v36 = vld [vmem:[#allocation10 + $0x30c] sm:$0xf] }
 0xc2c   : > { %v13383_v53 = vpop.f32.mrf.mxu2  ;;  %v13385_v56 = vpop.f32.mrf.mxu3 }
 0xc2d   : > { %17004 = vst [vmem:[#allocation33_spill] sm:$0xff] %v13383_v53 }
 0xc2e   : > { %17005 = vst [vmem:[#allocation43_spill] sm:$0xff] %v13385_v56  ;;  %v13387_v21 = vpop.f32.mrf.mxu0  ;;  %v13389_v62 = vpop.f32.mrf.mxu1 }
 0xc2f   : > { %17006 = vst [vmem:[#allocation38_spill] sm:$0xff] %v13387_v21  ;;  %5145 = vmatpush.bf16.msra.mxu0 %v8639_v57  ;;  %v9356_v21 = vld [vmem:[#allocation10 + $0xec] sm:$0xf0] }
 0xc30   : > { %17007 = vst [vmem:[#allocation159_spill] sm:$0xff] %v13389_v62  ;;  %v8620_v62 = vld [vmem:[#allocation10 + $0x338] sm:$0xf0] }
 0xc31   : > { %4857 = vmatmul.bf16.gmra.mxu0 %v16955_v15  ;;  %5084 = vmatmul.bf16.gmra.mxu3 %v16759_v11  ;;  %v8623_v58 = vor.u32 %v9427_v10, %v8620_v62  ;;  %v8835_v11 = vor.u32 %v9356_v21, %v8834_v51  ;;  %v8802_v10 = vld [vmem:[#allocation10 + $0xa0] sm:$0xf]  ;;  %v9348_v21 = vld [vmem:[#allocation10 + $0xac] sm:$0xf0] }
 0xc32   : > { %v8803_v51 = vor.u32 %v9348_v21, %v8802_v10  ;;  %v9336_v21 = vld [vmem:[#allocation10 + $0x4c] sm:$0xf0] }
 0xc33   : > { %5146 = vmatpush.bf16.msra.mxu0 %v8623_v58  ;;  %5549 = vmatpush.bf16.msrb.mxu1 %v8835_v11  ;;  %v8786_v58 = vld [vmem:[#allocation10 + $0x80] sm:$0xf]  ;;  %v9344_v11 = vld [vmem:[#allocation10 + $0x8c] sm:$0xf0] }
 0xc34   : > { %v13393_v44 = vpop.f32.mrf.mxu2  ;;  %v13395_v53 = vpop.f32.mrf.mxu3 }
 0xc35   : > { %17008 = vst [vmem:[#allocation160_spill] sm:$0xff] %v13393_v44 }
 0xc36   : > { %17009 = vst [vmem:[#allocation161_spill] sm:$0xff] %v13395_v53  ;;  %v13397_v20 = vpop.f32.mrf.mxu0  ;;  %v13399_v56 = vpop.f32.mrf.mxu1  ;;  %v8604_v53 = vld [vmem:[#allocation10 + $0x318] sm:$0xf0] }
 0xc37   : > { %17010 = vst [vmem:[#allocation162_spill] sm:$0xff] %v13397_v20  ;;  %v8607_v57 = vor.u32 %v9423_v36, %v8604_v53 }
 0xc38   : > { %17011 = vst [vmem:[#allocation163_spill] sm:$0xff] %v13399_v56  ;;  %v9352_v56 = vld [vmem:[#allocation10 + $0xcc] sm:$0xf0] }
 0xc39   : > { %4941 = vmatmul.bf16.gmra.mxu1 %v16838_v28  ;;  %4990 = vmatmul.bf16.gmra.mxu2 %v16839_v59  ;;  %v8819_v44 = vor.u32 %v9352_v56, %v8818_v17  ;;  %v8787_v56 = vor.u32 %v9344_v11, %v8786_v58 }
 0xc3a   : > { %5147 = vmatpush.bf16.msra.mxu0 %v8607_v57  ;;  %v9340_v57 = vld [vmem:[#allocation10 + $0x6c] sm:$0xf0] }
 0xc3b   : > { %5550 = vmatpush.bf16.msrb.mxu1 %v8819_v44  ;;  %v8770_v44 = vld [vmem:[#allocation10 + $0x60] sm:$0xf] }
 0xc3c   : > { %v13403_v26 = vpop.f32.mrf.mxu2  ;;  %v13405_v20 = vpop.f32.mrf.mxu3  ;;  %v8771_v10 = vor.u32 %v9340_v57, %v8770_v44  ;;  %v8722_v57 = vld [vmem:[#allocation10] sm:$0xf] }
 0xc3d   : > { %17012 = vst [vmem:[#allocation164_spill] sm:$0xff] %v13405_v20 }
 0xc3e   : > { %v13407_v1 = vpop.f32.mrf.mxu0  ;;  %v13409_v62 = vpop.f32.mrf.mxu1 }
 0xc3f   : > { %17013 = vst [vmem:[#allocation165_spill] sm:$0xff] %v13409_v62  ;;  %5551 = vmatpush.bf16.msrb.mxu1 %v8803_v51 }
 0xc41   : > { %4862 = vmatmul.bf16.gmra.mxu0 %v16965_v48  ;;  %5089 = vmatmul.bf16.gmra.mxu3 %v16767_v25  ;;  %v8754_v25 = vld [vmem:[#allocation10 + $0x40] sm:$0xf] }
 0xc42   : > { %v8755_v58 = vor.u32 %v9336_v21, %v8754_v25 }
 0xc43   : > { %5552 = vmatpush.bf16.msrb.mxu1 %v8787_v56  ;;  %v8738_v56 = vld [vmem:[#allocation10 + $0x20] sm:$0xf] }
 0xc44   : > { %v13413_v20 = vpop.f32.mrf.mxu2  ;;  %v13415_v53 = vpop.f32.mrf.mxu3 }
 0xc45   : > { %17014 = vst [vmem:[#allocation166_spill] sm:$0xff] %v13415_v53 }
 0xc46   : > { %v13417_v36 = vpop.f32.mrf.mxu0  ;;  %v13419_v17 = vpop.f32.mrf.mxu1 }
 0xc47   : > { %17015 = vst [vmem:[#allocation167_spill] sm:$0xff] %v13417_v36  ;;  %5553 = vmatpush.bf16.msrb.mxu1 %v8771_v10  ;;  %v9328_v10 = vld [vmem:[#allocation10 + $0xc] sm:$0xf0] }
 0xc48   : > { %17016 = vst [vmem:[#allocation168_spill] sm:$0xff] %v13419_v17  ;;  %v9332_v17 = vld [vmem:[#allocation10 + $0x2c] sm:$0xf0]  ;;  %v8723_v25 = vor.u32 %v9328_v10, %v8722_v57 }
 0xc49   : > { %4946 = vmatmul.bf16.gmra.mxu1 %v16853_v63  ;;  %4995 = vmatmul.bf16.gmra.mxu2 %v16854_v4  ;;  %v8739_v44 = vor.u32 %v9332_v17, %v8738_v56 }
 0xc4b   : > { %5554 = vmatpush.bf16.msrb.mxu1 %v8755_v58 }
 0xc4c   : > { %v13423_v51 = vpop.f32.mrf.mxu2  ;;  %v13425_v62 = vpop.f32.mrf.mxu3 }
 0xc4d   : > { %17017 = vst [vmem:[#allocation169_spill] sm:$0xff] %v13423_v51 }
 0xc4e   : > { %17018 = vst [vmem:[#allocation170_spill] sm:$0xff] %v13425_v62  ;;  %v13427_v11 = vpop.f32.mrf.mxu0  ;;  %v13429_v53 = vpop.f32.mrf.mxu1 }
 0xc4f   : > { %17019 = vst [vmem:[#allocation171_spill] sm:$0xff] %v13429_v53  ;;  %5555 = vmatpush.bf16.msrb.mxu1 %v8739_v44  ;;  %v17036_v53 = vld [vmem:[#allocation124_spill] sm:$0xff] }
 0xc51   : > { %4867 = vmatmul.bf16.gmra.mxu0 %v16975_v41  ;;  %5094 = vmatmul.bf16.gmra.mxu3 %v16777_v14 }
 0xc53   : > { %5556 = vmatpush.bf16.msrb.mxu1 %v8723_v25 }
 0xc54   : > { %v13433_v36 = vpop.f32.mrf.mxu2  ;;  %v13435_v51 = vpop.f32.mrf.mxu3 }
 0xc55   : > { %17020 = vst [vmem:[#allocation172_spill] sm:$0xff] %v13435_v51 }
 0xc56   : > { %v13437_v21 = vpop.f32.mrf.mxu0  ;;  %v13439_v62 = vpop.f32.mrf.mxu1 }
 0xc57   : > { %17021 = vst [vmem:[#allocation173_spill] sm:$0xff] %v13439_v62 }
 0xc59   : > { %4951 = vmatmul.bf16.gmra.mxu1 %v16867_v5  ;;  %5000 = vmatmul.bf16.gmra.mxu2 %v16868_v46 }
 0xc5c   : > { %v13443_v17 = vpop.f32.mrf.mxu2  ;;  %v13445_v14 = vpop.f32.mrf.mxu3 }
 0xc5d   : > { %17022 = vst [vmem:[#allocation174_spill] sm:$0xff] %v13445_v14 }
 0xc5e   : > { %v13447_v58 = vpop.f32.mrf.mxu0  ;;  %v13449_v56 = vpop.f32.mrf.mxu1 }
 0xc5f   : > { %17023 = vst [vmem:[#allocation175_spill] sm:$0xff] %v13447_v58 }
 0xc60   : > { %17024 = vst [vmem:[#allocation176_spill] sm:$0xff] %v13449_v56 }
 0xc61   : > { %5099 = vmatmul.bf16.gmra.mxu3 %v12622_v9  ;;  %5148 = vmatmul.bf16.vlgmr.msra.gmra.mxu0 %v12476_v19 }
 0xc64   : > { %v13453_v44 = vpop.f32.mrf.mxu2  ;;  %v13455_v57 = vpop.f32.mrf.mxu3 }
 0xc65   : > { %17025 = vst [vmem:[#allocation177_spill] sm:$0xff] %v13455_v57 }
 0xc66   : > { %v13457_v10 = vpop.f32.mrf.mxu0  ;;  %v13459_v25 = vpop.f32.mrf.mxu1 }
 0xc67   : > { %17026 = vst [vmem:[#allocation178_spill] sm:$0xff] %v13457_v10  ;;  %v8804_v10 = vld [vmem:[#allocation10 + $0xb0] sm:$0xf0] }
 0xc68   : > { %17027 = vst [vmem:[#allocation179_spill] sm:$0xff] %v13459_v25 }
 0xc69   : > { %4956 = vmatmul.bf16.gmra.mxu1 %v16885_v34  ;;  %5005 = vmatmul.bf16.gmra.mxu2 %v16886_v30 }
 0xc6c   : > { %v13463_v14 = vpop.f32.mrf.mxu2  ;;  %v13465_v62 = vpop.f32.mrf.mxu3 }
 0xc6d   : > { %17028 = vst [vmem:[#allocation180_spill] sm:$0xff] %v13463_v14 }
 0xc6e   : > { %17029 = vst [vmem:[#allocation181_spill] sm:$0xff] %v13465_v62  ;;  %v13467_v56 = vpop.f32.mrf.mxu0  ;;  %v13469_v9 = vpop.f32.mrf.mxu1 }
 0xc6f   : > { %17030 = vst [vmem:[#allocation182_spill] sm:$0xff] %v13467_v56 }
 0xc70   : > { %17031 = vst [vmem:[#allocation183_spill] sm:$0xff] %v13469_v9 }
 0xc71   : > { %5104 = vmatmul.bf16.gmra.mxu3 %v12617_v18  ;;  %5153 = vmatmul.bf16.gmra.mxu0 %v12493_v39 }
 0xc74   : > { %v13473_v19 = vpop.f32.mrf.mxu2  ;;  %v13475_v57 = vpop.f32.mrf.mxu3 }
 0xc75   : > { %17032 = vst [vmem:[#allocation184_spill] sm:$0xff] %v13473_v19 }
 0xc76   : > { %17033 = vst [vmem:[#allocation185_spill] sm:$0xff] %v13475_v57  ;;  %v13477_v25 = vpop.f32.mrf.mxu0  ;;  %v13479_v51 = vpop.f32.mrf.mxu1 }
 0xc77   : > { %17034 = vst [vmem:[#allocation186_spill] sm:$0xff] %v13477_v25 }
 0xc78   : > { %17035 = vst [vmem:[#allocation187_spill] sm:$0xff] %v13479_v51 }
 0xc79   : > { %5010 = vmatmul.bf16.gmra.mxu2 %v16902_v12  ;;  %5557 = vmatmul.bf16.vlgmr.msrb.gmra.mxu1 %v17036_v53 }
 0xc7c   : > { %v13483_v62 = vpop.f32.mrf.mxu2  ;;  %v13485_v56 = vpop.f32.mrf.mxu3 }
 0xc7d   : > { %17037 = vst [vmem:[#allocation124_spill] sm:$0xff] %v13483_v62  ;;  %v17045_v62 = vld [vmem:[#allocation122_spill] sm:$0xff] }
 0xc7e   : > { %17038 = vst [vmem:[#allocation188_spill] sm:$0xff] %v13485_v56  ;;  %v13487_v9 = vpop.f32.mrf.mxu0  ;;  %v13489_v18 = vpop.f32.mrf.mxu1 }
 0xc7f   : > { %17039 = vst [vmem:[#allocation189_spill] sm:$0xff] %v13487_v9 }
 0xc80   : > { %17040 = vst [vmem:[#allocation190_spill] sm:$0xff] %v13489_v18 }
 0xc81   : > { %5109 = vmatmul.bf16.gmra.mxu3 %v16809_v16  ;;  %5158 = vmatmul.bf16.gmra.mxu0 %v16810_v2 }
 0xc84   : > { %v13493_v39 = vpop.f32.mrf.mxu2  ;;  %v13495_v57 = vpop.f32.mrf.mxu3 }
 0xc85   : > { %17041 = vst [vmem:[#allocation191_spill] sm:$0xff] %v13493_v39 }
 0xc86   : > { %17042 = vst [vmem:[#allocation192_spill] sm:$0xff] %v13495_v57  ;;  %v13497_v51 = vpop.f32.mrf.mxu0  ;;  %v13499_v25 = vpop.f32.mrf.mxu1 }
 0xc87   : > { %17043 = vst [vmem:[#allocation193_spill] sm:$0xff] %v13497_v51 }
 0xc88   : > { %17044 = vst [vmem:[#allocation194_spill] sm:$0xff] %v13499_v25 }
 0xc89   : > { %5015 = vmatmul.bf16.gmra.mxu2 %v16914_v43  ;;  %5562 = vmatmul.bf16.gmra.mxu1 %v17045_v62 }
 0xc8c   : > { %v13503_v56 = vpop.f32.mrf.mxu2  ;;  %v13505_v9 = vpop.f32.mrf.mxu3 }
 0xc8d   : > { %17046 = vst [vmem:[#allocation122_spill] sm:$0xff] %v13503_v56  ;;  %v17054_v56 = vld [vmem:[#allocation120_spill] sm:$0xff] }
 0xc8e   : > { %17047 = vst [vmem:[#allocation195_spill] sm:$0xff] %v13505_v9  ;;  %v13507_v18 = vpop.f32.mrf.mxu0  ;;  %v13509_v16 = vpop.f32.mrf.mxu1 }
 0xc8f   : > { %17048 = vst [vmem:[#allocation196_spill] sm:$0xff] %v13507_v18 }
 0xc90   : > { %17049 = vst [vmem:[#allocation197_spill] sm:$0xff] %v13509_v16 }
 0xc91   : > { %5114 = vmatmul.bf16.gmra.mxu3 %v16823_v7  ;;  %5163 = vmatmul.bf16.gmra.mxu0 %v16824_v22  ;;  %v9354_v22 = vld [vmem:[#allocation10 + $0xe4] sm:$0xf] }
 0xc94   : > { %v13513_v2 = vpop.f32.mrf.mxu2  ;;  %v13515_v57 = vpop.f32.mrf.mxu3 }
 0xc95   : > { %17050 = vst [vmem:[#allocation198_spill] sm:$0xff] %v13513_v2  ;;  %v8836_v2 = vld [vmem:[#allocation10 + $0xf0] sm:$0xf0] }
 0xc96   : > { %17051 = vst [vmem:[#allocation199_spill] sm:$0xff] %v13515_v57  ;;  %v13517_v25 = vpop.f32.mrf.mxu0  ;;  %v13519_v51 = vpop.f32.mrf.mxu1  ;;  %v8839_v39 = vor.u32 %v9354_v22, %v8836_v2  ;;  %v8820_v57 = vld [vmem:[#allocation10 + $0xd0] sm:$0xf0] }
 0xc97   : > { %17052 = vst [vmem:[#allocation200_spill] sm:$0xff] %v13517_v25 }
 0xc98   : > { %17053 = vst [vmem:[#allocation201_spill] sm:$0xff] %v13519_v51  ;;  %5727 = vmatpush.bf16.msrb.mxu3 %v8839_v39  ;;  %v9350_v51 = vld [vmem:[#allocation10 + $0xc4] sm:$0xf]  ;;  %v8788_v39 = vld [vmem:[#allocation10 + $0x90] sm:$0xf0] }
 0xc99   : > { %5020 = vmatmul.bf16.gmra.mxu2 %v16924_v45  ;;  %5567 = vmatmul.bf16.gmra.mxu1 %v17054_v56 }
 0xc9c   : > { %v13523_v9 = vpop.f32.mrf.mxu2  ;;  %v13525_v18 = vpop.f32.mrf.mxu3 }
 0xc9d   : > { %17055 = vst [vmem:[#allocation120_spill] sm:$0xff] %v13523_v9  ;;  %v8823_v9 = vor.u32 %v9350_v51, %v8820_v57 }
 0xc9e   : > { %17056 = vst [vmem:[#allocation202_spill] sm:$0xff] %v13525_v18  ;;  %v13527_v16 = vpop.f32.mrf.mxu0  ;;  %v13529_v7 = vpop.f32.mrf.mxu1 }
 0xc9f   : > { %17057 = vst [vmem:[#allocation203_spill] sm:$0xff] %v13527_v16  ;;  %5728 = vmatpush.bf16.msrb.mxu3 %v8823_v9  ;;  %v9338_v9 = vld [vmem:[#allocation10 + $0x64] sm:$0xf] }
 0xca0   : > { %17058 = vst [vmem:[#allocation204_spill] sm:$0xff] %v13529_v7  ;;  %v9346_v7 = vld [vmem:[#allocation10 + $0xa4] sm:$0xf] }
 0xca1   : > { %5119 = vmatmul.bf16.gmra.mxu3 %v16838_v28  ;;  %5168 = vmatmul.bf16.gmra.mxu0 %v16839_v59  ;;  %v8807_v2 = vor.u32 %v9346_v7, %v8804_v10  ;;  %v17063_v28 = vld [vmem:[#allocation116_spill] sm:$0xff]  ;;  %v9342_v59 = vld [vmem:[#allocation10 + $0x84] sm:$0xf] }
 0xca2   : > { %v8791_v51 = vor.u32 %v9342_v59, %v8788_v39  ;;  %v9334_v7 = vld [vmem:[#allocation10 + $0x44] sm:$0xf] }
 0xca3   : > { %5729 = vmatpush.bf16.msrb.mxu3 %v8807_v2  ;;  %v8756_v2 = vld [vmem:[#allocation10 + $0x50] sm:$0xf0] }
 0xca4   : > { %v13533_v25 = vpop.f32.mrf.mxu2  ;;  %v13535_v19 = vpop.f32.mrf.mxu3  ;;  %v8759_v59 = vor.u32 %v9334_v7, %v8756_v2  ;;  %v9326_v7 = vld [vmem:[#allocation10 + $0x4] sm:$0xf] }
 0xca5   : > { %17059 = vst [vmem:[#allocation205_spill] sm:$0xff] %v13533_v25 }
 0xca6   : > { %17060 = vst [vmem:[#allocation206_spill] sm:$0xff] %v13535_v19  ;;  %v13537_v18 = vpop.f32.mrf.mxu0  ;;  %v13539_v16 = vpop.f32.mrf.mxu1 }
 0xca7   : > { %17061 = vst [vmem:[#allocation207_spill] sm:$0xff] %v13537_v18  ;;  %5730 = vmatpush.bf16.msrb.mxu3 %v8791_v51  ;;  %v8962_v51 = vld [vmem:[#allocation10 + $0x1e0] sm:$0xf] }
 0xca8   : > { %17062 = vst [vmem:[#allocation208_spill] sm:$0xff] %v13539_v16  ;;  %v8772_v16 = vld [vmem:[#allocation10 + $0x70] sm:$0xf0] }
 0xca9   : > { %5025 = vmatmul.bf16.gmra.mxu2 %v16934_v24  ;;  %5572 = vmatmul.bf16.gmra.mxu1 %v17063_v28  ;;  %v8775_v10 = vor.u32 %v9338_v9, %v8772_v16  ;;  %v9330_v16 = vld [vmem:[#allocation10 + $0x24] sm:$0xf] }
 0xcab   : > { %5731 = vmatpush.bf16.msrb.mxu3 %v8775_v10 }
 0xcac   : > { %v13543_v22 = vpop.f32.mrf.mxu2  ;;  %v13545_v25 = vpop.f32.mrf.mxu3 }
 0xcad   : > { %17064 = vst [vmem:[#allocation116_spill] sm:$0xff] %v13543_v22 }
 0xcae   : > { %17065 = vst [vmem:[#allocation209_spill] sm:$0xff] %v13545_v25  ;;  %v13547_v57 = vpop.f32.mrf.mxu0  ;;  %v13549_v19 = vpop.f32.mrf.mxu1 }
 0xcaf   : > { %17066 = vst [vmem:[#allocation210_spill] sm:$0xff] %v13547_v57  ;;  %5732 = vmatpush.bf16.msrb.mxu3 %v8759_v59  ;;  %v8946_v57 = vld [vmem:[#allocation10 + $0x1c0] sm:$0xf] }
 0xcb0   : > { %17067 = vst [vmem:[#allocation211_spill] sm:$0xff] %v13549_v19  ;;  %v9388_v19 = vld [vmem:[#allocation10 + $0x1ec] sm:$0xf0] }
 0xcb1   : > { %5124 = vmatmul.bf16.gmra.mxu3 %v16853_v63  ;;  %5173 = vmatmul.bf16.gmra.mxu0 %v16854_v4  ;;  %v8963_v9 = vor.u32 %v9388_v19, %v8962_v51  ;;  %v8740_v63 = vld [vmem:[#allocation10 + $0x30] sm:$0xf0]  ;;  %v17072_v4 = vld [vmem:[#allocation76_spill] sm:$0xff]  ;;  %v8930_v51 = vld [vmem:[#allocation10 + $0x1a0] sm:$0xf] }
 0xcb2   : > { %v8743_v10 = vor.u32 %v9330_v16, %v8740_v63  ;;  %v9380_v16 = vld [vmem:[#allocation10 + $0x1ac] sm:$0xf0]  ;;  %v8914_v63 = vld [vmem:[#allocation10 + $0x180] sm:$0xf] }
 0xcb3   : > { %5638 = vmatpush.bf16.msrb.mxu2 %v8963_v9  ;;  %v8931_v9 = vor.u32 %v9380_v16, %v8930_v51  ;;  %v9368_v16 = vld [vmem:[#allocation10 + $0x14c] sm:$0xf0] }
 0xcb4   : > { %v13553_v18 = vpop.f32.mrf.mxu2  ;;  %v13555_v22 = vpop.f32.mrf.mxu3  ;;  %5733 = vmatpush.bf16.msrb.mxu3 %v8743_v10  ;;  %v9376_v10 = vld [vmem:[#allocation10 + $0x18c] sm:$0xf0] }
 0xcb5   : > { %17068 = vst [vmem:[#allocation212_spill] sm:$0xff] %v13553_v18 }
 0xcb6   : > { %17069 = vst [vmem:[#allocation213_spill] sm:$0xff] %v13555_v22  ;;  %v13557_v39 = vpop.f32.mrf.mxu0  ;;  %v13559_v25 = vpop.f32.mrf.mxu1  ;;  %v9384_v22 = vld [vmem:[#allocation10 + $0x1cc] sm:$0xf0] }
 0xcb7   : > { %17070 = vst [vmem:[#allocation214_spill] sm:$0xff] %v13557_v39  ;;  %v8947_v59 = vor.u32 %v9384_v22, %v8946_v57 }
 0xcb8   : > { %17071 = vst [vmem:[#allocation215_spill] sm:$0xff] %v13559_v25  ;;  %v8724_v25 = vld [vmem:[#allocation10 + $0x10] sm:$0xf0] }
 0xcb9   : > { %5030 = vmatmul.bf16.gmra.mxu2 %v16945_v8  ;;  %5577 = vmatmul.bf16.gmra.mxu1 %v17072_v4  ;;  %v8727_v18 = vor.u32 %v9326_v7, %v8724_v25  ;;  %v8915_v25 = vor.u32 %v9376_v10, %v8914_v63 }
 0xcba   : > { %5639 = vmatpush.bf16.msrb.mxu2 %v8947_v59  ;;  %v9372_v59 = vld [vmem:[#allocation10 + $0x16c] sm:$0xf0] }
 0xcbb   : > { %5734 = vmatpush.bf16.msrb.mxu3 %v8727_v18  ;;  %v8898_v18 = vld [vmem:[#allocation10 + $0x160] sm:$0xf] }
 0xcbc   : > { %v13563_v2 = vpop.f32.mrf.mxu2  ;;  %v13565_v39 = vpop.f32.mrf.mxu3  ;;  %v8899_v51 = vor.u32 %v9372_v59, %v8898_v18  ;;  %v8850_v59 = vld [vmem:[#allocation10 + $0x100] sm:$0xf] }
 0xcbd   : > { %17073 = vst [vmem:[#allocation76_spill] sm:$0xff] %v13563_v2 }
 0xcbe   : > { %17074 = vst [vmem:[#allocation216_spill] sm:$0xff] %v13565_v39  ;;  %v13567_v14 = vpop.f32.mrf.mxu0  ;;  %v13569_v19 = vpop.f32.mrf.mxu1  ;;  %5640 = vmatpush.bf16.msrb.mxu2 %v8931_v9 }
 0xcbf   : > { %17075 = vst [vmem:[#allocation217_spill] sm:$0xff] %v13567_v14 }
 0xcc0   : > { %17076 = vst [vmem:[#allocation218_spill] sm:$0xff] %v13569_v19 }
 0xcc1   : > { %5129 = vmatmul.bf16.gmra.mxu3 %v16867_v5  ;;  %5178 = vmatmul.bf16.gmra.mxu0 %v16868_v46  ;;  %v17081_v5 = vld [vmem:[#allocation25_spill] sm:$0xff]  ;;  %v8882_v46 = vld [vmem:[#allocation10 + $0x140] sm:$0xf] }
 0xcc2   : > { %5641 = vmatpush.bf16.msrb.mxu2 %v8915_v25  ;;  %v8883_v63 = vor.u32 %v9368_v16, %v8882_v46  ;;  %v8866_v25 = vld [vmem:[#allocation10 + $0x120] sm:$0xf] }
 0xcc4   : > { %v13573_v39 = vpop.f32.mrf.mxu2  ;;  %v13575_v22 = vpop.f32.mrf.mxu3 }
 0xcc5   : > { %17077 = vst [vmem:[#allocation219_spill] sm:$0xff] %v13573_v39  ;;  %v17145_v39 = vld [vmem:[#allocation123_spill] sm:$0xff] }
 0xcc6   : > { %17078 = vst [vmem:[#allocation220_spill] sm:$0xff] %v13575_v22  ;;  %v13577_v57 = vpop.f32.mrf.mxu0  ;;  %v13579_v7 = vpop.f32.mrf.mxu1  ;;  %5642 = vmatpush.bf16.msrb.mxu2 %v8899_v51  ;;  %v9360_v51 = vld [vmem:[#allocation10 + $0x10c] sm:$0xf0] }
 0xcc7   : > { %17079 = vst [vmem:[#allocation221_spill] sm:$0xff] %v13577_v57  ;;  %v8851_v46 = vor.u32 %v9360_v51, %v8850_v59 }
 0xcc8   : > { %17080 = vst [vmem:[#allocation222_spill] sm:$0xff] %v13579_v7  ;;  %v9364_v7 = vld [vmem:[#allocation10 + $0x12c] sm:$0xf0] }
 0xcc9   : > { %5035 = vmatmul.bf16.gmra.mxu2 %v16955_v15  ;;  %5582 = vmatmul.bf16.gmra.mxu1 %v17081_v5  ;;  %v8867_v18 = vor.u32 %v9364_v7, %v8866_v25  ;;  %v17090_v7 = vld [vmem:[#allocation26_spill] sm:$0xff] }
 0xcca   : > { %5643 = vmatpush.bf16.msrb.mxu2 %v8883_v63 }
 0xccc   : > { %v13583_v9 = vpop.f32.mrf.mxu2  ;;  %v13585_v19 = vpop.f32.mrf.mxu3 }
 0xccd   : > { %17082 = vst [vmem:[#allocation25_spill] sm:$0xff] %v13583_v9 }
 0xcce   : > { %17083 = vst [vmem:[#allocation223_spill] sm:$0xff] %v13585_v19  ;;  %v13587_v10 = vpop.f32.mrf.mxu0  ;;  %v13589_v22 = vpop.f32.mrf.mxu1  ;;  %5644 = vmatpush.bf16.msrb.mxu2 %v8867_v18 }
 0xccf   : > { %17084 = vst [vmem:[#allocation224_spill] sm:$0xff] %v13587_v10  ;;  %v17135_v10 = vld [vmem:[#allocation64_spill] sm:$0xff] }
 0xcd0   : > { %17085 = vst [vmem:[#allocation225_spill] sm:$0xff] %v13589_v22  ;;  %v4616_v22 = vadd.f32 %v13137_v13, %v12898_v49 }
 0xcd1   : > { %5134 = vmatmul.bf16.gmra.mxu3 %v16885_v34  ;;  %5183 = vmatmul.bf16.gmra.mxu0 %v16886_v30 }
 0xcd2   : > { %5645 = vmatpush.bf16.msrb.mxu2 %v8851_v46 }
 0xcd4   : > { %v13593_v57 = vpop.f32.mrf.mxu2  ;;  %v13595_v9 = vpop.f32.mrf.mxu3 }
 0xcd5   : > { %17086 = vst [vmem:[#allocation226_spill] sm:$0xff] %v13593_v57  ;;  %v8900_v57 = vld [vmem:[#allocation10 + $0x170] sm:$0xf0] }
 0xcd6   : > { %17087 = vst [vmem:[#allocation227_spill] sm:$0xff] %v13595_v9  ;;  %v13597_v16 = vpop.f32.mrf.mxu0  ;;  %v13599_v19 = vpop.f32.mrf.mxu1 }
 0xcd7   : > { %17088 = vst [vmem:[#allocation228_spill] sm:$0xff] %v13597_v16 }
 0xcd8   : > { %17089 = vst [vmem:[#allocation229_spill] sm:$0xff] %v13599_v19  ;;  %v17099_v19 = vld [vmem:[#allocation88_spill] sm:$0xff] }
 0xcd9   : > { %5040 = vmatmul.bf16.gmra.mxu2 %v16965_v48  ;;  %5587 = vmatmul.bf16.gmra.mxu1 %v17090_v7 }
 0xcdc   : > { %v13603_v34 = vpop.f32.mrf.mxu2  ;;  %v13605_v30 = vpop.f32.mrf.mxu3 }
 0xcdd   : > { %17091 = vst [vmem:[#allocation26_spill] sm:$0xff] %v13603_v34 }
 0xcde   : > { %17092 = vst [vmem:[#allocation230_spill] sm:$0xff] %v13605_v30  ;;  %v13607_v63 = vpop.f32.mrf.mxu1  ;;  %v13609_v25 = vpop.f32.mrf.mxu0 }
 0xcdf   : > { %17093 = vst [vmem:[#allocation231_spill] sm:$0xff] %v13607_v63 }
 0xce0   : > { %17094 = vst [vmem:[#allocation232_spill] sm:$0xff] %v13609_v25 }
 0xce1   : > { %5188 = vmatmul.bf16.gmra.mxu0 %v16902_v12  ;;  %5735 = vmatmul.bf16.vlgmr.msrb.gmra.mxu3 %v17036_v53 }
 0xce4   : > { %v13613_v18 = vpop.f32.mrf.mxu2  ;;  %v13615_v59 = vpop.f32.mrf.mxu3 }
 0xce5   : > { %17095 = vst [vmem:[#allocation233_spill] sm:$0xff] %v13613_v18 }
 0xce6   : > { %17096 = vst [vmem:[#allocation234_spill] sm:$0xff] %v13615_v59  ;;  %v13617_v51 = vpop.f32.mrf.mxu1  ;;  %v13619_v46 = vpop.f32.mrf.mxu0 }
 0xce7   : > { %17097 = vst [vmem:[#allocation235_spill] sm:$0xff] %v13617_v51 }
 0xce8   : > { %17098 = vst [vmem:[#allocation236_spill] sm:$0xff] %v13619_v46 }
 0xce9   : > { %5045 = vmatmul.bf16.gmra.mxu2 %v16975_v41  ;;  %5592 = vmatmul.bf16.gmra.mxu1 %v17099_v19 }
 0xcec   : > { %v13623_v30 = vpop.f32.mrf.mxu2  ;;  %v13625_v63 = vpop.f32.mrf.mxu3 }
 0xced   : > { %17100 = vst [vmem:[#allocation88_spill] sm:$0xff] %v13623_v30 }
 0xcee   : > { %17101 = vst [vmem:[#allocation237_spill] sm:$0xff] %v13625_v63  ;;  %v13627_v9 = vpop.f32.mrf.mxu1  ;;  %v13629_v12 = vpop.f32.mrf.mxu0  ;;  %v17107_v63 = vld [vmem:[#allocation136_spill] sm:$0xff] }
 0xcef   : > { %17102 = vst [vmem:[#allocation238_spill] sm:$0xff] %v13627_v9  ;;  %v17108_v9 = vld [vmem:[#allocation135_spill] sm:$0xff] }
 0xcf0   : > { %17103 = vst [vmem:[#allocation239_spill] sm:$0xff] %v13629_v12 }
 0xcf1   : > { %5193 = vmatmul.bf16.gmra.mxu0 %v16914_v43  ;;  %5740 = vmatmul.bf16.gmra.mxu3 %v17045_v62 }
 0xcf4   : > { %v13633_v59 = vpop.f32.mrf.mxu2  ;;  %v13635_v51 = vpop.f32.mrf.mxu3 }
 0xcf5   : > { %17104 = vst [vmem:[#allocation240_spill] sm:$0xff] %v13633_v59  ;;  %v4618_v59 = vadd.f32 %v13148_v23, %v12917_v6  ;;  %v17115_v23 = vld [vmem:[#allocation77_spill] sm:$0xff] }
 0xcf6   : > { %17105 = vst [vmem:[#allocation241_spill] sm:$0xff] %v13635_v51  ;;  %v13639_v46 = vpop.f32.mrf.mxu0  ;;  %v5558_v30 = vpop.f32.mrf.mxu1 }
 0xcf7   : > { %17106 = vst [vmem:[#allocation242_spill] sm:$0xff] %v13639_v46  ;;  %v13641_v25 = vadd.f32 %v5558_v30, %v4616_v22  ;;  %v4621_v30 = vadd.f32 %v13161_v35, %v12926_v38 }
 0xcf9   : > { %5597 = vmatmul.bf16.gmra.mxu1 %v17107_v63  ;;  %5646 = vmatmul.bf16.vlgmr.msrb.gmra.mxu2 %v17108_v9 }
 0xcfc   : > { %v13645_v12 = vpop.f32.mrf.mxu2  ;;  %v13647_v43 = vpop.f32.mrf.mxu3 }
 0xcfd   : > { %17109 = vst [vmem:[#allocation243_spill] sm:$0xff] %v13645_v12 }
 0xcfe   : > { %17110 = vst [vmem:[#allocation244_spill] sm:$0xff] %v13647_v43  ;;  %v13651_v51 = vpop.f32.mrf.mxu0  ;;  %v5560_v18 = vpop.f32.mrf.mxu1 }
 0xcff   : > { %17111 = vst [vmem:[#allocation245_spill] sm:$0xff] %v13651_v51  ;;  %v13653_v49 = vadd.f32 %v5560_v18, %v4618_v59  ;;  %v17116_v18 = vld [vmem:[#allocation132_spill] sm:$0xff]  ;;  %v4623_v51 = vadd.f32 %v13172_v42, %v12945_v60  ;;  %v17124_v42 = vld [vmem:[#allocation34_spill] sm:$0xff] }
 0xd01   : > { %5198 = vmatmul.bf16.gmra.mxu0 %v16924_v45  ;;  %5745 = vmatmul.bf16.gmra.mxu3 %v17054_v56 }
 0xd04   : > { %v13657_v13 = vpop.f32.mrf.mxu2  ;;  %v13659_v22 = vpop.f32.mrf.mxu3 }
 0xd05   : > { %17112 = vst [vmem:[#allocation246_spill] sm:$0xff] %v13657_v13 }
 0xd06   : > { %17113 = vst [vmem:[#allocation247_spill] sm:$0xff] %v13659_v22  ;;  %v13663_v43 = vpop.f32.mrf.mxu0  ;;  %v5563_v46 = vpop.f32.mrf.mxu1 }
 0xd07   : > { %17114 = vst [vmem:[#allocation248_spill] sm:$0xff] %v13663_v43  ;;  %v13665_v6 = vadd.f32 %v5563_v46, %v4621_v30  ;;  %v17122_v30 = vld [vmem:[#allocation71_spill] sm:$0xff] }
 0xd08   : > { %v4626_v43 = vadd.f32 %v13185_v37, %v17122_v30  ;;  %v9386_v30 = vld [vmem:[#allocation10 + $0x1e4] sm:$0xf] }
 0xd09   : > { %5602 = vmatmul.bf16.gmra.mxu1 %v17115_v23  ;;  %5651 = vmatmul.bf16.gmra.mxu2 %v17116_v18 }
 0xd0c   : > { %v13669_v59 = vpop.f32.mrf.mxu2  ;;  %v13671_v45 = vpop.f32.mrf.mxu3 }
 0xd0d   : > { %17117 = vst [vmem:[#allocation249_spill] sm:$0xff] %v13669_v59 }
 0xd0e   : > { %17118 = vst [vmem:[#allocation250_spill] sm:$0xff] %v13671_v45  ;;  %v13675_v22 = vpop.f32.mrf.mxu0  ;;  %v5565_v13 = vpop.f32.mrf.mxu1 }
 0xd0f   : > { %17119 = vst [vmem:[#allocation251_spill] sm:$0xff] %v13675_v22  ;;  %v13677_v38 = vadd.f32 %v5565_v13, %v4623_v51  ;;  %v17125_v51 = vld [vmem:[#allocation32_spill] sm:$0xff]  ;;  %v17128_v22 = vld [vmem:[#allocation85_spill] sm:$0xff] }
 0xd11   : > { %5203 = vmatmul.bf16.gmra.mxu0 %v16934_v24  ;;  %5750 = vmatmul.bf16.gmra.mxu3 %v17063_v28 }
 0xd14   : > { %v13681_v35 = vpop.f32.mrf.mxu2  ;;  %v13683_v46 = vpop.f32.mrf.mxu3 }
 0xd15   : > { %17120 = vst [vmem:[#allocation252_spill] sm:$0xff] %v13681_v35  ;;  %v4628_v35 = vadd.f32 %v13196_v47, %v17128_v22  ;;  %v17132_v22 = vld [vmem:[#allocation86_spill] sm:$0xff] }
 0xd16   : > { %17121 = vst [vmem:[#allocation253_spill] sm:$0xff] %v13683_v46  ;;  %v13687_v45 = vpop.f32.mrf.mxu0  ;;  %v5568_v59 = vpop.f32.mrf.mxu1 }
 0xd17   : > { %17123 = vst [vmem:[#allocation71_spill] sm:$0xff] %v13687_v45  ;;  %v13689_v60 = vadd.f32 %v5568_v59, %v4626_v43  ;;  %v8964_v45 = vld [vmem:[#allocation10 + $0x1f0] sm:$0xf0]  ;;  %v9382_v59 = vld [vmem:[#allocation10 + $0x1c4] sm:$0xf] }
 0xd18   : > { %v8967_v43 = vor.u32 %v9386_v30, %v8964_v45  ;;  %v8932_v30 = vld [vmem:[#allocation10 + $0x1b0] sm:$0xf0] }
 0xd19   : > { %5607 = vmatmul.bf16.gmra.mxu1 %v17124_v42  ;;  %5656 = vmatmul.bf16.gmra.mxu2 %v17125_v51 }
 0xd1a   : > { %5816 = vmatpush.bf16.msrb.mxu0 %v8967_v43  ;;  %v17134_v43 = vld [vmem:[#allocation125_spill] sm:$0xff] }
 0xd1c   : > { %v13693_v13 = vpop.f32.mrf.mxu2  ;;  %v13695_v24 = vpop.f32.mrf.mxu3 }
 0xd1d   : > { %17126 = vst [vmem:[#allocation254_spill] sm:$0xff] %v13693_v13  ;;  %v8948_v13 = vld [vmem:[#allocation10 + $0x1d0] sm:$0xf0] }
 0xd1e   : > { %17127 = vst [vmem:[#allocation255_spill] sm:$0xff] %v13695_v24  ;;  %v13699_v46 = vpop.f32.mrf.mxu0  ;;  %v5570_v12 = vpop.f32.mrf.mxu1  ;;  %v8951_v47 = vor.u32 %v9382_v59, %v8948_v13 }
 0xd1f   : > { %17129 = vst [vmem:[#allocation85_spill] sm:$0xff] %v13699_v46  ;;  %v13701_v37 = vadd.f32 %v5570_v12, %v4628_v35  ;;  %v4631_v46 = vadd.f32 %v13209_v29, %v17132_v22  ;;  %v17138_v22 = vld [vmem:[#allocation84_spill] sm:$0xff] }
 0xd20   : > { %5817 = vmatpush.bf16.msrb.mxu0 %v8951_v47 }
 0xd21   : > { %5208 = vmatmul.bf16.gmra.mxu0 %v16945_v8  ;;  %5755 = vmatmul.bf16.gmra.mxu3 %v17072_v4  ;;  %v9378_v8 = vld [vmem:[#allocation10 + $0x1a4] sm:$0xf] }
 0xd22   : > { %v8935_v34 = vor.u32 %v9378_v8, %v8932_v30  ;;  %v9370_v30 = vld [vmem:[#allocation10 + $0x164] sm:$0xf] }
 0xd23   : > { %v8903_v14 = vor.u32 %v9370_v30, %v8900_v57  ;;  %v8868_v30 = vld [vmem:[#allocation10 + $0x130] sm:$0xf0] }
 0xd24   : > { %v13705_v16 = vpop.f32.mrf.mxu2  ;;  %v13707_v24 = vpop.f32.mrf.mxu3  ;;  %5818 = vmatpush.bf16.msrb.mxu0 %v8935_v34  ;;  %v9366_v34 = vld [vmem:[#allocation10 + $0x144] sm:$0xf] }
 0xd25   : > { %17130 = vst [vmem:[#allocation256_spill] sm:$0xff] %v13705_v16  ;;  %v9374_v16 = vld [vmem:[#allocation10 + $0x184] sm:$0xf] }
 0xd26   : > { %17131 = vst [vmem:[#allocation257_spill] sm:$0xff] %v13707_v24  ;;  %v13711_v12 = vpop.f32.mrf.mxu0  ;;  %v5573_v35 = vpop.f32.mrf.mxu1  ;;  %v8916_v24 = vld [vmem:[#allocation10 + $0x190] sm:$0xf0] }
 0xd27   : > { %17133 = vst [vmem:[#allocation86_spill] sm:$0xff] %v13711_v12  ;;  %v13713_v45 = vadd.f32 %v5573_v35, %v4631_v46  ;;  %v8919_v29 = vor.u32 %v9374_v16, %v8916_v24  ;;  %v17139_v12 = vld [vmem:[#allocation83_spill] sm:$0xff] }
 0xd28   : > { %v4633_v47 = vadd.f32 %v17139_v12, %v17138_v22  ;;  %v17143_v22 = vld [vmem:[#allocation87_spill] sm:$0xff] }
 0xd29   : > { %5612 = vmatmul.bf16.gmra.mxu1 %v17134_v43  ;;  %5661 = vmatmul.bf16.gmra.mxu2 %v17135_v10 }
 0xd2a   : > { %5819 = vmatpush.bf16.msrb.mxu0 %v8919_v29  ;;  %v4636_v29 = vadd.f32 %v13233_v54, %v17143_v22  ;;  %v8852_v54 = vld [vmem:[#allocation10 + $0x110] sm:$0xf0] }
 0xd2c   : > { %v13717_v13 = vpop.f32.mrf.mxu2  ;;  %v13719_v59 = vpop.f32.mrf.mxu3 }
 0xd2d   : > { %17136 = vst [vmem:[#allocation258_spill] sm:$0xff] %v13717_v13  ;;  %v9357_v13 = vld [vmem:[#allocation10 + $0xf4] sm:$0xf0] }
 0xd2e   : > { %17137 = vst [vmem:[#allocation259_spill] sm:$0xff] %v13719_v59  ;;  %v13723_v46 = vpop.f32.mrf.mxu0  ;;  %v5575_v35 = vpop.f32.mrf.mxu1  ;;  %5820 = vmatpush.bf16.msrb.mxu0 %v8903_v14  ;;  %v8884_v59 = vld [vmem:[#allocation10 + $0x150] sm:$0xf0] }
 0xd2f   : > { %17140 = vst [vmem:[#allocation84_spill] sm:$0xff] %v13723_v46  ;;  %v13725_v8 = vadd.f32 %v5575_v35, %v4633_v47  ;;  %v8887_v12 = vor.u32 %v9366_v34, %v8884_v59  ;;  %v8842_v46 = vld [vmem:[#allocation10 + $0xe8] sm:$0xf]  ;;  %v9358_v59 = vld [vmem:[#allocation10 + $0x104] sm:$0xf] }
 0xd30   : > { %v8826_v34 = vld [vmem:[#allocation10 + $0xc8] sm:$0xf] }
 0xd31   : > { %5213 = vmatmul.bf16.gmra.mxu0 %v16955_v15  ;;  %5760 = vmatmul.bf16.gmra.mxu3 %v17081_v5  ;;  %v9362_v15 = vld [vmem:[#allocation10 + $0x124] sm:$0xf] }
 0xd32   : > { %5821 = vmatpush.bf16.msrb.mxu0 %v8887_v12  ;;  %v8871_v14 = vor.u32 %v9362_v15, %v8868_v30 }
 0xd34   : > { %v13729_v16 = vpop.f32.mrf.mxu2  ;;  %v13731_v24 = vpop.f32.mrf.mxu3 }
 0xd35   : > { %17141 = vst [vmem:[#allocation83_spill] sm:$0xff] %v13729_v16  ;;  %v17146_v16 = vld [vmem:[#allocation20_spill] sm:$0xff] }
 0xd36   : > { %17142 = vst [vmem:[#allocation260_spill] sm:$0xff] %v13731_v24  ;;  %v13735_v47 = vpop.f32.mrf.mxu0  ;;  %v5578_v35 = vpop.f32.mrf.mxu1  ;;  %v8843_v24 = vor.u32 %v9357_v13, %v8842_v46  ;;  %5822 = vmatpush.bf16.msrb.mxu0 %v8871_v14  ;;  %v8810_v46 = vld [vmem:[#allocation10 + $0xa8] sm:$0xf] }
 0xd37   : > { %17144 = vst [vmem:[#allocation87_spill] sm:$0xff] %v13735_v47  ;;  %v13737_v57 = vadd.f32 %v5578_v35, %v4636_v29  ;;  %v8855_v29 = vor.u32 %v9358_v59, %v8852_v54  ;;  %v9353_v35 = vld [vmem:[#allocation10 + $0xd4] sm:$0xf0]  ;;  %v8794_v59 = vld [vmem:[#allocation10 + $0x88] sm:$0xf] }
 0xd38   : > { %5905 = vmatpush.bf16.msra.mxu1 %v8843_v24  ;;  %v17149_v47 = vld [vmem:[#allocation74_spill] sm:$0xff]  ;;  %v8827_v30 = vor.u32 %v9353_v35, %v8826_v34  ;;  %v17153_v34 = vld [vmem:[#allocation75_spill] sm:$0xff] }
 0xd39   : > { %5617 = vmatmul.bf16.gmra.mxu1 %v17145_v39  ;;  %5666 = vmatmul.bf16.gmra.mxu2 %v17146_v16  ;;  %v4638_v15 = vadd.f32 %v13244_v55, %v17149_v47  ;;  %v9349_v24 = vld [vmem:[#allocation10 + $0xb4] sm:$0xf0] }
 0xd3a   : > { %5823 = vmatpush.bf16.msrb.mxu0 %v8855_v29  ;;  %v8811_v14 = vor.u32 %v9349_v24, %v8810_v46  ;;  %v9345_v54 = vld [vmem:[#allocation10 + $0x94] sm:$0xf0] }
 0xd3b   : > { %v8795_v47 = vor.u32 %v9345_v54, %v8794_v59  ;;  %v17155_v24 = vld [vmem:[#allocation134_spill] sm:$0xff] }
 0xd3c   : > { %v13741_v22 = vpop.f32.mrf.mxu2  ;;  %v13743_v12 = vpop.f32.mrf.mxu3  ;;  %5906 = vmatpush.bf16.msra.mxu1 %v8827_v30  ;;  %v9341_v30 = vld [vmem:[#allocation10 + $0x74] sm:$0xf0] }
 0xd3d   : > { %17147 = vst [vmem:[#allocation261_spill] sm:$0xff] %v13741_v22  ;;  %v17179_v22 = vld [vmem:[#allocation118_spill] sm:$0xff] }
 0xd3e   : > { %17148 = vst [vmem:[#allocation262_spill] sm:$0xff] %v13743_v12  ;;  %v13747_v2 = vpop.f32.mrf.mxu0  ;;  %v5580_v58 = vpop.f32.mrf.mxu1 }
 0xd3f   : > { %17150 = vst [vmem:[#allocation74_spill] sm:$0xff] %v13747_v2  ;;  %v13749_v13 = vadd.f32 %v5580_v58, %v4638_v15  ;;  %v4641_v58 = vadd.f32 %v13257_v0, %v17153_v34  ;;  %v8762_v2 = vld [vmem:[#allocation10 + $0x48] sm:$0xf]  ;;  %v17159_v34 = vld [vmem:[#allocation69_spill] sm:$0xff] }
 0xd40   : > { %5907 = vmatpush.bf16.msra.mxu1 %v8811_v14  ;;  %v17156_v14 = vld [vmem:[#allocation100_spill] sm:$0xff] }
 0xd41   : > { %5218 = vmatmul.bf16.gmra.mxu0 %v16965_v48  ;;  %5765 = vmatmul.bf16.gmra.mxu3 %v17090_v7  ;;  %v8778_v48 = vld [vmem:[#allocation10 + $0x68] sm:$0xf] }
 0xd42   : > { %v8779_v46 = vor.u32 %v9341_v30, %v8778_v48  ;;  %v8746_v48 = vld [vmem:[#allocation10 + $0x28] sm:$0xf]  ;;  %v9333_v30 = vld [vmem:[#allocation10 + $0x34] sm:$0xf0] }
 0xd44   : > { %v13753_v12 = vpop.f32.mrf.mxu2  ;;  %v13755_v55 = vpop.f32.mrf.mxu3  ;;  %5908 = vmatpush.bf16.msra.mxu1 %v8795_v47 }
 0xd45   : > { %17151 = vst [vmem:[#allocation263_spill] sm:$0xff] %v13753_v12  ;;  %v8747_v12 = vor.u32 %v9333_v30, %v8746_v48  ;;  %v17166_v48 = vld [vmem:[#allocation102_spill] sm:$0xff] }
 0xd46   : > { %17152 = vst [vmem:[#allocation264_spill] sm:$0xff] %v13755_v55  ;;  %v13759_v29 = vpop.f32.mrf.mxu0  ;;  %v5583_v35 = vpop.f32.mrf.mxu1  ;;  %v9337_v55 = vld [vmem:[#allocation10 + $0x54] sm:$0xf0] }
 0xd47   : > { %17154 = vst [vmem:[#allocation75_spill] sm:$0xff] %v13759_v29  ;;  %v13761_v15 = vadd.f32 %v5583_v35, %v4641_v58  ;;  %v8763_v0 = vor.u32 %v9337_v55, %v8762_v2  ;;  %v4643_v58 = vadd.f32 %v13268_v3, %v17159_v34  ;;  %v17163_v34 = vld [vmem:[#allocation72_spill] sm:$0xff] }
 0xd48   : > { %5909 = vmatpush.bf16.msra.mxu1 %v8779_v46  ;;  %v8730_v46 = vld [vmem:[#allocation10 + $0x8] sm:$0xf] }
 0xd49   : > { %5622 = vmatmul.bf16.gmra.mxu1 %v17155_v24  ;;  %5671 = vmatmul.bf16.gmra.mxu2 %v17156_v14 }
 0xd4c   : > { %v13765_v59 = vpop.f32.mrf.mxu2  ;;  %v13767_v54 = vpop.f32.mrf.mxu3  ;;  %5910 = vmatpush.bf16.msra.mxu1 %v8763_v0 }
 0xd4d   : > { %17157 = vst [vmem:[#allocation265_spill] sm:$0xff] %v13765_v59  ;;  %v17177_v59 = vld [vmem:[#allocation68_spill] sm:$0xff] }
 0xd4e   : > { %17158 = vst [vmem:[#allocation266_spill] sm:$0xff] %v13767_v54  ;;  %v13771_v35 = vpop.f32.mrf.mxu0  ;;  %v5585_v47 = vpop.f32.mrf.mxu1  ;;  %v9329_v54 = vld [vmem:[#allocation10 + $0x14] sm:$0xf0] }
 0xd4f   : > { %17160 = vst [vmem:[#allocation69_spill] sm:$0xff] %v13771_v35  ;;  %v13773_v29 = vadd.f32 %v5585_v47, %v4643_v58  ;;  %v8731_v3 = vor.u32 %v9329_v54, %v8730_v46  ;;  %v4646_v58 = vadd.f32 %v13281_v33, %v17163_v34 }
 0xd50   : > { %5911 = vmatpush.bf16.msra.mxu1 %v8747_v12 }
 0xd51   : > { %5223 = vmatmul.bf16.gmra.mxu0 %v16975_v41  ;;  %5770 = vmatmul.bf16.gmra.mxu3 %v17099_v19  ;;  %v17165_v41 = vld [vmem:[#allocation131_spill] sm:$0xff] }
 0xd54   : > { %v13777_v2 = vpop.f32.mrf.mxu2  ;;  %v13779_v55 = vpop.f32.mrf.mxu3  ;;  %5912 = vmatpush.bf16.msra.mxu1 %v8731_v3  ;;  %v17171_v3 = vld [vmem:[#allocation128_spill] sm:$0xff] }
 0xd55   : > { %17161 = vst [vmem:[#allocation267_spill] sm:$0xff] %v13777_v2  ;;  %v17169_v2 = vld [vmem:[#allocation129_spill] sm:$0xff] }
 0xd56   : > { %17162 = vst [vmem:[#allocation268_spill] sm:$0xff] %v13779_v55  ;;  %v13783_v47 = vpop.f32.mrf.mxu0  ;;  %v5588_v0 = vpop.f32.mrf.mxu1  ;;  %v4648_v54 = vadd.f32 %v13293_v32, %v17169_v2 }
 0xd57   : > { %17164 = vst [vmem:[#allocation72_spill] sm:$0xff] %v13783_v47  ;;  %v13785_v35 = vadd.f32 %v5588_v0, %v4646_v58  ;;  %v4794_v58 = vadd.f32 %v13289_v61, %v17171_v3  ;;  %v17173_v47 = vld [vmem:[#allocation65_spill] sm:$0xff]  ;;  %v4796_v61 = vadd.f32 %v13299_v40, %v17177_v59 }
 0xd59   : > { %5627 = vmatmul.bf16.gmra.mxu1 %v17165_v41  ;;  %5676 = vmatmul.bf16.gmra.mxu2 %v17166_v48 }
 0xd5c   : > { %v13789_v12 = vpop.f32.mrf.mxu2  ;;  %v13791_v30 = vpop.f32.mrf.mxu3 }
 0xd5d   : > { %17167 = vst [vmem:[#allocation131_spill] sm:$0xff] %v13789_v12 }
 0xd5e   : > { %17168 = vst [vmem:[#allocation102_spill] sm:$0xff] %v13791_v30  ;;  %v13795_v46 = vpop.f32.mrf.mxu0  ;;  %v5590_v33 = vpop.f32.mrf.mxu1  ;;  %v4651_v30 = vadd.f32 %v13303_v52, %v17173_v47  ;;  %v4653_v52 = vadd.f32 %v13313_v27, %v17179_v22 }
 0xd5f   : > { %17170 = vst [vmem:[#allocation129_spill] sm:$0xff] %v13795_v46  ;;  %v13797_v34 = vadd.f32 %v5590_v33, %v4648_v54  ;;  %v17175_v33 = vld [vmem:[#allocation127_spill] sm:$0xff]  ;;  %v17176_v46 = vld [vmem:[#allocation106_spill] sm:$0xff] }
 0xd61   : > { %5775 = vmatmul.bf16.gmra.mxu3 %v17107_v63  ;;  %5824 = vmatmul.bf16.vlgmr.msrb.gmra.mxu0 %v17108_v9  ;;  %v17190_v9 = vld [vmem:[#allocation51_spill] sm:$0xff] }
 0xd64   : > { %v13803_v0 = vpop.f32.mrf.mxu2  ;;  %v5736_v55 = vpop.f32.mrf.mxu3 }
 0xd65   : > { %17172 = vst [vmem:[#allocation128_spill] sm:$0xff] %v13803_v0  ;;  %v13807_v12 = vadd.f32 %v5736_v55, %v4794_v58 }
 0xd66   : > { %v13809_v32 = vpop.f32.mrf.mxu0  ;;  %v5593_v2 = vpop.f32.mrf.mxu1 }
 0xd67   : > { %17174 = vst [vmem:[#allocation65_spill] sm:$0xff] %v13809_v32  ;;  %v13811_v54 = vadd.f32 %v5593_v2, %v4651_v30  ;;  %v17181_v2 = vld [vmem:[#allocation73_spill] sm:$0xff] }
 0xd68   : > { %v4799_v40 = vadd.f32 %v13309_v31, %v17181_v2 }
 0xd69   : > { %5632 = vmatmul.bf16.gmra.mxu1 %v17175_v33  ;;  %5681 = vmatmul.bf16.gmra.mxu2 %v17176_v46 }
 0xd6c   : > { %v13817_v3 = vpop.f32.mrf.mxu2  ;;  %v5738_v0 = vpop.f32.mrf.mxu3 }
 0xd6d   : > { %17178 = vst [vmem:[#allocation127_spill] sm:$0xff] %v13817_v3  ;;  %v13821_v55 = vadd.f32 %v5738_v0, %v4796_v61  ;;  %v17183_v3 = vld [vmem:[#allocation96_spill] sm:$0xff] }
 0xd6e   : > { %v13823_v47 = vpop.f32.mrf.mxu0  ;;  %v5595_v58 = vpop.f32.mrf.mxu1  ;;  %v4656_v27 = vadd.f32 %v13323_v50, %v17183_v3 }
 0xd6f   : > { %17180 = vst [vmem:[#allocation106_spill] sm:$0xff] %v13823_v47  ;;  %v13825_v30 = vadd.f32 %v5595_v58, %v4653_v52  ;;  %v17186_v58 = vld [vmem:[#allocation137_spill] sm:$0xff] }
 0xd70   : > { %v17187_v47 = vld [vmem:[#allocation29_spill] sm:$0xff] }
 0xd71   : > { %5780 = vmatmul.bf16.gmra.mxu3 %v17115_v23  ;;  %5829 = vmatmul.bf16.gmra.mxu0 %v17116_v18  ;;  %v17188_v18 = vld [vmem:[#allocation62_spill] sm:$0xff] }
 0xd72   : > { %v4801_v31 = vadd.f32 %v17188_v18, %v17187_v47  ;;  %v17189_v23 = vld [vmem:[#allocation158_spill] sm:$0xff] }
 0xd73   : > { %v4658_v63 = vadd.f32 %v17190_v9, %v17189_v23  ;;  %v17193_v18 = vld [vmem:[#allocation146_spill] sm:$0xff]  ;;  %v17195_v9 = vld [vmem:[#allocation99_spill] sm:$0xff]  ;;  %v17196_v23 = vld [vmem:[#allocation40_spill] sm:$0xff] }
 0xd74   : > { %v13831_v59 = vpop.f32.mrf.mxu2  ;;  %v5741_v32 = vpop.f32.mrf.mxu3  ;;  %v17194_v47 = vld [vmem:[#allocation98_spill] sm:$0xff] }
 0xd75   : > { %17182 = vst [vmem:[#allocation68_spill] sm:$0xff] %v13831_v59  ;;  %v13835_v22 = vadd.f32 %v5741_v32, %v4799_v40 }
 0xd76   : > { %v13837_v0 = vpop.f32.mrf.mxu0  ;;  %v5598_v61 = vpop.f32.mrf.mxu1 }
 0xd77   : > { %17184 = vst [vmem:[#allocation118_spill] sm:$0xff] %v13837_v0  ;;  %v13839_v52 = vadd.f32 %v5598_v61, %v4656_v27  ;;  %v4804_v61 = vadd.f32 %v17194_v47, %v17193_v18  ;;  %v17201_v18 = vld [vmem:[#allocation28_spill] sm:$0xff]  ;;  %v17202_v47 = vld [vmem:[#allocation82_spill] sm:$0xff] }
 0xd79   : > { %17185 = vst [vmem:[#allocation73_spill] sm:$0xff] %v13839_v52  ;;  %5686 = vmatmul.bf16.gmra.mxu2 %v17186_v58  ;;  %5913 = vmatmul.bf16.vlgmr.msra.gmra.mxu1 %v17036_v53 }
 0xd7c   : > { %v5647_v2 = vpop.f32.mrf.mxu2  ;;  %v5743_v59 = vpop.f32.mrf.mxu3 }
 0xd7d   : > { %v13848_v50 = vadd.f32 %v5647_v2, %v13641_v25  ;;  %v13850_v32 = vadd.f32 %v5743_v59, %v4801_v31  ;;  %v4661_v25 = vadd.f32 %v17196_v23, %v17195_v9  ;;  %v17203_v9 = vld [vmem:[#allocation104_spill] sm:$0xff] }
 0xd7e   : > { %v13852_v3 = vpop.f32.mrf.mxu0  ;;  %v5600_v40 = vpop.f32.mrf.mxu1  ;;  %v17204_v23 = vld [vmem:[#allocation24_spill] sm:$0xff] }
 0xd7f   : > { %17191 = vst [vmem:[#allocation96_spill] sm:$0xff] %v13848_v50  ;;  %v13854_v27 = vadd.f32 %v5600_v40, %v4658_v63  ;;  %v17200_v50 = vld [vmem:[#allocation80_spill] sm:$0xff] }
 0xd80   : > { %17192 = vst [vmem:[#allocation137_spill] sm:$0xff] %v13852_v3  ;;  %v4806_v3 = vadd.f32 %v17202_v47, %v17201_v18  ;;  %v17207_v18 = vld [vmem:[#allocation157_spill] sm:$0xff]  ;;  %v17208_v47 = vld [vmem:[#allocation30_spill] sm:$0xff] }
 0xd81   : > { %5785 = vmatmul.bf16.gmra.mxu3 %v17124_v42  ;;  %5834 = vmatmul.bf16.gmra.mxu0 %v17125_v51 }
 0xd84   : > { %v5649_v0 = vpop.f32.mrf.mxu2  ;;  %v5746_v52 = vpop.f32.mrf.mxu3 }
 0xd85   : > { %v13863_v59 = vadd.f32 %v5649_v0, %v13653_v49  ;;  %v13865_v31 = vadd.f32 %v5746_v52, %v4804_v61  ;;  %v4663_v49 = vadd.f32 %v17204_v23, %v17203_v9  ;;  %v17209_v9 = vld [vmem:[#allocation147_spill] sm:$0xff] }
 0xd86   : > { %v13867_v2 = vpop.f32.mrf.mxu0  ;;  %v5603_v63 = vpop.f32.mrf.mxu1  ;;  %v17210_v23 = vld [vmem:[#allocation91_spill] sm:$0xff] }
 0xd87   : > { %17197 = vst [vmem:[#allocation29_spill] sm:$0xff] %v13863_v59  ;;  %v13869_v40 = vadd.f32 %v5603_v63, %v4661_v25  ;;  %v4809_v59 = vadd.f32 %v17208_v47, %v17207_v18  ;;  %v17215_v18 = vld [vmem:[#allocation101_spill] sm:$0xff]  ;;  %v17216_v47 = vld [vmem:[#allocation27_spill] sm:$0xff] }
 0xd88   : > { %17198 = vst [vmem:[#allocation62_spill] sm:$0xff] %v13867_v2 }
 0xd89   : > { %17199 = vst [vmem:[#allocation158_spill] sm:$0xff] %v13869_v40  ;;  %5691 = vmatmul.bf16.gmra.mxu2 %v17200_v50  ;;  %5918 = vmatmul.bf16.gmra.mxu1 %v17045_v62 }
 0xd8c   : > { %v5652_v51 = vpop.f32.mrf.mxu2  ;;  %v5748_v42 = vpop.f32.mrf.mxu3 }
 0xd8d   : > { %v13878_v0 = vadd.f32 %v5652_v51, %v13665_v6  ;;  %v13880_v52 = vadd.f32 %v5748_v42, %v4806_v3  ;;  %v4666_v6 = vadd.f32 %v17210_v23, %v17209_v9  ;;  %v17217_v9 = vld [vmem:[#allocation148_spill] sm:$0xff]  ;;  %v17218_v23 = vld [vmem:[#allocation47_spill] sm:$0xff] }
 0xd8e   : > { %v13882_v61 = vpop.f32.mrf.mxu0  ;;  %v5605_v25 = vpop.f32.mrf.mxu1 }
 0xd8f   : > { %17205 = vst [vmem:[#allocation51_spill] sm:$0xff] %v13878_v0  ;;  %v13884_v63 = vadd.f32 %v5605_v25, %v4663_v49  ;;  %v17214_v0 = vld [vmem:[#allocation113_spill] sm:$0xff] }
 0xd90   : > { %17206 = vst [vmem:[#allocation146_spill] sm:$0xff] %v13882_v61  ;;  %v4811_v61 = vadd.f32 %v17216_v47, %v17215_v18  ;;  %v17222_v18 = vld [vmem:[#allocation112_spill] sm:$0xff]  ;;  %v17223_v47 = vld [vmem:[#allocation94_spill] sm:$0xff] }
 0xd91   : > { %5790 = vmatmul.bf16.gmra.mxu3 %v17134_v43  ;;  %5839 = vmatmul.bf16.gmra.mxu0 %v17135_v10 }
 0xd94   : > { %v5654_v2 = vpop.f32.mrf.mxu2  ;;  %v5751_v40 = vpop.f32.mrf.mxu3 }
 0xd95   : > { %v13893_v42 = vadd.f32 %v5654_v2, %v13677_v38  ;;  %v13895_v51 = vadd.f32 %v5751_v40, %v4809_v59  ;;  %v4668_v38 = vadd.f32 %v17218_v23, %v17217_v9  ;;  %v4814_v9 = vadd.f32 %v17223_v47, %v17222_v18  ;;  %v9347_v18 = vld [vmem:[#allocation10 + $0xac] sm:$0xf]  ;;  %v8812_v47 = vld [vmem:[#allocation10 + $0xb8] sm:$0xf0] }
 0xd96   : > { %v13897_v3 = vpop.f32.mrf.mxu0  ;;  %v5608_v49 = vpop.f32.mrf.mxu1 }
 0xd97   : > { %17211 = vst [vmem:[#allocation98_spill] sm:$0xff] %v13893_v42  ;;  %v13899_v25 = vadd.f32 %v5608_v49, %v4666_v6  ;;  %v9355_v42 = vld [vmem:[#allocation10 + $0xec] sm:$0xf] }
 0xd98   : > { %17212 = vst [vmem:[#allocation99_spill] sm:$0xff] %v13897_v3  ;;  %v8844_v3 = vld [vmem:[#allocation10 + $0xf8] sm:$0xf0] }
 0xd99   : > { %17213 = vst [vmem:[#allocation40_spill] sm:$0xff] %v13899_v25  ;;  %5696 = vmatmul.bf16.gmra.mxu2 %v17214_v0  ;;  %5923 = vmatmul.bf16.gmra.mxu1 %v17054_v56  ;;  %v8847_v25 = vor.u32 %v9355_v42, %v8844_v3 }
 0xd9b   : > { %6083 = vmatpush.bf16.msra.mxu3 %v8847_v25 }
 0xd9c   : > { %v5657_v10 = vpop.f32.mrf.mxu2  ;;  %v5753_v43 = vpop.f32.mrf.mxu3 }
 0xd9d   : > { %v13908_v59 = vadd.f32 %v5657_v10, %v13689_v60  ;;  %v13910_v2 = vadd.f32 %v5753_v43, %v4811_v61  ;;  %v9351_v10 = vld [vmem:[#allocation10 + $0xcc] sm:$0xf]  ;;  %v8828_v60 = vld [vmem:[#allocation10 + $0xd8] sm:$0xf0] }
 0xd9e   : > { %v13912_v40 = vpop.f32.mrf.mxu0  ;;  %v5610_v6 = vpop.f32.mrf.mxu1  ;;  %v8831_v23 = vor.u32 %v9351_v10, %v8828_v60  ;;  %v9343_v10 = vld [vmem:[#allocation10 + $0x8c] sm:$0xf] }
 0xd9f   : > { %17219 = vst [vmem:[#allocation80_spill] sm:$0xff] %v13908_v59  ;;  %v13914_v49 = vadd.f32 %v5610_v6, %v4668_v38  ;;  %v17224_v59 = vld [vmem:[#allocation133_spill] sm:$0xff] }
 0xda0   : > { %17220 = vst [vmem:[#allocation28_spill] sm:$0xff] %v13912_v40  ;;  %v17225_v40 = vld [vmem:[#allocation33_spill] sm:$0xff]  ;;  %6084 = vmatpush.bf16.msra.mxu3 %v8831_v23  ;;  %v17233_v23 = vld [vmem:[#allocation160_spill] sm:$0xff] }
 0xda1   : > { %17221 = vst [vmem:[#allocation82_spill] sm:$0xff] %v13914_v49  ;;  %5795 = vmatmul.bf16.gmra.mxu3 %v17145_v39  ;;  %5844 = vmatmul.bf16.gmra.mxu0 %v17146_v16  ;;  %v4671_v38 = vadd.f32 %v17225_v40, %v17224_v59  ;;  %v8815_v39 = vor.u32 %v9347_v18, %v8812_v47  ;;  %v17229_v49 = vld [vmem:[#allocation78_spill] sm:$0xff]  ;;  %v17230_v59 = vld [vmem:[#allocation156_spill] sm:$0xff] }
 0xda2   : > { %v17231_v40 = vld [vmem:[#allocation36_spill] sm:$0xff] }
 0xda4   : > { %v5659_v43 = vpop.f32.mrf.mxu2  ;;  %v5756_v61 = vpop.f32.mrf.mxu3  ;;  %6085 = vmatpush.bf16.msra.mxu3 %v8815_v39 }
 0xda5   : > { %v13923_v6 = vadd.f32 %v5659_v43, %v13701_v37  ;;  %v13925_v42 = vadd.f32 %v5756_v61, %v4814_v9  ;;  %v4816_v37 = vadd.f32 %v17231_v40, %v17230_v59  ;;  %v8796_v9 = vld [vmem:[#allocation10 + $0x98] sm:$0xf0]  ;;  %v9339_v59 = vld [vmem:[#allocation10 + $0x6c] sm:$0xf] }
 0xda6   : > { %v13927_v3 = vpop.f32.mrf.mxu0  ;;  %v5613_v16 = vpop.f32.mrf.mxu1  ;;  %v8799_v61 = vor.u32 %v9343_v10, %v8796_v9  ;;  %v8780_v40 = vld [vmem:[#allocation10 + $0x78] sm:$0xf0]  ;;  %v9335_v9 = vld [vmem:[#allocation10 + $0x4c] sm:$0xf] }
 0xda7   : > { %17226 = vst [vmem:[#allocation104_spill] sm:$0xff] %v13923_v6  ;;  %v13929_v25 = vadd.f32 %v5613_v16, %v4671_v38  ;;  %v17232_v6 = vld [vmem:[#allocation105_spill] sm:$0xff]  ;;  %v17237_v10 = vld [vmem:[#allocation38_spill] sm:$0xff] }
 0xda8   : > { %17227 = vst [vmem:[#allocation24_spill] sm:$0xff] %v13927_v3  ;;  %v4673_v16 = vadd.f32 %v17233_v23, %v17232_v6  ;;  %6086 = vmatpush.bf16.msra.mxu3 %v8799_v61  ;;  %v17236_v6 = vld [vmem:[#allocation44_spill] sm:$0xff] }
 0xda9   : > { %17228 = vst [vmem:[#allocation157_spill] sm:$0xff] %v13929_v25  ;;  %5701 = vmatmul.bf16.gmra.mxu2 %v17229_v49  ;;  %5928 = vmatmul.bf16.gmra.mxu1 %v17063_v28  ;;  %v8783_v25 = vor.u32 %v9339_v59, %v8780_v40 }
 0xdac   : > { %v5662_v60 = vpop.f32.mrf.mxu2  ;;  %v5758_v43 = vpop.f32.mrf.mxu3  ;;  %6087 = vmatpush.bf16.msra.mxu3 %v8783_v25 }
 0xdad   : > { %v13938_v38 = vadd.f32 %v5662_v60, %v13713_v45  ;;  %v13940_v18 = vadd.f32 %v5758_v43, %v4816_v37  ;;  %v4819_v45 = vadd.f32 %v17237_v10, %v17236_v6  ;;  %v8764_v37 = vld [vmem:[#allocation10 + $0x58] sm:$0xf0]  ;;  %v8970_v6 = vld [vmem:[#allocation10 + $0x1e8] sm:$0xf]  ;;  %v9389_v10 = vld [vmem:[#allocation10 + $0x1f4] sm:$0xf0] }
 0xdae   : > { %v13942_v47 = vpop.f32.mrf.mxu0  ;;  %v5615_v3 = vpop.f32.mrf.mxu1  ;;  %v8767_v23 = vor.u32 %v9335_v9, %v8764_v37  ;;  %v17242_v9 = vld [vmem:[#allocation31_spill] sm:$0xff]  ;;  %v8954_v37 = vld [vmem:[#allocation10 + $0x1c8] sm:$0xf] }
 0xdaf   : > { %17234 = vst [vmem:[#allocation30_spill] sm:$0xff] %v13938_v38  ;;  %v13944_v39 = vadd.f32 %v5615_v3, %v4673_v16  ;;  %v17238_v38 = vld [vmem:[#allocation67_spill] sm:$0xff] }
 0xdb0   : > { %17235 = vst [vmem:[#allocation147_spill] sm:$0xff] %v13942_v47  ;;  %v4676_v3 = vadd.f32 %v13403_v26, %v17238_v38  ;;  %6088 = vmatpush.bf16.msra.mxu3 %v8767_v23  ;;  %v9331_v47 = vld [vmem:[#allocation10 + $0x2c] sm:$0xf]  ;;  %v17244_v38 = vld [vmem:[#allocation162_spill] sm:$0xff] }
 0xdb1   : > { %5800 = vmatmul.bf16.gmra.mxu3 %v17155_v24  ;;  %5849 = vmatmul.bf16.gmra.mxu0 %v17156_v14  ;;  %v8971_v14 = vor.u32 %v9389_v10, %v8970_v6  ;;  %v8748_v24 = vld [vmem:[#allocation10 + $0x38] sm:$0xf0] }
 0xdb2   : > { %v8751_v26 = vor.u32 %v9331_v47, %v8748_v24 }
 0xdb3   : > { %5994 = vmatpush.bf16.msra.mxu2 %v8971_v14 }
 0xdb4   : > { %v5664_v60 = vpop.f32.mrf.mxu2  ;;  %v5761_v43 = vpop.f32.mrf.mxu3  ;;  %6089 = vmatpush.bf16.msra.mxu3 %v8751_v26 }
 0xdb5   : > { %v13953_v61 = vadd.f32 %v5664_v60, %v13725_v8  ;;  %v13955_v16 = vadd.f32 %v5761_v43, %v4819_v45  ;;  %v17243_v8 = vld [vmem:[#allocation130_spill] sm:$0xff]  ;;  %v9327_v43 = vld [vmem:[#allocation10 + $0xc] sm:$0xf] }
 0xdb6   : > { %v13957_v59 = vpop.f32.mrf.mxu0  ;;  %v5618_v40 = vpop.f32.mrf.mxu1  ;;  %v4821_v45 = vadd.f32 %v17244_v38, %v17243_v8  ;;  %v9385_v60 = vld [vmem:[#allocation10 + $0x1d4] sm:$0xf0]  ;;  %v8938_v8 = vld [vmem:[#allocation10 + $0x1a8] sm:$0xf] }
 0xdb7   : > { %17239 = vst [vmem:[#allocation91_spill] sm:$0xff] %v13953_v61  ;;  %v13959_v25 = vadd.f32 %v5618_v40, %v4676_v3  ;;  %v8955_v40 = vor.u32 %v9385_v60, %v8954_v37  ;;  %v8732_v61 = vld [vmem:[#allocation10 + $0x18] sm:$0xf0]  ;;  %v9381_v38 = vld [vmem:[#allocation10 + $0x1b4] sm:$0xf0] }
 0xdb8   : > { %17240 = vst [vmem:[#allocation101_spill] sm:$0xff] %v13957_v59  ;;  %v17245_v59 = vld [vmem:[#allocation151_spill] sm:$0xff]  ;;  %v8735_v24 = vor.u32 %v9327_v43, %v8732_v61  ;;  %v8939_v37 = vor.u32 %v9381_v38, %v8938_v8  ;;  %v9377_v61 = vld [vmem:[#allocation10 + $0x194] sm:$0xf0] }
 0xdb9   : > { %17241 = vst [vmem:[#allocation27_spill] sm:$0xff] %v13959_v25  ;;  %5706 = vmatmul.bf16.gmra.mxu2 %v17242_v9  ;;  %5933 = vmatmul.bf16.gmra.mxu1 %v17072_v4  ;;  %v4678_v6 = vadd.f32 %v13413_v20, %v17245_v59  ;;  %v17248_v20 = vld [vmem:[#allocation107_spill] sm:$0xff]  ;;  %v8922_v59 = vld [vmem:[#allocation10 + $0x188] sm:$0xf] }
 0xdba   : > { %5995 = vmatpush.bf16.msra.mxu2 %v8955_v40  ;;  %6090 = vmatpush.bf16.msra.mxu3 %v8735_v24  ;;  %v8923_v43 = vor.u32 %v9377_v61, %v8922_v59  ;;  %v17254_v59 = vld [vmem:[#allocation70_spill] sm:$0xff]  ;;  %v17255_v61 = vld [vmem:[#allocation167_spill] sm:$0xff] }
 0xdbc   : > { %v5667_v23 = vpop.f32.mrf.mxu2  ;;  %v5763_v3 = vpop.f32.mrf.mxu3 }
 0xdbd   : > { %v13968_v10 = vadd.f32 %v5667_v23, %v13737_v57  ;;  %v13970_v25 = vadd.f32 %v5763_v3, %v4821_v45  ;;  %v4824_v57 = vadd.f32 %v13407_v1, %v17248_v20  ;;  %v17249_v23 = vld [vmem:[#allocation109_spill] sm:$0xff]  ;;  %v8906_v1 = vld [vmem:[#allocation10 + $0x168] sm:$0xf] }
 0xdbe   : > { %v13972_v14 = vpop.f32.mrf.mxu0  ;;  %v5620_v47 = vpop.f32.mrf.mxu1  ;;  %5996 = vmatpush.bf16.msra.mxu2 %v8939_v37  ;;  %v17250_v3 = vld [vmem:[#allocation169_spill] sm:$0xff]  ;;  %v9373_v37 = vld [vmem:[#allocation10 + $0x174] sm:$0xf0] }
 0xdbf   : > { %17246 = vst [vmem:[#allocation148_spill] sm:$0xff] %v13968_v10  ;;  %v13974_v26 = vadd.f32 %v5620_v47, %v4678_v6  ;;  %v4681_v40 = vadd.f32 %v17250_v3, %v17249_v23  ;;  %v8907_v20 = vor.u32 %v9373_v37, %v8906_v1  ;;  %v17253_v10 = vld [vmem:[#allocation23_spill] sm:$0xff] }
 0xdc0   : > { %17247 = vst [vmem:[#allocation47_spill] sm:$0xff] %v13972_v14 }
 0xdc1   : > { %5805 = vmatmul.bf16.gmra.mxu3 %v17165_v41  ;;  %5854 = vmatmul.bf16.gmra.mxu0 %v17166_v48 }
 0xdc2   : > { %5997 = vmatpush.bf16.msra.mxu2 %v8923_v43 }
 0xdc4   : > { %v5669_v45 = vpop.f32.mrf.mxu2  ;;  %v5766_v60 = vpop.f32.mrf.mxu3 }
 0xdc5   : > { %v13983_v6 = vadd.f32 %v5669_v45, %v13749_v13  ;;  %v13985_v24 = vadd.f32 %v5766_v60, %v4824_v57  ;;  %v4826_v13 = vadd.f32 %v17255_v61, %v17254_v59  ;;  %v8890_v45 = vld [vmem:[#allocation10 + $0x148] sm:$0xf]  ;;  %v9369_v57 = vld [vmem:[#allocation10 + $0x154] sm:$0xf0] }
 0xdc6   : > { %v13987_v47 = vpop.f32.mrf.mxu0  ;;  %v5623_v8 = vpop.f32.mrf.mxu1  ;;  %5998 = vmatpush.bf16.msra.mxu2 %v8907_v20  ;;  %v8891_v3 = vor.u32 %v9369_v57, %v8890_v45  ;;  %v8874_v59 = vld [vmem:[#allocation10 + $0x128] sm:$0xf]  ;;  %v9365_v61 = vld [vmem:[#allocation10 + $0x134] sm:$0xf0] }
 0xdc7   : > { %17251 = vst [vmem:[#allocation112_spill] sm:$0xff] %v13983_v6  ;;  %v13989_v38 = vadd.f32 %v5623_v8, %v4681_v40  ;;  %v17256_v6 = vld [vmem:[#allocation154_spill] sm:$0xff] }
 0xdc8   : > { %17252 = vst [vmem:[#allocation94_spill] sm:$0xff] %v13987_v47  ;;  %v4683_v43 = vadd.f32 %v13433_v36, %v17256_v6  ;;  %v8875_v47 = vor.u32 %v9365_v61, %v8874_v59  ;;  %v17259_v36 = vld [vmem:[#allocation150_spill] sm:$0xff]  ;;  %v8858_v6 = vld [vmem:[#allocation10 + $0x108] sm:$0xf] }
 0xdc9   : > { %5711 = vmatmul.bf16.gmra.mxu2 %v17253_v10  ;;  %5938 = vmatmul.bf16.gmra.mxu1 %v17081_v5 }
 0xdca   : > { %5999 = vmatpush.bf16.msra.mxu2 %v8891_v3 }
 0xdcc   : > { %v5672_v60 = vpop.f32.mrf.mxu2  ;;  %v5768_v23 = vpop.f32.mrf.mxu3 }
 0xdcd   : > { %v13998_v40 = vadd.f32 %v5672_v60, %v13761_v15  ;;  %v14000_v8 = vadd.f32 %v5768_v23, %v4826_v13  ;;  %v4829_v15 = vadd.f32 %v13427_v11, %v17259_v36  ;;  %v9361_v13 = vld [vmem:[#allocation10 + $0x114] sm:$0xf0]  ;;  %v17260_v23 = vld [vmem:[#allocation111_spill] sm:$0xff]  ;;  %v17263_v11 = vld [vmem:[#allocation93_spill] sm:$0xff] }
 0xdce   : > { %v14002_v1 = vpop.f32.mrf.mxu0  ;;  %v5625_v37 = vpop.f32.mrf.mxu1  ;;  %6000 = vmatpush.bf16.msra.mxu2 %v8875_v47  ;;  %v8859_v60 = vor.u32 %v9361_v13, %v8858_v6  ;;  %v4686_v3 = vadd.f32 %v13443_v17, %v17260_v23  ;;  %v17264_v36 = vld [vmem:[#allocation108_spill] sm:$0xff]  ;;  %v17265_v23 = vld [vmem:[#allocation119_spill] sm:$0xff] }
 0xdcf   : > { %17257 = vst [vmem:[#allocation133_spill] sm:$0xff] %v13998_v40  ;;  %v14004_v20 = vadd.f32 %v5625_v37, %v4683_v43  ;;  %v4831_v6 = vadd.f32 %v13437_v21, %v17264_v36  ;;  %v17268_v21 = vld [vmem:[#allocation121_spill] sm:$0xff]  ;;  %v17269_v36 = vld [vmem:[#allocation175_spill] sm:$0xff] }
 0xdd0   : > { %17258 = vst [vmem:[#allocation33_spill] sm:$0xff] %v14002_v1 }
 0xdd1   : > { %5810 = vmatmul.bf16.gmra.mxu3 %v17175_v33  ;;  %5859 = vmatmul.bf16.gmra.mxu0 %v17176_v46 }
 0xdd2   : > { %6001 = vmatpush.bf16.msra.mxu2 %v8859_v60 }
 0xdd4   : > { %v5674_v45 = vpop.f32.mrf.mxu2  ;;  %v5771_v57 = vpop.f32.mrf.mxu3 }
 0xdd5   : > { %v14013_v43 = vadd.f32 %v5674_v45, %v13773_v29  ;;  %v14015_v37 = vadd.f32 %v5771_v57, %v4829_v15  ;;  %v4688_v29 = vadd.f32 %v13453_v44, %v17265_v23 }
 0xdd6   : > { %v14017_v59 = vpop.f32.mrf.mxu0  ;;  %v5628_v61 = vpop.f32.mrf.mxu1 }
 0xdd7   : > { %17261 = vst [vmem:[#allocation156_spill] sm:$0xff] %v14013_v43  ;;  %v14019_v47 = vadd.f32 %v5628_v61, %v4686_v3  ;;  %v4834_v43 = vadd.f32 %v17269_v36, %v17268_v21  ;;  %v17275_v21 = vld [vmem:[#allocation22_spill] sm:$0xff] }
 0xdd8   : > { %17262 = vst [vmem:[#allocation36_spill] sm:$0xff] %v14017_v59  ;;  %v17276_v36 = vld [vmem:[#allocation178_spill] sm:$0xff] }
 0xdd9   : > { %5716 = vmatmul.bf16.gmra.mxu2 %v17263_v11  ;;  %5943 = vmatmul.bf16.gmra.mxu1 %v17090_v7 }
 0xddc   : > { %v5677_v13 = vpop.f32.mrf.mxu2  ;;  %v5773_v17 = vpop.f32.mrf.mxu3 }
 0xddd   : > { %v14028_v15 = vadd.f32 %v5677_v13, %v13785_v35  ;;  %v14030_v45 = vadd.f32 %v5773_v17, %v4831_v6  ;;  %v17270_v35 = vld [vmem:[#allocation61_spill] sm:$0xff]  ;;  %v17271_v13 = vld [vmem:[#allocation180_spill] sm:$0xff] }
 0xdde   : > { %v5630_v57 = vpop.f32.mrf.mxu1  ;;  %v5825_v60 = vpop.f32.mrf.mxu0  ;;  %v4691_v6 = vadd.f32 %v17271_v13, %v17270_v35 }
 0xddf   : > { %17266 = vst [vmem:[#allocation105_spill] sm:$0xff] %v14028_v15  ;;  %v14032_v3 = vadd.f32 %v5630_v57, %v4688_v29  ;;  %v14035_v61 = vadd.f32 %v5825_v60, %v13807_v12  ;;  %v4836_v15 = vadd.f32 %v17276_v36, %v17275_v21  ;;  %v17281_v21 = vld [vmem:[#allocation149_spill] sm:$0xff]  ;;  %v17282_v36 = vld [vmem:[#allocation182_spill] sm:$0xff] }
 0xde1   : > { %17267 = vst [vmem:[#allocation160_spill] sm:$0xff] %v14035_v61  ;;  %5864 = vmatmul.bf16.gmra.mxu0 %v17186_v58  ;;  %6091 = vmatmul.bf16.vlgmr.msra.gmra.mxu3 %v17036_v53  ;;  %v17274_v53 = vld [vmem:[#allocation45_spill] sm:$0xff] }
 0xde4   : > { %v5679_v44 = vpop.f32.mrf.mxu2  ;;  %v5776_v23 = vpop.f32.mrf.mxu3 }
 0xde5   : > { %v14044_v17 = vadd.f32 %v5679_v44, %v13797_v34  ;;  %v14046_v29 = vadd.f32 %v5776_v23, %v4834_v43  ;;  %v17277_v34 = vld [vmem:[#allocation153_spill] sm:$0xff]  ;;  %v17278_v44 = vld [vmem:[#allocation184_spill] sm:$0xff] }
 0xde6   : > { %v5633_v57 = vpop.f32.mrf.mxu1  ;;  %v5827_v12 = vpop.f32.mrf.mxu0  ;;  %v4693_v43 = vadd.f32 %v17278_v44, %v17277_v34 }
 0xde7   : > { %17272 = vst [vmem:[#allocation44_spill] sm:$0xff] %v14044_v17  ;;  %v14048_v60 = vadd.f32 %v5633_v57, %v4691_v6  ;;  %v14051_v61 = vadd.f32 %v5827_v12, %v13821_v55  ;;  %v4839_v17 = vadd.f32 %v17282_v36, %v17281_v21  ;;  %v17288_v21 = vld [vmem:[#allocation135_spill] sm:$0xff]  ;;  %v17289_v36 = vld [vmem:[#allocation50_spill] sm:$0xff] }
 0xde9   : > { %17273 = vst [vmem:[#allocation38_spill] sm:$0xff] %v14051_v61  ;;  %5721 = vmatmul.bf16.gmra.mxu2 %v17274_v53  ;;  %5948 = vmatmul.bf16.gmra.mxu1 %v17099_v19 }
 0xdec   : > { %v5682_v35 = vpop.f32.mrf.mxu2  ;;  %v5778_v13 = vpop.f32.mrf.mxu3 }
 0xded   : > { %v14060_v23 = vadd.f32 %v5682_v35, %v13811_v54  ;;  %v14062_v6 = vadd.f32 %v5778_v13, %v4836_v15  ;;  %v17283_v54 = vld [vmem:[#allocation81_spill] sm:$0xff]  ;;  %v17284_v35 = vld [vmem:[#allocation124_spill] sm:$0xff] }
 0xdee   : > { %v5635_v57 = vpop.f32.mrf.mxu1  ;;  %v5830_v55 = vpop.f32.mrf.mxu0  ;;  %v4972_v15 = vadd.f32 %v17284_v35, %v17283_v54 }
 0xdef   : > { %17279 = vst [vmem:[#allocation67_spill] sm:$0xff] %v14060_v23  ;;  %v14064_v12 = vadd.f32 %v5635_v57, %v4693_v43  ;;  %v14067_v61 = vadd.f32 %v5830_v55, %v13835_v22  ;;  %v17290_v23 = vld [vmem:[#allocation186_spill] sm:$0xff] }
 0xdf0   : > { %v4841_v40 = vadd.f32 %v17290_v23, %v17289_v36  ;;  %v17296_v23 = vld [vmem:[#allocation138_spill] sm:$0xff]  ;;  %v17297_v36 = vld [vmem:[#allocation189_spill] sm:$0xff] }
 0xdf1   : > { %17280 = vst [vmem:[#allocation130_spill] sm:$0xff] %v14067_v61  ;;  %5869 = vmatmul.bf16.gmra.mxu0 %v17200_v50  ;;  %6096 = vmatmul.bf16.gmra.mxu3 %v17045_v62  ;;  %v17287_v62 = vld [vmem:[#allocation136_spill] sm:$0xff] }
 0xdf4   : > { %v5684_v34 = vpop.f32.mrf.mxu2  ;;  %v5781_v44 = vpop.f32.mrf.mxu3 }
 0xdf5   : > { %v14076_v13 = vadd.f32 %v5684_v34, %v13825_v30  ;;  %v14078_v43 = vadd.f32 %v5781_v44, %v4839_v17  ;;  %v17291_v30 = vld [vmem:[#allocation95_spill] sm:$0xff]  ;;  %v17293_v44 = vld [vmem:[#allocation73_spill] sm:$0xff] }
 0xdf6   : > { %v5832_v57 = vpop.f32.mrf.mxu0  ;;  %v5914_v22 = vpop.f32.mrf.mxu1  ;;  %v17292_v34 = vld [vmem:[#allocation191_spill] sm:$0xff] }
 0xdf7   : > { %17285 = vst [vmem:[#allocation162_spill] sm:$0xff] %v14076_v13  ;;  %v14081_v55 = vadd.f32 %v5832_v57, %v13850_v32  ;;  %v14083_v61 = vadd.f32 %v5914_v22, %v4972_v15  ;;  %v4974_v17 = vadd.f32 %v17292_v34, %v17291_v30 }
 0xdf9   : > { %17286 = vst [vmem:[#allocation151_spill] sm:$0xff] %v14081_v55  ;;  %5953 = vmatmul.bf16.gmra.mxu1 %v17287_v62  ;;  %6002 = vmatmul.bf16.vlgmr.msra.gmra.mxu2 %v17288_v21  ;;  %v4844_v55 = vadd.f32 %v17297_v36, %v17296_v23  ;;  %v17303_v23 = vld [vmem:[#allocation132_spill] sm:$0xff]  ;;  %v17304_v36 = vld [vmem:[#allocation79_spill] sm:$0xff] }
 0xdfc   : > { %v5687_v54 = vpop.f32.mrf.mxu2  ;;  %v5783_v35 = vpop.f32.mrf.mxu3 }
 0xdfd   : > { %v14092_v13 = vadd.f32 %v5687_v54, %v17293_v44  ;;  %v14094_v59 = vadd.f32 %v5783_v35, %v4841_v40  ;;  %v17298_v54 = vld [vmem:[#allocation66_spill] sm:$0xff] }
 0xdfe   : > { %v5835_v32 = vpop.f32.mrf.mxu0  ;;  %v5916_v15 = vpop.f32.mrf.mxu1  ;;  %v17299_v44 = vld [vmem:[#allocation122_spill] sm:$0xff] }
 0xdff   : > { %17294 = vst [vmem:[#allocation107_spill] sm:$0xff] %v14092_v13  ;;  %v14097_v57 = vadd.f32 %v5835_v32, %v13865_v31  ;;  %v14099_v22 = vadd.f32 %v5916_v15, %v4974_v17  ;;  %v4977_v40 = vadd.f32 %v17299_v44, %v17298_v54 }
 0xe01   : > { %17295 = vst [vmem:[#allocation109_spill] sm:$0xff] %v14097_v57  ;;  %5874 = vmatmul.bf16.gmra.mxu0 %v17214_v0  ;;  %6101 = vmatmul.bf16.gmra.mxu3 %v17054_v56  ;;  %v17302_v56 = vld [vmem:[#allocation77_spill] sm:$0xff] }
 0xe02   : > { %v17305_v57 = vld [vmem:[#allocation193_spill] sm:$0xff] }
 0xe03   : > { %v4846_v1 = vadd.f32 %v17305_v57, %v17304_v36  ;;  %v17311_v57 = vld [vmem:[#allocation90_spill] sm:$0xff]  ;;  %v17312_v36 = vld [vmem:[#allocation196_spill] sm:$0xff] }
 0xe04   : > { %v5689_v30 = vpop.f32.mrf.mxu2  ;;  %v5786_v34 = vpop.f32.mrf.mxu3 }
 0xe05   : > { %v14108_v35 = vadd.f32 %v5689_v30, %v13854_v27  ;;  %v14110_v13 = vadd.f32 %v5786_v34, %v4844_v55  ;;  %v17306_v27 = vld [vmem:[#allocation49_spill] sm:$0xff]  ;;  %v17307_v30 = vld [vmem:[#allocation198_spill] sm:$0xff] }
 0xe06   : > { %v5837_v31 = vpop.f32.mrf.mxu0  ;;  %v5919_v17 = vpop.f32.mrf.mxu1  ;;  %v4979_v55 = vadd.f32 %v17307_v30, %v17306_v27  ;;  %v17308_v34 = vld [vmem:[#allocation158_spill] sm:$0xff] }
 0xe07   : > { %17300 = vst [vmem:[#allocation169_spill] sm:$0xff] %v14108_v35  ;;  %v14113_v32 = vadd.f32 %v5837_v31, %v13880_v52  ;;  %v14115_v15 = vadd.f32 %v5919_v17, %v4977_v40 }
 0xe09   : > { %17301 = vst [vmem:[#allocation70_spill] sm:$0xff] %v14113_v32  ;;  %5958 = vmatmul.bf16.gmra.mxu1 %v17302_v56  ;;  %6007 = vmatmul.bf16.gmra.mxu2 %v17303_v23  ;;  %v4849_v32 = vadd.f32 %v17312_v36, %v17311_v57  ;;  %v17319_v57 = vld [vmem:[#allocation32_spill] sm:$0xff]  ;;  %v17320_v36 = vld [vmem:[#allocation39_spill] sm:$0xff] }
 0xe0c   : > { %v5692_v54 = vpop.f32.mrf.mxu2  ;;  %v5788_v44 = vpop.f32.mrf.mxu3 }
 0xe0d   : > { %v14124_v35 = vadd.f32 %v5692_v54, %v17308_v34  ;;  %v14126_v14 = vadd.f32 %v5788_v44, %v4846_v1  ;;  %v17313_v54 = vld [vmem:[#allocation21_spill] sm:$0xff]  ;;  %v17314_v34 = vld [vmem:[#allocation120_spill] sm:$0xff] }
 0xe0e   : > { %v5840_v52 = vpop.f32.mrf.mxu0  ;;  %v5921_v40 = vpop.f32.mrf.mxu1  ;;  %v4982_v1 = vadd.f32 %v17314_v34, %v17313_v54 }
 0xe0f   : > { %17309 = vst [vmem:[#allocation167_spill] sm:$0xff] %v14124_v35  ;;  %v14129_v31 = vadd.f32 %v5840_v52, %v13895_v51  ;;  %v14131_v17 = vadd.f32 %v5921_v40, %v4979_v55 }
 0xe11   : > { %17310 = vst [vmem:[#allocation154_spill] sm:$0xff] %v14129_v31  ;;  %5879 = vmatmul.bf16.gmra.mxu0 %v17229_v49  ;;  %6106 = vmatmul.bf16.gmra.mxu3 %v17063_v28  ;;  %v17318_v28 = vld [vmem:[#allocation34_spill] sm:$0xff]  ;;  %v17321_v31 = vld [vmem:[#allocation200_spill] sm:$0xff] }
 0xe12   : > { %v4851_v49 = vadd.f32 %v17321_v31, %v17320_v36  ;;  %v17329_v36 = vld [vmem:[#allocation63_spill] sm:$0xff] }
 0xe14   : > { %v5694_v27 = vpop.f32.mrf.mxu2  ;;  %v5791_v30 = vpop.f32.mrf.mxu3 }
 0xe15   : > { %v14140_v44 = vadd.f32 %v5694_v27, %v13884_v63  ;;  %v14142_v35 = vadd.f32 %v5791_v30, %v4849_v32  ;;  %v17322_v63 = vld [vmem:[#allocation35_spill] sm:$0xff]  ;;  %v17323_v27 = vld [vmem:[#allocation205_spill] sm:$0xff]  ;;  %v17324_v30 = vld [vmem:[#allocation40_spill] sm:$0xff] }
 0xe16   : > { %v5842_v51 = vpop.f32.mrf.mxu0  ;;  %v5924_v55 = vpop.f32.mrf.mxu1  ;;  %v4984_v32 = vadd.f32 %v17323_v27, %v17322_v63 }
 0xe17   : > { %17315 = vst [vmem:[#allocation150_spill] sm:$0xff] %v14140_v44  ;;  %v14145_v52 = vadd.f32 %v5842_v51, %v13910_v2  ;;  %v14147_v40 = vadd.f32 %v5924_v55, %v4982_v1 }
 0xe19   : > { %17316 = vst [vmem:[#allocation111_spill] sm:$0xff] %v14145_v52  ;;  %5963 = vmatmul.bf16.gmra.mxu1 %v17318_v28  ;;  %6012 = vmatmul.bf16.gmra.mxu2 %v17319_v57  ;;  %v9387_v52 = vld [vmem:[#allocation10 + $0x1ec] sm:$0xf] }
 0xe1a   : > { %17317 = vst [vmem:[#allocation93_spill] sm:$0xff] %v14147_v40  ;;  %v8972_v40 = vld [vmem:[#allocation10 + $0x1f8] sm:$0xf0] }
 0xe1b   : > { %v8975_v31 = vor.u32 %v9387_v52, %v8972_v40 }
 0xe1c   : > { %v5697_v54 = vpop.f32.mrf.mxu2  ;;  %v5793_v34 = vpop.f32.mrf.mxu3 }
 0xe1d   : > { %v14156_v44 = vadd.f32 %v5697_v54, %v17324_v30  ;;  %v14158_v0 = vadd.f32 %v5793_v34, %v4851_v49  ;;  %6172 = vmatpush.bf16.msra.mxu0 %v8975_v31  ;;  %v17330_v54 = vld [vmem:[#allocation203_spill] sm:$0xff]  ;;  %v9383_v49 = vld [vmem:[#allocation10 + $0x1cc] sm:$0xf]  ;;  %v8956_v34 = vld [vmem:[#allocation10 + $0x1d8] sm:$0xf0] }
 0xe1e   : > { %v5845_v2 = vpop.f32.mrf.mxu0  ;;  %v5926_v1 = vpop.f32.mrf.mxu1  ;;  %v4854_v63 = vadd.f32 %v17330_v54, %v17329_v36  ;;  %v9379_v36 = vld [vmem:[#allocation10 + $0x1ac] sm:$0xf]  ;;  %v8940_v54 = vld [vmem:[#allocation10 + $0x1b8] sm:$0xf0] }
 0xe1f   : > { %17325 = vst [vmem:[#allocation108_spill] sm:$0xff] %v14156_v44  ;;  %v14161_v51 = vadd.f32 %v5845_v2, %v13925_v42  ;;  %v14163_v55 = vadd.f32 %v5926_v1, %v4984_v32  ;;  %v8959_v44 = vor.u32 %v9383_v49, %v8956_v34  ;;  %v17331_v42 = vld [vmem:[#allocation37_spill] sm:$0xff]  ;;  %v17332_v2 = vld [vmem:[#allocation116_spill] sm:$0xff]  ;;  %v17333_v1 = vld [vmem:[#allocation82_spill] sm:$0xff] }
 0xe20   : > { %17326 = vst [vmem:[#allocation119_spill] sm:$0xff] %v14158_v0  ;;  %v4987_v32 = vadd.f32 %v17332_v2, %v17331_v42  ;;  %v17338_v49 = vld [vmem:[#allocation125_spill] sm:$0xff]  ;;  %v17339_v34 = vld [vmem:[#allocation64_spill] sm:$0xff]  ;;  %v17341_v42 = vld [vmem:[#allocation207_spill] sm:$0xff] }
 0xe21   : > { %17327 = vst [vmem:[#allocation121_spill] sm:$0xff] %v14161_v51  ;;  %5884 = vmatmul.bf16.gmra.mxu0 %v17242_v9  ;;  %6111 = vmatmul.bf16.gmra.mxu3 %v17072_v4  ;;  %v8924_v2 = vld [vmem:[#allocation10 + $0x198] sm:$0xf0] }
 0xe22   : > { %17328 = vst [vmem:[#allocation175_spill] sm:$0xff] %v14163_v55  ;;  %6173 = vmatpush.bf16.msra.mxu0 %v8959_v44  ;;  %v8943_v55 = vor.u32 %v9379_v36, %v8940_v54 }
 0xe24   : > { %v5699_v27 = vpop.f32.mrf.mxu2  ;;  %v5796_v30 = vpop.f32.mrf.mxu3 }
 0xe25   : > { %v14172_v51 = vadd.f32 %v5699_v27, %v17333_v1  ;;  %v14174_v52 = vadd.f32 %v5796_v30, %v4854_v63  ;;  %v17340_v27 = vld [vmem:[#allocation43_spill] sm:$0xff]  ;;  %v9375_v30 = vld [vmem:[#allocation10 + $0x18c] sm:$0xf] }
 0xe26   : > { %v5847_v40 = vpop.f32.mrf.mxu0  ;;  %v5929_v9 = vpop.f32.mrf.mxu1  ;;  %6174 = vmatpush.bf16.msra.mxu0 %v8943_v55  ;;  %v4856_v63 = vadd.f32 %v17341_v42, %v17340_v27  ;;  %v9371_v42 = vld [vmem:[#allocation10 + $0x16c] sm:$0xf] }
 0xe27   : > { %17334 = vst [vmem:[#allocation61_spill] sm:$0xff] %v14172_v51  ;;  %v14177_v4 = vadd.f32 %v5847_v40, %v13940_v18  ;;  %v14179_v31 = vadd.f32 %v5929_v9, %v4987_v32  ;;  %v8927_v51 = vor.u32 %v9375_v30, %v8924_v2  ;;  %v17342_v18 = vld [vmem:[#allocation159_spill] sm:$0xff]  ;;  %v17343_v40 = vld [vmem:[#allocation212_spill] sm:$0xff]  ;;  %v17344_v32 = vld [vmem:[#allocation157_spill] sm:$0xff] }
 0xe28   : > { %17335 = vst [vmem:[#allocation180_spill] sm:$0xff] %v14174_v52  ;;  %v4989_v9 = vadd.f32 %v17343_v40, %v17342_v18  ;;  %v8908_v52 = vld [vmem:[#allocation10 + $0x178] sm:$0xf0]  ;;  %v17348_v30 = vld [vmem:[#allocation161_spill] sm:$0xff] }
 0xe29   : > { %17336 = vst [vmem:[#allocation45_spill] sm:$0xff] %v14177_v4  ;;  %5968 = vmatmul.bf16.gmra.mxu1 %v17338_v49  ;;  %6017 = vmatmul.bf16.gmra.mxu2 %v17339_v34  ;;  %v8911_v0 = vor.u32 %v9371_v42, %v8908_v52  ;;  %v17349_v2 = vld [vmem:[#allocation210_spill] sm:$0xff] }
 0xe2a   : > { %17337 = vst [vmem:[#allocation22_spill] sm:$0xff] %v14179_v31  ;;  %6175 = vmatpush.bf16.msra.mxu0 %v8927_v51 }
 0xe2c   : > { %v5702_v1 = vpop.f32.mrf.mxu2  ;;  %v5798_v44 = vpop.f32.mrf.mxu3 }
 0xe2d   : > { %v14188_v4 = vadd.f32 %v5702_v1, %v17344_v32  ;;  %v14190_v36 = vadd.f32 %v5798_v44, %v4856_v63  ;;  %v4859_v63 = vadd.f32 %v17349_v2, %v17348_v30  ;;  %v9367_v1 = vld [vmem:[#allocation10 + $0x14c] sm:$0xf]  ;;  %v8892_v44 = vld [vmem:[#allocation10 + $0x158] sm:$0xf0] }
 0xe2e   : > { %v5850_v54 = vpop.f32.mrf.mxu0  ;;  %v5931_v31 = vpop.f32.mrf.mxu1  ;;  %6176 = vmatpush.bf16.msra.mxu0 %v8911_v0  ;;  %v8895_v40 = vor.u32 %v9367_v1, %v8892_v44  ;;  %v17351_v32 = vld [vmem:[#allocation76_spill] sm:$0xff]  ;;  %v8876_v2 = vld [vmem:[#allocation10 + $0x138] sm:$0xf0]  ;;  %v9484_v44 = vld [vmem:[#allocation10 + $0x4ec] sm:$0xf0] }
 0xe2f   : > { %17345 = vst [vmem:[#allocation178_spill] sm:$0xff] %v14188_v4  ;;  %v14193_v55 = vadd.f32 %v5850_v54, %v13955_v16  ;;  %v14195_v27 = vadd.f32 %v5931_v31, %v4989_v9  ;;  %v17350_v16 = vld [vmem:[#allocation163_spill] sm:$0xff]  ;;  %v9363_v30 = vld [vmem:[#allocation10 + $0x12c] sm:$0xf] }
 0xe30   : > { %v4992_v31 = vadd.f32 %v17351_v32, %v17350_v16  ;;  %v8879_v1 = vor.u32 %v9363_v30, %v8876_v2  ;;  %v17355_v4 = vld [vmem:[#allocation123_spill] sm:$0xff]  ;;  %v17356_v16 = vld [vmem:[#allocation20_spill] sm:$0xff] }
 0xe31   : > { %17346 = vst [vmem:[#allocation153_spill] sm:$0xff] %v14193_v55  ;;  %5889 = vmatmul.bf16.gmra.mxu0 %v17253_v10  ;;  %6116 = vmatmul.bf16.gmra.mxu3 %v17081_v5  ;;  %v9090_v55 = vld [vmem:[#allocation10 + $0x4e0] sm:$0xf] }
 0xe32   : > { %17347 = vst [vmem:[#allocation184_spill] sm:$0xff] %v14195_v27  ;;  %6177 = vmatpush.bf16.msra.mxu0 %v8895_v40  ;;  %v9359_v40 = vld [vmem:[#allocation10 + $0x10c] sm:$0xf]  ;;  %v9074_v32 = vld [vmem:[#allocation10 + $0x4c0] sm:$0xf] }
 0xe33   : > { %v17360_v30 = vld [vmem:[#allocation219_spill] sm:$0xff] }
 0xe34   : > { %v5704_v18 = vpop.f32.mrf.mxu2  ;;  %v5801_v51 = vpop.f32.mrf.mxu3  ;;  %v17361_v10 = vld [vmem:[#allocation27_spill] sm:$0xff] }
 0xe35   : > { %v14204_v9 = vadd.f32 %v5704_v18, %v13944_v39  ;;  %v14206_v52 = vadd.f32 %v5801_v51, %v4859_v63  ;;  %v9091_v39 = vor.u32 %v9484_v44, %v9090_v55  ;;  %v17357_v63 = vld [vmem:[#allocation164_spill] sm:$0xff]  ;;  %v17358_v18 = vld [vmem:[#allocation214_spill] sm:$0xff] }
 0xe36   : > { %v5852_v54 = vpop.f32.mrf.mxu0  ;;  %v5934_v42 = vpop.f32.mrf.mxu1  ;;  %6178 = vmatpush.bf16.msra.mxu0 %v8879_v1  ;;  %v4861_v51 = vadd.f32 %v17358_v18, %v17357_v63  ;;  %v9058_v18 = vld [vmem:[#allocation10 + $0x4a0] sm:$0xf] }
 0xe37   : > { %17352 = vst [vmem:[#allocation149_spill] sm:$0xff] %v14204_v9  ;;  %v14209_v5 = vadd.f32 %v5852_v54, %v13970_v25  ;;  %v14211_v0 = vadd.f32 %v5934_v42, %v4992_v31  ;;  %6678 = vmatpush.bf16.msrb.mxu1 %v9091_v39  ;;  %v8860_v25 = vld [vmem:[#allocation10 + $0x118] sm:$0xf0]  ;;  %v17359_v9 = vld [vmem:[#allocation165_spill] sm:$0xff] }
 0xe38   : > { %v8863_v42 = vor.u32 %v9359_v40, %v8860_v25  ;;  %v4994_v2 = vadd.f32 %v17360_v30, %v17359_v9  ;;  %v9476_v40 = vld [vmem:[#allocation10 + $0x4ac] sm:$0xf0] }
 0xe39   : > { %17353 = vst [vmem:[#allocation182_spill] sm:$0xff] %v14209_v5  ;;  %5973 = vmatmul.bf16.gmra.mxu1 %v17355_v4  ;;  %6022 = vmatmul.bf16.gmra.mxu2 %v17356_v16  ;;  %v9480_v5 = vld [vmem:[#allocation10 + $0x4cc] sm:$0xf0]  ;;  %v9059_v25 = vor.u32 %v9476_v40, %v9058_v18 }
 0xe3a   : > { %17354 = vst [vmem:[#allocation81_spill] sm:$0xff] %v14211_v0  ;;  %v9075_v55 = vor.u32 %v9480_v5, %v9074_v32  ;;  %6179 = vmatpush.bf16.msra.mxu0 %v8863_v42  ;;  %v17365_v9 = vld [vmem:[#allocation217_spill] sm:$0xff]  ;;  %v9042_v5 = vld [vmem:[#allocation10 + $0x480] sm:$0xf]  ;;  %v17366_v42 = vld [vmem:[#allocation168_spill] sm:$0xff] }
 0xe3b   : > { %v9472_v32 = vld [vmem:[#allocation10 + $0x48c] sm:$0xf0] }
 0xe3c   : > { %v5707_v31 = vpop.f32.mrf.mxu2  ;;  %v5803_v54 = vpop.f32.mrf.mxu3  ;;  %6679 = vmatpush.bf16.msrb.mxu1 %v9075_v55  ;;  %v17367_v30 = vld [vmem:[#allocation25_spill] sm:$0xff] }
 0xe3d   : > { %v14220_v0 = vadd.f32 %v5707_v31, %v17361_v10  ;;  %v14222_v27 = vadd.f32 %v5803_v54, %v4861_v51  ;;  %v17364_v10 = vld [vmem:[#allocation166_spill] sm:$0xff] }
 0xe3e   : > { %v5855_v1 = vpop.f32.mrf.mxu0  ;;  %v5936_v44 = vpop.f32.mrf.mxu1  ;;  %v4864_v51 = vadd.f32 %v17365_v9, %v17364_v10  ;;  %v9468_v10 = vld [vmem:[#allocation10 + $0x46c] sm:$0xf0] }
 0xe3f   : > { %17362 = vst [vmem:[#allocation124_spill] sm:$0xff] %v14220_v0  ;;  %v14225_v39 = vadd.f32 %v5855_v1, %v13985_v24  ;;  %v14227_v63 = vadd.f32 %v5936_v44, %v4994_v2  ;;  %v9043_v24 = vor.u32 %v9472_v32, %v9042_v5  ;;  %v4997_v2 = vadd.f32 %v17367_v30, %v17366_v42  ;;  %v17370_v5 = vld [vmem:[#allocation134_spill] sm:$0xff]  ;;  %v17371_v32 = vld [vmem:[#allocation100_spill] sm:$0xff] }
 0xe40   : > { %6680 = vmatpush.bf16.msrb.mxu1 %v9059_v25  ;;  %v9026_v25 = vld [vmem:[#allocation10 + $0x460] sm:$0xf]  ;;  %v17372_v42 = vld [vmem:[#allocation170_spill] sm:$0xff] }
 0xe41   : > { %17363 = vst [vmem:[#allocation136_spill] sm:$0xff] %v14225_v39  ;;  %5894 = vmatmul.bf16.gmra.mxu0 %v17263_v11  ;;  %6121 = vmatmul.bf16.gmra.mxu3 %v17090_v7  ;;  %v9027_v9 = vor.u32 %v9468_v10, %v9026_v25 }
 0xe44   : > { %v5709_v31 = vpop.f32.mrf.mxu2  ;;  %v5806_v54 = vpop.f32.mrf.mxu3  ;;  %6681 = vmatpush.bf16.msrb.mxu1 %v9043_v24 }
 0xe45   : > { %v14236_v55 = vadd.f32 %v5709_v31, %v13974_v26  ;;  %v14238_v1 = vadd.f32 %v5806_v54, %v4864_v51  ;;  %v17373_v26 = vld [vmem:[#allocation221_spill] sm:$0xff]  ;;  %v9010_v51 = vld [vmem:[#allocation10 + $0x440] sm:$0xf] }
 0xe46   : > { %v5857_v44 = vpop.f32.mrf.mxu0  ;;  %v5939_v18 = vpop.f32.mrf.mxu1  ;;  %v4866_v31 = vadd.f32 %v17373_v26, %v17372_v42  ;;  %v9464_v54 = vld [vmem:[#allocation10 + $0x44c] sm:$0xf0] }
 0xe47   : > { %17368 = vst [vmem:[#allocation135_spill] sm:$0xff] %v14236_v55  ;;  %v14241_v7 = vadd.f32 %v5857_v44, %v14000_v8  ;;  %v14243_v40 = vadd.f32 %v5939_v18, %v4997_v2  ;;  %v9011_v8 = vor.u32 %v9464_v54, %v9010_v51  ;;  %v17374_v44 = vld [vmem:[#allocation171_spill] sm:$0xff]  ;;  %v17375_v2 = vld [vmem:[#allocation226_spill] sm:$0xff]  ;;  %v9460_v26 = vld [vmem:[#allocation10 + $0x42c] sm:$0xf0] }
 0xe48   : > { %6682 = vmatpush.bf16.msrb.mxu1 %v9027_v9  ;;  %v4999_v18 = vadd.f32 %v17375_v2, %v17374_v44  ;;  %v8994_v9 = vld [vmem:[#allocation10 + $0x420] sm:$0xf]  ;;  %v17378_v51 = vld [vmem:[#allocation172_spill] sm:$0xff]  ;;  %v17380_v2 = vld [vmem:[#allocation173_spill] sm:$0xff] }
 0xe49   : > { %17369 = vst [vmem:[#allocation50_spill] sm:$0xff] %v14241_v7  ;;  %5978 = vmatmul.bf16.gmra.mxu1 %v17370_v5  ;;  %6027 = vmatmul.bf16.gmra.mxu2 %v17371_v32  ;;  %v8995_v0 = vor.u32 %v9460_v26, %v8994_v9 }
 0xe4c   : > { %v5712_v30 = vpop.f32.mrf.mxu2  ;;  %v5808_v55 = vpop.f32.mrf.mxu3  ;;  %6683 = vmatpush.bf16.msrb.mxu1 %v9011_v8 }
 0xe4d   : > { %v14252_v24 = vadd.f32 %v5712_v30, %v13989_v38  ;;  %v14254_v25 = vadd.f32 %v5808_v55, %v4866_v31  ;;  %v17379_v38 = vld [vmem:[#allocation224_spill] sm:$0xff]  ;;  %v8978_v55 = vld [vmem:[#allocation10 + $0x400] sm:$0xf]  ;;  %v9456_v31 = vld [vmem:[#allocation10 + $0x40c] sm:$0xf0] }
 0xe4e   : > { %v5860_v10 = vpop.f32.mrf.mxu0  ;;  %v5941_v7 = vpop.f32.mrf.mxu1  ;;  %v4869_v54 = vadd.f32 %v17379_v38, %v17378_v51  ;;  %v17385_v38 = vld [vmem:[#allocation228_spill] sm:$0xff] }
 0xe4f   : > { %17376 = vst [vmem:[#allocation186_spill] sm:$0xff] %v14252_v24  ;;  %v14257_v39 = vadd.f32 %v5860_v10, %v14015_v37  ;;  %v14259_v42 = vadd.f32 %v5941_v7, %v4999_v18  ;;  %v8979_v37 = vor.u32 %v9456_v31, %v8978_v55  ;;  %v17381_v7 = vld [vmem:[#allocation26_spill] sm:$0xff] }
 0xe50   : > { %6684 = vmatpush.bf16.msrb.mxu1 %v8995_v0  ;;  %v5002_v18 = vadd.f32 %v17381_v7, %v17380_v2  ;;  %v17384_v0 = vld [vmem:[#allocation174_spill] sm:$0xff] }
 0xe51   : > { %17377 = vst [vmem:[#allocation95_spill] sm:$0xff] %v14257_v39  ;;  %5899 = vmatmul.bf16.gmra.mxu0 %v17274_v53  ;;  %6126 = vmatmul.bf16.gmra.mxu3 %v17099_v19  ;;  %v4871_v55 = vadd.f32 %v17385_v38, %v17384_v0  ;;  %v17391_v0 = vld [vmem:[#allocation232_spill] sm:$0xff]  ;;  %v9028_v39 = vld [vmem:[#allocation10 + $0x470] sm:$0xf0] }
 0xe54   : > { %v5714_v30 = vpop.f32.mrf.mxu2  ;;  %v5811_v44 = vpop.f32.mrf.mxu3  ;;  %6685 = vmatpush.bf16.msrb.mxu1 %v8979_v37 }
 0xe55   : > { %v14268_v8 = vadd.f32 %v5714_v30, %v14004_v20  ;;  %v14270_v10 = vadd.f32 %v5811_v44, %v4869_v54  ;;  %v17386_v30 = vld [vmem:[#allocation176_spill] sm:$0xff]  ;;  %v17387_v54 = vld [vmem:[#allocation233_spill] sm:$0xff] }
 0xe56   : > { %v5862_v9 = vpop.f32.mrf.mxu0  ;;  %v5944_v26 = vpop.f32.mrf.mxu1  ;;  %v5004_v44 = vadd.f32 %v17387_v54, %v17386_v30 }
 0xe57   : > { %17382 = vst [vmem:[#allocation191_spill] sm:$0xff] %v14268_v8  ;;  %v14273_v19 = vadd.f32 %v5862_v9, %v14030_v45  ;;  %v14275_v51 = vadd.f32 %v5944_v26, %v5002_v18  ;;  %v17390_v26 = vld [vmem:[#allocation177_spill] sm:$0xff] }
 0xe58   : > { %v5150_v38 = vadd.f32 %v17391_v0, %v17390_v26 }
 0xe59   : > { %17383 = vst [vmem:[#allocation73_spill] sm:$0xff] %v14273_v19  ;;  %5983 = vmatmul.bf16.gmra.mxu1 %v17165_v41  ;;  %6032 = vmatmul.bf16.gmra.mxu2 %v17166_v48 }
 0xe5c   : > { %v5717_v31 = vpop.f32.mrf.mxu2  ;;  %v5813_v20 = vpop.f32.mrf.mxu3 }
 0xe5d   : > { %v14284_v2 = vadd.f32 %v5717_v31, %v14019_v47  ;;  %v14286_v45 = vadd.f32 %v5813_v20, %v4871_v55  ;;  %v17392_v47 = vld [vmem:[#allocation179_spill] sm:$0xff]  ;;  %v17393_v31 = vld [vmem:[#allocation88_spill] sm:$0xff] }
 0xe5e   : > { %v5865_v7 = vpop.f32.mrf.mxu0  ;;  %v5946_v18 = vpop.f32.mrf.mxu1  ;;  %v5007_v55 = vadd.f32 %v17393_v31, %v17392_v47 }
 0xe5f   : > { %17388 = vst [vmem:[#allocation138_spill] sm:$0xff] %v14284_v2  ;;  %v14289_v37 = vadd.f32 %v5865_v7, %v14046_v29  ;;  %v14291_v9 = vadd.f32 %v5946_v18, %v5004_v44  ;;  %v17397_v18 = vld [vmem:[#allocation236_spill] sm:$0xff] }
 0xe61   : > { %17389 = vst [vmem:[#allocation189_spill] sm:$0xff] %v14289_v37  ;;  %6131 = vmatmul.bf16.gmra.mxu3 %v17287_v62  ;;  %6180 = vmatmul.bf16.vlgmr.msra.gmra.mxu0 %v17288_v21  ;;  %v17396_v21 = vld [vmem:[#allocation181_spill] sm:$0xff] }
 0xe62   : > { %v5152_v26 = vadd.f32 %v17397_v18, %v17396_v21  ;;  %v17402_v21 = vld [vmem:[#allocation185_spill] sm:$0xff]  ;;  %v17403_v18 = vld [vmem:[#allocation239_spill] sm:$0xff] }
 0xe63   : > { %v9092_v37 = vld [vmem:[#allocation10 + $0x4f0] sm:$0xf0] }
 0xe64   : > { %v5719_v30 = vpop.f32.mrf.mxu2  ;;  %v6092_v54 = vpop.f32.mrf.mxu3 }
 0xe65   : > { %v14300_v20 = vadd.f32 %v5719_v30, %v14032_v3  ;;  %v14302_v2 = vadd.f32 %v6092_v54, %v5150_v38  ;;  %v17398_v3 = vld [vmem:[#allocation183_spill] sm:$0xff]  ;;  %v17399_v30 = vld [vmem:[#allocation240_spill] sm:$0xff] }
 0xe66   : > { %v5867_v29 = vpop.f32.mrf.mxu0  ;;  %v5949_v44 = vpop.f32.mrf.mxu1  ;;  %v5009_v38 = vadd.f32 %v17399_v30, %v17398_v3 }
 0xe67   : > { %17394 = vst [vmem:[#allocation66_spill] sm:$0xff] %v14300_v20  ;;  %v14305_v7 = vadd.f32 %v5867_v29, %v14062_v6  ;;  %v14307_v62 = vadd.f32 %v5949_v44, %v5007_v55  ;;  %v9482_v20 = vld [vmem:[#allocation10 + $0x4e4] sm:$0xf] }
 0xe69   : > { %17395 = vst [vmem:[#allocation122_spill] sm:$0xff] %v14305_v7  ;;  %5988 = vmatmul.bf16.gmra.mxu1 %v17175_v33  ;;  %6037 = vmatmul.bf16.gmra.mxu2 %v17176_v46  ;;  %v5155_v7 = vadd.f32 %v17403_v18, %v17402_v21  ;;  %v17410_v21 = vld [vmem:[#allocation242_spill] sm:$0xff] }
 0xe6c   : > { %v5722_v0 = vpop.f32.mrf.mxu2  ;;  %v6094_v47 = vpop.f32.mrf.mxu3 }
 0xe6d   : > { %v14316_v54 = vadd.f32 %v5722_v0, %v14048_v60  ;;  %v14318_v31 = vadd.f32 %v6094_v47, %v5152_v26  ;;  %v17404_v60 = vld [vmem:[#allocation187_spill] sm:$0xff] }
 0xe6e   : > { %v5870_v6 = vpop.f32.mrf.mxu0  ;;  %v5951_v55 = vpop.f32.mrf.mxu1  ;;  %v17405_v0 = vld [vmem:[#allocation243_spill] sm:$0xff] }
 0xe6f   : > { %17400 = vst [vmem:[#allocation77_spill] sm:$0xff] %v14316_v54  ;;  %v14321_v29 = vadd.f32 %v5870_v6, %v14078_v43  ;;  %v14323_v44 = vadd.f32 %v5951_v55, %v5009_v38  ;;  %v5012_v26 = vadd.f32 %v17405_v0, %v17404_v60  ;;  %v17409_v55 = vld [vmem:[#allocation188_spill] sm:$0xff] }
 0xe70   : > { %v5157_v18 = vadd.f32 %v17410_v21, %v17409_v55  ;;  %v17415_v55 = vld [vmem:[#allocation192_spill] sm:$0xff]  ;;  %v17416_v21 = vld [vmem:[#allocation245_spill] sm:$0xff] }
 0xe71   : > { %17401 = vst [vmem:[#allocation132_spill] sm:$0xff] %v14321_v29  ;;  %6136 = vmatmul.bf16.gmra.mxu3 %v17302_v56  ;;  %6185 = vmatmul.bf16.gmra.mxu0 %v17303_v23  ;;  %v17408_v23 = vld [vmem:[#allocation41_spill] sm:$0xff] }
 0xe74   : > { %v5724_v3 = vpop.f32.mrf.mxu2  ;;  %v6097_v30 = vpop.f32.mrf.mxu3 }
 0xe75   : > { %v14332_v47 = vadd.f32 %v5724_v3, %v14064_v12  ;;  %v14334_v54 = vadd.f32 %v6097_v30, %v5155_v7  ;;  %v17411_v12 = vld [vmem:[#allocation190_spill] sm:$0xff] }
 0xe76   : > { %v5872_v43 = vpop.f32.mrf.mxu0  ;;  %v5954_v38 = vpop.f32.mrf.mxu1  ;;  %v17412_v3 = vld [vmem:[#allocation246_spill] sm:$0xff] }
 0xe77   : > { %17406 = vst [vmem:[#allocation79_spill] sm:$0xff] %v14332_v47  ;;  %v14337_v6 = vadd.f32 %v5872_v43, %v14094_v59  ;;  %v14339_v56 = vadd.f32 %v5954_v38, %v5012_v26  ;;  %v5014_v7 = vadd.f32 %v17412_v3, %v17411_v12 }
 0xe79   : > { %17407 = vst [vmem:[#allocation193_spill] sm:$0xff] %v14337_v6  ;;  %6042 = vmatmul.bf16.gmra.mxu2 %v17186_v58  ;;  %6686 = vmatmul.bf16.vlgmr.msrb.gmra.mxu1 %v17408_v23  ;;  %v5160_v6 = vadd.f32 %v17416_v21, %v17415_v55  ;;  %v17423_v55 = vld [vmem:[#allocation248_spill] sm:$0xff] }
 0xe7c   : > { %v6003_v60 = vpop.f32.mrf.mxu2  ;;  %v6099_v0 = vpop.f32.mrf.mxu3 }
 0xe7d   : > { %v14348_v30 = vadd.f32 %v6003_v60, %v14083_v61  ;;  %v14350_v47 = vadd.f32 %v6099_v0, %v5157_v18  ;;  %v17417_v61 = vld [vmem:[#allocation194_spill] sm:$0xff]  ;;  %v17418_v60 = vld [vmem:[#allocation249_spill] sm:$0xff] }
 0xe7e   : > { %v5875_v59 = vpop.f32.mrf.mxu0  ;;  %v5956_v26 = vpop.f32.mrf.mxu1  ;;  %v5017_v18 = vadd.f32 %v17418_v60, %v17417_v61 }
 0xe7f   : > { %17413 = vst [vmem:[#allocation49_spill] sm:$0xff] %v14348_v30  ;;  %v14353_v43 = vadd.f32 %v5875_v59, %v14110_v13  ;;  %v14355_v38 = vadd.f32 %v5956_v26, %v5014_v7  ;;  %v17422_v26 = vld [vmem:[#allocation195_spill] sm:$0xff] }
 0xe80   : > { %v5162_v21 = vadd.f32 %v17423_v55, %v17422_v26  ;;  %v17428_v26 = vld [vmem:[#allocation199_spill] sm:$0xff] }
 0xe81   : > { %17414 = vst [vmem:[#allocation198_spill] sm:$0xff] %v14353_v43  ;;  %6141 = vmatmul.bf16.gmra.mxu3 %v17318_v28  ;;  %6190 = vmatmul.bf16.gmra.mxu0 %v17319_v57  ;;  %v17421_v57 = vld [vmem:[#allocation53_spill] sm:$0xff]  ;;  %v17429_v55 = vld [vmem:[#allocation251_spill] sm:$0xff] }
 0xe84   : > { %v6005_v12 = vpop.f32.mrf.mxu2  ;;  %v6102_v3 = vpop.f32.mrf.mxu3 }
 0xe85   : > { %v14364_v0 = vadd.f32 %v6005_v12, %v14099_v22  ;;  %v14366_v30 = vadd.f32 %v6102_v3, %v5160_v6  ;;  %v17424_v22 = vld [vmem:[#allocation197_spill] sm:$0xff]  ;;  %v17425_v12 = vld [vmem:[#allocation252_spill] sm:$0xff] }
 0xe86   : > { %v5877_v13 = vpop.f32.mrf.mxu0  ;;  %v5959_v7 = vpop.f32.mrf.mxu1  ;;  %v5019_v6 = vadd.f32 %v17425_v12, %v17424_v22 }
 0xe87   : > { %17419 = vst [vmem:[#allocation158_spill] sm:$0xff] %v14364_v0  ;;  %v14369_v59 = vadd.f32 %v5877_v13, %v14126_v14  ;;  %v14371_v28 = vadd.f32 %v5959_v7, %v5017_v18 }
 0xe89   : > { %17420 = vst [vmem:[#allocation90_spill] sm:$0xff] %v14369_v59  ;;  %6047 = vmatmul.bf16.gmra.mxu2 %v17200_v50  ;;  %6691 = vmatmul.bf16.gmra.mxu1 %v17421_v57  ;;  %v5165_v59 = vadd.f32 %v17429_v55, %v17428_v26  ;;  %v17436_v26 = vld [vmem:[#allocation42_spill] sm:$0xff] }
 0xe8a   : > { %v17437_v55 = vld [vmem:[#allocation202_spill] sm:$0xff] }
 0xe8c   : > { %v6008_v61 = vpop.f32.mrf.mxu2  ;;  %v6104_v60 = vpop.f32.mrf.mxu3 }
 0xe8d   : > { %v14380_v3 = vadd.f32 %v6008_v61, %v14115_v15  ;;  %v14382_v0 = vadd.f32 %v6104_v60, %v5162_v21  ;;  %v17430_v15 = vld [vmem:[#allocation201_spill] sm:$0xff]  ;;  %v17431_v61 = vld [vmem:[#allocation254_spill] sm:$0xff] }
 0xe8e   : > { %v5880_v14 = vpop.f32.mrf.mxu0  ;;  %v5961_v18 = vpop.f32.mrf.mxu1  ;;  %v5022_v21 = vadd.f32 %v17431_v61, %v17430_v15 }
 0xe8f   : > { %17426 = vst [vmem:[#allocation196_spill] sm:$0xff] %v14380_v3  ;;  %v14385_v13 = vadd.f32 %v5880_v14, %v14142_v35  ;;  %v14387_v7 = vadd.f32 %v5961_v18, %v5019_v6  ;;  %v17433_v14 = vld [vmem:[#allocation119_spill] sm:$0xff] }
 0xe91   : > { %17427 = vst [vmem:[#allocation21_spill] sm:$0xff] %v14385_v13  ;;  %6146 = vmatmul.bf16.gmra.mxu3 %v17338_v49  ;;  %6195 = vmatmul.bf16.gmra.mxu0 %v17339_v34  ;;  %v17435_v34 = vld [vmem:[#allocation113_spill] sm:$0xff]  ;;  %v17438_v13 = vld [vmem:[#allocation71_spill] sm:$0xff] }
 0xe92   : > { %v5167_v43 = vadd.f32 %v17438_v13, %v17437_v55  ;;  %v9095_v13 = vor.u32 %v9482_v20, %v9092_v37  ;;  %v17445_v55 = vld [vmem:[#allocation206_spill] sm:$0xff] }
 0xe94   : > { %v6010_v22 = vpop.f32.mrf.mxu2  ;;  %v6107_v12 = vpop.f32.mrf.mxu3  ;;  %6856 = vmatpush.bf16.msrb.mxu3 %v9095_v13 }
 0xe95   : > { %v14396_v60 = vadd.f32 %v6010_v22, %v14131_v17  ;;  %v14398_v3 = vadd.f32 %v6107_v12, %v5165_v59  ;;  %v17439_v17 = vld [vmem:[#allocation204_spill] sm:$0xff]  ;;  %v17441_v12 = vld [vmem:[#allocation93_spill] sm:$0xff] }
 0xe96   : > { %v5882_v35 = vpop.f32.mrf.mxu0  ;;  %v5964_v6 = vpop.f32.mrf.mxu1  ;;  %v17440_v22 = vld [vmem:[#allocation256_spill] sm:$0xff] }
 0xe97   : > { %17432 = vst [vmem:[#allocation120_spill] sm:$0xff] %v14396_v60  ;;  %v14401_v18 = vadd.f32 %v5882_v35, %v17433_v14  ;;  %v14403_v49 = vadd.f32 %v5964_v6, %v5022_v21  ;;  %v5024_v59 = vadd.f32 %v17440_v22, %v17439_v17  ;;  %v17443_v6 = vld [vmem:[#allocation180_spill] sm:$0xff] }
 0xe99   : > { %17434 = vst [vmem:[#allocation34_spill] sm:$0xff] %v14401_v18  ;;  %6052 = vmatmul.bf16.gmra.mxu2 %v17435_v34  ;;  %6696 = vmatmul.bf16.gmra.mxu1 %v17436_v26 }
 0xe9c   : > { %v6013_v15 = vpop.f32.mrf.mxu2  ;;  %v6109_v61 = vpop.f32.mrf.mxu3 }
 0xe9d   : > { %v14412_v60 = vadd.f32 %v6013_v15, %v17441_v12  ;;  %v14414_v29 = vadd.f32 %v6109_v61, %v5167_v43  ;;  %v17446_v15 = vld [vmem:[#allocation85_spill] sm:$0xff]  ;;  %v9478_v43 = vld [vmem:[#allocation10 + $0x4c4] sm:$0xf] }
 0xe9e   : > { %v5885_v35 = vpop.f32.mrf.mxu0  ;;  %v5966_v21 = vpop.f32.mrf.mxu1  ;;  %v5170_v17 = vadd.f32 %v17446_v15, %v17445_v55  ;;  %v9076_v61 = vld [vmem:[#allocation10 + $0x4d0] sm:$0xf0]  ;;  %v9474_v55 = vld [vmem:[#allocation10 + $0x4a4] sm:$0xf] }
 0xe9f   : > { %17442 = vst [vmem:[#allocation32_spill] sm:$0xff] %v14412_v60  ;;  %v14417_v14 = vadd.f32 %v5885_v35, %v17443_v6  ;;  %v14419_v18 = vadd.f32 %v5966_v21, %v5024_v59  ;;  %v9079_v60 = vor.u32 %v9478_v43, %v9076_v61  ;;  %v17447_v35 = vld [vmem:[#allocation208_spill] sm:$0xff]  ;;  %v17448_v6 = vld [vmem:[#allocation258_spill] sm:$0xff]  ;;  %v17449_v21 = vld [vmem:[#allocation175_spill] sm:$0xff] }
 0xea0   : > { %v5027_v59 = vadd.f32 %v17448_v6, %v17447_v35  ;;  %v9060_v15 = vld [vmem:[#allocation10 + $0x4b0] sm:$0xf0]  ;;  %v17452_v43 = vld [vmem:[#allocation78_spill] sm:$0xff]  ;;  %v17453_v61 = vld [vmem:[#allocation55_spill] sm:$0xff] }
 0xea1   : > { %17444 = vst [vmem:[#allocation39_spill] sm:$0xff] %v14417_v14  ;;  %6151 = vmatmul.bf16.gmra.mxu3 %v17355_v4  ;;  %6200 = vmatmul.bf16.gmra.mxu0 %v17356_v16  ;;  %v9063_v19 = vor.u32 %v9474_v55, %v9060_v15  ;;  %v17455_v35 = vld [vmem:[#allocation86_spill] sm:$0xff]  ;;  %v9044_v6 = vld [vmem:[#allocation10 + $0x490] sm:$0xf0] }
 0xea2   : > { %6857 = vmatpush.bf16.msrb.mxu3 %v9079_v60 }
 0xea4   : > { %v6015_v22 = vpop.f32.mrf.mxu2  ;;  %v6112_v12 = vpop.f32.mrf.mxu3 }
 0xea5   : > { %v14428_v14 = vadd.f32 %v6015_v22, %v17449_v21  ;;  %v14430_v37 = vadd.f32 %v6112_v12, %v5170_v17  ;;  %v17454_v22 = vld [vmem:[#allocation209_spill] sm:$0xff]  ;;  %v9470_v12 = vld [vmem:[#allocation10 + $0x484] sm:$0xf] }
 0xea6   : > { %v5887_v4 = vpop.f32.mrf.mxu0  ;;  %v5969_v20 = vpop.f32.mrf.mxu1  ;;  %6858 = vmatpush.bf16.msrb.mxu3 %v9063_v19  ;;  %v5172_v17 = vadd.f32 %v17455_v35, %v17454_v22  ;;  %v9466_v35 = vld [vmem:[#allocation10 + $0x464] sm:$0xf] }
 0xea7   : > { %17450 = vst [vmem:[#allocation200_spill] sm:$0xff] %v14428_v14  ;;  %v14433_v16 = vadd.f32 %v5887_v4, %v14190_v36  ;;  %v14435_v13 = vadd.f32 %v5969_v20, %v5027_v59  ;;  %v9047_v14 = vor.u32 %v9470_v12, %v9044_v6  ;;  %v17456_v36 = vld [vmem:[#allocation211_spill] sm:$0xff]  ;;  %v17458_v20 = vld [vmem:[#allocation22_spill] sm:$0xff]  ;;  %v9031_v24 = vor.u32 %v9466_v35, %v9028_v39  ;;  %v17462_v12 = vld [vmem:[#allocation213_spill] sm:$0xff] }
 0xea8   : > { %v17457_v4 = vld [vmem:[#allocation83_spill] sm:$0xff]  ;;  %v17463_v6 = vld [vmem:[#allocation84_spill] sm:$0xff] }
 0xea9   : > { %17451 = vst [vmem:[#allocation35_spill] sm:$0xff] %v14433_v16  ;;  %6057 = vmatmul.bf16.gmra.mxu2 %v17452_v43  ;;  %6701 = vmatmul.bf16.gmra.mxu1 %v17453_v61  ;;  %v5029_v59 = vadd.f32 %v17457_v4, %v17456_v36 }
 0xeaa   : > { %6859 = vmatpush.bf16.msrb.mxu3 %v9047_v14 }
 0xeac   : > { %v6018_v21 = vpop.f32.mrf.mxu2  ;;  %v6114_v60 = vpop.f32.mrf.mxu3 }
 0xead   : > { %v14444_v16 = vadd.f32 %v6018_v21, %v17458_v20  ;;  %v14446_v55 = vadd.f32 %v6114_v60, %v5172_v17  ;;  %v5175_v17 = vadd.f32 %v17463_v6, %v17462_v12  ;;  %v9462_v21 = vld [vmem:[#allocation10 + $0x444] sm:$0xf]  ;;  %v9012_v60 = vld [vmem:[#allocation10 + $0x450] sm:$0xf0]  ;;  %v9218_v12 = vld [vmem:[#allocation10 + $0x5e0] sm:$0xf] }
 0xeae   : > { %v5890_v15 = vpop.f32.mrf.mxu0  ;;  %v5971_v8 = vpop.f32.mrf.mxu1  ;;  %6860 = vmatpush.bf16.msrb.mxu3 %v9031_v24  ;;  %v9015_v4 = vor.u32 %v9462_v21, %v9012_v60  ;;  %v17465_v20 = vld [vmem:[#allocation261_spill] sm:$0xff] }
 0xeaf   : > { %17459 = vst [vmem:[#allocation205_spill] sm:$0xff] %v14444_v16  ;;  %v14449_v19 = vadd.f32 %v5890_v15, %v14206_v52  ;;  %v14451_v22 = vadd.f32 %v5971_v8, %v5029_v59  ;;  %v17464_v52 = vld [vmem:[#allocation215_spill] sm:$0xff]  ;;  %v17466_v59 = vld [vmem:[#allocation184_spill] sm:$0xff]  ;;  %v9516_v6 = vld [vmem:[#allocation10 + $0x5ec] sm:$0xf0] }
 0xeb0   : > { %v5032_v8 = vadd.f32 %v17465_v20, %v17464_v52  ;;  %v9219_v21 = vor.u32 %v9516_v6, %v9218_v12  ;;  %v8996_v60 = vld [vmem:[#allocation10 + $0x430] sm:$0xf0]  ;;  %v17471_v16 = vld [vmem:[#allocation31_spill] sm:$0xff] }
 0xeb1   : > { %17460 = vst [vmem:[#allocation40_spill] sm:$0xff] %v14449_v19  ;;  %6156 = vmatmul.bf16.gmra.mxu3 %v17370_v5  ;;  %6205 = vmatmul.bf16.gmra.mxu0 %v17371_v32  ;;  %v9458_v19 = vld [vmem:[#allocation10 + $0x424] sm:$0xf]  ;;  %v17472_v52 = vld [vmem:[#allocation57_spill] sm:$0xff] }
 0xeb2   : > { %17461 = vst [vmem:[#allocation63_spill] sm:$0xff] %v14451_v22  ;;  %6861 = vmatpush.bf16.msrb.mxu3 %v9015_v4  ;;  %6767 = vmatpush.bf16.msrb.mxu2 %v9219_v21  ;;  %v9202_v4 = vld [vmem:[#allocation10 + $0x5c0] sm:$0xf] }
 0xeb3   : > { %v17476_v12 = vld [vmem:[#allocation263_spill] sm:$0xff] }
 0xeb4   : > { %v6020_v36 = vpop.f32.mrf.mxu2  ;;  %v6117_v14 = vpop.f32.mrf.mxu3 }
 0xeb5   : > { %v14460_v15 = vadd.f32 %v6020_v36, %v17466_v59  ;;  %v14462_v39 = vadd.f32 %v6117_v14, %v5175_v17  ;;  %v8999_v36 = vor.u32 %v9458_v19, %v8996_v60  ;;  %v17473_v17 = vld [vmem:[#allocation216_spill] sm:$0xff]  ;;  %v17474_v14 = vld [vmem:[#allocation87_spill] sm:$0xff] }
 0xeb6   : > { %v5892_v5 = vpop.f32.mrf.mxu0  ;;  %v5974_v35 = vpop.f32.mrf.mxu1  ;;  %v5177_v20 = vadd.f32 %v17474_v14, %v17473_v17  ;;  %v9454_v59 = vld [vmem:[#allocation10 + $0x404] sm:$0xf]  ;;  %v9186_v14 = vld [vmem:[#allocation10 + $0x5a0] sm:$0xf] }
 0xeb7   : > { %17467 = vst [vmem:[#allocation203_spill] sm:$0xff] %v14460_v15  ;;  %v14465_v32 = vadd.f32 %v5892_v5, %v14222_v27  ;;  %v14467_v24 = vadd.f32 %v5974_v35, %v5032_v8  ;;  %6862 = vmatpush.bf16.msrb.mxu3 %v8999_v36  ;;  %v9512_v27 = vld [vmem:[#allocation10 + $0x5cc] sm:$0xf0]  ;;  %v17475_v15 = vld [vmem:[#allocation218_spill] sm:$0xff] }
 0xeb8   : > { %17468 = vst [vmem:[#allocation37_spill] sm:$0xff] %v14462_v39  ;;  %v9203_v35 = vor.u32 %v9512_v27, %v9202_v4  ;;  %v5034_v6 = vadd.f32 %v17476_v12, %v17475_v15  ;;  %v9508_v4 = vld [vmem:[#allocation10 + $0x5ac] sm:$0xf0]  ;;  %v17480_v15 = vld [vmem:[#allocation220_spill] sm:$0xff] }
 0xeb9   : > { %17469 = vst [vmem:[#allocation116_spill] sm:$0xff] %v14465_v32  ;;  %6062 = vmatmul.bf16.gmra.mxu2 %v17471_v16  ;;  %6706 = vmatmul.bf16.gmra.mxu1 %v17472_v52  ;;  %v8980_v32 = vld [vmem:[#allocation10 + $0x410] sm:$0xf0]  ;;  %v9187_v27 = vor.u32 %v9508_v4, %v9186_v14  ;;  %v9154_v4 = vld [vmem:[#allocation10 + $0x560] sm:$0xf] }
 0xeba   : > { %17470 = vst [vmem:[#allocation82_spill] sm:$0xff] %v14467_v24  ;;  %v17477_v24 = vld [vmem:[#allocation81_spill] sm:$0xff]  ;;  %v8983_v19 = vor.u32 %v9454_v59, %v8980_v32  ;;  %6768 = vmatpush.bf16.msrb.mxu2 %v9203_v35  ;;  %v17482_v35 = vld [vmem:[#allocation222_spill] sm:$0xff] }
 0xebb   : > { %v9504_v59 = vld [vmem:[#allocation10 + $0x58c] sm:$0xf0] }
 0xebc   : > { %v6023_v8 = vpop.f32.mrf.mxu2  ;;  %v6119_v5 = vpop.f32.mrf.mxu3  ;;  %6863 = vmatpush.bf16.msrb.mxu3 %v8983_v19  ;;  %v17483_v12 = vld [vmem:[#allocation265_spill] sm:$0xff] }
 0xebd   : > { %v14476_v22 = vadd.f32 %v6023_v8, %v17477_v24  ;;  %v14478_v39 = vadd.f32 %v6119_v5, %v5177_v20  ;;  %v17481_v24 = vld [vmem:[#allocation74_spill] sm:$0xff]  ;;  %v9170_v20 = vld [vmem:[#allocation10 + $0x580] sm:$0xf] }
 0xebe   : > { %v5895_v21 = vpop.f32.mrf.mxu0  ;;  %v5976_v60 = vpop.f32.mrf.mxu1  ;;  %6769 = vmatpush.bf16.msrb.mxu2 %v9187_v27  ;;  %v5180_v32 = vadd.f32 %v17481_v24, %v17480_v15  ;;  %v9500_v27 = vld [vmem:[#allocation10 + $0x56c] sm:$0xf0]  ;;  %v17486_v24 = vld [vmem:[#allocation23_spill] sm:$0xff] }
 0xebf   : > { %17478 = vst [vmem:[#allocation125_spill] sm:$0xff] %v14476_v22  ;;  %v14481_v36 = vadd.f32 %v5895_v21, %v14238_v1  ;;  %v14483_v17 = vadd.f32 %v5976_v60, %v5034_v6  ;;  %v9171_v1 = vor.u32 %v9504_v59, %v9170_v20  ;;  %v5037_v6 = vadd.f32 %v17483_v12, %v17482_v35  ;;  %v17487_v20 = vld [vmem:[#allocation48_spill] sm:$0xff]  ;;  %v17489_v59 = vld [vmem:[#allocation75_spill] sm:$0xff]  ;;  %v9156_v22 = vld [vmem:[#allocation10 + $0x570] sm:$0xf0] }
 0xec0   : > { %v9155_v15 = vor.u32 %v9500_v27, %v9154_v4 }
 0xec1   : > { %17479 = vst [vmem:[#allocation64_spill] sm:$0xff] %v14481_v36  ;;  %6161 = vmatmul.bf16.gmra.mxu3 %v17165_v41  ;;  %6210 = vmatmul.bf16.gmra.mxu0 %v17166_v48 }
 0xec2   : > { %6770 = vmatpush.bf16.msrb.mxu2 %v9171_v1 }
 0xec4   : > { %v6025_v8 = vpop.f32.mrf.mxu2  ;;  %v6122_v5 = vpop.f32.mrf.mxu3 }
 0xec5   : > { %v14492_v19 = vadd.f32 %v6025_v8, %v14227_v63  ;;  %v14494_v21 = vadd.f32 %v6122_v5, %v5180_v32  ;;  %v17488_v63 = vld [vmem:[#allocation223_spill] sm:$0xff]  ;;  %v9496_v5 = vld [vmem:[#allocation10 + $0x54c] sm:$0xf0] }
 0xec6   : > { %v5897_v41 = vpop.f32.mrf.mxu0  ;;  %v5979_v60 = vpop.f32.mrf.mxu1  ;;  %6771 = vmatpush.bf16.msrb.mxu2 %v9155_v15  ;;  %v5182_v32 = vadd.f32 %v17489_v59, %v17488_v63  ;;  %v9138_v8 = vld [vmem:[#allocation10 + $0x540] sm:$0xf] }
 0xec7   : > { %17484 = vst [vmem:[#allocation43_spill] sm:$0xff] %v14492_v19  ;;  %v14497_v48 = vadd.f32 %v5897_v41, %v14254_v25  ;;  %v14499_v14 = vadd.f32 %v5979_v60, %v5037_v6  ;;  %v9139_v12 = vor.u32 %v9496_v5, %v9138_v8  ;;  %v17490_v25 = vld [vmem:[#allocation225_spill] sm:$0xff]  ;;  %v17491_v41 = vld [vmem:[#allocation267_spill] sm:$0xff] }
 0xec8   : > { %v5039_v6 = vadd.f32 %v17491_v41, %v17490_v25  ;;  %v9122_v59 = vld [vmem:[#allocation10 + $0x520] sm:$0xf]  ;;  %v9492_v19 = vld [vmem:[#allocation10 + $0x52c] sm:$0xf0] }
 0xec9   : > { %17485 = vst [vmem:[#allocation207_spill] sm:$0xff] %v14497_v48  ;;  %6067 = vmatmul.bf16.gmra.mxu2 %v17486_v24  ;;  %6711 = vmatmul.bf16.gmra.mxu1 %v17487_v20  ;;  %v9123_v36 = vor.u32 %v9492_v19, %v9122_v59  ;;  %v17495_v8 = vld [vmem:[#allocation69_spill] sm:$0xff]  ;;  %v9106_v5 = vld [vmem:[#allocation10 + $0x500] sm:$0xf] }
 0xeca   : > { %6772 = vmatpush.bf16.msrb.mxu2 %v9139_v12  ;;  %v17497_v41 = vld [vmem:[#allocation131_spill] sm:$0xff] }
 0xecb   : > { %v17500_v59 = vld [vmem:[#allocation139_spill] sm:$0xff] }
 0xecc   : > { %v6028_v35 = vpop.f32.mrf.mxu2  ;;  %v6124_v1 = vpop.f32.mrf.mxu3 }
 0xecd   : > { %v14508_v60 = vadd.f32 %v6028_v35, %v14243_v40  ;;  %v14510_v4 = vadd.f32 %v6124_v1, %v5182_v32  ;;  %v17494_v40 = vld [vmem:[#allocation227_spill] sm:$0xff]  ;;  %v9488_v35 = vld [vmem:[#allocation10 + $0x50c] sm:$0xf0] }
 0xece   : > { %v5900_v27 = vpop.f32.mrf.mxu0  ;;  %v5981_v48 = vpop.f32.mrf.mxu1  ;;  %6773 = vmatpush.bf16.msrb.mxu2 %v9123_v36  ;;  %v5185_v32 = vadd.f32 %v17495_v8, %v17494_v40  ;;  %v9107_v25 = vor.u32 %v9488_v35, %v9106_v5  ;;  %v17501_v40 = vld [vmem:[#allocation230_spill] sm:$0xff]  ;;  %v17502_v8 = vld [vmem:[#allocation72_spill] sm:$0xff] }
 0xecf   : > { %17492 = vst [vmem:[#allocation159_spill] sm:$0xff] %v14508_v60  ;;  %v14513_v15 = vadd.f32 %v5900_v27, %v14270_v10  ;;  %v14515_v63 = vadd.f32 %v5981_v48, %v5039_v6  ;;  %v17496_v10 = vld [vmem:[#allocation229_spill] sm:$0xff]  ;;  %v5187_v5 = vadd.f32 %v17502_v8, %v17501_v40 }
 0xed0   : > { %v5042_v48 = vadd.f32 %v17497_v41, %v17496_v10  ;;  %v17508_v40 = vld [vmem:[#allocation129_spill] sm:$0xff] }
 0xed1   : > { %17493 = vst [vmem:[#allocation212_spill] sm:$0xff] %v14513_v15  ;;  %6166 = vmatmul.bf16.gmra.mxu3 %v17175_v33  ;;  %6215 = vmatmul.bf16.gmra.mxu0 %v17176_v46 }
 0xed2   : > { %6774 = vmatpush.bf16.msrb.mxu2 %v9107_v25 }
 0xed4   : > { %v6030_v1 = vpop.f32.mrf.mxu2  ;;  %v6127_v12 = vpop.f32.mrf.mxu3 }
 0xed5   : > { %v14524_v6 = vadd.f32 %v6030_v1, %v14259_v42  ;;  %v14526_v19 = vadd.f32 %v6127_v12, %v5185_v32  ;;  %v17503_v1 = vld [vmem:[#allocation231_spill] sm:$0xff]  ;;  %v17504_v32 = vld [vmem:[#allocation128_spill] sm:$0xff] }
 0xed6   : > { %v5902_v33 = vpop.f32.mrf.mxu0  ;;  %v5984_v27 = vpop.f32.mrf.mxu1  ;;  %v5044_v12 = vadd.f32 %v17504_v32, %v17503_v1 }
 0xed7   : > { %17498 = vst [vmem:[#allocation157_spill] sm:$0xff] %v14524_v6  ;;  %v14529_v46 = vadd.f32 %v5902_v33, %v14286_v45  ;;  %v14531_v36 = vadd.f32 %v5984_v27, %v5042_v48  ;;  %v17507_v27 = vld [vmem:[#allocation234_spill] sm:$0xff] }
 0xed8   : > { %v5190_v8 = vadd.f32 %v17508_v40, %v17507_v27  ;;  %v17513_v27 = vld [vmem:[#allocation115_spill] sm:$0xff]  ;;  %v17514_v40 = vld [vmem:[#allocation237_spill] sm:$0xff] }
 0xed9   : > { %17499 = vst [vmem:[#allocation161_spill] sm:$0xff] %v14529_v46  ;;  %6072 = vmatmul.bf16.gmra.mxu2 %v17263_v11  ;;  %6716 = vmatmul.bf16.gmra.mxu1 %v17500_v59 }
 0xedc   : > { %v6033_v35 = vpop.f32.mrf.mxu2  ;;  %v6129_v42 = vpop.f32.mrf.mxu3 }
 0xedd   : > { %v14540_v10 = vadd.f32 %v6033_v35, %v14275_v51  ;;  %v14542_v25 = vadd.f32 %v6129_v42, %v5187_v5  ;;  %v17509_v51 = vld [vmem:[#allocation235_spill] sm:$0xff] }
 0xede   : > { %v5986_v45 = vpop.f32.mrf.mxu1  ;;  %v6181_v41 = vpop.f32.mrf.mxu0  ;;  %v17510_v35 = vld [vmem:[#allocation127_spill] sm:$0xff] }
 0xedf   : > { %17505 = vst [vmem:[#allocation210_spill] sm:$0xff] %v14540_v10  ;;  %v14544_v48 = vadd.f32 %v5986_v45, %v5044_v12  ;;  %v14547_v33 = vadd.f32 %v6181_v41, %v14302_v2  ;;  %v5047_v5 = vadd.f32 %v17510_v35, %v17509_v51 }
 0xee1   : > { %17506 = vst [vmem:[#allocation163_spill] sm:$0xff] %v14547_v33  ;;  %6220 = vmatmul.bf16.gmra.mxu0 %v17186_v58  ;;  %6864 = vmatmul.bf16.vlgmr.msrb.gmra.mxu3 %v17408_v23  ;;  %v17515_v33 = vld [vmem:[#allocation65_spill] sm:$0xff] }
 0xee2   : > { %v5192_v10 = vadd.f32 %v17515_v33, %v17514_v40  ;;  %v17520_v33 = vld [vmem:[#allocation241_spill] sm:$0xff]  ;;  %v17521_v40 = vld [vmem:[#allocation106_spill] sm:$0xff] }
 0xee4   : > { %v6035_v1 = vpop.f32.mrf.mxu2  ;;  %v6132_v32 = vpop.f32.mrf.mxu3 }
 0xee5   : > { %v14556_v42 = vadd.f32 %v6035_v1, %v14291_v9  ;;  %v14558_v12 = vadd.f32 %v6132_v32, %v5190_v8  ;;  %v17516_v9 = vld [vmem:[#allocation238_spill] sm:$0xff]  ;;  %v17517_v1 = vld [vmem:[#allocation68_spill] sm:$0xff] }
 0xee6   : > { %v5989_v45 = vpop.f32.mrf.mxu1  ;;  %v6183_v2 = vpop.f32.mrf.mxu0  ;;  %v5049_v8 = vadd.f32 %v17517_v1, %v17516_v9 }
 0xee7   : > { %17511 = vst [vmem:[#allocation76_spill] sm:$0xff] %v14556_v42  ;;  %v14560_v41 = vadd.f32 %v5989_v45, %v5047_v5  ;;  %v14563_v58 = vadd.f32 %v6183_v2, %v14318_v31  ;;  %v5195_v42 = vadd.f32 %v17521_v40, %v17520_v33 }
 0xee9   : > { %17512 = vst [vmem:[#allocation123_spill] sm:$0xff] %v14563_v58  ;;  %6077 = vmatmul.bf16.gmra.mxu2 %v17274_v53  ;;  %6721 = vmatmul.bf16.gmra.mxu1 %v17513_v27 }
 0xeec   : > { %v6038_v51 = vpop.f32.mrf.mxu2  ;;  %v6134_v35 = vpop.f32.mrf.mxu3 }
 0xeed   : > { %v14572_v32 = vadd.f32 %v6038_v51, %v14307_v62  ;;  %v14574_v5 = vadd.f32 %v6134_v35, %v5192_v10 }
 0xeee   : > { %v5991_v45 = vpop.f32.mrf.mxu1  ;;  %v6186_v31 = vpop.f32.mrf.mxu0 }
 0xeef   : > { %17518 = vst [vmem:[#allocation20_spill] sm:$0xff] %v14572_v32  ;;  %v14576_v2 = vadd.f32 %v5991_v45, %v5049_v8  ;;  %v14579_v58 = vadd.f32 %v6186_v31, %v14334_v54  ;;  %v17524_v8 = vld [vmem:[#allocation140_spill] sm:$0xff]  ;;  %v17527_v31 = vld [vmem:[#allocation118_spill] sm:$0xff] }
 0xef0   : > { %v17526_v45 = vld [vmem:[#allocation244_spill] sm:$0xff] }
 0xef1   : > { %17519 = vst [vmem:[#allocation164_spill] sm:$0xff] %v14579_v58  ;;  %6225 = vmatmul.bf16.gmra.mxu0 %v17200_v50  ;;  %6869 = vmatmul.bf16.gmra.mxu3 %v17421_v57  ;;  %v17525_v50 = vld [vmem:[#allocation117_spill] sm:$0xff]  ;;  %v5197_v33 = vadd.f32 %v17527_v31, %v17526_v45 }
 0xef4   : > { %v6040_v9 = vpop.f32.mrf.mxu2  ;;  %v6137_v1 = vpop.f32.mrf.mxu3 }
 0xef5   : > { %v14586_v62 = vadd.f32 %v6040_v9, %v14323_v44  ;;  %v14588_v10 = vadd.f32 %v6137_v1, %v5195_v42 }
 0xef6   : > { %v6188_v51 = vpop.f32.mrf.mxu0  ;;  %v14590_v35 = vpop.f32.mrf.mxu1 }
 0xef7   : > { %17522 = vst [vmem:[#allocation214_spill] sm:$0xff] %v14586_v62  ;;  %v14593_v54 = vadd.f32 %v6188_v51, %v14350_v47  ;;  %v17530_v51 = vld [vmem:[#allocation247_spill] sm:$0xff] }
 0xef9   : > { %17523 = vst [vmem:[#allocation165_spill] sm:$0xff] %v14593_v54  ;;  %6726 = vmatmul.bf16.gmra.mxu1 %v17524_v8  ;;  %6775 = vmatmul.bf16.vlgmr.msrb.gmra.mxu2 %v17525_v50  ;;  %v17531_v54 = vld [vmem:[#allocation137_spill] sm:$0xff] }
 0xefa   : > { %v5200_v45 = vadd.f32 %v17531_v54, %v17530_v51 }
 0xefc   : > { %v6043_v40 = vpop.f32.mrf.mxu2  ;;  %v6139_v58 = vpop.f32.mrf.mxu3 }
 0xefd   : > { %v14600_v44 = vadd.f32 %v6043_v40, %v14339_v56  ;;  %v14602_v42 = vadd.f32 %v6139_v58, %v5197_v33 }
 0xefe   : > { %v6191_v9 = vpop.f32.mrf.mxu0  ;;  %v14604_v1 = vpop.f32.mrf.mxu1 }
 0xeff   : > { %17528 = vst [vmem:[#allocation219_spill] sm:$0xff] %v14600_v44  ;;  %v14607_v47 = vadd.f32 %v6191_v9, %v14366_v30  ;;  %v17534_v9 = vld [vmem:[#allocation54_spill] sm:$0xff] }
 0xf00   : > { %v17537_v44 = vld [vmem:[#allocation62_spill] sm:$0xff] }
 0xf01   : > { %17529 = vst [vmem:[#allocation27_spill] sm:$0xff] %v14607_v47  ;;  %6230 = vmatmul.bf16.gmra.mxu0 %v17435_v34  ;;  %6874 = vmatmul.bf16.gmra.mxu3 %v17436_v26  ;;  %v17535_v34 = vld [vmem:[#allocation52_spill] sm:$0xff]  ;;  %v17536_v47 = vld [vmem:[#allocation250_spill] sm:$0xff] }
 0xf02   : > { %v5202_v54 = vadd.f32 %v17537_v44, %v17536_v47 }
 0xf04   : > { %v6045_v31 = vpop.f32.mrf.mxu2  ;;  %v6142_v62 = vpop.f32.mrf.mxu3 }
 0xf05   : > { %v14614_v56 = vadd.f32 %v6045_v31, %v14355_v38  ;;  %v14616_v58 = vadd.f32 %v6142_v62, %v5200_v45 }
 0xf06   : > { %v6193_v33 = vpop.f32.mrf.mxu0  ;;  %v14618_v40 = vpop.f32.mrf.mxu1 }
 0xf07   : > { %17532 = vst [vmem:[#allocation166_spill] sm:$0xff] %v14614_v56  ;;  %v14621_v30 = vadd.f32 %v6193_v33, %v14382_v0  ;;  %v17540_v33 = vld [vmem:[#allocation253_spill] sm:$0xff] }
 0xf09   : > { %17533 = vst [vmem:[#allocation217_spill] sm:$0xff] %v14621_v30  ;;  %6731 = vmatmul.bf16.gmra.mxu1 %v17534_v9  ;;  %6780 = vmatmul.bf16.gmra.mxu2 %v17535_v34  ;;  %v17541_v30 = vld [vmem:[#allocation146_spill] sm:$0xff] }
 0xf0a   : > { %v5205_v44 = vadd.f32 %v17541_v30, %v17540_v33 }
 0xf0c   : > { %v6048_v51 = vpop.f32.mrf.mxu2  ;;  %v6144_v32 = vpop.f32.mrf.mxu3 }
 0xf0d   : > { %v14628_v38 = vadd.f32 %v6048_v51, %v14371_v28  ;;  %v14630_v62 = vadd.f32 %v6144_v32, %v5202_v54 }
 0xf0e   : > { %v6196_v45 = vpop.f32.mrf.mxu0  ;;  %v14632_v31 = vpop.f32.mrf.mxu1 }
 0xf0f   : > { %17538 = vst [vmem:[#allocation168_spill] sm:$0xff] %v14628_v38  ;;  %v14635_v0 = vadd.f32 %v6196_v45, %v14398_v3  ;;  %v17544_v45 = vld [vmem:[#allocation56_spill] sm:$0xff]  ;;  %v17547_v38 = vld [vmem:[#allocation99_spill] sm:$0xff] }
 0xf11   : > { %17539 = vst [vmem:[#allocation25_spill] sm:$0xff] %v14635_v0  ;;  %6235 = vmatmul.bf16.gmra.mxu0 %v17452_v43  ;;  %6879 = vmatmul.bf16.gmra.mxu3 %v17453_v61  ;;  %v17545_v43 = vld [vmem:[#allocation114_spill] sm:$0xff]  ;;  %v17546_v0 = vld [vmem:[#allocation255_spill] sm:$0xff] }
 0xf12   : > { %v5207_v30 = vadd.f32 %v17547_v38, %v17546_v0  ;;  %v17550_v38 = vld [vmem:[#allocation257_spill] sm:$0xff]  ;;  %v17551_v0 = vld [vmem:[#allocation28_spill] sm:$0xff] }
 0xf14   : > { %v6050_v47 = vpop.f32.mrf.mxu2  ;;  %v6147_v56 = vpop.f32.mrf.mxu3 }
 0xf15   : > { %v14642_v28 = vadd.f32 %v6050_v47, %v14387_v7  ;;  %v14644_v32 = vadd.f32 %v6147_v56, %v5205_v44 }
 0xf16   : > { %v6198_v54 = vpop.f32.mrf.mxu0  ;;  %v14646_v51 = vpop.f32.mrf.mxu1 }
 0xf17   : > { %17542 = vst [vmem:[#allocation134_spill] sm:$0xff] %v14642_v28  ;;  %v14649_v3 = vadd.f32 %v6198_v54, %v14414_v29  ;;  %v9514_v54 = vld [vmem:[#allocation10 + $0x5e4] sm:$0xf] }
 0xf19   : > { %17543 = vst [vmem:[#allocation100_spill] sm:$0xff] %v14649_v3  ;;  %6736 = vmatmul.bf16.gmra.mxu1 %v17544_v45  ;;  %6785 = vmatmul.bf16.gmra.mxu2 %v17545_v43  ;;  %v9220_v3 = vld [vmem:[#allocation10 + $0x5f0] sm:$0xf0] }
 0xf1a   : > { %v9223_v28 = vor.u32 %v9514_v54, %v9220_v3  ;;  %v9188_v54 = vld [vmem:[#allocation10 + $0x5b0] sm:$0xf0] }
 0xf1c   : > { %v6053_v33 = vpop.f32.mrf.mxu2  ;;  %v6149_v46 = vpop.f32.mrf.mxu3  ;;  %6945 = vmatpush.bf16.msrb.mxu0 %v9223_v28  ;;  %v9506_v28 = vld [vmem:[#allocation10 + $0x5a4] sm:$0xf] }
 0xf1d   : > { %v14656_v7 = vadd.f32 %v6053_v33, %v14403_v49  ;;  %v14658_v56 = vadd.f32 %v6149_v46, %v5207_v30  ;;  %v5210_v49 = vadd.f32 %v17551_v0, %v17550_v38  ;;  %v9510_v33 = vld [vmem:[#allocation10 + $0x5c4] sm:$0xf]  ;;  %v9204_v46 = vld [vmem:[#allocation10 + $0x5d0] sm:$0xf0]  ;;  %v9191_v38 = vor.u32 %v9506_v28, %v9188_v54  ;;  %v17555_v0 = vld [vmem:[#allocation58_spill] sm:$0xff] }
 0xf1e   : > { %v6201_v44 = vpop.f32.mrf.mxu0  ;;  %v14660_v47 = vpop.f32.mrf.mxu1  ;;  %v9207_v6 = vor.u32 %v9510_v33, %v9204_v46  ;;  %v17557_v33 = vld [vmem:[#allocation259_spill] sm:$0xff]  ;;  %v17561_v54 = vld [vmem:[#allocation37_spill] sm:$0xff] }
 0xf1f   : > { %17548 = vst [vmem:[#allocation170_spill] sm:$0xff] %v14656_v7  ;;  %v14663_v29 = vadd.f32 %v6201_v44, %v14430_v37 }
 0xf20   : > { %6946 = vmatpush.bf16.msrb.mxu0 %v9207_v6 }
 0xf21   : > { %17549 = vst [vmem:[#allocation221_spill] sm:$0xff] %v14663_v29  ;;  %6240 = vmatmul.bf16.gmra.mxu0 %v17471_v16  ;;  %6884 = vmatmul.bf16.gmra.mxu3 %v17472_v52  ;;  %v17556_v29 = vld [vmem:[#allocation141_spill] sm:$0xff] }
 0xf24   : > { %v6055_v30 = vpop.f32.mrf.mxu2  ;;  %v6152_v7 = vpop.f32.mrf.mxu3  ;;  %6947 = vmatpush.bf16.msrb.mxu0 %v9191_v38  ;;  %v9498_v38 = vld [vmem:[#allocation10 + $0x564] sm:$0xf] }
 0xf25   : > { %v14670_v15 = vadd.f32 %v6055_v30, %v14419_v18  ;;  %v14672_v37 = vadd.f32 %v6152_v7, %v5210_v49  ;;  %v17558_v18 = vld [vmem:[#allocation24_spill] sm:$0xff]  ;;  %v9502_v7 = vld [vmem:[#allocation10 + $0x584] sm:$0xf]  ;;  %v9172_v49 = vld [vmem:[#allocation10 + $0x590] sm:$0xf0] }
 0xf26   : > { %v6203_v44 = vpop.f32.mrf.mxu0  ;;  %v14674_v3 = vpop.f32.mrf.mxu1  ;;  %v5212_v46 = vadd.f32 %v17558_v18, %v17557_v33  ;;  %v9175_v60 = vor.u32 %v9502_v7, %v9172_v49  ;;  %v9159_v33 = vor.u32 %v9498_v38, %v9156_v22  ;;  %v17563_v18 = vld [vmem:[#allocation260_spill] sm:$0xff]  ;;  %v9490_v38 = vld [vmem:[#allocation10 + $0x524] sm:$0xf] }
 0xf27   : > { %17552 = vst [vmem:[#allocation171_spill] sm:$0xff] %v14670_v15  ;;  %v14677_v16 = vadd.f32 %v6203_v44, %v14446_v55 }
 0xf28   : > { %17553 = vst [vmem:[#allocation226_spill] sm:$0xff] %v14674_v3  ;;  %6948 = vmatpush.bf16.msrb.mxu0 %v9175_v60  ;;  %v17565_v60 = vld [vmem:[#allocation63_spill] sm:$0xff] }
 0xf29   : > { %17554 = vst [vmem:[#allocation172_spill] sm:$0xff] %v14677_v16  ;;  %6741 = vmatmul.bf16.gmra.mxu1 %v17555_v0  ;;  %6790 = vmatmul.bf16.gmra.mxu2 %v17556_v29 }
 0xf2c   : > { %v6058_v30 = vpop.f32.mrf.mxu2  ;;  %v6154_v15 = vpop.f32.mrf.mxu3  ;;  %6949 = vmatpush.bf16.msrb.mxu0 %v9159_v33  ;;  %v9124_v33 = vld [vmem:[#allocation10 + $0x530] sm:$0xf0] }
 0xf2d   : > { %v14684_v6 = vadd.f32 %v6058_v30, %v14435_v13  ;;  %v14686_v55 = vadd.f32 %v6154_v15, %v5212_v46  ;;  %v17564_v13 = vld [vmem:[#allocation147_spill] sm:$0xff]  ;;  %v9140_v46 = vld [vmem:[#allocation10 + $0x550] sm:$0xf0] }
 0xf2e   : > { %v6206_v44 = vpop.f32.mrf.mxu0  ;;  %v14688_v28 = vpop.f32.mrf.mxu1  ;;  %v5215_v7 = vadd.f32 %v17564_v13, %v17563_v18  ;;  %v9494_v15 = vld [vmem:[#allocation10 + $0x544] sm:$0xf]  ;;  %v9098_v18 = vld [vmem:[#allocation10 + $0x4e8] sm:$0xf]  ;;  %v9127_v13 = vor.u32 %v9490_v38, %v9124_v33 }
 0xf2f   : > { %17559 = vst [vmem:[#allocation224_spill] sm:$0xff] %v14684_v6  ;;  %v14691_v16 = vadd.f32 %v6206_v44, %v17561_v54  ;;  %v9143_v6 = vor.u32 %v9494_v15, %v9140_v46  ;;  %v17571_v15 = vld [vmem:[#allocation145_spill] sm:$0xff] }
 0xf30   : > { %17560 = vst [vmem:[#allocation173_spill] sm:$0xff] %v14688_v28  ;;  %v17574_v28 = vld [vmem:[#allocation82_spill] sm:$0xff] }
 0xf31   : > { %17562 = vst [vmem:[#allocation26_spill] sm:$0xff] %v14691_v16  ;;  %6245 = vmatmul.bf16.gmra.mxu0 %v17486_v24  ;;  %6889 = vmatmul.bf16.gmra.mxu3 %v17487_v20  ;;  %v9485_v16 = vld [vmem:[#allocation10 + $0x4f4] sm:$0xf0]  ;;  %v17570_v20 = vld [vmem:[#allocation59_spill] sm:$0xff] }
 0xf32   : > { %6950 = vmatpush.bf16.msrb.mxu0 %v9143_v6  ;;  %v9099_v46 = vor.u32 %v9485_v16, %v9098_v18  ;;  %v9108_v6 = vld [vmem:[#allocation10 + $0x510] sm:$0xf0] }
 0xf34   : > { %v6060_v49 = vpop.f32.mrf.mxu2  ;;  %v6157_v30 = vpop.f32.mrf.mxu3  ;;  %7034 = vmatpush.bf16.msra.mxu1 %v9099_v46  ;;  %v9477_v46 = vld [vmem:[#allocation10 + $0x4b4] sm:$0xf0] }
 0xf35   : > { %v14698_v52 = vadd.f32 %v6060_v49, %v17565_v60  ;;  %v14700_v44 = vadd.f32 %v6157_v30, %v5215_v7  ;;  %v17572_v7 = vld [vmem:[#allocation262_spill] sm:$0xff]  ;;  %v17573_v49 = vld [vmem:[#allocation101_spill] sm:$0xff]  ;;  %v9486_v60 = vld [vmem:[#allocation10 + $0x504] sm:$0xf] }
 0xf36   : > { %v6208_v54 = vpop.f32.mrf.mxu0  ;;  %v14702_v22 = vpop.f32.mrf.mxu1  ;;  %6951 = vmatpush.bf16.msrb.mxu0 %v9127_v13  ;;  %v5217_v30 = vadd.f32 %v17573_v49, %v17572_v7  ;;  %v9066_v13 = vld [vmem:[#allocation10 + $0x4a8] sm:$0xf]  ;;  %v17578_v49 = vld [vmem:[#allocation47_spill] sm:$0xff] }
 0xf37   : > { %17566 = vst [vmem:[#allocation174_spill] sm:$0xff] %v14698_v52  ;;  %v14705_v24 = vadd.f32 %v6208_v54, %v14478_v39  ;;  %v9082_v52 = vld [vmem:[#allocation10 + $0x4c8] sm:$0xf]  ;;  %v9067_v7 = vor.u32 %v9477_v46, %v9066_v13  ;;  %v9469_v13 = vld [vmem:[#allocation10 + $0x474] sm:$0xf0] }
 0xf38   : > { %17567 = vst [vmem:[#allocation228_spill] sm:$0xff] %v14700_v44 }
 0xf39   : > { %17568 = vst [vmem:[#allocation176_spill] sm:$0xff] %v14702_v22  ;;  %6746 = vmatmul.bf16.gmra.mxu1 %v17570_v20  ;;  %6795 = vmatmul.bf16.gmra.mxu2 %v17571_v15  ;;  %v9481_v22 = vld [vmem:[#allocation10 + $0x4d4] sm:$0xf0] }
 0xf3a   : > { %17569 = vst [vmem:[#allocation233_spill] sm:$0xff] %v14705_v24  ;;  %v9111_v24 = vor.u32 %v9486_v60, %v9108_v6  ;;  %v9083_v44 = vor.u32 %v9481_v22, %v9082_v52  ;;  %v9050_v52 = vld [vmem:[#allocation10 + $0x488] sm:$0xf]  ;;  %v9473_v22 = vld [vmem:[#allocation10 + $0x494] sm:$0xf0] }
 0xf3c   : > { %v6063_v39 = vpop.f32.mrf.mxu2  ;;  %v6159_v54 = vpop.f32.mrf.mxu3  ;;  %6952 = vmatpush.bf16.msrb.mxu0 %v9111_v24  ;;  %7035 = vmatpush.bf16.msra.mxu1 %v9083_v44  ;;  %v9051_v24 = vor.u32 %v9473_v22, %v9050_v52  ;;  %v17584_v52 = vld [vmem:[#allocation94_spill] sm:$0xff] }
 0xf3d   : > { %v14712_v38 = vadd.f32 %v6063_v39, %v17574_v28  ;;  %v14714_v33 = vadd.f32 %v6159_v54, %v5217_v30  ;;  %v17577_v28 = vld [vmem:[#allocation264_spill] sm:$0xff]  ;;  %v9465_v22 = vld [vmem:[#allocation10 + $0x454] sm:$0xf0] }
 0xf3e   : > { %v6211_v3 = vpop.f32.mrf.mxu0  ;;  %v14716_v16 = vpop.f32.mrf.mxu1  ;;  %v5220_v30 = vadd.f32 %v17578_v49, %v17577_v28  ;;  %v9034_v54 = vld [vmem:[#allocation10 + $0x468] sm:$0xf]  ;;  %v17583_v49 = vld [vmem:[#allocation266_spill] sm:$0xff] }
 0xf3f   : > { %17575 = vst [vmem:[#allocation177_spill] sm:$0xff] %v14712_v38  ;;  %v14719_v18 = vadd.f32 %v6211_v3, %v14494_v21  ;;  %v9035_v46 = vor.u32 %v9469_v13, %v9034_v54  ;;  %v17582_v28 = vld [vmem:[#allocation144_spill] sm:$0xff] }
 0xf40   : > { %7036 = vmatpush.bf16.msra.mxu1 %v9067_v7  ;;  %v17581_v7 = vld [vmem:[#allocation60_spill] sm:$0xff] }
 0xf41   : > { %17576 = vst [vmem:[#allocation232_spill] sm:$0xff] %v14719_v18  ;;  %6250 = vmatmul.bf16.gmra.mxu0 %v17263_v11  ;;  %6894 = vmatmul.bf16.gmra.mxu3 %v17500_v59  ;;  %v9002_v13 = vld [vmem:[#allocation10 + $0x428] sm:$0xf] }
 0xf44   : > { %v6065_v60 = vpop.f32.mrf.mxu2  ;;  %v6162_v6 = vpop.f32.mrf.mxu3  ;;  %7037 = vmatpush.bf16.msra.mxu1 %v9051_v24 }
 0xf45   : > { %v14726_v21 = vadd.f32 %v6065_v60, %v14483_v17  ;;  %v14728_v3 = vadd.f32 %v6162_v6, %v5220_v30  ;;  %v5222_v17 = vadd.f32 %v17584_v52, %v17583_v49  ;;  %v9018_v30 = vld [vmem:[#allocation10 + $0x448] sm:$0xf]  ;;  %v17588_v52 = vld [vmem:[#allocation33_spill] sm:$0xff] }
 0xf46   : > { %v6213_v44 = vpop.f32.mrf.mxu0  ;;  %v14733_v11 = vpop.f32.mrf.mxu1 }
 0xf47   : > { %17579 = vst [vmem:[#allocation179_spill] sm:$0xff] %v14726_v21  ;;  %v14731_v39 = vadd.f32 %v6213_v44, %v14510_v4  ;;  %v9019_v4 = vor.u32 %v9465_v22, %v9018_v30  ;;  %v9461_v21 = vld [vmem:[#allocation10 + $0x434] sm:$0xf0] }
 0xf48   : > { %7038 = vmatpush.bf16.msra.mxu1 %v9035_v46  ;;  %v9003_v18 = vor.u32 %v9461_v21, %v9002_v13  ;;  %v17587_v46 = vld [vmem:[#allocation268_spill] sm:$0xff]  ;;  %v9457_v30 = vld [vmem:[#allocation10 + $0x414] sm:$0xf0]  ;;  %v17592_v13 = vld [vmem:[#allocation143_spill] sm:$0xff] }
 0xf49   : > { %17580 = vst [vmem:[#allocation88_spill] sm:$0xff] %v14731_v39  ;;  %6751 = vmatmul.bf16.gmra.mxu1 %v17581_v7  ;;  %6800 = vmatmul.bf16.gmra.mxu2 %v17582_v28 }
 0xf4c   : > { %v6068_v60 = vpop.f32.mrf.mxu2  ;;  %v6164_v6 = vpop.f32.mrf.mxu3  ;;  %7039 = vmatpush.bf16.msra.mxu1 %v9019_v4 }
 0xf4d   : > { %v14740_v44 = vadd.f32 %v6068_v60, %v14499_v14  ;;  %v14742_v24 = vadd.f32 %v6164_v6, %v5222_v17  ;;  %v5225_v14 = vadd.f32 %v17588_v52, %v17587_v46  ;;  %v8986_v17 = vld [vmem:[#allocation10 + $0x408] sm:$0xf] }
 0xf4e   : > { %v6216_v39 = vpop.f32.mrf.mxu0  ;;  %v14747_v49 = vpop.f32.mrf.mxu1  ;;  %v17594_v46 = vld [vmem:[#allocation36_spill] sm:$0xff] }
 0xf4f   : > { %17585 = vst [vmem:[#allocation181_spill] sm:$0xff] %v14740_v44  ;;  %v14745_v54 = vadd.f32 %v6216_v39, %v14526_v19  ;;  %v8987_v19 = vor.u32 %v9457_v30, %v8986_v17  ;;  %v17610_v44 = vld [vmem:[#allocation92_spill] sm:$0xff] }
 0xf50   : > { %7040 = vmatpush.bf16.msra.mxu1 %v9003_v18  ;;  %v17593_v18 = vld [vmem:[#allocation102_spill] sm:$0xff] }
 0xf51   : > { %17586 = vst [vmem:[#allocation236_spill] sm:$0xff] %v14745_v54  ;;  %6255 = vmatmul.bf16.gmra.mxu0 %v17274_v53  ;;  %6899 = vmatmul.bf16.gmra.mxu3 %v17513_v27  ;;  %v17591_v53 = vld [vmem:[#allocation89_spill] sm:$0xff]  ;;  %v5227_v52 = vadd.f32 %v17594_v46, %v17593_v18 }
 0xf54   : > { %v6070_v22 = vpop.f32.mrf.mxu2  ;;  %v6167_v60 = vpop.f32.mrf.mxu3  ;;  %7041 = vmatpush.bf16.msra.mxu1 %v8987_v19 }
 0xf55   : > { %v14754_v39 = vadd.f32 %v6070_v22, %v14515_v63  ;;  %v14756_v6 = vadd.f32 %v6167_v60, %v5225_v14 }
 0xf56   : > { %v6218_v21 = vpop.f32.mrf.mxu0  ;;  %v14765_v54 = vpop.f32.mrf.mxu1 }
 0xf57   : > { %17589 = vst [vmem:[#allocation183_spill] sm:$0xff] %v14754_v39  ;;  %v14759_v4 = vadd.f32 %v6218_v21, %v14542_v25 }
 0xf59   : > { %17590 = vst [vmem:[#allocation240_spill] sm:$0xff] %v14759_v4  ;;  %6756 = vmatmul.bf16.gmra.mxu1 %v17591_v53  ;;  %6805 = vmatmul.bf16.gmra.mxu2 %v17592_v13 }
 0xf5c   : > { %v6073_v17 = vpop.f32.mrf.mxu2  ;;  %v6169_v30 = vpop.f32.mrf.mxu3 }
 0xf5d   : > { %v14768_v63 = vadd.f32 %v6073_v17, %v14531_v36  ;;  %v14770_v14 = vadd.f32 %v6169_v30, %v5227_v52  ;;  %v17599_v52 = vld [vmem:[#allocation97_spill] sm:$0xff] }
 0xf5e   : > { %v6221_v22 = vpop.f32.mrf.mxu0  ;;  %v14779_v21 = vpop.f32.mrf.mxu1 }
 0xf5f   : > { %17595 = vst [vmem:[#allocation185_spill] sm:$0xff] %v14768_v63  ;;  %v14773_v25 = vadd.f32 %v6221_v22, %v14558_v12  ;;  %v17600_v12 = vld [vmem:[#allocation142_spill] sm:$0xff] }
 0xf61   : > { %17596 = vst [vmem:[#allocation239_spill] sm:$0xff] %v14773_v25  ;;  %6904 = vmatmul.bf16.gmra.mxu3 %v17524_v8  ;;  %6953 = vmatmul.bf16.vlgmr.msrb.gmra.mxu0 %v17525_v50 }
 0xf64   : > { %v6075_v60 = vpop.f32.mrf.mxu2  ;;  %v14777_v19 = vpop.f32.mrf.mxu3 }
 0xf65   : > { %v14782_v18 = vadd.f32 %v6075_v60, %v14544_v48 }
 0xf66   : > { %v6223_v36 = vpop.f32.mrf.mxu0  ;;  %v14794_v63 = vpop.f32.mrf.mxu1 }
 0xf67   : > { %17597 = vst [vmem:[#allocation187_spill] sm:$0xff] %v14782_v18  ;;  %v14785_v46 = vadd.f32 %v6223_v36, %v14574_v5 }
 0xf69   : > { %17598 = vst [vmem:[#allocation243_spill] sm:$0xff] %v14785_v46  ;;  %6761 = vmatmul.bf16.gmra.mxu1 %v17599_v52  ;;  %6810 = vmatmul.bf16.gmra.mxu2 %v17600_v12 }
 0xf6c   : > { %v6078_v17 = vpop.f32.mrf.mxu2  ;;  %v14789_v30 = vpop.f32.mrf.mxu3 }
 0xf6d   : > { %v14792_v22 = vadd.f32 %v6078_v17, %v14560_v41 }
 0xf6e   : > { %v6226_v25 = vpop.f32.mrf.mxu0  ;;  %v14809_v17 = vpop.f32.mrf.mxu1 }
 0xf6f   : > { %17601 = vst [vmem:[#allocation41_spill] sm:$0xff] %v14792_v22  ;;  %v14797_v48 = vadd.f32 %v6226_v25, %v14588_v10  ;;  %v17605_v22 = vld [vmem:[#allocation19_spill] sm:$0xff]  ;;  %v14816_v10 = vld [vmem:[%s15633_s7] sm:$0xf] }
 0xf71   : > { %17602 = vst [vmem:[#allocation188_spill] sm:$0xff] %v14797_v48  ;;  %6909 = vmatmul.bf16.gmra.mxu3 %v17534_v9  ;;  %6958 = vmatmul.bf16.gmra.mxu0 %v17535_v34 }
 0xf74   : > { %v6080_v5 = vpop.f32.mrf.mxu2  ;;  %v14801_v60 = vpop.f32.mrf.mxu3 }
 0xf75   : > { %v14804_v36 = vadd.f32 %v6080_v5, %v14576_v2  ;;  %v14822_v5 = vperm.slane %v14816_v10, 0 }
 0xf76   : > { %v6228_v46 = vpop.f32.mrf.mxu0  ;;  %v14832_v4 = vpop.f32.mrf.mxu1 }
 0xf77   : > { %17603 = vst [vmem:[#allocation242_spill] sm:$0xff] %v14804_v36  ;;  %v14807_v41 = vadd.f32 %v6228_v46, %v14602_v42  ;;  %v17606_v46 = vld [vmem:[#allocation96_spill] sm:$0xff] }
 0xf79   : > { %17604 = vst [vmem:[#allocation190_spill] sm:$0xff] %v14807_v41  ;;  %6815 = vmatmul.bf16.gmra.mxu2 %v17605_v22  ;;  %7042 = vmatmul.bf16.vlgmr.msra.gmra.mxu1 %v17408_v23 }
 0xf7c   : > { %v6776_v25 = vpop.f32.mrf.mxu2  ;;  %v14818_v48 = vpop.f32.mrf.mxu3 }
 0xf7d   : > { %v6777_v2 = vadd.f32 %v6776_v25, %v14590_v35 }
 0xf7e   : > { %v6231_v42 = vpop.f32.mrf.mxu0 }
 0xf7f   : > { %v7390_v41 = vadd.f32 %v6777_v2, %v17606_v46  ;;  %v14827_v36 = vadd.f32 %v6231_v42, %v14616_v58  ;;  %v17608_v42 = vld [vmem:[#allocation29_spill] sm:$0xff] }
 0xf81   : > { %17607 = vst [vmem:[#allocation246_spill] sm:$0xff] %v14827_v36  ;;  %v7528_v18 = vadd.f32 %v14822_v5, %v7390_v41  ;;  %6914 = vmatmul.bf16.gmra.mxu3 %v17544_v45  ;;  %6963 = vmatmul.bf16.gmra.mxu0 %v17545_v43 }
 0xf83   : > { %v7656_v39 = vmax.f32 %v7528_v18, 0.0 }
 0xf84   : > { %v6778_v35 = vpop.f32.mrf.mxu2  ;;  %v14834_v25 = vpop.f32.mrf.mxu3 }
 0xf85   : > { %7784 = vst [vmem:[%s14836_s21] sm:$0xff] %v7656_v39  ;;  %v6779_v58 = vadd.f32 %v6778_v35, %v14604_v1  ;;  %v14849_v39 = vpop.f32.mrf.mxu1 }
 0xf86   : > { %v6233_v2 = vpop.f32.mrf.mxu0 }
 0xf87   : > { %v7394_v41 = vadd.f32 %v6779_v58, %v17608_v42  ;;  %v14842_v46 = vadd.f32 %v6233_v2, %v14630_v62  ;;  %v17611_v58 = vld [vmem:[#allocation51_spill] sm:$0xff] }
 0xf89   : > { %17609 = vst [vmem:[#allocation192_spill] sm:$0xff] %v14842_v46  ;;  %v7532_v36 = vadd.f32 %v14822_v5, %v7394_v41  ;;  %6820 = vmatmul.bf16.gmra.mxu2 %v17610_v44  ;;  %7047 = vmatmul.bf16.gmra.mxu1 %v17421_v57 }
 0xf8b   : > { %v7660_v18 = vmax.f32 %v7532_v36, 0.0 }
 0xf8c   : > { %v6781_v38 = vpop.f32.mrf.mxu2  ;;  %v14847_v43 = vpop.f32.mrf.mxu3 }
 0xf8d   : > { %7788 = vst [vmem:[%s14836_s21 + $0x20] sm:$0xff] %v7660_v18  ;;  %v6782_v1 = vadd.f32 %v6781_v38, %v14618_v40  ;;  %v14864_v18 = vpop.f32.mrf.mxu1 }
 0xf8e   : > { %v6236_v35 = vpop.f32.mrf.mxu0 }
 0xf8f   : > { %v7398_v62 = vadd.f32 %v6782_v1, %v17611_v58  ;;  %v14855_v2 = vadd.f32 %v6236_v35, %v14644_v32  ;;  %v17613_v1 = vld [vmem:[#allocation98_spill] sm:$0xff] }
 0xf91   : > { %17612 = vst [vmem:[#allocation245_spill] sm:$0xff] %v14855_v2  ;;  %v7536_v42 = vadd.f32 %v14822_v5, %v7398_v62  ;;  %6919 = vmatmul.bf16.gmra.mxu3 %v17555_v0  ;;  %6968 = vmatmul.bf16.gmra.mxu0 %v17556_v29  ;;  %v17615_v62 = vld [vmem:[#allocation110_spill] sm:$0xff] }
 0xf93   : > { %v7664_v36 = vmax.f32 %v7536_v42, 0.0 }
 0xf94   : > { %v6783_v41 = vpop.f32.mrf.mxu2  ;;  %v14860_v46 = vpop.f32.mrf.mxu3 }
 0xf95   : > { %7792 = vst [vmem:[%s14836_s21 + $0x40] sm:$0xff] %v7664_v36  ;;  %v6784_v40 = vadd.f32 %v6783_v41, %v14632_v31  ;;  %v17616_v41 = vld [vmem:[#allocation80_spill] sm:$0xff] }
 0xf96   : > { %v6238_v38 = vpop.f32.mrf.mxu0 }
 0xf97   : > { %v7402_v32 = vadd.f32 %v6784_v40, %v17613_v1  ;;  %v14868_v35 = vadd.f32 %v6238_v38, %v14658_v56  ;;  %v9483_v40 = vld [vmem:[#allocation10 + $0x4ec] sm:$0xf]  ;;  %v9100_v38 = vld [vmem:[#allocation10 + $0x4f8] sm:$0xf0] }
 0xf98   : > { %v9103_v1 = vor.u32 %v9483_v40, %v9100_v38  ;;  %v17619_v38 = vld [vmem:[#allocation104_spill] sm:$0xff] }
 0xf99   : > { %17614 = vst [vmem:[#allocation194_spill] sm:$0xff] %v14868_v35  ;;  %v7540_v58 = vadd.f32 %v14822_v5, %v7402_v32  ;;  %6825 = vmatmul.bf16.gmra.mxu2 %v17615_v62  ;;  %7052 = vmatmul.bf16.gmra.mxu1 %v17436_v26  ;;  %v14881_v32 = vpop.f32.mrf.mxu1  ;;  %v9475_v35 = vld [vmem:[#allocation10 + $0x4ac] sm:$0xf] }
 0xf9a   : > { %7212 = vmatpush.bf16.msra.mxu3 %v9103_v1  ;;  %v9068_v1 = vld [vmem:[#allocation10 + $0x4b8] sm:$0xf0] }
 0xf9b   : > { %v7668_v42 = vmax.f32 %v7540_v58, 0.0 }
 0xf9c   : > { %v6786_v2 = vpop.f32.mrf.mxu2  ;;  %v14873_v29 = vpop.f32.mrf.mxu3 }
 0xf9d   : > { %7796 = vst [vmem:[%s14836_s21 + $0x60] sm:$0xff] %v7668_v42  ;;  %v6787_v31 = vadd.f32 %v6786_v2, %v14646_v51  ;;  %v9479_v2 = vld [vmem:[#allocation10 + $0x4cc] sm:$0xf]  ;;  %v9084_v42 = vld [vmem:[#allocation10 + $0x4d8] sm:$0xf0] }
 0xf9e   : > { %v6241_v36 = vpop.f32.mrf.mxu0 }
 0xf9f   : > { %v7406_v0 = vadd.f32 %v6787_v31, %v17616_v41  ;;  %v14879_v56 = vadd.f32 %v6241_v36, %v14672_v37  ;;  %v9087_v37 = vor.u32 %v9479_v2, %v9084_v42  ;;  %v9471_v2 = vld [vmem:[#allocation10 + $0x48c] sm:$0xf]  ;;  %v9052_v42 = vld [vmem:[#allocation10 + $0x498] sm:$0xf0] }
 0xfa1   : > { %17617 = vst [vmem:[#allocation249_spill] sm:$0xff] %v14879_v56  ;;  %v7544_v58 = vadd.f32 %v14822_v5, %v7406_v0  ;;  %6924 = vmatmul.bf16.gmra.mxu3 %v17570_v20  ;;  %6973 = vmatmul.bf16.gmra.mxu0 %v17571_v15  ;;  %v17621_v20 = vld [vmem:[#allocation103_spill] sm:$0xff] }
 0xfa2   : > { %7213 = vmatpush.bf16.msra.mxu3 %v9087_v37 }
 0xfa3   : > { %v7672_v51 = vmax.f32 %v7544_v58, 0.0  ;;  %v9071_v58 = vor.u32 %v9475_v35, %v9068_v1  ;;  %v17626_v1 = vld [vmem:[#allocation228_spill] sm:$0xff] }
 0xfa4   : > { %v6788_v31 = vpop.f32.mrf.mxu2  ;;  %v14886_v41 = vpop.f32.mrf.mxu3 }
 0xfa5   : > { %17618 = vst [vmem:[#allocation53_spill] sm:$0xff] %v14886_v41  ;;  %v6789_v36 = vadd.f32 %v6788_v31, %v14660_v47  ;;  %v9036_v41 = vld [vmem:[#allocation10 + $0x478] sm:$0xf0] }
 0xfa6   : > { %7800 = vst [vmem:[%s14836_s21 + $0x80] sm:$0xff] %v7672_v51  ;;  %v6243_v40 = vpop.f32.mrf.mxu0  ;;  %7214 = vmatpush.bf16.msra.mxu3 %v9071_v58  ;;  %v14897_v51 = vpop.f32.mrf.mxu1  ;;  %v9467_v58 = vld [vmem:[#allocation10 + $0x46c] sm:$0xf] }
 0xfa7   : > { %v7410_v56 = vadd.f32 %v6789_v36, %v17619_v38  ;;  %v14892_v0 = vadd.f32 %v6243_v40, %v14686_v55  ;;  %17622 = vst [vmem:[#allocation248_spill] sm:$0xff] %v14897_v51  ;;  %v9055_v55 = vor.u32 %v9471_v2, %v9052_v42  ;;  %v17624_v36 = vld [vmem:[#allocation226_spill] sm:$0xff]  ;;  %v9463_v2 = vld [vmem:[#allocation10 + $0x44c] sm:$0xf] }
 0xfa8   : > { %v9020_v42 = vld [vmem:[#allocation10 + $0x458] sm:$0xf0] }
 0xfa9   : > { %17620 = vst [vmem:[#allocation195_spill] sm:$0xff] %v14892_v0  ;;  %v7548_v15 = vadd.f32 %v14822_v5, %v7410_v56  ;;  %6830 = vmatmul.bf16.gmra.mxu2 %v17621_v20  ;;  %7057 = vmatmul.bf16.gmra.mxu1 %v17453_v61  ;;  %v17625_v56 = vld [vmem:[#allocation30_spill] sm:$0xff] }
 0xfaa   : > { %7215 = vmatpush.bf16.msra.mxu3 %v9055_v55 }
 0xfab   : > { %v7676_v47 = vmax.f32 %v7548_v15, 0.0  ;;  %v9039_v15 = vor.u32 %v9467_v58, %v9036_v41 }
 0xfac   : > { %v6791_v31 = vpop.f32.mrf.mxu2  ;;  %v14899_v37 = vpop.f32.mrf.mxu3 }
 0xfad   : > { %17623 = vst [vmem:[#allocation197_spill] sm:$0xff] %v14899_v37  ;;  %v6792_v40 = vadd.f32 %v6791_v31, %v17624_v36  ;;  %v9023_v36 = vor.u32 %v9463_v2, %v9020_v42  ;;  %v17633_v42 = vld [vmem:[#allocation152_spill] sm:$0xff] }
 0xfae   : > { %7804 = vst [vmem:[%s14836_s21 + $0xa0] sm:$0xff] %v7676_v47  ;;  %v6246_v35 = vpop.f32.mrf.mxu0  ;;  %7216 = vmatpush.bf16.msra.mxu3 %v9039_v15  ;;  %v9226_v15 = vld [vmem:[#allocation10 + $0x5e8] sm:$0xf] }
 0xfaf   : > { %v7414_v38 = vadd.f32 %v6792_v40, %v17625_v56  ;;  %v14905_v0 = vadd.f32 %v6246_v35, %v17626_v1  ;;  %v14912_v40 = vpop.f32.mrf.mxu1  ;;  %v17630_v35 = vld [vmem:[#allocation173_spill] sm:$0xff] }
 0xfb0   : > { %17629 = vst [vmem:[#allocation251_spill] sm:$0xff] %v14912_v40 }
 0xfb1   : > { %17627 = vst [vmem:[#allocation252_spill] sm:$0xff] %v14905_v0  ;;  %v7552_v51 = vadd.f32 %v14822_v5, %v7414_v38  ;;  %6929 = vmatmul.bf16.gmra.mxu3 %v17581_v7  ;;  %6978 = vmatmul.bf16.gmra.mxu0 %v17582_v28  ;;  %v17631_v38 = vld [vmem:[#allocation91_spill] sm:$0xff]  ;;  %v9459_v0 = vld [vmem:[#allocation10 + $0x42c] sm:$0xf]  ;;  %v9004_v7 = vld [vmem:[#allocation10 + $0x438] sm:$0xf0] }
 0xfb2   : > { %7217 = vmatpush.bf16.msra.mxu3 %v9023_v36 }
 0xfb3   : > { %v7680_v47 = vmax.f32 %v7552_v51, 0.0  ;;  %v9517_v51 = vld [vmem:[#allocation10 + $0x5f4] sm:$0xf0] }
 0xfb4   : > { %v6793_v31 = vpop.f32.mrf.mxu2  ;;  %v14910_v55 = vpop.f32.mrf.mxu3  ;;  %v9227_v28 = vor.u32 %v9517_v51, %v9226_v15  ;;  %v8988_v15 = vld [vmem:[#allocation10 + $0x418] sm:$0xf0]  ;;  %v17635_v51 = vld [vmem:[#allocation176_spill] sm:$0xff] }
 0xfb5   : > { %17628 = vst [vmem:[#allocation199_spill] sm:$0xff] %v14910_v55  ;;  %v6794_v56 = vadd.f32 %v6793_v31, %v17630_v35  ;;  %v9007_v31 = vor.u32 %v9459_v0, %v9004_v7  ;;  %v9210_v35 = vld [vmem:[#allocation10 + $0x5c8] sm:$0xf] }
 0xfb6   : > { %7808 = vst [vmem:[%s14836_s21 + $0xc0] sm:$0xff] %v7680_v47  ;;  %v6248_v41 = vpop.f32.mrf.mxu0  ;;  %v17634_v47 = vld [vmem:[#allocation57_spill] sm:$0xff]  ;;  %7123 = vmatpush.bf16.msra.mxu2 %v9227_v28  ;;  %v17636_v7 = vld [vmem:[#allocation148_spill] sm:$0xff] }
 0xfb7   : > { %v7418_v1 = vadd.f32 %v6794_v56, %v17631_v38  ;;  %v14918_v58 = vadd.f32 %v6248_v41, %v14714_v33  ;;  %7218 = vmatpush.bf16.msra.mxu3 %v9007_v31  ;;  %v9513_v56 = vld [vmem:[#allocation10 + $0x5d4] sm:$0xf0]  ;;  %v14927_v40 = vpop.f32.mrf.mxu1 }
 0xfb8   : > { %v9211_v38 = vor.u32 %v9513_v56, %v9210_v35  ;;  %v9509_v31 = vld [vmem:[#allocation10 + $0x5b4] sm:$0xf0] }
 0xfb9   : > { %17632 = vst [vmem:[#allocation201_spill] sm:$0xff] %v14918_v58  ;;  %v7556_v2 = vadd.f32 %v14822_v5, %v7418_v1  ;;  %6835 = vmatmul.bf16.gmra.mxu2 %v17633_v42  ;;  %7062 = vmatmul.bf16.gmra.mxu1 %v17634_v47  ;;  %v9455_v58 = vld [vmem:[#allocation10 + $0x40c] sm:$0xf] }
 0xfba   : > { %v8991_v1 = vor.u32 %v9455_v58, %v8988_v15  ;;  %7124 = vmatpush.bf16.msra.mxu2 %v9211_v38 }
 0xfbb   : > { %v7684_v36 = vmax.f32 %v7556_v2, 0.0  ;;  %v9194_v2 = vld [vmem:[#allocation10 + $0x5a8] sm:$0xf] }
 0xfbc   : > { %v6796_v33 = vpop.f32.mrf.mxu2  ;;  %v14923_v41 = vpop.f32.mrf.mxu3  ;;  %7219 = vmatpush.bf16.msra.mxu3 %v8991_v1  ;;  %v9195_v35 = vor.u32 %v9509_v31, %v9194_v2  ;;  %v9501_v2 = vld [vmem:[#allocation10 + $0x574] sm:$0xf0] }
 0xfbd   : > { %7812 = vst [vmem:[%s14836_s21 + $0xe0] sm:$0xff] %v7684_v36  ;;  %v6797_v55 = vadd.f32 %v6796_v33, %v17635_v51  ;;  %v9178_v36 = vld [vmem:[#allocation10 + $0x588] sm:$0xf]  ;;  %v9505_v33 = vld [vmem:[#allocation10 + $0x594] sm:$0xf0] }
 0xfbe   : > { %v6251_v37 = vpop.f32.mrf.mxu0  ;;  %7125 = vmatpush.bf16.msra.mxu2 %v9195_v35  ;;  %v9179_v15 = vor.u32 %v9505_v33, %v9178_v36  ;;  %v17638_v51 = vld [vmem:[#allocation112_spill] sm:$0xff]  ;;  %v9497_v33 = vld [vmem:[#allocation10 + $0x554] sm:$0xf0] }
 0xfbf   : > { %v7422_v28 = vadd.f32 %v6797_v55, %v17636_v7  ;;  %v14931_v0 = vadd.f32 %v6251_v37, %v14728_v3  ;;  %v14944_v35 = vpop.f32.mrf.mxu1  ;;  %v9146_v36 = vld [vmem:[#allocation10 + $0x548] sm:$0xf] }
 0xfc1   : > { %17637 = vst [vmem:[#allocation254_spill] sm:$0xff] %v14931_v0  ;;  %v7560_v56 = vadd.f32 %v14822_v5, %v7422_v28  ;;  %6934 = vmatmul.bf16.gmra.mxu3 %v17591_v53  ;;  %6983 = vmatmul.bf16.gmra.mxu0 %v17592_v13  ;;  %v9162_v28 = vld [vmem:[#allocation10 + $0x568] sm:$0xf]  ;;  %v17640_v0 = vld [vmem:[#allocation155_spill] sm:$0xff] }
 0xfc2   : > { %7126 = vmatpush.bf16.msra.mxu2 %v9179_v15  ;;  %v9163_v31 = vor.u32 %v9501_v2, %v9162_v28  ;;  %v9147_v15 = vor.u32 %v9497_v33, %v9146_v36  ;;  %v9130_v2 = vld [vmem:[#allocation10 + $0x528] sm:$0xf]  ;;  %v9489_v33 = vld [vmem:[#allocation10 + $0x514] sm:$0xf0] }
 0xfc3   : > { %v7688_v58 = vmax.f32 %v7560_v56, 0.0  ;;  %v9114_v36 = vld [vmem:[#allocation10 + $0x508] sm:$0xf] }
 0xfc4   : > { %v6798_v38 = vpop.f32.mrf.mxu2  ;;  %v14936_v55 = vpop.f32.mrf.mxu3 }
 0xfc5   : > { %7816 = vst [vmem:[%s14836_s21 + $0x100] sm:$0xff] %v7688_v58  ;;  %v6799_v3 = vadd.f32 %v6798_v38, %v14716_v16  ;;  %v17641_v58 = vld [vmem:[#allocation48_spill] sm:$0xff] }
 0xfc6   : > { %v6253_v37 = vpop.f32.mrf.mxu0  ;;  %7127 = vmatpush.bf16.msra.mxu2 %v9163_v31  ;;  %v9493_v31 = vld [vmem:[#allocation10 + $0x534] sm:$0xf0] }
 0xfc7   : > { %v7426_v1 = vadd.f32 %v6799_v3, %v17638_v51  ;;  %v14942_v7 = vadd.f32 %v6253_v37, %v14742_v24  ;;  %v17642_v51 = vld [vmem:[#allocation133_spill] sm:$0xff] }
 0xfc9   : > { %17639 = vst [vmem:[#allocation119_spill] sm:$0xff] %v14942_v7  ;;  %v7564_v56 = vadd.f32 %v14822_v5, %v7426_v1  ;;  %6840 = vmatmul.bf16.gmra.mxu2 %v17640_v0  ;;  %7067 = vmatmul.bf16.gmra.mxu1 %v17641_v58 }
 0xfca   : > { %7128 = vmatpush.bf16.msra.mxu2 %v9147_v15  ;;  %v9115_v15 = vor.u32 %v9489_v33, %v9114_v36 }
 0xfcb   : > { %v7692_v16 = vmax.f32 %v7564_v56, 0.0  ;;  %v9131_v56 = vor.u32 %v9493_v31, %v9130_v2 }
 0xfcc   : > { %v6801_v38 = vpop.f32.mrf.mxu2  ;;  %v14951_v3 = vpop.f32.mrf.mxu3 }
 0xfcd   : > { %7820 = vst [vmem:[%s14836_s21 + $0x120] sm:$0xff] %v7692_v16  ;;  %v6802_v24 = vadd.f32 %v6801_v38, %v14733_v11  ;;  %v14960_v11 = vpop.f32.mrf.mxu1 }
 0xfce   : > { %v6256_v37 = vpop.f32.mrf.mxu0  ;;  %7129 = vmatpush.bf16.msra.mxu2 %v9131_v56 }
 0xfcf   : > { %v7430_v1 = vadd.f32 %v6802_v24, %v17642_v51  ;;  %v14955_v28 = vadd.f32 %v6256_v37, %v14756_v6  ;;  %v17644_v37 = vld [vmem:[#allocation156_spill] sm:$0xff] }
 0xfd1   : > { %17643 = vst [vmem:[#allocation113_spill] sm:$0xff] %v14955_v28  ;;  %v7568_v7 = vadd.f32 %v14822_v5, %v7430_v1  ;;  %6939 = vmatmul.bf16.gmra.mxu3 %v17599_v52  ;;  %6988 = vmatmul.bf16.gmra.mxu0 %v17600_v12 }
 0xfd2   : > { %7130 = vmatpush.bf16.msra.mxu2 %v9115_v15 }
 0xfd3   : > { %v7696_v16 = vmax.f32 %v7568_v7, 0.0  ;;  %v17646_v7 = vld [vmem:[#allocation126_spill] sm:$0xff] }
 0xfd4   : > { %v6803_v38 = vpop.f32.mrf.mxu2  ;;  %v14965_v1 = vpop.f32.mrf.mxu3 }
 0xfd5   : > { %7824 = vst [vmem:[%s14836_s21 + $0x140] sm:$0xff] %v7696_v16  ;;  %v6804_v6 = vadd.f32 %v6803_v38, %v14747_v49  ;;  %v14973_v16 = vpop.f32.mrf.mxu1  ;;  %v17647_v38 = vld [vmem:[#allocation105_spill] sm:$0xff] }
 0xfd6   : > { %v6258_v24 = vpop.f32.mrf.mxu0 }
 0xfd7   : > { %v7434_v51 = vadd.f32 %v6804_v6, %v17644_v37  ;;  %v14968_v2 = vadd.f32 %v6258_v24, %v14770_v14  ;;  %v14980_v6 = vperm.slane %v14816_v10, 1 }
 0xfd9   : > { %17645 = vst [vmem:[#allocation42_spill] sm:$0xff] %v14968_v2  ;;  %v7572_v31 = vadd.f32 %v14822_v5, %v7434_v51  ;;  %6845 = vmatmul.bf16.gmra.mxu2 %v17646_v7  ;;  %7072 = vmatmul.bf16.gmra.mxu1 %v17500_v59  ;;  %v17648_v51 = vld [vmem:[#allocation160_spill] sm:$0xff] }
 0xfdb   : > { %v7700_v56 = vmax.f32 %v7572_v31, 0.0 }
 0xfdc   : > { %v6806_v36 = vpop.f32.mrf.mxu2  ;;  %v14983_v37 = vpop.f32.mrf.mxu3 }
 0xfdd   : > { %7828 = vst [vmem:[%s14836_s21 + $0x160] sm:$0xff] %v7700_v56  ;;  %v6807_v49 = vadd.f32 %v6806_v36, %v14765_v54 }
 0xfde   : > { %v6954_v33 = vpop.f32.mrf.mxu0 }
 0xfdf   : > { %v7438_v15 = vadd.f32 %v6807_v49, %v17647_v38  ;;  %v6955_v14 = vadd.f32 %v6954_v33, %v14777_v19  ;;  %v14991_v33 = vpop.f32.mrf.mxu1  ;;  %v17649_v38 = vld [vmem:[#allocation44_spill] sm:$0xff] }
 0xfe1   : > { %v7576_v24 = vadd.f32 %v14822_v5, %v7438_v15  ;;  %v7391_v31 = vadd.f32 %v6955_v14, %v17648_v51  ;;  %6993 = vmatmul.bf16.gmra.mxu0 %v17605_v22  ;;  %7220 = vmatmul.bf16.vlgmr.msra.gmra.mxu3 %v17408_v23 }
 0xfe3   : > { %v7704_v54 = vmax.f32 %v7576_v24, 0.0  ;;  %v7529_v56 = vadd.f32 %v14980_v6, %v7391_v31  ;;  %v17650_v24 = vld [vmem:[#allocation38_spill] sm:$0xff] }
 0xfe4   : > { %v6808_v36 = vpop.f32.mrf.mxu2  ;;  %v17651_v31 = vld [vmem:[#allocation46_spill] sm:$0xff] }
 0xfe5   : > { %7832 = vst [vmem:[%s14836_s21 + $0x180] sm:$0xff] %v7704_v54  ;;  %v7657_v19 = vmax.f32 %v7529_v56, 0.0  ;;  %v6809_v10 = vadd.f32 %v6808_v36, %v14779_v21  ;;  %v15000_v56 = vpop.f32.mrf.mxu3 }
 0xfe6   : > { %v6956_v49 = vpop.f32.mrf.mxu0 }
 0xfe7   : > { %7785 = vst [vmem:[%s14836_s21 + $0x8] sm:$0xff] %v7657_v19  ;;  %v7442_v15 = vadd.f32 %v6809_v10, %v17649_v38  ;;  %v6957_v14 = vadd.f32 %v6956_v49, %v14789_v30  ;;  %v17652_v49 = vld [vmem:[#allocation67_spill] sm:$0xff] }
 0xfe9   : > { %v7580_v23 = vadd.f32 %v14822_v5, %v7442_v15  ;;  %v7395_v51 = vadd.f32 %v6957_v14, %v17650_v24  ;;  %6850 = vmatmul.bf16.gmra.mxu2 %v17651_v31  ;;  %7077 = vmatmul.bf16.gmra.mxu1 %v17513_v27  ;;  %v15008_v14 = vpop.f32.mrf.mxu1  ;;  %v17653_v24 = vld [vmem:[#allocation130_spill] sm:$0xff] }
 0xfeb   : > { %v7708_v54 = vmax.f32 %v7580_v23, 0.0  ;;  %v7533_v21 = vadd.f32 %v14980_v6, %v7395_v51 }
 0xfec   : > { %v6811_v36 = vpop.f32.mrf.mxu2 }
 0xfed   : > { %7836 = vst [vmem:[%s14836_s21 + $0x1a0] sm:$0xff] %v7708_v54  ;;  %v7661_v19 = vmax.f32 %v7533_v21, 0.0  ;;  %v6812_v10 = vadd.f32 %v6811_v36, %v14794_v63  ;;  %v15016_v21 = vpop.f32.mrf.mxu3 }
 0xfee   : > { %v6959_v30 = vpop.f32.mrf.mxu0 }
 0xfef   : > { %7789 = vst [vmem:[%s14836_s21 + $0x28] sm:$0xff] %v7661_v19  ;;  %v7446_v38 = vadd.f32 %v6812_v10, %v17652_v49  ;;  %v6960_v15 = vadd.f32 %v6959_v30, %v14801_v60  ;;  %v17654_v10 = vld [vmem:[#allocation162_spill] sm:$0xff] }
 0xff1   : > { %v7584_v23 = vadd.f32 %v14822_v5, %v7446_v38  ;;  %v7399_v2 = vadd.f32 %v6960_v15, %v17653_v24  ;;  %6998 = vmatmul.bf16.gmra.mxu0 %v17610_v44  ;;  %7225 = vmatmul.bf16.gmra.mxu3 %v17421_v57  ;;  %v17655_v38 = vld [vmem:[#allocation151_spill] sm:$0xff] }
 0xff3   : > { %v7712_v51 = vmax.f32 %v7584_v23, 0.0  ;;  %v7537_v63 = vadd.f32 %v14980_v6, %v7399_v2  ;;  %v15026_v2 = vpop.f32.mrf.mxu1 }
 0xff4   : > { %v6813_v54 = vpop.f32.mrf.mxu2 }
 0xff5   : > { %7840 = vst [vmem:[%s14836_s21 + $0x1c0] sm:$0xff] %v7712_v51  ;;  %v7665_v36 = vmax.f32 %v7537_v63, 0.0  ;;  %v6814_v60 = vadd.f32 %v6813_v54, %v14809_v17  ;;  %v15031_v54 = vpop.f32.mrf.mxu3 }
 0xff6   : > { %v6961_v19 = vpop.f32.mrf.mxu0 }
 0xff7   : > { %7793 = vst [vmem:[%s14836_s21 + $0x48] sm:$0xff] %v7665_v36  ;;  %v7450_v30 = vadd.f32 %v6814_v60, %v17654_v10  ;;  %v6962_v49 = vadd.f32 %v6961_v19, %v14818_v48  ;;  %v17656_v36 = vld [vmem:[#allocation107_spill] sm:$0xff] }
 0xff9   : > { %v7588_v57 = vadd.f32 %v14822_v5, %v7450_v30  ;;  %v7403_v15 = vadd.f32 %v6962_v49, %v17655_v38  ;;  %7082 = vmatmul.bf16.gmra.mxu1 %v17524_v8  ;;  %7131 = vmatmul.bf16.vlgmr.msra.gmra.mxu2 %v17525_v50  ;;  %v17657_v30 = vld [vmem:[#allocation109_spill] sm:$0xff] }
 0xffb   : > { %v7716_v23 = vmax.f32 %v7588_v57, 0.0  ;;  %v7541_v17 = vadd.f32 %v14980_v6, %v7403_v15  ;;  %v15041_v15 = vpop.f32.mrf.mxu1 }
 0xffc   : > { %v6816_v24 = vpop.f32.mrf.mxu2 }
 0xffd   : > { %7844 = vst [vmem:[%s14836_s21 + $0x1e0] sm:$0xff] %v7716_v23  ;;  %v7669_v51 = vmax.f32 %v7541_v17, 0.0  ;;  %v6817_v63 = vadd.f32 %v6816_v24, %v14832_v4  ;;  %v17658_v24 = vld [vmem:[#allocation169_spill] sm:$0xff] }
 0xffe   : > { %v6964_v48 = vpop.f32.mrf.mxu0 }
 0xfff   : > { %7797 = vst [vmem:[%s14836_s21 + $0x68] sm:$0xff] %v7669_v51  ;;  %v7454_v60 = vadd.f32 %v6817_v63, %v17656_v36  ;;  %v6965_v19 = vadd.f32 %v6964_v48, %v14834_v25  ;;  %v15048_v48 = vpop.f32.mrf.mxu3  ;;  %v17659_v36 = vld [vmem:[#allocation70_spill] sm:$0xff] }
0x1001   : > { %v7592_v10 = vadd.f32 %v14822_v5, %v7454_v60  ;;  %v7407_v49 = vadd.f32 %v6965_v19, %v17657_v30  ;;  %7003 = vmatmul.bf16.gmra.mxu0 %v17615_v62  ;;  %7230 = vmatmul.bf16.gmra.mxu3 %v17436_v26 }
0x1003   : > { %v7720_v57 = vmax.f32 %v7592_v10, 0.0  ;;  %v7545_v4 = vadd.f32 %v14980_v6, %v7407_v49 }
0x1004   : > { %v6818_v38 = vpop.f32.mrf.mxu2 }
0x1005   : > { %7848 = vst [vmem:[%s14836_s21 + $0x200] sm:$0xff] %v7720_v57  ;;  %v7673_v23 = vmax.f32 %v7545_v4, 0.0  ;;  %v6819_v17 = vadd.f32 %v6818_v38, %v14849_v39  ;;  %v15057_v57 = vpop.f32.mrf.mxu1  ;;  %v17660_v4 = vld [vmem:[#allocation167_spill] sm:$0xff] }
0x1006   : > { %v6966_v25 = vpop.f32.mrf.mxu0 }
0x1007   : > { %7801 = vst [vmem:[%s14836_s21 + $0x88] sm:$0xff] %v7673_v23  ;;  %v7458_v51 = vadd.f32 %v6819_v17, %v17658_v24  ;;  %v6967_v63 = vadd.f32 %v6966_v25, %v14847_v43  ;;  %v17661_v25 = vld [vmem:[#allocation154_spill] sm:$0xff] }
0x1009   : > { %v7596_v26 = vadd.f32 %v14822_v5, %v7458_v51  ;;  %v7411_v60 = vadd.f32 %v6967_v63, %v17659_v36  ;;  %7087 = vmatmul.bf16.gmra.mxu1 %v17534_v9  ;;  %7136 = vmatmul.bf16.gmra.mxu2 %v17535_v34  ;;  %v15066_v51 = vpop.f32.mrf.mxu3 }
0x100b   : > { %v7724_v19 = vmax.f32 %v7596_v26, 0.0  ;;  %v7549_v39 = vadd.f32 %v14980_v6, %v7411_v60 }
0x100c   : > { %v6821_v10 = vpop.f32.mrf.mxu2 }
0x100d   : > { %7852 = vst [vmem:[%s14836_s21 + $0x220] sm:$0xff] %v7724_v19  ;;  %v7677_v30 = vmax.f32 %v7549_v39, 0.0  ;;  %v6822_v49 = vadd.f32 %v6821_v10, %v14864_v18  ;;  %v17662_v19 = vld [vmem:[#allocation150_spill] sm:$0xff] }
0x100e   : > { %v6969_v43 = vpop.f32.mrf.mxu0 }
0x100f   : > { %7805 = vst [vmem:[%s14836_s21 + $0xa8] sm:$0xff] %v7677_v30  ;;  %v7462_v38 = vadd.f32 %v6822_v49, %v17660_v4  ;;  %v6970_v23 = vadd.f32 %v6969_v43, %v14860_v46  ;;  %v15074_v30 = vpop.f32.mrf.mxu1  ;;  %v17663_v49 = vld [vmem:[#allocation111_spill] sm:$0xff]  ;;  %v17664_v4 = vld [vmem:[#allocation114_spill] sm:$0xff] }
0x1011   : > { %v7600_v17 = vadd.f32 %v14822_v5, %v7462_v38  ;;  %v7415_v24 = vadd.f32 %v6970_v23, %v17661_v25  ;;  %7008 = vmatmul.bf16.gmra.mxu0 %v17621_v20  ;;  %7235 = vmatmul.bf16.gmra.mxu3 %v17453_v61 }
0x1013   : > { %v7728_v18 = vmax.f32 %v7600_v17, 0.0  ;;  %v7553_v63 = vadd.f32 %v14980_v6, %v7415_v24  ;;  %v15081_v17 = vpop.f32.mrf.mxu3  ;;  %v17665_v24 = vld [vmem:[#allocation248_spill] sm:$0xff] }
0x1014   : > { %v6823_v26 = vpop.f32.mrf.mxu2 }
0x1015   : > { %7856 = vst [vmem:[%s14836_s21 + $0x240] sm:$0xff] %v7728_v18  ;;  %v7681_v36 = vmax.f32 %v7553_v63, 0.0  ;;  %v6824_v60 = vadd.f32 %v6823_v26, %v14881_v32  ;;  %v17666_v63 = vld [vmem:[#allocation108_spill] sm:$0xff] }
0x1016   : > { %v6971_v46 = vpop.f32.mrf.mxu0 }
0x1017   : > { %7809 = vst [vmem:[%s14836_s21 + $0xc8] sm:$0xff] %v7681_v36  ;;  %v7466_v39 = vadd.f32 %v6824_v60, %v17662_v19  ;;  %v6972_v10 = vadd.f32 %v6971_v46, %v14873_v29  ;;  %v17667_v36 = vld [vmem:[#allocation53_spill] sm:$0xff]  ;;  %v9515_v46 = vld [vmem:[#allocation10 + $0x5ec] sm:$0xf]  ;;  %v9228_v19 = vld [vmem:[#allocation10 + $0x5f8] sm:$0xf0] }
0x1019   : > { %v7604_v61 = vadd.f32 %v14822_v5, %v7466_v39  ;;  %v7419_v43 = vadd.f32 %v6972_v10, %v17663_v49  ;;  %7092 = vmatmul.bf16.gmra.mxu1 %v17544_v45  ;;  %7141 = vmatmul.bf16.gmra.mxu2 %v17664_v4  ;;  %v9231_v39 = vor.u32 %v9515_v46, %v9228_v19  ;;  %v17671_v19 = vld [vmem:[#allocation197_spill] sm:$0xff] }
0x101b   : > { %v7732_v38 = vmax.f32 %v7604_v61, 0.0  ;;  %v7557_v32 = vadd.f32 %v14980_v6, %v7419_v43  ;;  %v17668_v61 = vld [vmem:[#allocation121_spill] sm:$0xff]  ;;  %7301 = vmatpush.bf16.msra.mxu0 %v9231_v39  ;;  %v15092_v43 = vpop.f32.mrf.mxu1 }
0x101c   : > { %v6826_v23 = vpop.f32.mrf.mxu2 }
0x101d   : > { %7860 = vst [vmem:[%s14836_s21 + $0x260] sm:$0xff] %v7732_v38  ;;  %v7685_v25 = vmax.f32 %v7557_v32, 0.0  ;;  %v6827_v29 = vadd.f32 %v6826_v23, %v17665_v24  ;;  %v9511_v23 = vld [vmem:[#allocation10 + $0x5cc] sm:$0xf] }
0x101e   : > { %v6974_v18 = vpop.f32.mrf.mxu0 }
0x101f   : > { %7813 = vst [vmem:[%s14836_s21 + $0xe8] sm:$0xff] %v7685_v25  ;;  %v7470_v26 = vadd.f32 %v6827_v29, %v17666_v63  ;;  %v6975_v60 = vadd.f32 %v6974_v18, %v17667_v36  ;;  %v9212_v25 = vld [vmem:[#allocation10 + $0x5d8] sm:$0xf0]  ;;  %v17669_v63 = vld [vmem:[#allocation251_spill] sm:$0xff] }
0x1020   : > { %v9215_v29 = vor.u32 %v9511_v23, %v9212_v25  ;;  %v17672_v23 = vld [vmem:[#allocation45_spill] sm:$0xff] }
0x1021   : > { %v7608_v10 = vadd.f32 %v14822_v5, %v7470_v26  ;;  %v7423_v49 = vadd.f32 %v6975_v60, %v17668_v61  ;;  %7013 = vmatmul.bf16.gmra.mxu0 %v17633_v42  ;;  %7240 = vmatmul.bf16.gmra.mxu3 %v17634_v47  ;;  %v15097_v60 = vpop.f32.mrf.mxu3  ;;  %v17670_v47 = vld [vmem:[#allocation61_spill] sm:$0xff]  ;;  %v9196_v61 = vld [vmem:[#allocation10 + $0x5b8] sm:$0xf0] }
0x1022   : > { %7302 = vmatpush.bf16.msra.mxu0 %v9215_v29  ;;  %v17674_v25 = vld [vmem:[#allocation141_spill] sm:$0xff] }
0x1023   : > { %v7736_v38 = vmax.f32 %v7608_v10, 0.0  ;;  %v7561_v32 = vadd.f32 %v14980_v6, %v7423_v49  ;;  %v9507_v10 = vld [vmem:[#allocation10 + $0x5ac] sm:$0xf] }
0x1024   : > { %v6828_v24 = vpop.f32.mrf.mxu2  ;;  %v9199_v49 = vor.u32 %v9507_v10, %v9196_v61  ;;  %v17675_v10 = vld [vmem:[#allocation178_spill] sm:$0xff] }
0x1025   : > { %7864 = vst [vmem:[%s14836_s21 + $0x280] sm:$0xff] %v7736_v38  ;;  %v7689_v18 = vmax.f32 %v7561_v32, 0.0  ;;  %v6829_v26 = vadd.f32 %v6828_v24, %v17669_v63  ;;  %v17673_v32 = vld [vmem:[#allocation58_spill] sm:$0xff] }
0x1026   : > { %v6976_v36 = vpop.f32.mrf.mxu0  ;;  %7303 = vmatpush.bf16.msra.mxu0 %v9199_v49  ;;  %v9180_v63 = vld [vmem:[#allocation10 + $0x598] sm:$0xf0] }
0x1027   : > { %7817 = vst [vmem:[%s14836_s21 + $0x108] sm:$0xff] %v7689_v18  ;;  %v7474_v46 = vadd.f32 %v6829_v26, %v17670_v47  ;;  %v6977_v39 = vadd.f32 %v6976_v36, %v17671_v19  ;;  %v9503_v18 = vld [vmem:[#allocation10 + $0x58c] sm:$0xf]  ;;  %v15107_v47 = vpop.f32.mrf.mxu1 }
0x1028   : > { %v9183_v36 = vor.u32 %v9503_v18, %v9180_v63  ;;  %v17677_v63 = vld [vmem:[#allocation153_spill] sm:$0xff] }
0x1029   : > { %v7612_v28 = vadd.f32 %v14822_v5, %v7474_v46  ;;  %v7427_v38 = vadd.f32 %v6977_v39, %v17672_v23  ;;  %7097 = vmatmul.bf16.gmra.mxu1 %v17673_v32  ;;  %7146 = vmatmul.bf16.gmra.mxu2 %v17674_v25  ;;  %v17676_v23 = vld [vmem:[#allocation199_spill] sm:$0xff]  ;;  %v15114_v20 = vpop.f32.mrf.mxu3 }
0x102a   : > { %7304 = vmatpush.bf16.msra.mxu0 %v9183_v36  ;;  %v9148_v36 = vld [vmem:[#allocation10 + $0x558] sm:$0xf0] }
0x102b   : > { %v7740_v24 = vmax.f32 %v7612_v28, 0.0  ;;  %v7565_v29 = vadd.f32 %v14980_v6, %v7427_v38  ;;  %v9499_v28 = vld [vmem:[#allocation10 + $0x56c] sm:$0xf]  ;;  %v9164_v38 = vld [vmem:[#allocation10 + $0x578] sm:$0xf0] }
0x102c   : > { %v6831_v26 = vpop.f32.mrf.mxu2  ;;  %v9167_v42 = vor.u32 %v9499_v28, %v9164_v38  ;;  %v9132_v38 = vld [vmem:[#allocation10 + $0x538] sm:$0xf0] }
0x102d   : > { %7868 = vst [vmem:[%s14836_s21 + $0x2a0] sm:$0xff] %v7740_v24  ;;  %v7693_v19 = vmax.f32 %v7565_v29, 0.0  ;;  %v6832_v46 = vadd.f32 %v6831_v26, %v14927_v40  ;;  %v9495_v26 = vld [vmem:[#allocation10 + $0x54c] sm:$0xf] }
0x102e   : > { %v6979_v39 = vpop.f32.mrf.mxu0  ;;  %7305 = vmatpush.bf16.msra.mxu0 %v9167_v42 }
0x102f   : > { %7821 = vst [vmem:[%s14836_s21 + $0x128] sm:$0xff] %v7693_v19  ;;  %v7478_v61 = vadd.f32 %v6832_v46, %v17675_v10  ;;  %v6980_v49 = vadd.f32 %v6979_v39, %v17676_v23  ;;  %v9151_v46 = vor.u32 %v9495_v26, %v9148_v36  ;;  %v15123_v23 = vpop.f32.mrf.mxu1 }
0x1031   : > { %v7616_v18 = vadd.f32 %v14822_v5, %v7478_v61  ;;  %v7431_v24 = vadd.f32 %v6980_v49, %v17677_v63  ;;  %7018 = vmatmul.bf16.gmra.mxu0 %v17640_v0  ;;  %7245 = vmatmul.bf16.gmra.mxu3 %v17641_v58  ;;  %v17678_v49 = vld [vmem:[#allocation149_spill] sm:$0xff]  ;;  %v9491_v58 = vld [vmem:[#allocation10 + $0x52c] sm:$0xf]  ;;  %v15132_v26 = vpop.f32.mrf.mxu3 }
0x1032   : > { %7306 = vmatpush.bf16.msra.mxu0 %v9151_v46  ;;  %v9116_v46 = vld [vmem:[#allocation10 + $0x518] sm:$0xf0] }
0x1033   : > { %v7744_v40 = vmax.f32 %v7616_v18, 0.0  ;;  %v7569_v29 = vadd.f32 %v14980_v6, %v7431_v24  ;;  %v9135_v18 = vor.u32 %v9491_v58, %v9132_v38  ;;  %v17679_v24 = vld [vmem:[#allocation182_spill] sm:$0xff] }
0x1034   : > { %v6833_v19 = vpop.f32.mrf.mxu2 }
0x1035   : > { %7872 = vst [vmem:[%s14836_s21 + $0x2c0] sm:$0xff] %v7744_v40  ;;  %v7697_v39 = vmax.f32 %v7569_v29, 0.0  ;;  %v6834_v10 = vadd.f32 %v6833_v19, %v14944_v35  ;;  %v17680_v29 = vld [vmem:[#allocation59_spill] sm:$0xff]  ;;  %v17681_v35 = vld [vmem:[#allocation145_spill] sm:$0xff] }
0x1036   : > { %v6981_v61 = vpop.f32.mrf.mxu0  ;;  %7307 = vmatpush.bf16.msra.mxu0 %v9135_v18 }
0x1037   : > { %7825 = vst [vmem:[%s14836_s21 + $0x148] sm:$0xff] %v7697_v39  ;;  %v7482_v28 = vadd.f32 %v6834_v10, %v17678_v49  ;;  %v6982_v42 = vadd.f32 %v6981_v61, %v14923_v41  ;;  %v9487_v41 = vld [vmem:[#allocation10 + $0x50c] sm:$0xf]  ;;  %v15140_v18 = vpop.f32.mrf.mxu1 }
0x1038   : > { %v9119_v10 = vor.u32 %v9487_v41, %v9116_v46 }
0x1039   : > { %v7620_v63 = vadd.f32 %v14822_v5, %v7482_v28  ;;  %v7435_v40 = vadd.f32 %v6982_v42, %v17679_v24  ;;  %7102 = vmatmul.bf16.gmra.mxu1 %v17680_v29  ;;  %7151 = vmatmul.bf16.gmra.mxu2 %v17681_v35  ;;  %v17682_v42 = vld [vmem:[#allocation124_spill] sm:$0xff]  ;;  %v15147_v41 = vpop.f32.mrf.mxu3 }
0x103a   : > { %7308 = vmatpush.bf16.msra.mxu0 %v9119_v10  ;;  %v17683_v24 = vld [vmem:[#allocation136_spill] sm:$0xff]  ;;  %v17684_v10 = vld [vmem:[#allocation135_spill] sm:$0xff] }
0x103b   : > { %v7748_v36 = vmax.f32 %v7620_v63, 0.0  ;;  %v7573_v19 = vadd.f32 %v14980_v6, %v7435_v40 }
0x103c   : > { %v6836_v39 = vpop.f32.mrf.mxu2 }
0x103d   : > { %7876 = vst [vmem:[%s14836_s21 + $0x2e0] sm:$0xff] %v7748_v36  ;;  %v7701_v61 = vmax.f32 %v7573_v19, 0.0  ;;  %v6837_v49 = vadd.f32 %v6836_v39, %v14960_v11 }
0x103e   : > { %v6984_v28 = vpop.f32.mrf.mxu0 }
0x103f   : > { %7829 = vst [vmem:[%s14836_s21 + $0x168] sm:$0xff] %v7701_v61  ;;  %v7486_v58 = vadd.f32 %v6837_v49, %v17682_v42  ;;  %v6985_v38 = vadd.f32 %v6984_v28, %v14936_v55  ;;  %v17685_v28 = vld [vmem:[#allocation50_spill] sm:$0xff] }
0x1041   : > { %v7624_v63 = vadd.f32 %v14822_v5, %v7486_v58  ;;  %v7439_v40 = vadd.f32 %v6985_v38, %v17683_v24  ;;  %7023 = vmatmul.bf16.gmra.mxu0 %v17646_v7  ;;  %7250 = vmatmul.bf16.gmra.mxu3 %v17500_v59  ;;  %v17686_v58 = vld [vmem:[#allocation60_spill] sm:$0xff] }
0x1042   : > { %v17687_v38 = vld [vmem:[#allocation144_spill] sm:$0xff] }
0x1043   : > { %v7752_v36 = vmax.f32 %v7624_v63, 0.0  ;;  %v7577_v11 = vadd.f32 %v14980_v6, %v7439_v40  ;;  %v15158_v63 = vpop.f32.mrf.mxu1 }
0x1044   : > { %v6838_v19 = vpop.f32.mrf.mxu2 }
0x1045   : > { %7880 = vst [vmem:[%s14836_s21 + $0x300] sm:$0xff] %v7752_v36  ;;  %v7705_v46 = vmax.f32 %v7577_v11, 0.0  ;;  %v6839_v55 = vadd.f32 %v6838_v19, %v14973_v16  ;;  %v15163_v19 = vpop.f32.mrf.mxu3 }
0x1046   : > { %v6986_v39 = vpop.f32.mrf.mxu0 }
0x1047   : > { %7833 = vst [vmem:[%s14836_s21 + $0x188] sm:$0xff] %v7705_v46  ;;  %v7490_v61 = vadd.f32 %v6839_v55, %v17684_v10  ;;  %v6987_v49 = vadd.f32 %v6986_v39, %v14951_v3  ;;  %v17688_v46 = vld [vmem:[#allocation186_spill] sm:$0xff] }
0x1049   : > { %v7628_v59 = vadd.f32 %v14822_v5, %v7490_v61  ;;  %v7443_v42 = vadd.f32 %v6987_v49, %v17685_v28  ;;  %7107 = vmatmul.bf16.gmra.mxu1 %v17686_v58  ;;  %7156 = vmatmul.bf16.gmra.mxu2 %v17687_v38  ;;  %v17689_v61 = vld [vmem:[#allocation95_spill] sm:$0xff] }
0x104b   : > { %v7756_v24 = vmax.f32 %v7628_v59, 0.0  ;;  %v7581_v16 = vadd.f32 %v14980_v6, %v7443_v42  ;;  %v15173_v42 = vpop.f32.mrf.mxu1 }
0x104c   : > { %v6841_v40 = vpop.f32.mrf.mxu2 }
0x104d   : > { %7884 = vst [vmem:[%s14836_s21 + $0x320] sm:$0xff] %v7756_v24  ;;  %v7709_v36 = vmax.f32 %v7581_v16, 0.0  ;;  %v6842_v11 = vadd.f32 %v6841_v40, %v14991_v33  ;;  %v17690_v40 = vld [vmem:[#allocation191_spill] sm:$0xff] }
0x104e   : > { %v6989_v3 = vpop.f32.mrf.mxu0 }
0x104f   : > { %7837 = vst [vmem:[%s14836_s21 + $0x1a8] sm:$0xff] %v7709_v36  ;;  %v7494_v55 = vadd.f32 %v6842_v11, %v17688_v46  ;;  %v6990_v39 = vadd.f32 %v6989_v3, %v14965_v1  ;;  %v15180_v3 = vpop.f32.mrf.mxu3  ;;  %v17691_v46 = vld [vmem:[#allocation73_spill] sm:$0xff] }
0x1051   : > { %v7632_v10 = vadd.f32 %v14822_v5, %v7494_v55  ;;  %v7447_v49 = vadd.f32 %v6990_v39, %v17689_v61  ;;  %7028 = vmatmul.bf16.gmra.mxu0 %v17651_v31  ;;  %7255 = vmatmul.bf16.gmra.mxu3 %v17513_v27 }
0x1053   : > { %v7760_v59 = vmax.f32 %v7632_v10, 0.0  ;;  %v7585_v33 = vadd.f32 %v14980_v6, %v7447_v49 }
0x1054   : > { %v6843_v28 = vpop.f32.mrf.mxu2 }
0x1055   : > { %7888 = vst [vmem:[%s14836_s21 + $0x340] sm:$0xff] %v7760_v59  ;;  %v7713_v24 = vmax.f32 %v7585_v33, 0.0  ;;  %v6844_v16 = vadd.f32 %v6843_v28, %v15008_v14  ;;  %v15189_v59 = vpop.f32.mrf.mxu1  ;;  %v17692_v33 = vld [vmem:[#allocation138_spill] sm:$0xff] }
0x1056   : > { %v6991_v1 = vpop.f32.mrf.mxu0 }
0x1057   : > { %7841 = vst [vmem:[%s14836_s21 + $0x1c8] sm:$0xff] %v7713_v24  ;;  %v7498_v36 = vadd.f32 %v6844_v16, %v17690_v40  ;;  %v6992_v11 = vadd.f32 %v6991_v1, %v14983_v37  ;;  %v17693_v1 = vld [vmem:[#allocation189_spill] sm:$0xff] }
0x1059   : > { %v7636_v27 = vadd.f32 %v14822_v5, %v7498_v36  ;;  %v7451_v55 = vadd.f32 %v6992_v11, %v17691_v46  ;;  %7112 = vmatmul.bf16.gmra.mxu1 %v17591_v53  ;;  %7161 = vmatmul.bf16.gmra.mxu2 %v17592_v13  ;;  %v15198_v36 = vpop.f32.mrf.mxu3 }
0x105b   : > { %v7764_v39 = vmax.f32 %v7636_v27, 0.0  ;;  %v7589_v14 = vadd.f32 %v14980_v6, %v7451_v55 }
0x105c   : > { %v6846_v10 = vpop.f32.mrf.mxu2 }
0x105d   : > { %7892 = vst [vmem:[%s14836_s21 + $0x360] sm:$0xff] %v7764_v39  ;;  %v7717_v61 = vmax.f32 %v7589_v14, 0.0  ;;  %v6847_v49 = vadd.f32 %v6846_v10, %v15026_v2  ;;  %v17694_v39 = vld [vmem:[#allocation66_spill] sm:$0xff]  ;;  %v15206_v10 = vpop.f32.mrf.mxu1 }
0x105e   : > { %v6994_v37 = vpop.f32.mrf.mxu0 }
0x105f   : > { %7845 = vst [vmem:[%s14836_s21 + $0x1e8] sm:$0xff] %v7717_v61  ;;  %v7502_v28 = vadd.f32 %v6847_v49, %v17692_v33  ;;  %v6995_v24 = vadd.f32 %v6994_v37, %v15000_v56  ;;  %v17695_v61 = vld [vmem:[#allocation122_spill] sm:$0xff] }
0x1061   : > { %v7640_v16 = vadd.f32 %v14822_v5, %v7502_v28  ;;  %v7455_v40 = vadd.f32 %v6995_v24, %v17693_v1  ;;  %7260 = vmatmul.bf16.gmra.mxu3 %v17524_v8  ;;  %7309 = vmatmul.bf16.vlgmr.msra.gmra.mxu0 %v17525_v50  ;;  %v15213_v28 = vpop.f32.mrf.mxu3  ;;  %v17696_v1 = vld [vmem:[#allocation77_spill] sm:$0xff] }
0x1063   : > { %v7768_v2 = vmax.f32 %v7640_v16, 0.0  ;;  %v7593_v11 = vadd.f32 %v14980_v6, %v7455_v40 }
0x1064   : > { %v6848_v27 = vpop.f32.mrf.mxu2 }
0x1065   : > { %7896 = vst [vmem:[%s14836_s21 + $0x380] sm:$0xff] %v7768_v2  ;;  %v7721_v46 = vmax.f32 %v7593_v11, 0.0  ;;  %v6849_v55 = vadd.f32 %v6848_v27, %v15041_v15  ;;  %v17697_v27 = vld [vmem:[#allocation132_spill] sm:$0xff] }
0x1066   : > { %v6996_v56 = vpop.f32.mrf.mxu0 }
0x1067   : > { %7849 = vst [vmem:[%s14836_s21 + $0x208] sm:$0xff] %v7721_v46  ;;  %v7506_v14 = vadd.f32 %v6849_v55, %v17694_v39  ;;  %v6997_v8 = vadd.f32 %v6996_v56, %v15016_v21 }
0x1069   : > { %v7644_v50 = vadd.f32 %v14822_v5, %v7506_v14  ;;  %v7459_v49 = vadd.f32 %v6997_v8, %v17695_v61  ;;  %7117 = vmatmul.bf16.gmra.mxu1 %v17599_v52  ;;  %7166 = vmatmul.bf16.gmra.mxu2 %v17600_v12 }
0x106b   : > { %v7772_v37 = vmax.f32 %v7644_v50, 0.0  ;;  %v7597_v15 = vadd.f32 %v14980_v6, %v7459_v49  ;;  %v15227_v50 = vpop.f32.mrf.mxu3  ;;  %v17699_v49 = vld [vmem:[#allocation193_spill] sm:$0xff] }
0x106c   : > { %v6851_v33 = vpop.f32.mrf.mxu2 }
0x106d   : > { %7900 = vst [vmem:[%s14836_s21 + $0x3a0] sm:$0xff] %v7772_v37  ;;  %v7725_v24 = vmax.f32 %v7597_v15, 0.0  ;;  %v6852_v21 = vadd.f32 %v6851_v33, %v15057_v57 }
0x106e   : > { %v6999_v16 = vpop.f32.mrf.mxu0 }
0x106f   : > { %7853 = vst [vmem:[%s14836_s21 + $0x228] sm:$0xff] %v7725_v24  ;;  %v7510_v40 = vadd.f32 %v6852_v21, %v17696_v1  ;;  %v7000_v2 = vadd.f32 %v6999_v16, %v15031_v54  ;;  %v17698_v54 = vld [vmem:[#allocation79_spill] sm:$0xff]  ;;  %v15241_v16 = vld [vmem:[%s15633_s7] sm:$0xf] }
0x1070   : > { %v17700_v1 = vld [vmem:[#allocation49_spill] sm:$0xff] }
0x1071   : > { %v7648_v11 = vadd.f32 %v14822_v5, %v7510_v40  ;;  %v7463_v46 = vadd.f32 %v7000_v2, %v17697_v27  ;;  %7265 = vmatmul.bf16.gmra.mxu3 %v17534_v9  ;;  %7314 = vmatmul.bf16.gmra.mxu0 %v17535_v34 }
0x1073   : > { %v7776_v55 = vmax.f32 %v7648_v11, 0.0  ;;  %v7601_v56 = vadd.f32 %v14980_v6, %v7463_v46  ;;  %v15249_v11 = vpop.f32.mrf.mxu3 }
0x1074   : > { %v6853_v57 = vpop.f32.mrf.mxu2 }
0x1075   : > { %7904 = vst [vmem:[%s14836_s21 + $0x3c0] sm:$0xff] %v7776_v55  ;;  %v7729_v39 = vmax.f32 %v7601_v56, 0.0  ;;  %v6854_v14 = vadd.f32 %v6853_v57, %v15074_v30 }
0x1076   : > { %v7001_v8 = vpop.f32.mrf.mxu0 }
0x1077   : > { %7857 = vst [vmem:[%s14836_s21 + $0x248] sm:$0xff] %v7729_v39  ;;  %v7514_v61 = vadd.f32 %v6854_v14, %v17698_v54  ;;  %v7002_v9 = vadd.f32 %v7001_v8, %v15048_v48  ;;  %v17702_v8 = vld [vmem:[#allocation158_spill] sm:$0xff] }
0x1079   : > { %v7652_v34 = vadd.f32 %v14822_v5, %v7514_v61  ;;  %v7467_v37 = vadd.f32 %v7002_v9, %v17699_v49  ;;  %7171 = vmatmul.bf16.gmra.mxu2 %v17605_v22  ;;  %v15244_v5 = vperm.slane %v15241_v16, 2  ;;  %v17703_v9 = vld [vmem:[#allocation90_spill] sm:$0xff] }
0x107b   : > { %v7780_v15 = vmax.f32 %v7652_v34, 0.0  ;;  %v7605_v33 = vadd.f32 %v14980_v6, %v7467_v37  ;;  %v15264_v34 = vpop.f32.mrf.mxu3 }
0x107c   : > { %v7132_v24 = vpop.f32.mrf.mxu2 }
0x107d   : > { %7908 = vst [vmem:[%s14836_s21 + $0x3e0] sm:$0xff] %v7780_v15  ;;  %v7733_v30 = vmax.f32 %v7605_v33, 0.0  ;;  %v7133_v21 = vadd.f32 %v7132_v24, %v15092_v43  ;;  %v17701_v43 = vld [vmem:[#allocation198_spill] sm:$0xff]  ;;  %v15269_v24 = vpop.f32.mrf.mxu1 }
0x107e   : > { %v7004_v48 = vpop.f32.mrf.mxu0 }
0x107f   : > { %7861 = vst [vmem:[%s14836_s21 + $0x268] sm:$0xff] %v7733_v30  ;;  %v7392_v40 = vadd.f32 %v7133_v21, %v17700_v1  ;;  %v7005_v2 = vadd.f32 %v7004_v48, %v15066_v51  ;;  %v17704_v30 = vld [vmem:[#allocation196_spill] sm:$0xff] }
0x1081   : > { %v7530_v27 = vadd.f32 %v15244_v5, %v7392_v40  ;;  %v7471_v46 = vadd.f32 %v7005_v2, %v17701_v43  ;;  %7270 = vmatmul.bf16.gmra.mxu3 %v17544_v45  ;;  %7319 = vmatmul.bf16.gmra.mxu0 %v17664_v4  ;;  %v17705_v40 = vld [vmem:[#allocation21_spill] sm:$0xff] }
0x1083   : > { %v7658_v55 = vmax.f32 %v7530_v27, 0.0  ;;  %v7609_v56 = vadd.f32 %v14980_v6, %v7471_v46  ;;  %v15279_v46 = vpop.f32.mrf.mxu3 }
0x1084   : > { %v7134_v57 = vpop.f32.mrf.mxu2 }
0x1085   : > { %7786 = vst [vmem:[%s14836_s21 + $0x10] sm:$0xff] %v7658_v55  ;;  %v7737_v39 = vmax.f32 %v7609_v56, 0.0  ;;  %v7135_v14 = vadd.f32 %v7134_v57, %v15107_v47  ;;  %v17706_v57 = vld [vmem:[#allocation120_spill] sm:$0xff] }
0x1086   : > { %v7006_v51 = vpop.f32.mrf.mxu0 }
0x1087   : > { %7865 = vst [vmem:[%s14836_s21 + $0x288] sm:$0xff] %v7737_v39  ;;  %v7396_v54 = vadd.f32 %v7135_v14, %v17702_v8  ;;  %v7007_v61 = vadd.f32 %v7006_v51, %v15081_v17  ;;  %v15286_v14 = vpop.f32.mrf.mxu1  ;;  %v17707_v51 = vld [vmem:[#allocation34_spill] sm:$0xff] }
0x1089   : > { %v7534_v45 = vadd.f32 %v15244_v5, %v7396_v54  ;;  %v7475_v4 = vadd.f32 %v7007_v61, %v17703_v9  ;;  %7176 = vmatmul.bf16.gmra.mxu2 %v17610_v44 }
0x108b   : > { %v7662_v49 = vmax.f32 %v7534_v45, 0.0  ;;  %v7613_v37 = vadd.f32 %v14980_v6, %v7475_v4 }
0x108c   : > { %v7137_v15 = vpop.f32.mrf.mxu2 }
0x108d   : > { %7790 = vst [vmem:[%s14836_s21 + $0x30] sm:$0xff] %v7662_v49  ;;  %v7741_v47 = vmax.f32 %v7613_v37, 0.0  ;;  %v7138_v33 = vadd.f32 %v7137_v15, %v15123_v23  ;;  %v15294_v49 = vpop.f32.mrf.mxu3 }
0x108e   : > { %v7009_v17 = vpop.f32.mrf.mxu0 }
0x108f   : > { %7869 = vst [vmem:[%s14836_s21 + $0x2a8] sm:$0xff] %v7741_v47  ;;  %v7400_v21 = vadd.f32 %v7138_v33, %v17704_v30  ;;  %v7010_v48 = vadd.f32 %v7009_v17, %v15097_v60  ;;  %v17709_v33 = vld [vmem:[#allocation39_spill] sm:$0xff]  ;;  %v15303_v30 = vpop.f32.mrf.mxu1 }
0x1091   : > { %v7538_v1 = vadd.f32 %v15244_v5, %v7400_v21  ;;  %v7479_v2 = vadd.f32 %v7010_v48, %v17705_v40  ;;  %7275 = vmatmul.bf16.gmra.mxu3 %v17673_v32  ;;  %7324 = vmatmul.bf16.gmra.mxu0 %v17674_v25 }
0x1093   : > { %v7666_v27 = vmax.f32 %v7538_v1, 0.0  ;;  %v7617_v23 = vadd.f32 %v14980_v6, %v7479_v2  ;;  %v17710_v2 = vld [vmem:[#allocation200_spill] sm:$0xff] }
0x1094   : > { %v7139_v43 = vpop.f32.mrf.mxu2 }
0x1095   : > { %7794 = vst [vmem:[%s14836_s21 + $0x50] sm:$0xff] %v7666_v27  ;;  %v7745_v55 = vmax.f32 %v7617_v23, 0.0  ;;  %v7140_v56 = vadd.f32 %v7139_v43, %v15140_v18  ;;  %v15311_v23 = vpop.f32.mrf.mxu3  ;;  %v17711_v43 = vld [vmem:[#allocation35_spill] sm:$0xff] }
0x1096   : > { %v7011_v60 = vpop.f32.mrf.mxu0 }
0x1097   : > { %7873 = vst [vmem:[%s14836_s21 + $0x2c8] sm:$0xff] %v7745_v55  ;;  %v7404_v39 = vadd.f32 %v7140_v56, %v17706_v57  ;;  %v7012_v32 = vadd.f32 %v7011_v60, %v15114_v20  ;;  %v17708_v20 = vld [vmem:[#allocation32_spill] sm:$0xff]  ;;  %v17712_v56 = vld [vmem:[#allocation103_spill] sm:$0xff] }
0x1099   : > { %v7542_v25 = vadd.f32 %v15244_v5, %v7404_v39  ;;  %v7483_v8 = vadd.f32 %v7012_v32, %v17707_v51  ;;  %7181 = vmatmul.bf16.gmra.mxu2 %v17615_v62  ;;  %v15317_v39 = vpop.f32.mrf.mxu1  ;;  %v17713_v51 = vld [vmem:[#allocation205_spill] sm:$0xff] }
0x109b   : > { %v7670_v54 = vmax.f32 %v7542_v25, 0.0  ;;  %v7621_v61 = vadd.f32 %v14980_v6, %v7483_v8 }
0x109c   : > { %v7142_v45 = vpop.f32.mrf.mxu2 }
0x109d   : > { %7798 = vst [vmem:[%s14836_s21 + $0x70] sm:$0xff] %v7670_v54  ;;  %v7749_v18 = vmax.f32 %v7621_v61, 0.0  ;;  %v7143_v9 = vadd.f32 %v7142_v45, %v15158_v63  ;;  %v17714_v45 = vld [vmem:[#allocation40_spill] sm:$0xff] }
0x109e   : > { %v7014_v4 = vpop.f32.mrf.mxu0 }
0x109f   : > { %7877 = vst [vmem:[%s14836_s21 + $0x2e8] sm:$0xff] %v7749_v18  ;;  %v7408_v37 = vadd.f32 %v7143_v9, %v17708_v20  ;;  %v7015_v15 = vadd.f32 %v7014_v4, %v15132_v26  ;;  %v15328_v9 = vpop.f32.mrf.mxu3 }
0x10a1   : > { %v7546_v47 = vadd.f32 %v15244_v5, %v7408_v37  ;;  %v7487_v17 = vadd.f32 %v7015_v15, %v17709_v33  ;;  %7280 = vmatmul.bf16.gmra.mxu3 %v17680_v29  ;;  %7329 = vmatmul.bf16.gmra.mxu0 %v17681_v35  ;;  %v17715_v33 = vld [vmem:[#allocation203_spill] sm:$0xff] }
0x10a3   : > { %v7674_v63 = vmax.f32 %v7546_v47, 0.0  ;;  %v7625_v21 = vadd.f32 %v14980_v6, %v7487_v17 }
0x10a4   : > { %v7144_v48 = vpop.f32.mrf.mxu2 }
0x10a5   : > { %7802 = vst [vmem:[%s14836_s21 + $0x90] sm:$0xff] %v7674_v63  ;;  %v7753_v1 = vmax.f32 %v7625_v21, 0.0  ;;  %v7145_v40 = vadd.f32 %v7144_v48, %v15173_v42  ;;  %v17716_v63 = vld [vmem:[#allocation116_spill] sm:$0xff] }
0x10a6   : > { %v7016_v26 = vpop.f32.mrf.mxu0  ;;  %v17717_v48 = vld [vmem:[#allocation152_spill] sm:$0xff] }
0x10a7   : > { %7881 = vst [vmem:[%s14836_s21 + $0x308] sm:$0xff] %v7753_v1  ;;  %v7412_v27 = vadd.f32 %v7145_v40, %v17710_v2  ;;  %v7017_v29 = vadd.f32 %v7016_v26, %v15147_v41 }
0x10a9   : > { %v7550_v35 = vadd.f32 %v15244_v5, %v7412_v27  ;;  %v7491_v55 = vadd.f32 %v7017_v29, %v17711_v43  ;;  %7186 = vmatmul.bf16.gmra.mxu2 %v17712_v56 }
0x10ab   : > { %v7678_v60 = vmax.f32 %v7550_v35, 0.0  ;;  %v7629_v57 = vadd.f32 %v14980_v6, %v7491_v55 }
0x10ac   : > { %v7147_v42 = vpop.f32.mrf.mxu2 }
0x10ad   : > { %7806 = vst [vmem:[%s14836_s21 + $0xb0] sm:$0xff] %v7678_v60  ;;  %v7757_v32 = vmax.f32 %v7629_v57, 0.0  ;;  %v7148_v25 = vadd.f32 %v7147_v42, %v15189_v59  ;;  %v17719_v57 = vld [vmem:[#allocation64_spill] sm:$0xff] }
0x10ae   : > { %v7019_v41 = vpop.f32.mrf.mxu0 }
0x10af   : > { %7885 = vst [vmem:[%s14836_s21 + $0x328] sm:$0xff] %v7757_v32  ;;  %v7416_v8 = vadd.f32 %v7148_v25, %v17713_v51  ;;  %v7020_v54 = vadd.f32 %v7019_v41, %v15163_v19  ;;  %v15333_v19 = vpop.f32.mrf.mxu1 }
0x10b1   : > { %v7554_v61 = vadd.f32 %v15244_v5, %v7416_v8  ;;  %v7495_v18 = vadd.f32 %v7020_v54, %v17714_v45  ;;  %7285 = vmatmul.bf16.gmra.mxu3 %v17686_v58  ;;  %7334 = vmatmul.bf16.gmra.mxu0 %v17687_v38  ;;  %v17720_v54 = vld [vmem:[#allocation43_spill] sm:$0xff] }
0x10b2   : > { %v17721_v45 = vld [vmem:[#allocation207_spill] sm:$0xff] }
0x10b3   : > { %v7682_v4 = vmax.f32 %v7554_v61, 0.0  ;;  %v7633_v59 = vadd.f32 %v14980_v6, %v7495_v18 }
0x10b4   : > { %v7149_v20 = vpop.f32.mrf.mxu2 }
0x10b5   : > { %7810 = vst [vmem:[%s14836_s21 + $0xd0] sm:$0xff] %v7682_v4  ;;  %v7761_v37 = vmax.f32 %v7633_v59, 0.0  ;;  %v7150_v15 = vadd.f32 %v7149_v20, %v15206_v10  ;;  %v15342_v10 = vpop.f32.mrf.mxu3 }
0x10b6   : > { %v7021_v47 = vpop.f32.mrf.mxu0 }
0x10b7   : > { %7889 = vst [vmem:[%s14836_s21 + $0x348] sm:$0xff] %v7761_v37  ;;  %v7420_v58 = vadd.f32 %v7150_v15, %v17715_v33  ;;  %v7022_v38 = vadd.f32 %v7021_v47, %v15180_v3  ;;  %v17718_v3 = vld [vmem:[#allocation125_spill] sm:$0xff]  ;;  %v15349_v55 = vpop.f32.mrf.mxu1 }
0x10b9   : > { %v7558_v17 = vadd.f32 %v15244_v5, %v7420_v58  ;;  %v7499_v21 = vadd.f32 %v7022_v38, %v17716_v63  ;;  %7191 = vmatmul.bf16.gmra.mxu2 %v17717_v48  ;;  %v17723_v63 = vld [vmem:[#allocation212_spill] sm:$0xff] }
0x10bb   : > { %v7686_v1 = vmax.f32 %v7558_v17, 0.0  ;;  %v7637_v40 = vadd.f32 %v14980_v6, %v7499_v21 }
0x10bc   : > { %v7152_v26 = vpop.f32.mrf.mxu2 }
0x10bd   : > { %7814 = vst [vmem:[%s14836_s21 + $0xf0] sm:$0xff] %v7686_v1  ;;  %v7765_v2 = vmax.f32 %v7637_v40, 0.0  ;;  %v7153_v27 = vadd.f32 %v7152_v26, %v15269_v24  ;;  %v15358_v8 = vpop.f32.mrf.mxu3 }
0x10be   : > { %v7024_v29 = vpop.f32.mrf.mxu0 }
0x10bf   : > { %7893 = vst [vmem:[%s14836_s21 + $0x368] sm:$0xff] %v7765_v2  ;;  %v7424_v35 = vadd.f32 %v7153_v27, %v17718_v3  ;;  %v7025_v43 = vadd.f32 %v7024_v29, %v15198_v36  ;;  %v15366_v4 = vpop.f32.mrf.mxu1  ;;  %v17724_v29 = vld [vmem:[#allocation157_spill] sm:$0xff] }
0x10c1   : > { %v7562_v60 = vadd.f32 %v15244_v5, %v7424_v35  ;;  %v7503_v42 = vadd.f32 %v7025_v43, %v17719_v57  ;;  %7290 = vmatmul.bf16.gmra.mxu3 %v17591_v53  ;;  %7339 = vmatmul.bf16.gmra.mxu0 %v17592_v13 }
0x10c3   : > { %v7690_v32 = vmax.f32 %v7562_v60, 0.0  ;;  %v7641_v24 = vadd.f32 %v14980_v6, %v7503_v42 }
0x10c4   : > { %v7154_v25 = vpop.f32.mrf.mxu2 }
0x10c5   : > { %7818 = vst [vmem:[%s14836_s21 + $0x110] sm:$0xff] %v7690_v32  ;;  %v7769_v41 = vmax.f32 %v7641_v24, 0.0  ;;  %v7155_v51 = vadd.f32 %v7154_v25, %v15286_v14  ;;  %v15374_v38 = vpop.f32.mrf.mxu3 }
0x10c6   : > { %v7026_v36 = vpop.f32.mrf.mxu0 }
0x10c7   : > { %7897 = vst [vmem:[%s14836_s21 + $0x388] sm:$0xff] %v7769_v41  ;;  %v7428_v61 = vadd.f32 %v7155_v51, %v17720_v54  ;;  %v7027_v53 = vadd.f32 %v7026_v36, %v15213_v28  ;;  %v17722_v28 = vld [vmem:[#allocation159_spill] sm:$0xff]  ;;  %v7080_v40 = vpop.f32.mrf.mxu1  ;;  %v15396_v36 = vperm.slane %v15241_v16, 3  ;;  %v17728_v16 = vld [vmem:[#allocation76_spill] sm:$0xff] }
0x10c9   : > { %v7566_v13 = vadd.f32 %v15244_v5, %v7428_v61  ;;  %v7507_v18 = vadd.f32 %v7027_v53, %v17721_v45  ;;  %7196 = vmatmul.bf16.gmra.mxu2 %v17640_v0 }
0x10cb   : > { %v7694_v59 = vmax.f32 %v7566_v13, 0.0  ;;  %v7645_v14 = vadd.f32 %v14980_v6, %v7507_v18 }
0x10cc   : > { %v7157_v20 = vpop.f32.mrf.mxu2 }
0x10cd   : > { %7822 = vst [vmem:[%s14836_s21 + $0x130] sm:$0xff] %v7694_v59  ;;  %v7773_v37 = vmax.f32 %v7645_v14, 0.0  ;;  %v7158_v15 = vadd.f32 %v7157_v20, %v15303_v30 }
0x10ce   : > { %v7029_v47 = vpop.f32.mrf.mxu0 }
0x10cf   : > { %7901 = vst [vmem:[%s14836_s21 + $0x3a8] sm:$0xff] %v7773_v37  ;;  %v7432_v33 = vadd.f32 %v7158_v15, %v17722_v28  ;;  %v7030_v58 = vadd.f32 %v7029_v47, %v15227_v50  ;;  %v7083_v24 = vpop.f32.mrf.mxu1 }
0x10d1   : > { %v7570_v17 = vadd.f32 %v15244_v5, %v7432_v33  ;;  %v7511_v21 = vadd.f32 %v7030_v58, %v17723_v63  ;;  %7295 = vmatmul.bf16.gmra.mxu3 %v17599_v52  ;;  %7344 = vmatmul.bf16.gmra.mxu0 %v17600_v12  ;;  %v17725_v12 = vld [vmem:[#allocation161_spill] sm:$0xff] }
0x10d3   : > { %v7698_v1 = vmax.f32 %v7570_v17, 0.0  ;;  %v7649_v30 = vadd.f32 %v14980_v6, %v7511_v21 }
0x10d4   : > { %v7159_v26 = vpop.f32.mrf.mxu2 }
0x10d5   : > { %7826 = vst [vmem:[%s14836_s21 + $0x150] sm:$0xff] %v7698_v1  ;;  %v7777_v2 = vmax.f32 %v7649_v30, 0.0  ;;  %v7160_v50 = vadd.f32 %v7159_v26, %v15317_v39  ;;  %v15416_v1 = vpop.f32.mrf.mxu3  ;;  %v17731_v26 = vld [vmem:[#allocation164_spill] sm:$0xff] }
0x10d6   : > { %v7031_v27 = vpop.f32.mrf.mxu0 }
0x10d7   : > { %7905 = vst [vmem:[%s14836_s21 + $0x3c8] sm:$0xff] %v7777_v2  ;;  %v7436_v3 = vadd.f32 %v7160_v50, %v17724_v29  ;;  %v7032_v35 = vadd.f32 %v7031_v27, %v15249_v11  ;;  %v17726_v11 = vld [vmem:[#allocation210_spill] sm:$0xff]  ;;  %v7085_v20 = vpop.f32.mrf.mxu1 }
0x10d9   : > { %v7574_v52 = vadd.f32 %v15244_v5, %v7436_v3  ;;  %v7515_v43 = vadd.f32 %v7032_v35, %v17725_v12  ;;  %7201 = vmatmul.bf16.gmra.mxu2 %v17646_v7 }
0x10db   : > { %v7702_v60 = vmax.f32 %v7574_v52, 0.0  ;;  %v7653_v57 = vadd.f32 %v14980_v6, %v7515_v43  ;;  %v17727_v6 = vld [vmem:[#allocation163_spill] sm:$0xff] }
0x10dc   : > { %v7162_v42 = vpop.f32.mrf.mxu2 }
0x10dd   : > { %7830 = vst [vmem:[%s14836_s21 + $0x170] sm:$0xff] %v7702_v60  ;;  %v7781_v39 = vmax.f32 %v7653_v57, 0.0  ;;  %v7163_v32 = vadd.f32 %v7162_v42, %v15333_v19  ;;  %v17733_v57 = vld [vmem:[#allocation165_spill] sm:$0xff]  ;;  %v15428_v42 = vpop.f32.mrf.mxu3 }
0x10de   : > { %v7310_v25 = vpop.f32.mrf.mxu0 }
0x10df   : > { %7909 = vst [vmem:[%s14836_s21 + $0x3e8] sm:$0xff] %v7781_v39  ;;  %v7440_v41 = vadd.f32 %v7163_v32, %v17726_v11  ;;  %v7311_v51 = vadd.f32 %v7310_v25, %v15264_v34  ;;  %v7088_v50 = vpop.f32.mrf.mxu1 }
0x10e1   : > { %v7578_v54 = vadd.f32 %v15244_v5, %v7440_v41  ;;  %v7393_v61 = vadd.f32 %v7311_v51, %v17727_v6  ;;  %7349 = vmatmul.bf16.gmra.mxu0 %v17605_v22  ;;  %v17729_v22 = vld [vmem:[#allocation123_spill] sm:$0xff] }
0x10e3   : > { %v7706_v53 = vmax.f32 %v7578_v54, 0.0  ;;  %v7531_v19 = vadd.f32 %v15396_v36, %v7393_v61  ;;  %v17734_v54 = vld [vmem:[#allocation219_spill] sm:$0xff] }
0x10e4   : > { %v7164_v13 = vpop.f32.mrf.mxu2 }
0x10e5   : > { %7834 = vst [vmem:[%s14836_s21 + $0x190] sm:$0xff] %v7706_v53  ;;  %v7659_v45 = vmax.f32 %v7531_v19, 0.0  ;;  %v7165_v18 = vadd.f32 %v7164_v13, %v15349_v55  ;;  %v17735_v53 = vld [vmem:[#allocation27_spill] sm:$0xff] }
0x10e6   : > { %v7312_v34 = vpop.f32.mrf.mxu0 }
0x10e7   : > { %7787 = vst [vmem:[%s14836_s21 + $0x18] sm:$0xff] %v7659_v45  ;;  %v7444_v59 = vadd.f32 %v7165_v18, %v17728_v16  ;;  %v7313_v14 = vadd.f32 %v7312_v34, %v15279_v46  ;;  %v17730_v46 = vld [vmem:[#allocation20_spill] sm:$0xff]  ;;  %v7090_v25 = vpop.f32.mrf.mxu1  ;;  %v15439_v18 = vpop.f32.mrf.mxu3 }
0x10e9   : > { %v7582_v37 = vadd.f32 %v15244_v5, %v7444_v59  ;;  %v7397_v15 = vadd.f32 %v7313_v14, %v17729_v22  ;;  %7206 = vmatmul.bf16.gmra.mxu2 %v17651_v31 }
0x10eb   : > { %v7710_v47 = vmax.f32 %v7582_v37, 0.0  ;;  %v7535_v28 = vadd.f32 %v15396_v36, %v7397_v15  ;;  %v17737_v15 = vld [vmem:[#allocation217_spill] sm:$0xff] }
0x10ec   : > { %v7167_v33 = vpop.f32.mrf.mxu2 }
0x10ed   : > { %7838 = vst [vmem:[%s14836_s21 + $0x1b0] sm:$0xff] %v7710_v47  ;;  %v7663_v55 = vmax.f32 %v7535_v28, 0.0  ;;  %v7168_v58 = vadd.f32 %v7167_v33, %v15366_v4 }
0x10ee   : > { %v7315_v17 = vpop.f32.mrf.mxu0 }
0x10ef   : > { %7791 = vst [vmem:[%s14836_s21 + $0x38] sm:$0xff] %v7663_v55  ;;  %v7448_v63 = vadd.f32 %v7168_v58, %v17730_v46  ;;  %v7316_v21 = vadd.f32 %v7315_v17, %v15294_v49  ;;  %v17732_v49 = vld [vmem:[#allocation214_spill] sm:$0xff]  ;;  %v7093_v59 = vpop.f32.mrf.mxu1  ;;  %v15449_v17 = vpop.f32.mrf.mxu3 }
0x10f1   : > { %v7586_v30 = vadd.f32 %v15244_v5, %v7448_v63  ;;  %v7401_v2 = vadd.f32 %v7316_v21, %v17731_v26  ;;  %7354 = vmatmul.bf16.gmra.mxu0 %v17610_v44  ;;  %v17738_v63 = vld [vmem:[#allocation168_spill] sm:$0xff] }
0x10f3   : > { %v7714_v27 = vmax.f32 %v7586_v30, 0.0  ;;  %v7539_v29 = vadd.f32 %v15396_v36, %v7401_v2  ;;  %v17739_v2 = vld [vmem:[#allocation25_spill] sm:$0xff] }
0x10f4   : > { %v7169_v4 = vpop.f32.mrf.mxu2 }
0x10f5   : > { %7842 = vst [vmem:[%s14836_s21 + $0x1d0] sm:$0xff] %v7714_v27  ;;  %v7667_v3 = vmax.f32 %v7539_v29, 0.0  ;;  %v7170_v35 = vadd.f32 %v7169_v4, %v7080_v40 }
0x10f6   : > { %v7317_v52 = vpop.f32.mrf.mxu0 }
0x10f7   : > { %7795 = vst [vmem:[%s14836_s21 + $0x58] sm:$0xff] %v7667_v3  ;;  %v7452_v12 = vadd.f32 %v7170_v35, %v17732_v49  ;;  %v7318_v43 = vadd.f32 %v7317_v52, %v15311_v23  ;;  %v7095_v30 = vpop.f32.mrf.mxu1  ;;  %v17740_v49 = vld [vmem:[#allocation134_spill] sm:$0xff] }
0x10f9   : > { %v7590_v60 = vadd.f32 %v15244_v5, %v7452_v12  ;;  %v7405_v44 = vadd.f32 %v7318_v43, %v17733_v57  ;;  %v15462_v43 = vpop.f32.mrf.mxu3 }
0x10fb   : > { %v7718_v39 = vmax.f32 %v7590_v60, 0.0  ;;  %v7543_v32 = vadd.f32 %v15396_v36, %v7405_v44 }
0x10fc   : > { %v7172_v11 = vpop.f32.mrf.mxu2 }
0x10fd   : > { %7846 = vst [vmem:[%s14836_s21 + $0x1f0] sm:$0xff] %v7718_v39  ;;  %v7671_v40 = vmax.f32 %v7543_v32, 0.0  ;;  %v7173_v41 = vadd.f32 %v7172_v11, %v7083_v24 }
0x10fe   : > { %v7320_v51 = vpop.f32.mrf.mxu0 }
0x10ff   : > { %7799 = vst [vmem:[%s14836_s21 + $0x78] sm:$0xff] %v7671_v40  ;;  %v7456_v23 = vadd.f32 %v7173_v41, %v17734_v54  ;;  %v7321_v6 = vadd.f32 %v7320_v51, %v15328_v9  ;;  %v17736_v9 = vld [vmem:[#allocation166_spill] sm:$0xff]  ;;  %v7098_v44 = vpop.f32.mrf.mxu1 }
0x1100   : > { %v17742_v51 = vld [vmem:[#allocation170_spill] sm:$0xff] }
0x1101   : > { %v7594_v61 = vadd.f32 %v15244_v5, %v7456_v23  ;;  %v7409_v19 = vadd.f32 %v7321_v6, %v17735_v53  ;;  %7359 = vmatmul.bf16.gmra.mxu0 %v17615_v62  ;;  %v17743_v6 = vld [vmem:[#allocation221_spill] sm:$0xff]  ;;  %v15474_v53 = vpop.f32.mrf.mxu3 }
0x1103   : > { %v7722_v13 = vmax.f32 %v7594_v61, 0.0  ;;  %v7547_v45 = vadd.f32 %v15396_v36, %v7409_v19 }
0x1104   : > { %v7174_v24 = vpop.f32.mrf.mxu2 }
0x1105   : > { %7850 = vst [vmem:[%s14836_s21 + $0x210] sm:$0xff] %v7722_v13  ;;  %v7675_v34 = vmax.f32 %v7547_v45, 0.0  ;;  %v7175_v16 = vadd.f32 %v7174_v24, %v7085_v20 }
0x1106   : > { %v7322_v14 = vpop.f32.mrf.mxu0 }
0x1107   : > { %7803 = vst [vmem:[%s14836_s21 + $0x98] sm:$0xff] %v7675_v34  ;;  %v7460_v37 = vadd.f32 %v7175_v16, %v17736_v9  ;;  %v7323_v22 = vadd.f32 %v7322_v14, %v15342_v10  ;;  %v7100_v45 = vpop.f32.mrf.mxu1 }
0x1109   : > { %v7598_v62 = vadd.f32 %v15244_v5, %v7460_v37  ;;  %v7413_v47 = vadd.f32 %v7323_v22, %v17737_v15  ;;  %v17745_v37 = vld [vmem:[#allocation172_spill] sm:$0xff] }
0x110b   : > { %v7726_v28 = vmax.f32 %v7598_v62, 0.0  ;;  %v7551_v33 = vadd.f32 %v15396_v36, %v7413_v47  ;;  %v15484_v47 = vpop.f32.mrf.mxu3 }
0x110c   : > { %v7177_v55 = vpop.f32.mrf.mxu2 }
0x110d   : > { %7854 = vst [vmem:[%s14836_s21 + $0x230] sm:$0xff] %v7726_v28  ;;  %v7679_v58 = vmax.f32 %v7551_v33, 0.0  ;;  %v7178_v20 = vadd.f32 %v7177_v55, %v7088_v50 }
0x110e   : > { %v7325_v46 = vpop.f32.mrf.mxu0 }
0x110f   : > { %7807 = vst [vmem:[%s14836_s21 + $0xb8] sm:$0xff] %v7679_v58  ;;  %v7464_v21 = vadd.f32 %v7178_v20, %v17738_v63  ;;  %v7326_v10 = vadd.f32 %v7325_v46, %v15358_v8  ;;  %v7103_v58 = vpop.f32.mrf.mxu1  ;;  %v17746_v46 = vld [vmem:[#allocation224_spill] sm:$0xff] }
0x1111   : > { %v7602_v26 = vadd.f32 %v15244_v5, %v7464_v21  ;;  %v7417_v27 = vadd.f32 %v7326_v10, %v17739_v2  ;;  %7364 = vmatmul.bf16.gmra.mxu0 %v17712_v56  ;;  %v17741_v56 = vld [vmem:[#allocation100_spill] sm:$0xff]  ;;  %v17747_v10 = vld [vmem:[#allocation26_spill] sm:$0xff] }
0x1113   : > { %v7730_v29 = vmax.f32 %v7602_v26, 0.0  ;;  %v7555_v4 = vadd.f32 %v15396_v36, %v7417_v27 }
0x1114   : > { %v7179_v50 = vpop.f32.mrf.mxu2 }
0x1115   : > { %7858 = vst [vmem:[%s14836_s21 + $0x250] sm:$0xff] %v7730_v29  ;;  %v7683_v3 = vmax.f32 %v7555_v4, 0.0  ;;  %v7180_v35 = vadd.f32 %v7179_v50, %v7090_v25  ;;  %v7258_v50 = vpop.f32.mrf.mxu3 }
0x1116   : > { %v7327_v52 = vpop.f32.mrf.mxu0 }
0x1117   : > { %7811 = vst [vmem:[%s14836_s21 + $0xd8] sm:$0xff] %v7683_v3  ;;  %v7468_v8 = vadd.f32 %v7180_v35, %v17740_v49  ;;  %v7328_v12 = vadd.f32 %v7327_v52, %v15374_v38  ;;  %v17748_v35 = vld [vmem:[#allocation174_spill] sm:$0xff]  ;;  %v7105_v49 = vpop.f32.mrf.mxu1 }
0x1119   : > { %v7606_v60 = vadd.f32 %v15244_v5, %v7468_v8  ;;  %v7421_v57 = vadd.f32 %v7328_v12, %v17741_v56 }
0x111b   : > { %v7734_v39 = vmax.f32 %v7606_v60, 0.0  ;;  %v7559_v32 = vadd.f32 %v15396_v36, %v7421_v57 }
0x111c   : > { %v7182_v11 = vpop.f32.mrf.mxu2 }
0x111d   : > { %7862 = vst [vmem:[%s14836_s21 + $0x270] sm:$0xff] %v7734_v39  ;;  %v7687_v25 = vmax.f32 %v7559_v32, 0.0  ;;  %v7183_v40 = vadd.f32 %v7182_v11, %v7093_v59  ;;  %v17750_v11 = vld [vmem:[#allocation177_spill] sm:$0xff] }
0x111e   : > { %v7330_v41 = vpop.f32.mrf.mxu0 }
0x111f   : > { %7815 = vst [vmem:[%s14836_s21 + $0xf8] sm:$0xff] %v7687_v25  ;;  %v7472_v38 = vadd.f32 %v7183_v40, %v17742_v51  ;;  %v7331_v54 = vadd.f32 %v7330_v41, %v15416_v1  ;;  %v17744_v1 = vld [vmem:[#allocation171_spill] sm:$0xff]  ;;  %v7261_v40 = vpop.f32.mrf.mxu3  ;;  %v17751_v51 = vld [vmem:[#allocation232_spill] sm:$0xff] }
0x1121   : > { %v7610_v23 = vadd.f32 %v15244_v5, %v7472_v38  ;;  %v7425_v61 = vadd.f32 %v7331_v54, %v17743_v6  ;;  %7369 = vmatmul.bf16.gmra.mxu0 %v17717_v48  ;;  %v7108_v54 = vpop.f32.mrf.mxu1 }
0x1123   : > { %v7738_v19 = vmax.f32 %v7610_v23, 0.0  ;;  %v7563_v13 = vadd.f32 %v15396_v36, %v7425_v61 }
0x1124   : > { %v7184_v24 = vpop.f32.mrf.mxu2 }
0x1125   : > { %7866 = vst [vmem:[%s14836_s21 + $0x290] sm:$0xff] %v7738_v19  ;;  %v7691_v34 = vmax.f32 %v7563_v13, 0.0  ;;  %v7185_v16 = vadd.f32 %v7184_v24, %v7095_v30 }
0x1126   : > { %v7332_v59 = vpop.f32.mrf.mxu0 }
0x1127   : > { %7819 = vst [vmem:[%s14836_s21 + $0x118] sm:$0xff] %v7691_v34  ;;  %v7476_v14 = vadd.f32 %v7185_v16, %v17744_v1  ;;  %v7333_v9 = vadd.f32 %v7332_v59, %v15428_v42  ;;  %v17753_v59 = vld [vmem:[#allocation88_spill] sm:$0xff]  ;;  %v7263_v1 = vpop.f32.mrf.mxu3 }
0x1129   : > { %v7614_v48 = vadd.f32 %v15244_v5, %v7476_v14  ;;  %v7429_v22 = vadd.f32 %v7333_v9, %v17745_v37 }
0x112b   : > { %v7742_v62 = vmax.f32 %v7614_v48, 0.0  ;;  %v7567_v15 = vadd.f32 %v15396_v36, %v7429_v22  ;;  %v7110_v48 = vpop.f32.mrf.mxu1 }
0x112c   : > { %v7187_v28 = vpop.f32.mrf.mxu2 }
0x112d   : > { %7870 = vst [vmem:[%s14836_s21 + $0x2b0] sm:$0xff] %v7742_v62  ;;  %v7695_v33 = vmax.f32 %v7567_v15, 0.0  ;;  %v7188_v55 = vadd.f32 %v7187_v28, %v7098_v44  ;;  %v17754_v28 = vld [vmem:[#allocation181_spill] sm:$0xff] }
0x112e   : > { %v7335_v20 = vpop.f32.mrf.mxu0 }
0x112f   : > { %7823 = vst [vmem:[%s14836_s21 + $0x138] sm:$0xff] %v7695_v33  ;;  %v7480_v42 = vadd.f32 %v7188_v55, %v17746_v46  ;;  %v7336_v63 = vadd.f32 %v7335_v20, %v15439_v18 }
0x1131   : > { %v7618_v21 = vadd.f32 %v15244_v5, %v7480_v42  ;;  %v7433_v30 = vadd.f32 %v7336_v63, %v17747_v10  ;;  %7374 = vmatmul.bf16.gmra.mxu0 %v17640_v0  ;;  %v17749_v0 = vld [vmem:[#allocation233_spill] sm:$0xff]  ;;  %v7266_v63 = vpop.f32.mrf.mxu3 }
0x1133   : > { %v7746_v26 = vmax.f32 %v7618_v21, 0.0  ;;  %v7571_v2 = vadd.f32 %v15396_v36, %v7433_v30 }
0x1134   : > { %v7189_v27 = vpop.f32.mrf.mxu2 }
0x1135   : > { %7874 = vst [vmem:[%s14836_s21 + $0x2d0] sm:$0xff] %v7746_v26  ;;  %v7699_v29 = vmax.f32 %v7571_v2, 0.0  ;;  %v7190_v4 = vadd.f32 %v7189_v27, %v7100_v45  ;;  %v7113_v26 = vpop.f32.mrf.mxu1 }
0x1136   : > { %v7337_v3 = vpop.f32.mrf.mxu0 }
0x1137   : > { %7827 = vst [vmem:[%s14836_s21 + $0x158] sm:$0xff] %v7699_v29  ;;  %v7484_v18 = vadd.f32 %v7190_v4, %v17748_v35  ;;  %v7338_v52 = vadd.f32 %v7337_v3, %v15449_v17  ;;  %v17757_v3 = vld [vmem:[#allocation240_spill] sm:$0xff] }
0x1139   : > { %v7622_v8 = vadd.f32 %v15244_v5, %v7484_v18  ;;  %v7437_v12 = vadd.f32 %v7338_v52, %v17749_v0  ;;  %v7268_v0 = vpop.f32.mrf.mxu3 }
0x113b   : > { %v7750_v60 = vmax.f32 %v7622_v8, 0.0  ;;  %v7575_v56 = vadd.f32 %v15396_v36, %v7437_v12 }
0x113c   : > { %v7192_v57 = vpop.f32.mrf.mxu2 }
0x113d   : > { %7878 = vst [vmem:[%s14836_s21 + $0x2f0] sm:$0xff] %v7750_v60  ;;  %v7703_v44 = vmax.f32 %v7575_v56, 0.0  ;;  %v7193_v39 = vadd.f32 %v7192_v57, %v7103_v58  ;;  %v17755_v58 = vld [vmem:[#allocation236_spill] sm:$0xff]  ;;  %v17758_v60 = vld [vmem:[#allocation185_spill] sm:$0xff] }
0x113e   : > { %v7340_v32 = vpop.f32.mrf.mxu0 }
0x113f   : > { %7831 = vst [vmem:[%s14836_s21 + $0x178] sm:$0xff] %v7703_v44  ;;  %v7488_v25 = vadd.f32 %v7193_v39, %v17750_v11  ;;  %v7341_v17 = vadd.f32 %v7340_v32, %v15462_v43  ;;  %v17752_v43 = vld [vmem:[#allocation179_spill] sm:$0xff] }
0x1140   : > { %v17759_v39 = vld [vmem:[#allocation239_spill] sm:$0xff] }
0x1141   : > { %v7626_v41 = vadd.f32 %v15244_v5, %v7488_v25  ;;  %v7441_v38 = vadd.f32 %v7341_v17, %v17751_v51  ;;  %7379 = vmatmul.bf16.gmra.mxu0 %v17646_v7 }
0x1143   : > { %v7754_v23 = vmax.f32 %v7626_v41, 0.0  ;;  %v7579_v6 = vadd.f32 %v15396_v36, %v7441_v38 }
0x1144   : > { %v7194_v61 = vpop.f32.mrf.mxu2 }
0x1145   : > { %7882 = vst [vmem:[%s14836_s21 + $0x310] sm:$0xff] %v7754_v23  ;;  %v7707_v19 = vmax.f32 %v7579_v6, 0.0  ;;  %v7195_v13 = vadd.f32 %v7194_v61, %v7105_v49 }
0x1146   : > { %v7342_v45 = vpop.f32.mrf.mxu0 }
0x1147   : > { %7835 = vst [vmem:[%s14836_s21 + $0x198] sm:$0xff] %v7707_v19  ;;  %v7492_v24 = vadd.f32 %v7195_v13, %v17752_v43  ;;  %v7343_v34 = vadd.f32 %v7342_v45, %v15474_v53  ;;  %v17761_v19 = vld [vmem:[#allocation243_spill] sm:$0xff] }
0x1149   : > { %v7630_v16 = vadd.f32 %v15244_v5, %v7492_v24  ;;  %v7445_v7 = vadd.f32 %v7343_v34, %v17753_v59 }
0x114b   : > { %v7758_v14 = vmax.f32 %v7630_v16, 0.0  ;;  %v7583_v9 = vadd.f32 %v15396_v36, %v7445_v7 }
0x114c   : > { %v7197_v37 = vpop.f32.mrf.mxu2 }
0x114d   : > { %7886 = vst [vmem:[%s14836_s21 + $0x330] sm:$0xff] %v7758_v14  ;;  %v7711_v22 = vmax.f32 %v7583_v9, 0.0  ;;  %v7198_v62 = vadd.f32 %v7197_v37, %v7108_v54  ;;  %v17760_v54 = vld [vmem:[#allocation187_spill] sm:$0xff]  ;;  %v17762_v14 = vld [vmem:[#allocation41_spill] sm:$0xff]  ;;  %v17763_v37 = vld [vmem:[#allocation188_spill] sm:$0xff] }
0x114e   : > { %v7345_v15 = vpop.f32.mrf.mxu0 }
0x114f   : > { %7839 = vst [vmem:[%s14836_s21 + $0x1b8] sm:$0xff] %v7711_v22  ;;  %v7496_v33 = vadd.f32 %v7198_v62, %v17754_v28  ;;  %v7346_v53 = vadd.f32 %v7345_v15, %v15484_v47  ;;  %v17756_v47 = vld [vmem:[#allocation183_spill] sm:$0xff] }
0x1151   : > { %v7634_v55 = vadd.f32 %v15244_v5, %v7496_v33  ;;  %v7449_v20 = vadd.f32 %v7346_v53, %v17755_v58  ;;  %7384 = vmatmul.bf16.gmra.mxu0 %v17651_v31 }
0x1153   : > { %v7762_v46 = vmax.f32 %v7634_v55, 0.0  ;;  %v7587_v42 = vadd.f32 %v15396_v36, %v7449_v20 }
0x1154   : > { %v7199_v21 = vpop.f32.mrf.mxu2 }
0x1155   : > { %7890 = vst [vmem:[%s14836_s21 + $0x350] sm:$0xff] %v7762_v46  ;;  %v7715_v10 = vmax.f32 %v7587_v42, 0.0  ;;  %v7200_v30 = vadd.f32 %v7199_v21, %v7110_v48  ;;  %v17764_v46 = vld [vmem:[#allocation242_spill] sm:$0xff] }
0x1156   : > { %v7347_v2 = vpop.f32.mrf.mxu0 }
0x1157   : > { %7843 = vst [vmem:[%s14836_s21 + $0x1d8] sm:$0xff] %v7715_v10  ;;  %v7500_v27 = vadd.f32 %v7200_v30, %v17756_v47  ;;  %v7348_v29 = vadd.f32 %v7347_v2, %v7258_v50  ;;  %v7115_v50 = vpop.f32.mrf.mxu1  ;;  %v17765_v10 = vld [vmem:[#allocation190_spill] sm:$0xff] }
0x1159   : > { %v7638_v4 = vadd.f32 %v15244_v5, %v7500_v27  ;;  %v7453_v31 = vadd.f32 %v7348_v29, %v17757_v3  ;;  %v17766_v3 = vld [vmem:[#allocation246_spill] sm:$0xff] }
0x115b   : > { %v7766_v35 = vmax.f32 %v7638_v4, 0.0  ;;  %v7591_v18 = vadd.f32 %v15396_v36, %v7453_v31 }
0x115c   : > { %v7202_v52 = vpop.f32.mrf.mxu2 }
0x115d   : > { %7894 = vst [vmem:[%s14836_s21 + $0x370] sm:$0xff] %v7766_v35  ;;  %v7719_v49 = vmax.f32 %v7591_v18, 0.0  ;;  %v7203_v8 = vadd.f32 %v7202_v52, %v7113_v26 }
0x115e   : > { %v7350_v12 = vpop.f32.mrf.mxu0 }
0x115f   : > { %7847 = vst [vmem:[%s14836_s21 + $0x1f8] sm:$0xff] %v7719_v49  ;;  %v7504_v56 = vadd.f32 %v7203_v8, %v17758_v60  ;;  %v7351_v57 = vadd.f32 %v7350_v12, %v7261_v40  ;;  %v7271_v40 = vpop.f32.mrf.mxu3  ;;  %v7118_v45 = vpop.f32.mrf.mxu1  ;;  %v17767_v8 = vld [vmem:[#allocation192_spill] sm:$0xff] }
0x1161   : > { %v7642_v44 = vadd.f32 %v15244_v5, %v7504_v56  ;;  %v7457_v32 = vadd.f32 %v7351_v57, %v17759_v39 }
0x1163   : > { %v7770_v11 = vmax.f32 %v7642_v44, 0.0  ;;  %v7595_v25 = vadd.f32 %v15396_v36, %v7457_v32  ;;  %v17768_v44 = vld [vmem:[#allocation245_spill] sm:$0xff] }
0x1164   : > { %v7204_v17 = vpop.f32.mrf.mxu2 }
0x1165   : > { %7898 = vst [vmem:[%s14836_s21 + $0x390] sm:$0xff] %v7770_v11  ;;  %v7723_v41 = vmax.f32 %v7595_v25, 0.0  ;;  %v7205_v51 = vadd.f32 %v7204_v17, %v7115_v50 }
0x1166   : > { %v7352_v38 = vpop.f32.mrf.mxu0 }
0x1167   : > { %7851 = vst [vmem:[%s14836_s21 + $0x218] sm:$0xff] %v7723_v41  ;;  %v7508_v23 = vadd.f32 %v7205_v51, %v17760_v54  ;;  %v7353_v6 = vadd.f32 %v7352_v38, %v7263_v1  ;;  %v7273_v62 = vpop.f32.mrf.mxu3  ;;  %v7120_v33 = vpop.f32.mrf.mxu1  ;;  %v17769_v41 = vld [vmem:[#allocation194_spill] sm:$0xff] }
0x1169   : > { %v7646_v61 = vadd.f32 %v15244_v5, %v7508_v23  ;;  %v7461_v13 = vadd.f32 %v7353_v6, %v17761_v19 }
0x116b   : > { %v7774_v43 = vmax.f32 %v7646_v61, 0.0  ;;  %v7599_v24 = vadd.f32 %v15396_v36, %v7461_v13  ;;  %v17770_v61 = vld [vmem:[#allocation249_spill] sm:$0xff] }
0x116c   : > { %v7207_v34 = vpop.f32.mrf.mxu2 }
0x116d   : > { %7902 = vst [vmem:[%s14836_s21 + $0x3b0] sm:$0xff] %v7774_v43  ;;  %v7727_v16 = vmax.f32 %v7599_v24, 0.0  ;;  %v7208_v59 = vadd.f32 %v7207_v34, %v7118_v45 }
0x116e   : > { %v7355_v7 = vpop.f32.mrf.mxu0 }
0x116f   : > { %7855 = vst [vmem:[%s14836_s21 + $0x238] sm:$0xff] %v7727_v16  ;;  %v7512_v9 = vadd.f32 %v7208_v59, %v17762_v14  ;;  %v7356_v1 = vadd.f32 %v7355_v7, %v7266_v63  ;;  %v7276_v47 = vpop.f32.mrf.mxu3  ;;  %v17771_v16 = vld [vmem:[#allocation195_spill] sm:$0xff] }
0x1171   : > { %v7650_v48 = vadd.f32 %v15244_v5, %v7512_v9  ;;  %v7465_v22 = vadd.f32 %v7356_v1, %v17763_v37  ;;  %v17772_v37 = vld [vmem:[#allocation252_spill] sm:$0xff] }
0x1173   : > { %v7778_v15 = vmax.f32 %v7650_v48, 0.0  ;;  %v7603_v28 = vadd.f32 %v15396_v36, %v7465_v22 }
0x1174   : > { %v7209_v53 = vpop.f32.mrf.mxu2 }
0x1175   : > { %7906 = vst [vmem:[%s14836_s21 + $0x3d0] sm:$0xff] %v7778_v15  ;;  %v7731_v55 = vmax.f32 %v7603_v28, 0.0  ;;  %v7210_v58 = vadd.f32 %v7209_v53, %v7120_v33 }
0x1176   : > { %v7357_v20 = vpop.f32.mrf.mxu0 }
0x1177   : > { %7859 = vst [vmem:[%s14836_s21 + $0x258] sm:$0xff] %v7731_v55  ;;  %v7516_v42 = vadd.f32 %v7210_v58, %v17764_v46  ;;  %v7358_v63 = vadd.f32 %v7357_v20, %v7268_v0  ;;  %v7278_v52 = vpop.f32.mrf.mxu3  ;;  %v17773_v55 = vld [vmem:[#allocation201_spill] sm:$0xff] }
0x1179   : > { %v7654_v21 = vadd.f32 %v15244_v5, %v7516_v42  ;;  %v7469_v30 = vadd.f32 %v7358_v63, %v17765_v10 }
0x117b   : > { %v7782_v26 = vmax.f32 %v7654_v21, 0.0  ;;  %v7607_v2 = vadd.f32 %v15396_v36, %v7469_v30  ;;  %v17774_v21 = vld [vmem:[#allocation254_spill] sm:$0xff] }
0x117d   : > { %7910 = vst [vmem:[%s14836_s21 + $0x3f0] sm:$0xff] %v7782_v26  ;;  %v7735_v27 = vmax.f32 %v7607_v2, 0.0 }
0x117e   : > { %v7360_v29 = vpop.f32.mrf.mxu0 }
0x117f   : > { %7863 = vst [vmem:[%s14836_s21 + $0x278] sm:$0xff] %v7735_v27  ;;  %v7361_v4 = vadd.f32 %v7360_v29, %v7271_v40  ;;  %v7281_v50 = vpop.f32.mrf.mxu3  ;;  %v17775_v29 = vld [vmem:[#allocation119_spill] sm:$0xff] }
0x1181   : > { %v7473_v31 = vadd.f32 %v7361_v4, %v17766_v3 }
0x1183   : > { %v7611_v35 = vadd.f32 %v15396_v36, %v7473_v31 }
0x1185   : > { %v7739_v18 = vmax.f32 %v7611_v35, 0.0 }
0x1186   : > { %v7362_v5 = vpop.f32.mrf.mxu0 }
0x1187   : > { %7867 = vst [vmem:[%s14836_s21 + $0x298] sm:$0xff] %v7739_v18  ;;  %v7363_v49 = vadd.f32 %v7362_v5, %v7273_v62  ;;  %v7283_v38 = vpop.f32.mrf.mxu3  ;;  %v17776_v5 = vld [vmem:[#allocation113_spill] sm:$0xff] }
0x1189   : > { %v7477_v0 = vadd.f32 %v7363_v49, %v17767_v8 }
0x118b   : > { %v7615_v12 = vadd.f32 %v15396_v36, %v7477_v0 }
0x118d   : > { %v7743_v60 = vmax.f32 %v7615_v12, 0.0 }
0x118e   : > { %v7365_v56 = vpop.f32.mrf.mxu0 }
0x118f   : > { %7871 = vst [vmem:[%s14836_s21 + $0x2b8] sm:$0xff] %v7743_v60  ;;  %v7366_v57 = vadd.f32 %v7365_v56, %v7276_v47  ;;  %v7286_v45 = vpop.f32.mrf.mxu3 }
0x1191   : > { %v7481_v39 = vadd.f32 %v7366_v57, %v17768_v44  ;;  %v17777_v57 = vld [vmem:[#allocation42_spill] sm:$0xff] }
0x1193   : > { %v7619_v32 = vadd.f32 %v15396_v36, %v7481_v39 }
0x1195   : > { %v7747_v11 = vmax.f32 %v7619_v32, 0.0 }
0x1196   : > { %v7367_v25 = vpop.f32.mrf.mxu0 }
0x1197   : > { %7875 = vst [vmem:[%s14836_s21 + $0x2d8] sm:$0xff] %v7747_v11  ;;  %v7368_v17 = vadd.f32 %v7367_v25, %v7278_v52  ;;  %v7288_v9 = vpop.f32.mrf.mxu3 }
0x1199   : > { %v7485_v51 = vadd.f32 %v7368_v17, %v17769_v41 }
0x119b   : > { %v7623_v54 = vadd.f32 %v15396_v36, %v7485_v51 }
0x119d   : > { %v7751_v23 = vmax.f32 %v7623_v54, 0.0 }
0x119e   : > { %v7370_v6 = vpop.f32.mrf.mxu0 }
0x119f   : > { %7879 = vst [vmem:[%s14836_s21 + $0x2f8] sm:$0xff] %v7751_v23  ;;  %v7371_v40 = vadd.f32 %v7370_v6, %v7281_v50  ;;  %v7291_v53 = vpop.f32.mrf.mxu3 }
0x11a1   : > { %v7489_v19 = vadd.f32 %v7371_v40, %v17770_v61 }
0x11a3   : > { %v7627_v13 = vadd.f32 %v15396_v36, %v7489_v19 }
0x11a5   : > { %v7755_v43 = vmax.f32 %v7627_v13, 0.0 }
0x11a6   : > { %v7372_v24 = vpop.f32.mrf.mxu0 }
0x11a7   : > { %7883 = vst [vmem:[%s14836_s21 + $0x318] sm:$0xff] %v7755_v43  ;;  %v7373_v34 = vadd.f32 %v7372_v24, %v7283_v38  ;;  %v7293_v30 = vpop.f32.mrf.mxu3 }
0x11a9   : > { %v7493_v59 = vadd.f32 %v7373_v34, %v17771_v16 }
0x11ab   : > { %v7631_v7 = vadd.f32 %v15396_v36, %v7493_v59 }
0x11ad   : > { %v7759_v14 = vmax.f32 %v7631_v7, 0.0 }
0x11ae   : > { %v7375_v1 = vpop.f32.mrf.mxu0 }
0x11af   : > { %7887 = vst [vmem:[%s14836_s21 + $0x338] sm:$0xff] %v7759_v14  ;;  %v7376_v48 = vadd.f32 %v7375_v1, %v7286_v45  ;;  %v7296_v31 = vpop.f32.mrf.mxu3 }
0x11b1   : > { %v7497_v22 = vadd.f32 %v7376_v48, %v17772_v37 }
0x11b3   : > { %v7635_v62 = vadd.f32 %v15396_v36, %v7497_v22 }
0x11b5   : > { %v7763_v15 = vmax.f32 %v7635_v62, 0.0 }
0x11b6   : > { %v7377_v28 = vpop.f32.mrf.mxu0 }
0x11b7   : > { %7891 = vst [vmem:[%s14836_s21 + $0x358] sm:$0xff] %v7763_v15  ;;  %v7378_v33 = vadd.f32 %v7377_v28, %v7288_v9  ;;  %v7298_v12 = vpop.f32.mrf.mxu3 }
0x11b9   : > { %v7501_v58 = vadd.f32 %v7378_v33, %v17773_v55 }
0x11bb   : > { %v7639_v20 = vadd.f32 %v15396_v36, %v7501_v58 }
0x11bd   : > { %v7767_v46 = vmax.f32 %v7639_v20, 0.0 }
0x11be   : > { %v7380_v42 = vpop.f32.mrf.mxu0 }
0x11bf   : > { %7895 = vst [vmem:[%s14836_s21 + $0x378] sm:$0xff] %v7767_v46  ;;  %v7381_v63 = vadd.f32 %v7380_v42, %v7291_v53 }
0x11c1   : > { %v7505_v10 = vadd.f32 %v7381_v63, %v17774_v21 }
0x11c3   : > { %v7643_v26 = vadd.f32 %v15396_v36, %v7505_v10 }
0x11c5   : > { %v7771_v2 = vmax.f32 %v7643_v26, 0.0 }
0x11c6   : > { %v7382_v47 = vpop.f32.mrf.mxu0 }
0x11c7   : > { %7899 = vst [vmem:[%s14836_s21 + $0x398] sm:$0xff] %v7771_v2  ;;  %v7383_v27 = vadd.f32 %v7382_v47, %v7293_v30 }
0x11c9   : > { %v7509_v4 = vadd.f32 %v7383_v27, %v17775_v29 }
0x11cb   : > { %v7647_v3 = vadd.f32 %v15396_v36, %v7509_v4 }
0x11cd   : > { %v7775_v35 = vmax.f32 %v7647_v3, 0.0 }
0x11ce   : > { %v7385_v18 = vpop.f32.mrf.mxu0 }
0x11cf   : > { %7903 = vst [vmem:[%s14836_s21 + $0x3b8] sm:$0xff] %v7775_v35  ;;  %v7386_v52 = vadd.f32 %v7385_v18, %v7296_v31 }
0x11d1   : > { %v7513_v49 = vadd.f32 %v7386_v52, %v17776_v5 }
0x11d3   : > { %v7651_v8 = vadd.f32 %v15396_v36, %v7513_v49 }
0x11d5   : > { %v7779_v0 = vmax.f32 %v7651_v8, 0.0 }
0x11d6   : > { %v7387_v60 = vpop.f32.mrf.mxu0 }
0x11d7   : > { %7907 = vst [vmem:[%s14836_s21 + $0x3d8] sm:$0xff] %v7779_v0  ;;  %v7388_v56 = vadd.f32 %v7387_v60, %v7298_v12 }
0x11d9   : > { %v7517_v50 = vadd.f32 %v7388_v56, %v17777_v57 }
0x11db   : > { %v7655_v44 = vadd.f32 %v15396_v36, %v7517_v50 }
0x11dd   : > { %v7783_v39 = vmax.f32 %v7655_v44, 0.0 }
0x11df   : > { %7911 = vst [vmem:[%s14836_s21 + $0x3f8] sm:$0xff] %v7783_v39 }
0x11e0   : > { %9835 = shalt.err (!%p9832_p11)
}
0x11e1   : > { %s9897_s10 = smov 512   ;;  %s9898_s19 = smov 32  }
0x11e2   : > { %9560 = dma.vmem_to_hbm [thread:$0]  (%p10030_p7), %s7927_s20, 16384, %s7929_s26, %s7913_s9, %s9897_s10, %s9897_s10, %s9898_s19  }
0x11e3 PF: > { %s7943_s2 = sand.u32 1, %s9874_s27   ;;  %p17778_p12 = scmp.ge.s32.totalorder %s9886_s30, 2 }
0x11e4   : > { %s7944_s21 = scalar_lea.sflag [#allocation4], %s7943_s2 }
0x11e5   : > { %p9580_p13 = pnand %p17778_p12, %p9979_p6 }
0x11e7   : > { %p9581_p0 = pneg %p9580_p13 }
0x11e9   : > { %9869 = dma.done.wait (%p9581_p0), %s7944_s21, 16384  }
0x11ea   : > { %9871 = vsyncadd (%p9581_p0), %s7944_s21, 4294950912  ;;  %s17779_s22 = sld [smem:[#allocation17_spill]]  ;;  %p25_p3 = scmp.ge.s32.totalorder %s10016_s24, 4  }
0x11eb   : > { %s17780_s29 = sld [smem:[#allocation18_spill]]  ;;  %s17781_s27 = smov %s9878_s28 }
0x11ec   : > { %s17783_s30 = smov %s10016_s24  ;;  %27 = sbr.rel (!%p25_p3) target bundleno = 13 (0xd), region = 128 }
0x11f0   : > { %s17782_s28 = smov %s17779_s22 }
0x11f1   :  { %7950 = vsyncpa [#allocation3], 1 }
0x11f2   :  { %7952 = vsyncpa [#allocation3 + $0x1], 1 }
0x11f3   :  { %7953 = vsyncpa [#allocation6], 1 }
0x11f4   :  { %7955 = vsyncpa [#allocation6 + $0x1], 1 }
0x11f5   :  { %7956 = vsyncpa [#allocation9], 1 }
0x11f6   :  { %7957 = vsyncpa [#allocation4], 1 }
0x11f7   :  { %7959 = vsyncpa [#allocation4 + $0x1], 1 }

</bundles_post_ra>
